<compile_context>
chip_gen: v6e
topology: v6e:2x2x1
jax: 0.10.0
libtpu: 0.0.40
codegen_flags: <defaults>
</compile_context>

<pallas_src>
import math

import jax
import jax.numpy as jnp
from jax import lax
from jax.experimental import pallas as pl
from jax.experimental.pallas import tpu as pltpu


def _round_up(x, m):
    return ((x + m - 1) // m) * m


def _conv_vmem_bytes(td, *, nph, qd, ph2, pw2, c, oc, oh, ow, ntaps, in_isz, out_isz):
    """Conservative per-step VMEM working set (accounts for (8,128) layout padding)."""
    lane, sub = 128, 8
    c_l = _round_up(c, lane)
    oc_l = _round_up(oc, lane)
    sd_t = td + qd + 1
    rows = nph * sd_t * ph2 * pw2
    r_fat = td * ph2 * pw2
    in_block = rows * c_l * in_isz                                   # input slab
    out_block = td * oh * _round_up(ow, sub) * oc_l * out_isz        # output tile
    w_block = ntaps * _round_up(c, sub) * oc_l * in_isz              # resident weight
    acc = r_fat * oc_l * 4                                           # f32 accumulator
    temps = r_fat * c_l * in_isz + r_fat * oc_l * 4                  # live tap slice + dot
    return 2 * in_block + 2 * out_block + 2 * w_block + acc + temps


def _make_conv_kernel(offsets, r_fat, td, ph2, pw2, oh, ow, oc):
    """In-kernel im2col: accumulate one K=C matmul per kernel tap into an f32 value."""

    def kernel(x_ref, w_ref, o_ref):
        # x_ref: (1, 1, ROWS, C)  flat phase-stacked input slab for this (batch, depth tile)
        # w_ref: (NTAPS, C, OC)   resident weight (constant block index -> DMA'd once)
        # o_ref: (1, TD, OH, OW, OC)
        acc = None
        for t, off in enumerate(offsets):
            xt = x_ref[0, 0, off:off + r_fat, :]                       # shifted window [R,C]
            part = jnp.dot(xt, w_ref[t], preferred_element_type=jnp.float32)
            acc = part if acc is None else acc + part
        # drop the halo ("fat") rows/cols that only exist to keep tap windows contiguous
        out = acc.reshape(td, ph2, pw2, oc)[:, :oh, :ow, :]
        o_ref[0] = out.astype(o_ref.dtype)

    return kernel


class Conv3dStaticSamePadding:
    """JAX/Pallas port of the PyTorch Conv3dStaticSamePadding module (groups=1, no bias)."""

    def __init__(self, in_channels, out_channels, kernel_size, stride=1,
                 bias=False, groups=1, dilation=1, *, key, use_bf16=True, **kwargs):
        assert groups == 1, "only groups=1 supported"
        assert not bias, "only bias=False supported"

        def _triple(v):
            if isinstance(v, int):
                return [v] * 3
            v = list(v)
            if len(v) == 1:
                return [v[0]] * 3
            assert len(v) == 3
            return v

        self.kernel_size = _triple(kernel_size)
        self.stride = _triple(stride)
        self.in_channels = in_channels
        self.out_channels = out_channels
        self.use_bf16 = use_bf16

        kd, kh, kw = self.kernel_size
        fan_in = in_channels * kd * kh * kw
        bound = 1.0 / math.sqrt(fan_in)
        self.weight = jax.random.uniform(
            key, (out_channels, in_channels, kd, kh, kw),
            minval=-bound, maxval=bound, dtype=jnp.float32)

    @staticmethod
    def _same_pad(size, stride, k):
        extra = (math.ceil(size / stride) - 1) * stride - size + k
        lo = extra // 2          # Python floor-div, matches the PyTorch module exactly
        return lo, extra - lo

    def __call__(self, x):
        n, c, d, h, w = x.shape
        sd, sh, sw = self.stride
        kd, kh, kw = self.kernel_size
        oc = self.out_channels
        out_dtype = x.dtype
        cdt = jnp.bfloat16 if self.use_bf16 else x.dtype
        in_isz = jnp.dtype(cdt).itemsize
        out_isz = jnp.dtype(out_dtype).itemsize

        # ---- geometry: TF "same" output sizes, stride phases, halo extents ---------------
        od, oh, ow = -(-d // sd), -(-h // sh), -(-w // sw)
        qd, qh, qw = (kd - 1) // sd, (kh - 1) // sh, (kw - 1) // sw   # per-axis halo (quotients)
        spd, sph, spw = min(sd, kd), min(sh, kh), min(sw, kw)         # phases actually used
        nph = spd * sph * spw
        ntaps = kd * kh * kw
        ph2 = oh + qh                              # fat H extent per phase
        pw2 = _round_up(ow + qw, 8)                # fat W extent, 8-aligned for cheap reshapes
        pd2 = od + qd + 1                          # phase depth extent (+1 overflow guard)
        dp2, hp2, wp2 = pd2 * sd, ph2 * sh, pw2 * sw

        # ---- padding: TF "same" low pads, then extend high side for phases/halo ----------
        front, _ = self._same_pad(d, sd, kd)
        top, _ = self._same_pad(h, sh, kh)
        left, _ = self._same_pad(w, sw, kw)
        back, bottom, right = dp2 - d - front, hp2 - h - top, wp2 - w - left
        xq = x.astype(cdt)                         # bf16 operands by default (f32 accum)
        x_pad = lax.pad(xq, jnp.zeros((), cdt),
                        ((0, 0, 0), (0, 0, 0),
                         (front, back, 0), (top, bottom, 0), (left, right, 0)))

        # ---- depth-tile selection under a VMEM budget (TD always divides OD) -------------
        budget = 36 * 1024 * 1024                  # working-set target, safe on v7x 64MiB/TC
        def ws(td_):
            return _conv_vmem_bytes(td_, nph=nph, qd=qd, ph2=ph2, pw2=pw2, c=c, oc=oc,
                                    oh=oh, ow=ow, ntaps=ntaps, in_isz=in_isz, out_isz=out_isz)
        td = 1
        for cand in range(od, 0, -1):
            if od % cand == 0 and ws(cand) <= budget:
                td = cand
                break
        n_dt = od // td
        sd_t = td + qd + 1
        seg = sd_t * ph2 * pw2
        plane = ph2 * pw2
        rows = nph * seg
        r_fat = td * plane

        # ---- build the phase-split, depth-tiled, channels-last input view (single pass) --
        # cols[b, t, ((p*SD_T + dq)*PH2 + hq)*PW2 + wq, ch] =
        #     x_pad[b, ch, (t*TD + dq)*sd + pd, hq*sh + ph, wq*sw + pw],  p=(pd*sph+ph)*spw+pw
        x6 = x_pad.reshape(n, c, pd2, sd, ph2, sh, pw2, sw)
        x6 = x6[:, :, :, :spd, :, :sph, :, :spw]
        wins = [x6[:, :, t * td: t * td + sd_t] for t in range(n_dt)]
        xw = jnp.stack(wins, axis=2)               # [n, c, n_dt, sd_t, spd, ph2, sph, pw2, spw]
        xw = jnp.transpose(xw, (0, 2, 4, 6, 8, 3, 5, 7, 1))
        cols = xw.reshape(n, n_dt, rows, c)

        # weight [OC, C, KD, KH, KW] -> per-tap [NTAPS, C, OC] matching tap enumeration order
        w_taps = jnp.transpose(self.weight, (2, 3, 4, 1, 0)).reshape(ntaps, c, oc).astype(cdt)

        # static per-tap row offsets into the flat slab
        offsets = []
        for i in range(kd):
            for j in range(kh):
                for k in range(kw):
                    p = ((i % sd) * sph + (j % sh)) * spw + (k % sw)
                    offsets.append(p * seg + (i // sd) * plane + (j // sh) * pw2 + (k // sw))

        kernel = _make_conv_kernel(tuple(offsets), r_fat, td, ph2, pw2, oh, ow, oc)
        vmem_limit = int(min(max(32 * 1024 * 1024, int(ws(td) * 1.4)), 110 * 1024 * 1024))

        out_cl = pl.pallas_call(
            kernel,
            out_shape=jax.ShapeDtypeStruct((n, od, oh, ow, oc), out_dtype),
            grid_spec=pltpu.PrefetchScalarGridSpec(
                num_scalar_prefetch=0,
                grid=(n, n_dt),
                in_specs=[
                    pl.BlockSpec((1, 1, rows, c), lambda b, t: (b, t, 0, 0)),
                    # resident weight: constant block index -> fetched once, reused everywhere
                    pl.BlockSpec((ntaps, c, oc), lambda b, t: (0, 0, 0)),
                ],
                out_specs=pl.BlockSpec((1, td, oh, ow, oc), lambda b, t: (b, t, 0, 0, 0)),
            ),
            compiler_params=pltpu.CompilerParams(
                dimension_semantics=("parallel", "parallel"),
                vmem_limit_bytes=vmem_limit),
        )(cols, w_taps)

        # channels-last [N, OD, OH, OW, OC] -> NCDHW
        return jnp.transpose(out_cl, (0, 4, 1, 2, 3))


def _reference_conv(x, weight, stride, k):
    """Pure-JAX reference: identical per-axis TF 'same' padding + VALID strided 3-D conv."""
    pads = []
    for size in x.shape[-3:]:
        extra = (math.ceil(size / stride) - 1) * stride - size + k
        lo = extra // 2
        pads.append((lo, extra - lo, 0))
    x_pad = lax.pad(x, jnp.zeros((), x.dtype), ((0, 0, 0), (0, 0, 0)) + tuple(pads))
    return lax.conv_general_dilated(
        x_pad, weight, window_strides=(stride,) * 3, padding="VALID",
        dimension_numbers=("NCDHW", "OIDHW", "NCDHW"))


if __name__ == "__main__":
    key = jax.random.PRNGKey(0)
    kx, kw_key, kx2, kw2 = jax.random.split(key, 4)

    # case 1: stride 2, non-cubic spatial dims (exercises phase split + per-axis padding)
    N, C, D, H, W = 2, 4, 8, 16, 12
    OC, K, STRIDE = 8, 3, 2
    x = jax.random.normal(kx, (N, C, D, H, W), dtype=jnp.float32)

    mod_f32 = Conv3dStaticSamePadding(C, OC, K, stride=STRIDE, key=kw_key, use_bf16=False)
    out_f32 = jax.block_until_ready(mod_f32(x))
    ref = _reference_conv(x, mod_f32.weight, STRIDE, K)
    assert out_f32.shape == ref.shape, (out_f32.shape, ref.shape)
    assert jnp.allclose(out_f32, ref, atol=1e-4, rtol=1e-4), \
        float(jnp.max(jnp.abs(out_f32 - ref)))

    mod_bf16 = Conv3dStaticSamePadding(C, OC, K, stride=STRIDE, key=kw_key, use_bf16=True)
    out_bf16 = jax.block_until_ready(mod_bf16(x))
    assert jnp.allclose(out_bf16, ref, atol=6e-2, rtol=6e-2), \
        float(jnp.max(jnp.abs(out_bf16 - ref)))

    # case 2: stride 1 (single phase, full depth resident), odd spatial sizes
    x2 = jax.random.normal(kx2, (1, 4, 6, 10, 9), dtype=jnp.float32)
    mod_s1 = Conv3dStaticSamePadding(4, 8, 3, stride=1, key=kw2, use_bf16=False)
    out_s1 = jax.block_until_ready(mod_s1(x2))
    ref_s1 = _reference_conv(x2, mod_s1.weight, 1, 3)
    assert out_s1.shape == ref_s1.shape, (out_s1.shape, ref_s1.shape)
    assert jnp.allclose(out_s1, ref_s1, atol=1e-4, rtol=1e-4), \
        float(jnp.max(jnp.abs(out_s1 - ref_s1)))

    print("KERNEL_OK")
</pallas_src>

<mosaic_0001>
module attributes {stable_mosaic.version = 11 : i64} {
  func.func @kernel(%arg0: i32, %arg1: i32, %arg2: memref<1x1x3456x4xf32, #tpu.memory_space<vmem>>, %arg3: memref<27x4x8xf32, #tpu.memory_space<vmem>>, %arg4: memref<1x4x8x6x8xf32, #tpu.memory_space<vmem>>) attributes {dimension_semantics = [#tpu.dimension_semantics<parallel>, #tpu.dimension_semantics<parallel>], iteration_bounds = array<i64: 2, 1>, scalar_prefetch = 0 : i64, scratch_operands = 0 : i64, tpu.core_type = #tpu.core_type<tc>, window_params = [{transform_indices = @transform_0, window_bounds = array<i64: 1, 1, 3456, 4>}, {pipeline_mode = #tpu.pipeline_mode<synchronous>, transform_indices = @transform_1, window_bounds = array<i64: 27, 4, 8>}, {transform_indices = @transform_2, window_bounds = array<i64: 1, 4, 8, 6, 8>}]} {
    %c0 = arith.constant 0 : index
    %c0_0 = arith.constant 0 : index
    %c0_1 = arith.constant 0 : index
    %c0_2 = arith.constant 0 : index
    %0 = vector.load %arg2[%c0, %c0_0, %c0_1, %c0_2] : memref<1x1x3456x4xf32, #tpu.memory_space<vmem>>, vector<1x1x288x4xf32>
    %1 = vector.shape_cast %0 : vector<1x1x288x4xf32> to vector<288x4xf32>
    %c0_3 = arith.constant 0 : index
    %c0_4 = arith.constant 0 : index
    %c0_5 = arith.constant 0 : index
    %2 = vector.load %arg3[%c0_3, %c0_4, %c0_5] : memref<27x4x8xf32, #tpu.memory_space<vmem>>, vector<1x4x8xf32>
    %3 = vector.shape_cast %2 : vector<1x4x8xf32> to vector<4x8xf32>
    %cst = arith.constant dense<0.000000e+00> : vector<288x8xf32>
    %4 = tpu.matmul %1, %3, %cst {dimension_numbers = #tpu.dot_dimension_numbers<[1], [0], [0], [1], [0, 0, 1, 1], [], []>} : vector<288x4xf32>, vector<4x8xf32>, vector<288x8xf32> -> vector<288x8xf32>
    %c0_6 = arith.constant 0 : index
    %c0_7 = arith.constant 0 : index
    %c432 = arith.constant 432 : index
    %c0_8 = arith.constant 0 : index
    %5 = vector.load %arg2[%c0_6, %c0_7, %c432, %c0_8] : memref<1x1x3456x4xf32, #tpu.memory_space<vmem>>, vector<1x1x288x4xf32>
    %6 = vector.shape_cast %5 : vector<1x1x288x4xf32> to vector<288x4xf32>
    %c1 = arith.constant 1 : index
    %c0_9 = arith.constant 0 : index
    %c0_10 = arith.constant 0 : index
    %7 = vector.load %arg3[%c1, %c0_9, %c0_10] : memref<27x4x8xf32, #tpu.memory_space<vmem>>, vector<1x4x8xf32>
    %8 = vector.shape_cast %7 : vector<1x4x8xf32> to vector<4x8xf32>
    %cst_11 = arith.constant dense<0.000000e+00> : vector<288x8xf32>
    %9 = tpu.matmul %6, %8, %cst_11 {dimension_numbers = #tpu.dot_dimension_numbers<[1], [0], [0], [1], [0, 0, 1, 1], [], []>} : vector<288x4xf32>, vector<4x8xf32>, vector<288x8xf32> -> vector<288x8xf32>
    %10 = arith.addf %4, %9 : vector<288x8xf32>
    %c0_12 = arith.constant 0 : index
    %c0_13 = arith.constant 0 : index
    %c1_14 = arith.constant 1 : index
    %c0_15 = arith.constant 0 : index
    %11 = vector.load %arg2[%c0_12, %c0_13, %c1_14, %c0_15] : memref<1x1x3456x4xf32, #tpu.memory_space<vmem>>, vector<1x1x288x4xf32>
    %12 = vector.shape_cast %11 : vector<1x1x288x4xf32> to vector<288x4xf32>
    %c2 = arith.constant 2 : index
    %c0_16 = arith.constant 0 : index
    %c0_17 = arith.constant 0 : index
    %13 = vector.load %arg3[%c2, %c0_16, %c0_17] : memref<27x4x8xf32, #tpu.memory_space<vmem>>, vector<1x4x8xf32>
    %14 = vector.shape_cast %13 : vector<1x4x8xf32> to vector<4x8xf32>
    %cst_18 = arith.constant dense<0.000000e+00> : vector<288x8xf32>
    %15 = tpu.matmul %12, %14, %cst_18 {dimension_numbers = #tpu.dot_dimension_numbers<[1], [0], [0], [1], [0, 0, 1, 1], [], []>} : vector<288x4xf32>, vector<4x8xf32>, vector<288x8xf32> -> vector<288x8xf32>
    %16 = arith.addf %10, %15 : vector<288x8xf32>
    %c0_19 = arith.constant 0 : index
    %c0_20 = arith.constant 0 : index
    %c864 = arith.constant 864 : index
    %c0_21 = arith.constant 0 : index
    %17 = vector.load %arg2[%c0_19, %c0_20, %c864, %c0_21] : memref<1x1x3456x4xf32, #tpu.memory_space<vmem>>, vector<1x1x288x4xf32>
    %18 = vector.shape_cast %17 : vector<1x1x288x4xf32> to vector<288x4xf32>
    %c3 = arith.constant 3 : index
    %c0_22 = arith.constant 0 : index
    %c0_23 = arith.constant 0 : index
    %19 = vector.load %arg3[%c3, %c0_22, %c0_23] : memref<27x4x8xf32, #tpu.memory_space<vmem>>, vector<1x4x8xf32>
    %20 = vector.shape_cast %19 : vector<1x4x8xf32> to vector<4x8xf32>
    %cst_24 = arith.constant dense<0.000000e+00> : vector<288x8xf32>
    %21 = tpu.matmul %18, %20, %cst_24 {dimension_numbers = #tpu.dot_dimension_numbers<[1], [0], [0], [1], [0, 0, 1, 1], [], []>} : vector<288x4xf32>, vector<4x8xf32>, vector<288x8xf32> -> vector<288x8xf32>
    %22 = arith.addf %16, %21 : vector<288x8xf32>
    %c0_25 = arith.constant 0 : index
    %c0_26 = arith.constant 0 : index
    %c1296 = arith.constant 1296 : index
    %c0_27 = arith.constant 0 : index
    %23 = vector.load %arg2[%c0_25, %c0_26, %c1296, %c0_27] : memref<1x1x3456x4xf32, #tpu.memory_space<vmem>>, vector<1x1x288x4xf32>
    %24 = vector.shape_cast %23 : vector<1x1x288x4xf32> to vector<288x4xf32>
    %c4 = arith.constant 4 : index
    %c0_28 = arith.constant 0 : index
    %c0_29 = arith.constant 0 : index
    %25 = vector.load %arg3[%c4, %c0_28, %c0_29] : memref<27x4x8xf32, #tpu.memory_space<vmem>>, vector<1x4x8xf32>
    %26 = vector.shape_cast %25 : vector<1x4x8xf32> to vector<4x8xf32>
    %cst_30 = arith.constant dense<0.000000e+00> : vector<288x8xf32>
    %27 = tpu.matmul %24, %26, %cst_30 {dimension_numbers = #tpu.dot_dimension_numbers<[1], [0], [0], [1], [0, 0, 1, 1], [], []>} : vector<288x4xf32>, vector<4x8xf32>, vector<288x8xf32> -> vector<288x8xf32>
    %28 = arith.addf %22, %27 : vector<288x8xf32>
    %c0_31 = arith.constant 0 : index
    %c0_32 = arith.constant 0 : index
    %c865 = arith.constant 865 : index
    %c0_33 = arith.constant 0 : index
    %29 = vector.load %arg2[%c0_31, %c0_32, %c865, %c0_33] : memref<1x1x3456x4xf32, #tpu.memory_space<vmem>>, vector<1x1x288x4xf32>
    %30 = vector.shape_cast %29 : vector<1x1x288x4xf32> to vector<288x4xf32>
    %c5 = arith.constant 5 : index
    %c0_34 = arith.constant 0 : index
    %c0_35 = arith.constant 0 : index
    %31 = vector.load %arg3[%c5, %c0_34, %c0_35] : memref<27x4x8xf32, #tpu.memory_space<vmem>>, vector<1x4x8xf32>
    %32 = vector.shape_cast %31 : vector<1x4x8xf32> to vector<4x8xf32>
    %cst_36 = arith.constant dense<0.000000e+00> : vector<288x8xf32>
    %33 = tpu.matmul %30, %32, %cst_36 {dimension_numbers = #tpu.dot_dimension_numbers<[1], [0], [0], [1], [0, 0, 1, 1], [], []>} : vector<288x4xf32>, vector<4x8xf32>, vector<288x8xf32> -> vector<288x8xf32>
    %34 = arith.addf %28, %33 : vector<288x8xf32>
    %c0_37 = arith.constant 0 : index
    %c0_38 = arith.constant 0 : index
    %c8 = arith.constant 8 : index
    %c0_39 = arith.constant 0 : index
    %35 = vector.load %arg2[%c0_37, %c0_38, %c8, %c0_39] : memref<1x1x3456x4xf32, #tpu.memory_space<vmem>>, vector<1x1x288x4xf32>
    %36 = vector.shape_cast %35 : vector<1x1x288x4xf32> to vector<288x4xf32>
    %c6 = arith.constant 6 : index
    %c0_40 = arith.constant 0 : index
    %c0_41 = arith.constant 0 : index
    %37 = vector.load %arg3[%c6, %c0_40, %c0_41] : memref<27x4x8xf32, #tpu.memory_space<vmem>>, vector<1x4x8xf32>
    %38 = vector.shape_cast %37 : vector<1x4x8xf32> to vector<4x8xf32>
    %cst_42 = arith.constant dense<0.000000e+00> : vector<288x8xf32>
    %39 = tpu.matmul %36, %38, %cst_42 {dimension_numbers = #tpu.dot_dimension_numbers<[1], [0], [0], [1], [0, 0, 1, 1], [], []>} : vector<288x4xf32>, vector<4x8xf32>, vector<288x8xf32> -> vector<288x8xf32>
    %40 = arith.addf %34, %39 : vector<288x8xf32>
    %c0_43 = arith.constant 0 : index
    %c0_44 = arith.constant 0 : index
    %c440 = arith.constant 440 : index
    %c0_45 = arith.constant 0 : index
    %41 = vector.load %arg2[%c0_43, %c0_44, %c440, %c0_45] : memref<1x1x3456x4xf32, #tpu.memory_space<vmem>>, vector<1x1x288x4xf32>
    %42 = vector.shape_cast %41 : vector<1x1x288x4xf32> to vector<288x4xf32>
    %c7 = arith.constant 7 : index
    %c0_46 = arith.constant 0 : index
    %c0_47 = arith.constant 0 : index
    %43 = vector.load %arg3[%c7, %c0_46, %c0_47] : memref<27x4x8xf32, #tpu.memory_space<vmem>>, vector<1x4x8xf32>
    %44 = vector.shape_cast %43 : vector<1x4x8xf32> to vector<4x8xf32>
    %cst_48 = arith.constant dense<0.000000e+00> : vector<288x8xf32>
    %45 = tpu.matmul %42, %44, %cst_48 {dimension_numbers = #tpu.dot_dimension_numbers<[1], [0], [0], [1], [0, 0, 1, 1], [], []>} : vector<288x4xf32>, vector<4x8xf32>, vector<288x8xf32> -> vector<288x8xf32>
    %46 = arith.addf %40, %45 : vector<288x8xf32>
    %c0_49 = arith.constant 0 : index
    %c0_50 = arith.constant 0 : index
    %c9 = arith.constant 9 : index
    %c0_51 = arith.constant 0 : index
    %47 = vector.load %arg2[%c0_49, %c0_50, %c9, %c0_51] : memref<1x1x3456x4xf32, #tpu.memory_space<vmem>>, vector<1x1x288x4xf32>
    %48 = vector.shape_cast %47 : vector<1x1x288x4xf32> to vector<288x4xf32>
    %c8_52 = arith.constant 8 : index
    %c0_53 = arith.constant 0 : index
    %c0_54 = arith.constant 0 : index
    %49 = vector.load %arg3[%c8_52, %c0_53, %c0_54] : memref<27x4x8xf32, #tpu.memory_space<vmem>>, vector<1x4x8xf32>
    %50 = vector.shape_cast %49 : vector<1x4x8xf32> to vector<4x8xf32>
    %cst_55 = arith.constant dense<0.000000e+00> : vector<288x8xf32>
    %51 = tpu.matmul %48, %50, %cst_55 {dimension_numbers = #tpu.dot_dimension_numbers<[1], [0], [0], [1], [0, 0, 1, 1], [], []>} : vector<288x4xf32>, vector<4x8xf32>, vector<288x8xf32> -> vector<288x8xf32>
    %52 = arith.addf %46, %51 : vector<288x8xf32>
    %c0_56 = arith.constant 0 : index
    %c0_57 = arith.constant 0 : index
    %c1728 = arith.constant 1728 : index
    %c0_58 = arith.constant 0 : index
    %53 = vector.load %arg2[%c0_56, %c0_57, %c1728, %c0_58] : memref<1x1x3456x4xf32, #tpu.memory_space<vmem>>, vector<1x1x288x4xf32>
    %54 = vector.shape_cast %53 : vector<1x1x288x4xf32> to vector<288x4xf32>
    %c9_59 = arith.constant 9 : index
    %c0_60 = arith.constant 0 : index
    %c0_61 = arith.constant 0 : index
    %55 = vector.load %arg3[%c9_59, %c0_60, %c0_61] : memref<27x4x8xf32, #tpu.memory_space<vmem>>, vector<1x4x8xf32>
    %56 = vector.shape_cast %55 : vector<1x4x8xf32> to vector<4x8xf32>
    %cst_62 = arith.constant dense<0.000000e+00> : vector<288x8xf32>
    %57 = tpu.matmul %54, %56, %cst_62 {dimension_numbers = #tpu.dot_dimension_numbers<[1], [0], [0], [1], [0, 0, 1, 1], [], []>} : vector<288x4xf32>, vector<4x8xf32>, vector<288x8xf32> -> vector<288x8xf32>
    %58 = arith.addf %52, %57 : vector<288x8xf32>
    %c0_63 = arith.constant 0 : index
    %c0_64 = arith.constant 0 : index
    %c2160 = arith.constant 2160 : index
    %c0_65 = arith.constant 0 : index
    %59 = vector.load %arg2[%c0_63, %c0_64, %c2160, %c0_65] : memref<1x1x3456x4xf32, #tpu.memory_space<vmem>>, vector<1x1x288x4xf32>
    %60 = vector.shape_cast %59 : vector<1x1x288x4xf32> to vector<288x4xf32>
    %c10 = arith.constant 10 : index
    %c0_66 = arith.constant 0 : index
    %c0_67 = arith.constant 0 : index
    %61 = vector.load %arg3[%c10, %c0_66, %c0_67] : memref<27x4x8xf32, #tpu.memory_space<vmem>>, vector<1x4x8xf32>
    %62 = vector.shape_cast %61 : vector<1x4x8xf32> to vector<4x8xf32>
    %cst_68 = arith.constant dense<0.000000e+00> : vector<288x8xf32>
    %63 = tpu.matmul %60, %62, %cst_68 {dimension_numbers = #tpu.dot_dimension_numbers<[1], [0], [0], [1], [0, 0, 1, 1], [], []>} : vector<288x4xf32>, vector<4x8xf32>, vector<288x8xf32> -> vector<288x8xf32>
    %64 = arith.addf %58, %63 : vector<288x8xf32>
    %c0_69 = arith.constant 0 : index
    %c0_70 = arith.constant 0 : index
    %c1729 = arith.constant 1729 : index
    %c0_71 = arith.constant 0 : index
    %65 = vector.load %arg2[%c0_69, %c0_70, %c1729, %c0_71] : memref<1x1x3456x4xf32, #tpu.memory_space<vmem>>, vector<1x1x288x4xf32>
    %66 = vector.shape_cast %65 : vector<1x1x288x4xf32> to vector<288x4xf32>
    %c11 = arith.constant 11 : index
    %c0_72 = arith.constant 0 : index
    %c0_73 = arith.constant 0 : index
    %67 = vector.load %arg3[%c11, %c0_72, %c0_73] : memref<27x4x8xf32, #tpu.memory_space<vmem>>, vector<1x4x8xf32>
    %68 = vector.shape_cast %67 : vector<1x4x8xf32> to vector<4x8xf32>
    %cst_74 = arith.constant dense<0.000000e+00> : vector<288x8xf32>
    %69 = tpu.matmul %66, %68, %cst_74 {dimension_numbers = #tpu.dot_dimension_numbers<[1], [0], [0], [1], [0, 0, 1, 1], [], []>} : vector<288x4xf32>, vector<4x8xf32>, vector<288x8xf32> -> vector<288x8xf32>
    %70 = arith.addf %64, %69 : vector<288x8xf32>
    %c0_75 = arith.constant 0 : index
    %c0_76 = arith.constant 0 : index
    %c2592 = arith.constant 2592 : index
    %c0_77 = arith.constant 0 : index
    %71 = vector.load %arg2[%c0_75, %c0_76, %c2592, %c0_77] : memref<1x1x3456x4xf32, #tpu.memory_space<vmem>>, vector<1x1x288x4xf32>
    %72 = vector.shape_cast %71 : vector<1x1x288x4xf32> to vector<288x4xf32>
    %c12 = arith.constant 12 : index
    %c0_78 = arith.constant 0 : index
    %c0_79 = arith.constant 0 : index
    %73 = vector.load %arg3[%c12, %c0_78, %c0_79] : memref<27x4x8xf32, #tpu.memory_space<vmem>>, vector<1x4x8xf32>
    %74 = vector.shape_cast %73 : vector<1x4x8xf32> to vector<4x8xf32>
    %cst_80 = arith.constant dense<0.000000e+00> : vector<288x8xf32>
    %75 = tpu.matmul %72, %74, %cst_80 {dimension_numbers = #tpu.dot_dimension_numbers<[1], [0], [0], [1], [0, 0, 1, 1], [], []>} : vector<288x4xf32>, vector<4x8xf32>, vector<288x8xf32> -> vector<288x8xf32>
    %76 = arith.addf %70, %75 : vector<288x8xf32>
    %c0_81 = arith.constant 0 : index
    %c0_82 = arith.constant 0 : index
    %c3024 = arith.constant 3024 : index
    %c0_83 = arith.constant 0 : index
    %77 = vector.load %arg2[%c0_81, %c0_82, %c3024, %c0_83] : memref<1x1x3456x4xf32, #tpu.memory_space<vmem>>, vector<1x1x288x4xf32>
    %78 = vector.shape_cast %77 : vector<1x1x288x4xf32> to vector<288x4xf32>
    %c13 = arith.constant 13 : index
    %c0_84 = arith.constant 0 : index
    %c0_85 = arith.constant 0 : index
    %79 = vector.load %arg3[%c13, %c0_84, %c0_85] : memref<27x4x8xf32, #tpu.memory_space<vmem>>, vector<1x4x8xf32>
    %80 = vector.shape_cast %79 : vector<1x4x8xf32> to vector<4x8xf32>
    %cst_86 = arith.constant dense<0.000000e+00> : vector<288x8xf32>
    %81 = tpu.matmul %78, %80, %cst_86 {dimension_numbers = #tpu.dot_dimension_numbers<[1], [0], [0], [1], [0, 0, 1, 1], [], []>} : vector<288x4xf32>, vector<4x8xf32>, vector<288x8xf32> -> vector<288x8xf32>
    %82 = arith.addf %76, %81 : vector<288x8xf32>
    %c0_87 = arith.constant 0 : index
    %c0_88 = arith.constant 0 : index
    %c2593 = arith.constant 2593 : index
    %c0_89 = arith.constant 0 : index
    %83 = vector.load %arg2[%c0_87, %c0_88, %c2593, %c0_89] : memref<1x1x3456x4xf32, #tpu.memory_space<vmem>>, vector<1x1x288x4xf32>
    %84 = vector.shape_cast %83 : vector<1x1x288x4xf32> to vector<288x4xf32>
    %c14 = arith.constant 14 : index
    %c0_90 = arith.constant 0 : index
    %c0_91 = arith.constant 0 : index
    %85 = vector.load %arg3[%c14, %c0_90, %c0_91] : memref<27x4x8xf32, #tpu.memory_space<vmem>>, vector<1x4x8xf32>
    %86 = vector.shape_cast %85 : vector<1x4x8xf32> to vector<4x8xf32>
    %cst_92 = arith.constant dense<0.000000e+00> : vector<288x8xf32>
    %87 = tpu.matmul %84, %86, %cst_92 {dimension_numbers = #tpu.dot_dimension_numbers<[1], [0], [0], [1], [0, 0, 1, 1], [], []>} : vector<288x4xf32>, vector<4x8xf32>, vector<288x8xf32> -> vector<288x8xf32>
    %88 = arith.addf %82, %87 : vector<288x8xf32>
    %c0_93 = arith.constant 0 : index
    %c0_94 = arith.constant 0 : index
    %c1736 = arith.constant 1736 : index
    %c0_95 = arith.constant 0 : index
    %89 = vector.load %arg2[%c0_93, %c0_94, %c1736, %c0_95] : memref<1x1x3456x4xf32, #tpu.memory_space<vmem>>, vector<1x1x288x4xf32>
    %90 = vector.shape_cast %89 : vector<1x1x288x4xf32> to vector<288x4xf32>
    %c15 = arith.constant 15 : index
    %c0_96 = arith.constant 0 : index
    %c0_97 = arith.constant 0 : index
    %91 = vector.load %arg3[%c15, %c0_96, %c0_97] : memref<27x4x8xf32, #tpu.memory_space<vmem>>, vector<1x4x8xf32>
    %92 = vector.shape_cast %91 : vector<1x4x8xf32> to vector<4x8xf32>
    %cst_98 = arith.constant dense<0.000000e+00> : vector<288x8xf32>
    %93 = tpu.matmul %90, %92, %cst_98 {dimension_numbers = #tpu.dot_dimension_numbers<[1], [0], [0], [1], [0, 0, 1, 1], [], []>} : vector<288x4xf32>, vector<4x8xf32>, vector<288x8xf32> -> vector<288x8xf32>
    %94 = arith.addf %88, %93 : vector<288x8xf32>
    %c0_99 = arith.constant 0 : index
    %c0_100 = arith.constant 0 : index
    %c2168 = arith.constant 2168 : index
    %c0_101 = arith.constant 0 : index
    %95 = vector.load %arg2[%c0_99, %c0_100, %c2168, %c0_101] : memref<1x1x3456x4xf32, #tpu.memory_space<vmem>>, vector<1x1x288x4xf32>
    %96 = vector.shape_cast %95 : vector<1x1x288x4xf32> to vector<288x4xf32>
    %c16 = arith.constant 16 : index
    %c0_102 = arith.constant 0 : index
    %c0_103 = arith.constant 0 : index
    %97 = vector.load %arg3[%c16, %c0_102, %c0_103] : memref<27x4x8xf32, #tpu.memory_space<vmem>>, vector<1x4x8xf32>
    %98 = vector.shape_cast %97 : vector<1x4x8xf32> to vector<4x8xf32>
    %cst_104 = arith.constant dense<0.000000e+00> : vector<288x8xf32>
    %99 = tpu.matmul %96, %98, %cst_104 {dimension_numbers = #tpu.dot_dimension_numbers<[1], [0], [0], [1], [0, 0, 1, 1], [], []>} : vector<288x4xf32>, vector<4x8xf32>, vector<288x8xf32> -> vector<288x8xf32>
    %100 = arith.addf %94, %99 : vector<288x8xf32>
    %c0_105 = arith.constant 0 : index
    %c0_106 = arith.constant 0 : index
    %c1737 = arith.constant 1737 : index
    %c0_107 = arith.constant 0 : index
    %101 = vector.load %arg2[%c0_105, %c0_106, %c1737, %c0_107] : memref<1x1x3456x4xf32, #tpu.memory_space<vmem>>, vector<1x1x288x4xf32>
    %102 = vector.shape_cast %101 : vector<1x1x288x4xf32> to vector<288x4xf32>
    %c17 = arith.constant 17 : index
    %c0_108 = arith.constant 0 : index
    %c0_109 = arith.constant 0 : index
    %103 = vector.load %arg3[%c17, %c0_108, %c0_109] : memref<27x4x8xf32, #tpu.memory_space<vmem>>, vector<1x4x8xf32>
    %104 = vector.shape_cast %103 : vector<1x4x8xf32> to vector<4x8xf32>
    %cst_110 = arith.constant dense<0.000000e+00> : vector<288x8xf32>
    %105 = tpu.matmul %102, %104, %cst_110 {dimension_numbers = #tpu.dot_dimension_numbers<[1], [0], [0], [1], [0, 0, 1, 1], [], []>} : vector<288x4xf32>, vector<4x8xf32>, vector<288x8xf32> -> vector<288x8xf32>
    %106 = arith.addf %100, %105 : vector<288x8xf32>
    %c0_111 = arith.constant 0 : index
    %c0_112 = arith.constant 0 : index
    %c72 = arith.constant 72 : index
    %c0_113 = arith.constant 0 : index
    %107 = vector.load %arg2[%c0_111, %c0_112, %c72, %c0_113] : memref<1x1x3456x4xf32, #tpu.memory_space<vmem>>, vector<1x1x288x4xf32>
    %108 = vector.shape_cast %107 : vector<1x1x288x4xf32> to vector<288x4xf32>
    %c18 = arith.constant 18 : index
    %c0_114 = arith.constant 0 : index
    %c0_115 = arith.constant 0 : index
    %109 = vector.load %arg3[%c18, %c0_114, %c0_115] : memref<27x4x8xf32, #tpu.memory_space<vmem>>, vector<1x4x8xf32>
    %110 = vector.shape_cast %109 : vector<1x4x8xf32> to vector<4x8xf32>
    %cst_116 = arith.constant dense<0.000000e+00> : vector<288x8xf32>
    %111 = tpu.matmul %108, %110, %cst_116 {dimension_numbers = #tpu.dot_dimension_numbers<[1], [0], [0], [1], [0, 0, 1, 1], [], []>} : vector<288x4xf32>, vector<4x8xf32>, vector<288x8xf32> -> vector<288x8xf32>
    %112 = arith.addf %106, %111 : vector<288x8xf32>
    %c0_117 = arith.constant 0 : index
    %c0_118 = arith.constant 0 : index
    %c504 = arith.constant 504 : index
    %c0_119 = arith.constant 0 : index
    %113 = vector.load %arg2[%c0_117, %c0_118, %c504, %c0_119] : memref<1x1x3456x4xf32, #tpu.memory_space<vmem>>, vector<1x1x288x4xf32>
    %114 = vector.shape_cast %113 : vector<1x1x288x4xf32> to vector<288x4xf32>
    %c19 = arith.constant 19 : index
    %c0_120 = arith.constant 0 : index
    %c0_121 = arith.constant 0 : index
    %115 = vector.load %arg3[%c19, %c0_120, %c0_121] : memref<27x4x8xf32, #tpu.memory_space<vmem>>, vector<1x4x8xf32>
    %116 = vector.shape_cast %115 : vector<1x4x8xf32> to vector<4x8xf32>
    %cst_122 = arith.constant dense<0.000000e+00> : vector<288x8xf32>
    %117 = tpu.matmul %114, %116, %cst_122 {dimension_numbers = #tpu.dot_dimension_numbers<[1], [0], [0], [1], [0, 0, 1, 1], [], []>} : vector<288x4xf32>, vector<4x8xf32>, vector<288x8xf32> -> vector<288x8xf32>
    %118 = arith.addf %112, %117 : vector<288x8xf32>
    %c0_123 = arith.constant 0 : index
    %c0_124 = arith.constant 0 : index
    %c73 = arith.constant 73 : index
    %c0_125 = arith.constant 0 : index
    %119 = vector.load %arg2[%c0_123, %c0_124, %c73, %c0_125] : memref<1x1x3456x4xf32, #tpu.memory_space<vmem>>, vector<1x1x288x4xf32>
    %120 = vector.shape_cast %119 : vector<1x1x288x4xf32> to vector<288x4xf32>
    %c20 = arith.constant 20 : index
    %c0_126 = arith.constant 0 : index
    %c0_127 = arith.constant 0 : index
    %121 = vector.load %arg3[%c20, %c0_126, %c0_127] : memref<27x4x8xf32, #tpu.memory_space<vmem>>, vector<1x4x8xf32>
    %122 = vector.shape_cast %121 : vector<1x4x8xf32> to vector<4x8xf32>
    %cst_128 = arith.constant dense<0.000000e+00> : vector<288x8xf32>
    %123 = tpu.matmul %120, %122, %cst_128 {dimension_numbers = #tpu.dot_dimension_numbers<[1], [0], [0], [1], [0, 0, 1, 1], [], []>} : vector<288x4xf32>, vector<4x8xf32>, vector<288x8xf32> -> vector<288x8xf32>
    %124 = arith.addf %118, %123 : vector<288x8xf32>
    %c0_129 = arith.constant 0 : index
    %c0_130 = arith.constant 0 : index
    %c936 = arith.constant 936 : index
    %c0_131 = arith.constant 0 : index
    %125 = vector.load %arg2[%c0_129, %c0_130, %c936, %c0_131] : memref<1x1x3456x4xf32, #tpu.memory_space<vmem>>, vector<1x1x288x4xf32>
    %126 = vector.shape_cast %125 : vector<1x1x288x4xf32> to vector<288x4xf32>
    %c21 = arith.constant 21 : index
    %c0_132 = arith.constant 0 : index
    %c0_133 = arith.constant 0 : index
    %127 = vector.load %arg3[%c21, %c0_132, %c0_133] : memref<27x4x8xf32, #tpu.memory_space<vmem>>, vector<1x4x8xf32>
    %128 = vector.shape_cast %127 : vector<1x4x8xf32> to vector<4x8xf32>
    %cst_134 = arith.constant dense<0.000000e+00> : vector<288x8xf32>
    %129 = tpu.matmul %126, %128, %cst_134 {dimension_numbers = #tpu.dot_dimension_numbers<[1], [0], [0], [1], [0, 0, 1, 1], [], []>} : vector<288x4xf32>, vector<4x8xf32>, vector<288x8xf32> -> vector<288x8xf32>
    %130 = arith.addf %124, %129 : vector<288x8xf32>
    %c0_135 = arith.constant 0 : index
    %c0_136 = arith.constant 0 : index
    %c1368 = arith.constant 1368 : index
    %c0_137 = arith.constant 0 : index
    %131 = vector.load %arg2[%c0_135, %c0_136, %c1368, %c0_137] : memref<1x1x3456x4xf32, #tpu.memory_space<vmem>>, vector<1x1x288x4xf32>
    %132 = vector.shape_cast %131 : vector<1x1x288x4xf32> to vector<288x4xf32>
    %c22 = arith.constant 22 : index
    %c0_138 = arith.constant 0 : index
    %c0_139 = arith.constant 0 : index
    %133 = vector.load %arg3[%c22, %c0_138, %c0_139] : memref<27x4x8xf32, #tpu.memory_space<vmem>>, vector<1x4x8xf32>
    %134 = vector.shape_cast %133 : vector<1x4x8xf32> to vector<4x8xf32>
    %cst_140 = arith.constant dense<0.000000e+00> : vector<288x8xf32>
    %135 = tpu.matmul %132, %134, %cst_140 {dimension_numbers = #tpu.dot_dimension_numbers<[1], [0], [0], [1], [0, 0, 1, 1], [], []>} : vector<288x4xf32>, vector<4x8xf32>, vector<288x8xf32> -> vector<288x8xf32>
    %136 = arith.addf %130, %135 : vector<288x8xf32>
    %c0_141 = arith.constant 0 : index
    %c0_142 = arith.constant 0 : index
    %c937 = arith.constant 937 : index
    %c0_143 = arith.constant 0 : index
    %137 = vector.load %arg2[%c0_141, %c0_142, %c937, %c0_143] : memref<1x1x3456x4xf32, #tpu.memory_space<vmem>>, vector<1x1x288x4xf32>
    %138 = vector.shape_cast %137 : vector<1x1x288x4xf32> to vector<288x4xf32>
    %c23 = arith.constant 23 : index
    %c0_144 = arith.constant 0 : index
    %c0_145 = arith.constant 0 : index
    %139 = vector.load %arg3[%c23, %c0_144, %c0_145] : memref<27x4x8xf32, #tpu.memory_space<vmem>>, vector<1x4x8xf32>
    %140 = vector.shape_cast %139 : vector<1x4x8xf32> to vector<4x8xf32>
    %cst_146 = arith.constant dense<0.000000e+00> : vector<288x8xf32>
    %141 = tpu.matmul %138, %140, %cst_146 {dimension_numbers = #tpu.dot_dimension_numbers<[1], [0], [0], [1], [0, 0, 1, 1], [], []>} : vector<288x4xf32>, vector<4x8xf32>, vector<288x8xf32> -> vector<288x8xf32>
    %142 = arith.addf %136, %141 : vector<288x8xf32>
    %c0_147 = arith.constant 0 : index
    %c0_148 = arith.constant 0 : index
    %c80 = arith.constant 80 : index
    %c0_149 = arith.constant 0 : index
    %143 = vector.load %arg2[%c0_147, %c0_148, %c80, %c0_149] : memref<1x1x3456x4xf32, #tpu.memory_space<vmem>>, vector<1x1x288x4xf32>
    %144 = vector.shape_cast %143 : vector<1x1x288x4xf32> to vector<288x4xf32>
    %c24 = arith.constant 24 : index
    %c0_150 = arith.constant 0 : index
    %c0_151 = arith.constant 0 : index
    %145 = vector.load %arg3[%c24, %c0_150, %c0_151] : memref<27x4x8xf32, #tpu.memory_space<vmem>>, vector<1x4x8xf32>
    %146 = vector.shape_cast %145 : vector<1x4x8xf32> to vector<4x8xf32>
    %cst_152 = arith.constant dense<0.000000e+00> : vector<288x8xf32>
    %147 = tpu.matmul %144, %146, %cst_152 {dimension_numbers = #tpu.dot_dimension_numbers<[1], [0], [0], [1], [0, 0, 1, 1], [], []>} : vector<288x4xf32>, vector<4x8xf32>, vector<288x8xf32> -> vector<288x8xf32>
    %148 = arith.addf %142, %147 : vector<288x8xf32>
    %c0_153 = arith.constant 0 : index
    %c0_154 = arith.constant 0 : index
    %c512 = arith.constant 512 : index
    %c0_155 = arith.constant 0 : index
    %149 = vector.load %arg2[%c0_153, %c0_154, %c512, %c0_155] : memref<1x1x3456x4xf32, #tpu.memory_space<vmem>>, vector<1x1x288x4xf32>
    %150 = vector.shape_cast %149 : vector<1x1x288x4xf32> to vector<288x4xf32>
    %c25 = arith.constant 25 : index
    %c0_156 = arith.constant 0 : index
    %c0_157 = arith.constant 0 : index
    %151 = vector.load %arg3[%c25, %c0_156, %c0_157] : memref<27x4x8xf32, #tpu.memory_space<vmem>>, vector<1x4x8xf32>
    %152 = vector.shape_cast %151 : vector<1x4x8xf32> to vector<4x8xf32>
    %cst_158 = arith.constant dense<0.000000e+00> : vector<288x8xf32>
    %153 = tpu.matmul %150, %152, %cst_158 {dimension_numbers = #tpu.dot_dimension_numbers<[1], [0], [0], [1], [0, 0, 1, 1], [], []>} : vector<288x4xf32>, vector<4x8xf32>, vector<288x8xf32> -> vector<288x8xf32>
    %154 = arith.addf %148, %153 : vector<288x8xf32>
    %c0_159 = arith.constant 0 : index
    %c0_160 = arith.constant 0 : index
    %c81 = arith.constant 81 : index
    %c0_161 = arith.constant 0 : index
    %155 = vector.load %arg2[%c0_159, %c0_160, %c81, %c0_161] : memref<1x1x3456x4xf32, #tpu.memory_space<vmem>>, vector<1x1x288x4xf32>
    %156 = vector.shape_cast %155 : vector<1x1x288x4xf32> to vector<288x4xf32>
    %c26 = arith.constant 26 : index
    %c0_162 = arith.constant 0 : index
    %c0_163 = arith.constant 0 : index
    %157 = vector.load %arg3[%c26, %c0_162, %c0_163] : memref<27x4x8xf32, #tpu.memory_space<vmem>>, vector<1x4x8xf32>
    %158 = vector.shape_cast %157 : vector<1x4x8xf32> to vector<4x8xf32>
    %cst_164 = arith.constant dense<0.000000e+00> : vector<288x8xf32>
    %159 = tpu.matmul %156, %158, %cst_164 {dimension_numbers = #tpu.dot_dimension_numbers<[1], [0], [0], [1], [0, 0, 1, 1], [], []>} : vector<288x4xf32>, vector<4x8xf32>, vector<288x8xf32> -> vector<288x8xf32>
    %160 = arith.addf %154, %159 : vector<288x8xf32>
    %161 = vector.shape_cast %160 : vector<288x8xf32> to vector<4x9x8x8xf32>
    %162 = vector.extract_strided_slice %161 {offsets = [0, 0, 0, 0], sizes = [4, 8, 6, 8], strides = [1, 1, 1, 1]} : vector<4x9x8x8xf32> to vector<4x8x6x8xf32>
    %c0_165 = arith.constant 0 : index
    %c0_166 = arith.constant 0 : index
    %c0_167 = arith.constant 0 : index
    %c0_168 = arith.constant 0 : index
    %c0_169 = arith.constant 0 : index
    %163 = vector.load %arg4[%c0_165, %c0_166, %c0_167, %c0_168, %c0_169] : memref<1x4x8x6x8xf32, #tpu.memory_space<vmem>>, vector<1x4x8x6x8xf32>
    %164 = vector.shape_cast %163 : vector<1x4x8x6x8xf32> to vector<4x8x6x8xf32>
    %165 = vector.shape_cast %162 : vector<4x8x6x8xf32> to vector<1x4x8x6x8xf32>
    tpu.vector_store %arg4[%c0_165, %c0_166, %c0_167, %c0_168, %c0_169], %165 {strides = array<i32>} : memref<1x4x8x6x8xf32, #tpu.memory_space<vmem>>, vector<1x4x8x6x8xf32>,
    return
  }
  func.func @transform_0(%arg0: i32, %arg1: i32) -> (i32, i32, i32, i32) {
    %c0_i32 = arith.constant 0 : i32
    %c0_i32_0 = arith.constant 0 : i32
    %c0_i32_1 = arith.constant 0 : i32
    return %arg0, %arg1, %c0_i32, %c0_i32_0 : i32, i32, i32, i32
  }
  func.func @transform_1(%arg0: i32, %arg1: i32) -> (i32, i32, i32) {
    %c0_i32 = arith.constant 0 : i32
    %c0_i32_0 = arith.constant 0 : i32
    %c0_i32_1 = arith.constant 0 : i32
    %c0_i32_2 = arith.constant 0 : i32
    return %c0_i32, %c0_i32_0, %c0_i32_1 : i32, i32, i32
  }
  func.func @transform_2(%arg0: i32, %arg1: i32) -> (i32, i32, i32, i32, i32) {
    %c0_i32 = arith.constant 0 : i32
    %c0_i32_0 = arith.constant 0 : i32
    %c0_i32_1 = arith.constant 0 : i32
    %c0_i32_2 = arith.constant 0 : i32
    return %arg0, %arg1, %c0_i32, %c0_i32_0, %c0_i32_1 : i32, i32, i32, i32, i32
  }
}

</mosaic_0001>

<bundles_post_ra>
// kernel: tpu_custom_call.1
= control target key start
LH: loop header
LB: loop body
LE: loop exit
PB: predicated region body
PF: predicated region fallthrough
CT: control target
= control target key end

     0   :  { %s15256_s9 = smov 0   ;;  %s15258_s10 = smov 0   ;;  %s18891_s0 = inlined_call_operand.vmem [shape: f32[2,1,3456,4], index: 0, kind: input, shape index: {}]   ;;  %s18892_s1 = inlined_call_operand.vmem [shape: f32[27,4,8], index: 1, kind: input, shape index: {}]   ;;  %s18893_s2 = inlined_call_operand.vmem [shape: f32[2,4,8,6,8], index: 2, kind: output, shape index: {}]  }
   0x1   :  { %s15260_s11 = smov 0  }
   0x2 LB: > { %s24_s12 = sadd.s32 1, %s15235_s10  ;;  %p11647_p0 = scmp.ge.s32.totalorder %s15239_s11, 1  ;;  %s15239_s11 = sphi %s15260_s11, %s12_s11   ;;  %s15235_s10 = sphi %s15258_s10, %s18895_s10   ;;  %s15231_s9 = sphi %s15256_s9, %s18894_s9  }
   0x3   : > { %p26_p1 = scmp.ge.s32.totalorder %s24_s12, 2  ;;  %p132_p2 = scmp.lt.s32.totalorder %s15239_s11, 3 }
   0x5   : > { %s18897_s12 = smov (%p26_p1, %s24_s12), 0  ;;  %p133_p3 = pnand %p11647_p0, %p132_p2 }
   0x6   : > { %p163_p4 = scmp.lt.s32.totalorder (!%p133_p3), %s15231_s9, 1 }
   0x7   : > { %136 = sbr.rel (%p133_p3) target bundleno = 1186 (0x4a2), region = 28 }
   0xc   : > { %v11651_v0 = vld [vmem:[%s18892_s1 + $0x4] sm:$0xf]  ;;  %vm367_vm0 = vcmask 1043456   ;;  %v219_v1 = vld [vmem:[%s18892_s1] sm:$0xf]  ;;  %s18899_s9 = smov (!%p163_p4, %s15231_s9), 1 }
   0xd   : > { %15190 = vmatprep.subr.msk.mxu1 %vm367_vm0, %v11651_v0  ;;  %13678 = vmatprep.subr.msk.mxu0 %vm367_vm0, %v11651_v0  ;;  %v11726_v2 = vld [vmem:[%s18892_s1 + $0x8] sm:$0xf]  ;;  %s15192_s19 = smul.u32 3456, %s18899_s9  ;;  %vm258_vm1 = vcmask 31744   ;;  %v15310_v9 = vld [vmem:[%s18892_s1 + $0xc] sm:$0xf] }
   0xe   : > { %15191 = vmatpush3.msk.msra.mxu1 %vm367_vm0, %v11651_v0  ;;  %13679 = vmatpush3.msk.msra.mxu0 %vm367_vm0, %v11651_v0  ;;  %v15315_v10 = vld [vmem:[%s18892_s1 + $0x10] sm:$0xf]  ;;  %v15403_v47 = vld [vmem:[%s18892_s1 + $0x14] sm:$0xf]  ;;  %v15408_v48 = vld [vmem:[%s18892_s1 + $0x18] sm:$0xf] }
   0xf   : > { %13734 = vmatprep.subr.msk.mxu1 %vm367_vm0, %v219_v1  ;;  %13790 = vmatprep.subr.msk.mxu0 %vm367_vm0, %v11726_v2  ;;  %s15295_s22 = scalar_lea.vmem %s18891_s0, %s15192_s19  ;;  %vm11514_vm2 = vcmask 62464  }
  0x10   : > { %v220_v3 = vld [vmem:[%s15295_s22 + $0x1b0] sm:$0xff]  ;;  %v238_v4 = vld [vmem:[%s15295_s22 + $0x240] sm:$0xff]  ;;  %v221_v5 = vld [vmem:[%s15295_s22 + $0x1b8] sm:$0xff] }
  0x11   : > { %13680 = vmatprep.mubr.msk.f32.mxu0 %vm258_vm1, %v220_v3  ;;  %13707 = vmatprep.mubr.msk.f32.mxu1 %vm258_vm1, %v238_v4  ;;  %v239_v6 = vld [vmem:[%s15295_s22 + $0x248] sm:$0xff]  ;;  %v222_v7 = vld [vmem:[%s15295_s22 + $0x1c0] sm:$0xff]  ;;  %v240_v8 = vld [vmem:[%s15295_s22 + $0x250] sm:$0xff] }
  0x12   : > { %13681 = vmatmul.mubr.msk.f32.vlgmr.msra.gmra.mxu0 %vm258_vm1, %v221_v5  ;;  %13708 = vmatmul.mubr.msk.f32.vlgmr.msra.gmra.mxu1 %vm258_vm1, %v239_v6  ;;  %v223_v11 = vld [vmem:[%s15295_s22 + $0x1c8] sm:$0xff]  ;;  %v241_v12 = vld [vmem:[%s15295_s22 + $0x258] sm:$0xff]  ;;  %v224_v13 = vld [vmem:[%s15295_s22 + $0x1d0] sm:$0xff] }
  0x13   : > { %13735 = vmatpush3.msk.msra.mxu1 %vm367_vm0, %v219_v1  ;;  %13791 = vmatpush3.msk.msra.mxu0 %vm367_vm0, %v11726_v2  ;;  %v242_v14 = vld [vmem:[%s15295_s22 + $0x260] sm:$0xff]  ;;  %v225_v15 = vld [vmem:[%s15295_s22 + $0x1d8] sm:$0xff]  ;;  %v243_v16 = vld [vmem:[%s15295_s22 + $0x268] sm:$0xff] }
  0x14   : > { %13683 = vmatprep.mubr.msk.f32.mxu0 %vm258_vm1, %v222_v7  ;;  %13710 = vmatprep.mubr.msk.f32.mxu1 %vm258_vm1, %v240_v8  ;;  %v226_v17 = vld [vmem:[%s15295_s22 + $0x1e0] sm:$0xff]  ;;  %v244_v18 = vld [vmem:[%s15295_s22 + $0x270] sm:$0xff]  ;;  %v227_v19 = vld [vmem:[%s15295_s22 + $0x1e8] sm:$0xff] }
  0x15   : > { %13846 = vmatprep.subr.msk.mxu1 %vm367_vm0, %v15310_v9  ;;  %13902 = vmatprep.subr.msk.mxu0 %vm367_vm0, %v15315_v10  ;;  %v245_v20 = vld [vmem:[%s15295_s22 + $0x278] sm:$0xff]  ;;  %v228_v21 = vld [vmem:[%s15295_s22 + $0x1f0] sm:$0xff]  ;;  %v246_v22 = vld [vmem:[%s15295_s22 + $0x280] sm:$0xff] }
  0x16   : > { %13684 = vmatmul.mubr.msk.f32.gmra.mxu0 %vm258_vm1, %v223_v11  ;;  %13711 = vmatmul.mubr.msk.f32.gmra.mxu1 %vm258_vm1, %v241_v12  ;;  %v229_v23 = vld [vmem:[%s15295_s22 + $0x1f8] sm:$0xff]  ;;  %v247_v24 = vld [vmem:[%s15295_s22 + $0x288] sm:$0xff]  ;;  %v230_v25 = vld [vmem:[%s15295_s22 + $0x200] sm:$0xff] }
  0x17   : > { %13686 = vmatprep.mubr.msk.f32.mxu0 %vm258_vm1, %v224_v13  ;;  %13713 = vmatprep.mubr.msk.f32.mxu1 %vm258_vm1, %v242_v14  ;;  %v248_v26 = vld [vmem:[%s15295_s22 + $0x290] sm:$0xff]  ;;  %v231_v27 = vld [vmem:[%s15295_s22 + $0x208] sm:$0xff]  ;;  %v249_v28 = vld [vmem:[%s15295_s22 + $0x298] sm:$0xff] }
  0x18   : > { %v232_v29 = vld [vmem:[%s15295_s22 + $0x210] sm:$0xff]  ;;  %v250_v30 = vld [vmem:[%s15295_s22 + $0x2a0] sm:$0xff]  ;;  %v233_v31 = vld [vmem:[%s15295_s22 + $0x218] sm:$0xff] }
  0x19   : > { %v251_v32 = vld [vmem:[%s15295_s22 + $0x2a8] sm:$0xff]  ;;  %v234_v33 = vld [vmem:[%s15295_s22 + $0x220] sm:$0xff]  ;;  %v252_v34 = vld [vmem:[%s15295_s22 + $0x2b0] sm:$0xff] }
  0x1a   : > { %13687 = vmatmul.mubr.msk.f32.gmra.mxu0 %vm258_vm1, %v225_v15  ;;  %13714 = vmatmul.mubr.msk.f32.gmra.mxu1 %vm258_vm1, %v243_v16  ;;  %v235_v35 = vld [vmem:[%s15295_s22 + $0x228] sm:$0xff]  ;;  %v253_v36 = vld [vmem:[%s15295_s22 + $0x2b8] sm:$0xff]  ;;  %v236_v37 = vld [vmem:[%s15295_s22 + $0x230] sm:$0xff] }
  0x1b   : > { %13689 = vmatprep.mubr.msk.f32.mxu0 %vm258_vm1, %v226_v17  ;;  %13716 = vmatprep.mubr.msk.f32.mxu1 %vm258_vm1, %v244_v18  ;;  %v254_v38 = vld [vmem:[%s15295_s22 + $0x2c0] sm:$0xff]  ;;  %v237_v39 = vld [vmem:[%s15295_s22 + $0x238] sm:$0xff]  ;;  %v255_v40 = vld [vmem:[%s15295_s22 + $0x2c8] sm:$0xff] }
  0x1c   : > { %v183_v41 = vld [vmem:[%s15295_s22] sm:$0xff]  ;;  %v15390_v43 = vld [vmem:[%s15295_s22 + $0x8] sm:$0xff]  ;;  %v15394_v45 = vld [vmem:[%s15295_s22 + $0x10] sm:$0xff] }
  0x1d   : > { %v964_v42 = vld [vmem:[%s15295_s22 + $0x1] sm:$0xff]  ;;  %v965_v44 = vld [vmem:[%s15295_s22 + $0x9] sm:$0xff]  ;;  %v966_v46 = vld [vmem:[%s15295_s22 + $0x11] sm:$0xff] }
  0x1e   : > { %13690 = vmatmul.mubr.msk.f32.gmra.mxu0 %vm258_vm1, %v227_v19  ;;  %13717 = vmatmul.mubr.msk.f32.gmra.mxu1 %vm258_vm1, %v245_v20  ;;  %v15415_v49 = vld [vmem:[%s15295_s22 + $0x18] sm:$0xff]  ;;  %v15422_v51 = vld [vmem:[%s15295_s22 + $0x20] sm:$0xff]  ;;  %v15436_v53 = vld [vmem:[%s15295_s22 + $0x28] sm:$0xff] }
  0x1f   : > { %13692 = vmatprep.mubr.msk.f32.mxu0 %vm258_vm1, %v228_v21  ;;  %13719 = vmatprep.mubr.msk.f32.mxu1 %vm258_vm1, %v246_v22  ;;  %v967_v50 = vld [vmem:[%s15295_s22 + $0x19] sm:$0xff]  ;;  %v968_v52 = vld [vmem:[%s15295_s22 + $0x21] sm:$0xff]  ;;  %v969_v54 = vld [vmem:[%s15295_s22 + $0x29] sm:$0xff] }
  0x20   : > { %v15440_v55 = vld [vmem:[%s15295_s22 + $0x30] sm:$0xff]  ;;  %v15450_v57 = vld [vmem:[%s15295_s22 + $0x38] sm:$0xff]  ;;  %v15454_v59 = vld [vmem:[%s15295_s22 + $0x40] sm:$0xff] }
  0x21   : > { %v970_v56 = vld [vmem:[%s15295_s22 + $0x31] sm:$0xff]  ;;  %v971_v58 = vld [vmem:[%s15295_s22 + $0x39] sm:$0xff]  ;;  %v972_v60 = vld [vmem:[%s15295_s22 + $0x41] sm:$0xff] }
  0x22   : > { %13693 = vmatmul.mubr.msk.f32.gmra.mxu0 %vm258_vm1, %v229_v23  ;;  %13720 = vmatmul.mubr.msk.f32.gmra.mxu1 %vm258_vm1, %v247_v24  ;;  %v15464_v61 = vld [vmem:[%s15295_s22 + $0x48] sm:$0xff]  ;;  %v15468_v63 = vld [vmem:[%s15295_s22 + $0x50] sm:$0xff]  ;;  %v15478_v1 = vld [vmem:[%s15295_s22 + $0x58] sm:$0xff] }
  0x23   : > { %13695 = vmatprep.mubr.msk.f32.mxu0 %vm258_vm1, %v230_v25  ;;  %13722 = vmatprep.mubr.msk.f32.mxu1 %vm258_vm1, %v248_v26  ;;  %v973_v62 = vld [vmem:[%s15295_s22 + $0x49] sm:$0xff]  ;;  %v974_v0 = vld [vmem:[%s15295_s22 + $0x51] sm:$0xff]  ;;  %v975_v2 = vld [vmem:[%s15295_s22 + $0x59] sm:$0xff] }
  0x24   : > { %v15482_v3 = vld [vmem:[%s15295_s22 + $0x60] sm:$0xff]  ;;  %v15492_v5 = vld [vmem:[%s15295_s22 + $0x68] sm:$0xff]  ;;  %v15496_v7 = vld [vmem:[%s15295_s22 + $0x70] sm:$0xff] }
  0x25   : > { %v976_v4 = vld [vmem:[%s15295_s22 + $0x61] sm:$0xff]  ;;  %v977_v6 = vld [vmem:[%s15295_s22 + $0x69] sm:$0xff]  ;;  %v978_v8 = vld [vmem:[%s15295_s22 + $0x71] sm:$0xff] }
  0x26   : > { %13696 = vmatmul.mubr.msk.f32.gmra.mxu0 %vm258_vm1, %v231_v27  ;;  %13723 = vmatmul.mubr.msk.f32.gmra.mxu1 %vm258_vm1, %v249_v28  ;;  %v15510_v11 = vld [vmem:[%s15295_s22 + $0x80] sm:$0xff]  ;;  %v15520_v13 = vld [vmem:[%s15295_s22 + $0x88] sm:$0xff]  ;;  %v15524_v15 = vld [vmem:[%s15295_s22 + $0x90] sm:$0xff] }
  0x27   : > { %13698 = vmatprep.mubr.msk.f32.mxu0 %vm258_vm1, %v232_v29  ;;  %13725 = vmatprep.mubr.msk.f32.mxu1 %vm258_vm1, %v250_v30  ;;  %v980_v12 = vld [vmem:[%s15295_s22 + $0x81] sm:$0xff]  ;;  %v981_v14 = vld [vmem:[%s15295_s22 + $0x89] sm:$0xff]  ;;  %v982_v16 = vld [vmem:[%s15295_s22 + $0x91] sm:$0xff] }
  0x28   : > { %v15534_v17 = vld [vmem:[%s15295_s22 + $0x98] sm:$0xff]  ;;  %v15538_v19 = vld [vmem:[%s15295_s22 + $0xa0] sm:$0xff]  ;;  %v15548_v21 = vld [vmem:[%s15295_s22 + $0xa8] sm:$0xff] }
  0x29   : > { %v983_v18 = vld [vmem:[%s15295_s22 + $0x99] sm:$0xff]  ;;  %v984_v20 = vld [vmem:[%s15295_s22 + $0xa1] sm:$0xff]  ;;  %v985_v22 = vld [vmem:[%s15295_s22 + $0xa9] sm:$0xff] }
  0x2a   : > { %13699 = vmatmul.mubr.msk.f32.gmra.mxu0 %vm258_vm1, %v233_v31  ;;  %13726 = vmatmul.mubr.msk.f32.gmra.mxu1 %vm258_vm1, %v251_v32  ;;  %v15552_v23 = vld [vmem:[%s15295_s22 + $0xb0] sm:$0xff]  ;;  %v15562_v25 = vld [vmem:[%s15295_s22 + $0xb8] sm:$0xff]  ;;  %v15566_v27 = vld [vmem:[%s15295_s22 + $0xc0] sm:$0xff] }
  0x2b   : > { %13701 = vmatprep.mubr.msk.f32.mxu0 %vm258_vm1, %v234_v33  ;;  %13728 = vmatprep.mubr.msk.f32.mxu1 %vm258_vm1, %v252_v34  ;;  %v986_v24 = vld [vmem:[%s15295_s22 + $0xb1] sm:$0xff]  ;;  %v987_v26 = vld [vmem:[%s15295_s22 + $0xb9] sm:$0xff]  ;;  %v988_v28 = vld [vmem:[%s15295_s22 + $0xc1] sm:$0xff] }
  0x2c   : > { %v15576_v29 = vld [vmem:[%s15295_s22 + $0xc8] sm:$0xff]  ;;  %v15580_v31 = vld [vmem:[%s15295_s22 + $0xd0] sm:$0xff]  ;;  %v15590_v33 = vld [vmem:[%s15295_s22 + $0xd8] sm:$0xff] }
  0x2d   : > { %v989_v30 = vld [vmem:[%s15295_s22 + $0xc9] sm:$0xff]  ;;  %v990_v32 = vld [vmem:[%s15295_s22 + $0xd1] sm:$0xff]  ;;  %v991_v34 = vld [vmem:[%s15295_s22 + $0xd9] sm:$0xff] }
  0x2e   : > { %13702 = vmatmul.mubr.msk.f32.gmra.mxu0 %vm258_vm1, %v235_v35  ;;  %13729 = vmatmul.mubr.msk.f32.gmra.mxu1 %vm258_vm1, %v253_v36  ;;  %v15594_v35 = vld [vmem:[%s15295_s22 + $0xe0] sm:$0xff] }
  0x2f   : > { %13704 = vmatprep.mubr.msk.f32.mxu0 %vm258_vm1, %v236_v37  ;;  %13731 = vmatprep.mubr.msk.f32.mxu1 %vm258_vm1, %v254_v38  ;;  %v992_v36 = vld [vmem:[%s15295_s22 + $0xe1] sm:$0xff]  ;;  %v993_v38 = vld [vmem:[%s15295_s22 + $0xe9] sm:$0xff] }
  0x30   : > { %v15604_v37 = vld [vmem:[%s15295_s22 + $0xe8] sm:$0xff] }
  0x32   : > { %13705 = vmatmul.mubr.msk.f32.gmra.mxu0 %vm258_vm1, %v237_v39  ;;  %13732 = vmatmul.mubr.msk.f32.gmra.mxu1 %vm258_vm1, %v255_v40  ;;  %v15608_v39 = vld [vmem:[%s15295_s22 + $0xf0] sm:$0xff] }
  0x33   : > { %13736 = vmatprep.mubr.msk.f32.mxu1 %vm258_vm1, %v183_v41  ;;  %13792 = vmatprep.mubr.msk.f32.mxu0 %vm258_vm1, %v964_v42  ;;  %v994_v40 = vld [vmem:[%s15295_s22 + $0xf1] sm:$0xff]  ;;  %v995_v42 = vld [vmem:[%s15295_s22 + $0xf9] sm:$0xff] }
  0x34   : > { %v15618_v41 = vld [vmem:[%s15295_s22 + $0xf8] sm:$0xff] }
  0x36   : > { %13737 = vmatmul.mubr.msk.f32.vlgmr.msra.gmra.mxu1 %vm258_vm1, %v15390_v43  ;;  %13793 = vmatmul.mubr.msk.f32.vlgmr.msra.gmra.mxu0 %vm258_vm1, %v965_v44  ;;  %v15622_v44 = vld [vmem:[%s15295_s22 + $0x100] sm:$0xff] }
  0x37   : > { %13847 = vmatpush3.msk.msra.mxu1 %vm367_vm0, %v15310_v9  ;;  %13903 = vmatpush3.msk.msra.mxu0 %vm367_vm0, %v15315_v10  ;;  %v15506_v9 = vld [vmem:[%s15295_s22 + $0x78] sm:$0xff] }
  0x38   : > { %13739 = vmatprep.mubr.msk.f32.mxu1 %vm258_vm1, %v15394_v45  ;;  %13795 = vmatprep.mubr.msk.f32.mxu0 %vm258_vm1, %v966_v46  ;;  %v979_v10 = vld [vmem:[%s15295_s22 + $0x79] sm:$0xff]  ;;  %v996_v46 = vld [vmem:[%s15295_s22 + $0x101] sm:$0xff] }
  0x39   : > { %13958 = vmatprep.subr.msk.mxu1 %vm367_vm0, %v15403_v47  ;;  %14014 = vmatprep.subr.msk.mxu0 %vm367_vm0, %v15408_v48 }
  0x3a   : > { %13740 = vmatmul.mubr.msk.f32.gmra.mxu1 %vm258_vm1, %v15415_v49  ;;  %13796 = vmatmul.mubr.msk.f32.gmra.mxu0 %vm258_vm1, %v967_v50  ;;  %v15632_v50 = vld [vmem:[%s15295_s22 + $0x108] sm:$0xff] }
  0x3b   : > { %13742 = vmatprep.mubr.msk.f32.mxu1 %vm258_vm1, %v15422_v51  ;;  %13798 = vmatprep.mubr.msk.f32.mxu0 %vm258_vm1, %v968_v52  ;;  %v997_v52 = vld [vmem:[%s15295_s22 + $0x109] sm:$0xff] }
  0x3e   : > { %13743 = vmatmul.mubr.msk.f32.gmra.mxu1 %vm258_vm1, %v15436_v53  ;;  %13799 = vmatmul.mubr.msk.f32.gmra.mxu0 %vm258_vm1, %v969_v54  ;;  %v15636_v54 = vld [vmem:[%s15295_s22 + $0x110] sm:$0xff] }
  0x3f   : > { %13745 = vmatprep.mubr.msk.f32.mxu1 %vm258_vm1, %v15440_v55  ;;  %13801 = vmatprep.mubr.msk.f32.mxu0 %vm258_vm1, %v970_v56  ;;  %v998_v56 = vld [vmem:[%s15295_s22 + $0x111] sm:$0xff] }
  0x42   : > { %13746 = vmatmul.mubr.msk.f32.gmra.mxu1 %vm258_vm1, %v15450_v57  ;;  %13802 = vmatmul.mubr.msk.f32.gmra.mxu0 %vm258_vm1, %v971_v58  ;;  %v15646_v58 = vld [vmem:[%s15295_s22 + $0x118] sm:$0xff] }
  0x43   : > { %13748 = vmatprep.mubr.msk.f32.mxu1 %vm258_vm1, %v15454_v59  ;;  %13804 = vmatprep.mubr.msk.f32.mxu0 %vm258_vm1, %v972_v60  ;;  %v999_v60 = vld [vmem:[%s15295_s22 + $0x119] sm:$0xff] }
  0x46   : > { %13749 = vmatmul.mubr.msk.f32.gmra.mxu1 %vm258_vm1, %v15464_v61  ;;  %13805 = vmatmul.mubr.msk.f32.gmra.mxu0 %vm258_vm1, %v973_v62  ;;  %v1386_v62 = vld [vmem:[%s15295_s22 + $0x360] sm:$0xff] }
  0x47   : > { %13751 = vmatprep.mubr.msk.f32.mxu1 %vm258_vm1, %v15468_v63  ;;  %13807 = vmatprep.mubr.msk.f32.mxu0 %vm258_vm1, %v974_v0  ;;  %v1808_v0 = vld [vmem:[%s15295_s22 + $0x510] sm:$0xff] }
  0x4a   : > { %13752 = vmatmul.mubr.msk.f32.gmra.mxu1 %vm258_vm1, %v15478_v1  ;;  %13808 = vmatmul.mubr.msk.f32.gmra.mxu0 %vm258_vm1, %v975_v2  ;;  %v1387_v2 = vld [vmem:[%s15295_s22 + $0x368] sm:$0xff] }
  0x4b   : > { %13754 = vmatprep.mubr.msk.f32.mxu1 %vm258_vm1, %v15482_v3  ;;  %13810 = vmatprep.mubr.msk.f32.mxu0 %vm258_vm1, %v976_v4  ;;  %v1809_v4 = vld [vmem:[%s15295_s22 + $0x518] sm:$0xff] }
  0x4e   : > { %13755 = vmatmul.mubr.msk.f32.gmra.mxu1 %vm258_vm1, %v15492_v5  ;;  %13811 = vmatmul.mubr.msk.f32.gmra.mxu0 %vm258_vm1, %v977_v6  ;;  %v1388_v6 = vld [vmem:[%s15295_s22 + $0x370] sm:$0xff] }
  0x4f   : > { %13757 = vmatprep.mubr.msk.f32.mxu1 %vm258_vm1, %v15496_v7  ;;  %13813 = vmatprep.mubr.msk.f32.mxu0 %vm258_vm1, %v978_v8  ;;  %v1810_v8 = vld [vmem:[%s15295_s22 + $0x520] sm:$0xff] }
  0x52   : > { %13758 = vmatmul.mubr.msk.f32.gmra.mxu1 %vm258_vm1, %v15506_v9  ;;  %13814 = vmatmul.mubr.msk.f32.gmra.mxu0 %vm258_vm1, %v979_v10  ;;  %v15665_v10 = vld [vmem:[%s18892_s1 + $0x1c] sm:$0xf] }
  0x53   : > { %13760 = vmatprep.mubr.msk.f32.mxu1 %vm258_vm1, %v15510_v11  ;;  %13816 = vmatprep.mubr.msk.f32.mxu0 %vm258_vm1, %v980_v12  ;;  %v15670_v12 = vld [vmem:[%s18892_s1 + $0x20] sm:$0xf] }
  0x56   : > { %13761 = vmatmul.mubr.msk.f32.gmra.mxu1 %vm258_vm1, %v15520_v13  ;;  %13817 = vmatmul.mubr.msk.f32.gmra.mxu0 %vm258_vm1, %v981_v14  ;;  %v1389_v14 = vld [vmem:[%s15295_s22 + $0x378] sm:$0xff] }
  0x57   : > { %13763 = vmatprep.mubr.msk.f32.mxu1 %vm258_vm1, %v15524_v15  ;;  %13819 = vmatprep.mubr.msk.f32.mxu0 %vm258_vm1, %v982_v16  ;;  %v1811_v16 = vld [vmem:[%s15295_s22 + $0x528] sm:$0xff] }
  0x5a   : > { %13764 = vmatmul.mubr.msk.f32.gmra.mxu1 %vm258_vm1, %v15534_v17  ;;  %13820 = vmatmul.mubr.msk.f32.gmra.mxu0 %vm258_vm1, %v983_v18  ;;  %v1390_v18 = vld [vmem:[%s15295_s22 + $0x380] sm:$0xff] }
  0x5b   : > { %13766 = vmatprep.mubr.msk.f32.mxu1 %vm258_vm1, %v15538_v19  ;;  %13822 = vmatprep.mubr.msk.f32.mxu0 %vm258_vm1, %v984_v20  ;;  %v1812_v20 = vld [vmem:[%s15295_s22 + $0x530] sm:$0xff] }
  0x5e   : > { %13767 = vmatmul.mubr.msk.f32.gmra.mxu1 %vm258_vm1, %v15548_v21  ;;  %13823 = vmatmul.mubr.msk.f32.gmra.mxu0 %vm258_vm1, %v985_v22  ;;  %v1392_v22 = vld [vmem:[%s15295_s22 + $0x390] sm:$0xff] }
  0x5f   : > { %13769 = vmatprep.mubr.msk.f32.mxu1 %vm258_vm1, %v15552_v23  ;;  %13825 = vmatprep.mubr.msk.f32.mxu0 %vm258_vm1, %v986_v24  ;;  %v1814_v24 = vld [vmem:[%s15295_s22 + $0x540] sm:$0xff] }
  0x62   : > { %13770 = vmatmul.mubr.msk.f32.gmra.mxu1 %vm258_vm1, %v15562_v25  ;;  %13826 = vmatmul.mubr.msk.f32.gmra.mxu0 %vm258_vm1, %v987_v26  ;;  %v1393_v26 = vld [vmem:[%s15295_s22 + $0x398] sm:$0xff] }
  0x63   : > { %13772 = vmatprep.mubr.msk.f32.mxu1 %vm258_vm1, %v15566_v27  ;;  %13828 = vmatprep.mubr.msk.f32.mxu0 %vm258_vm1, %v988_v28  ;;  %v1815_v28 = vld [vmem:[%s15295_s22 + $0x548] sm:$0xff] }
  0x66   : > { %13773 = vmatmul.mubr.msk.f32.gmra.mxu1 %vm258_vm1, %v15576_v29  ;;  %13829 = vmatmul.mubr.msk.f32.gmra.mxu0 %vm258_vm1, %v989_v30  ;;  %v1394_v30 = vld [vmem:[%s15295_s22 + $0x3a0] sm:$0xff] }
  0x67   : > { %13775 = vmatprep.mubr.msk.f32.mxu1 %vm258_vm1, %v15580_v31  ;;  %13831 = vmatprep.mubr.msk.f32.mxu0 %vm258_vm1, %v990_v32  ;;  %v1816_v32 = vld [vmem:[%s15295_s22 + $0x550] sm:$0xff] }
  0x6a   : > { %13776 = vmatmul.mubr.msk.f32.gmra.mxu1 %vm258_vm1, %v15590_v33  ;;  %13832 = vmatmul.mubr.msk.f32.gmra.mxu0 %vm258_vm1, %v991_v34  ;;  %v1395_v34 = vld [vmem:[%s15295_s22 + $0x3a8] sm:$0xff] }
  0x6b   : > { %13778 = vmatprep.mubr.msk.f32.mxu1 %vm258_vm1, %v15594_v35  ;;  %13834 = vmatprep.mubr.msk.f32.mxu0 %vm258_vm1, %v992_v36  ;;  %v1817_v36 = vld [vmem:[%s15295_s22 + $0x558] sm:$0xff] }
  0x6e   : > { %13779 = vmatmul.mubr.msk.f32.gmra.mxu1 %vm258_vm1, %v15604_v37  ;;  %13835 = vmatmul.mubr.msk.f32.gmra.mxu0 %vm258_vm1, %v993_v38  ;;  %v1396_v38 = vld [vmem:[%s15295_s22 + $0x3b0] sm:$0xff] }
  0x6f   : > { %13781 = vmatprep.mubr.msk.f32.mxu1 %vm258_vm1, %v15608_v39  ;;  %13837 = vmatprep.mubr.msk.f32.mxu0 %vm258_vm1, %v994_v40  ;;  %v1818_v40 = vld [vmem:[%s15295_s22 + $0x560] sm:$0xff] }
  0x72   : > { %13782 = vmatmul.mubr.msk.f32.gmra.mxu1 %vm258_vm1, %v15618_v41  ;;  %13838 = vmatmul.mubr.msk.f32.gmra.mxu0 %vm258_vm1, %v995_v42  ;;  %v1397_v42 = vld [vmem:[%s15295_s22 + $0x3b8] sm:$0xff] }
  0x73   : > { %13784 = vmatprep.mubr.msk.f32.mxu1 %vm258_vm1, %v15622_v44  ;;  %13840 = vmatprep.mubr.msk.f32.mxu0 %vm258_vm1, %v996_v46  ;;  %v1819_v46 = vld [vmem:[%s15295_s22 + $0x568] sm:$0xff] }
  0x76   : > { %13785 = vmatmul.mubr.msk.f32.gmra.mxu1 %vm258_vm1, %v15632_v50  ;;  %13841 = vmatmul.mubr.msk.f32.gmra.mxu0 %vm258_vm1, %v997_v52  ;;  %v1398_v52 = vld [vmem:[%s15295_s22 + $0x3c0] sm:$0xff] }
  0x77   : > { %13787 = vmatprep.mubr.msk.f32.mxu1 %vm258_vm1, %v15636_v54  ;;  %13843 = vmatprep.mubr.msk.f32.mxu0 %vm258_vm1, %v998_v56  ;;  %v1820_v56 = vld [vmem:[%s15295_s22 + $0x570] sm:$0xff] }
  0x7a   : > { %13788 = vmatmul.mubr.msk.f32.gmra.mxu1 %vm258_vm1, %v15646_v58  ;;  %13844 = vmatmul.mubr.msk.f32.gmra.mxu0 %vm258_vm1, %v999_v60  ;;  %v1399_v60 = vld [vmem:[%s15295_s22 + $0x3c8] sm:$0xff] }
  0x7b   : > { %13848 = vmatprep.mubr.msk.f32.mxu1 %vm258_vm1, %v1386_v62  ;;  %13904 = vmatprep.mubr.msk.f32.mxu0 %vm258_vm1, %v1808_v0  ;;  %v1821_v62 = vld [vmem:[%s15295_s22 + $0x578] sm:$0xff]  ;;  %v1400_v0 = vld [vmem:[%s15295_s22 + $0x3d0] sm:$0xff] }
  0x7e   : > { %13849 = vmatmul.mubr.msk.f32.vlgmr.msra.gmra.mxu1 %vm258_vm1, %v1387_v2  ;;  %13905 = vmatmul.mubr.msk.f32.vlgmr.msra.gmra.mxu0 %vm258_vm1, %v1809_v4  ;;  %v1822_v2 = vld [vmem:[%s15295_s22 + $0x580] sm:$0xff]  ;;  %v1401_v4 = vld [vmem:[%s15295_s22 + $0x3d8] sm:$0xff] }
  0x7f   : > { %13959 = vmatpush3.msk.msra.mxu1 %vm367_vm0, %v15403_v47  ;;  %14015 = vmatpush3.msk.msra.mxu0 %vm367_vm0, %v15408_v48  ;;  %v1391_v47 = vld [vmem:[%s15295_s22 + $0x388] sm:$0xff]  ;;  %v1813_v48 = vld [vmem:[%s15295_s22 + $0x538] sm:$0xff] }
  0x80   : > { %13851 = vmatprep.mubr.msk.f32.mxu1 %vm258_vm1, %v1388_v6  ;;  %13907 = vmatprep.mubr.msk.f32.mxu0 %vm258_vm1, %v1810_v8  ;;  %v1823_v6 = vld [vmem:[%s15295_s22 + $0x588] sm:$0xff]  ;;  %v1402_v8 = vld [vmem:[%s15295_s22 + $0x3e0] sm:$0xff] }
  0x81   : > { %14070 = vmatprep.subr.msk.mxu1 %vm367_vm0, %v15665_v10  ;;  %14126 = vmatprep.subr.msk.mxu0 %vm367_vm0, %v15670_v12 }
  0x82   : > { %13852 = vmatmul.mubr.msk.f32.gmra.mxu1 %vm258_vm1, %v1389_v14  ;;  %13908 = vmatmul.mubr.msk.f32.gmra.mxu0 %vm258_vm1, %v1811_v16  ;;  %v1824_v14 = vld [vmem:[%s15295_s22 + $0x590] sm:$0xff]  ;;  %v1403_v16 = vld [vmem:[%s15295_s22 + $0x3e8] sm:$0xff] }
  0x83   : > { %13854 = vmatprep.mubr.msk.f32.mxu1 %vm258_vm1, %v1390_v18  ;;  %13910 = vmatprep.mubr.msk.f32.mxu0 %vm258_vm1, %v1812_v20  ;;  %v1825_v18 = vld [vmem:[%s15295_s22 + $0x598] sm:$0xff]  ;;  %v1404_v20 = vld [vmem:[%s15295_s22 + $0x3f0] sm:$0xff] }
  0x86   : > { %13855 = vmatmul.mubr.msk.f32.gmra.mxu1 %vm258_vm1, %v1391_v47  ;;  %13911 = vmatmul.mubr.msk.f32.gmra.mxu0 %vm258_vm1, %v1813_v48  ;;  %v1826_v47 = vld [vmem:[%s15295_s22 + $0x5a0] sm:$0xff]  ;;  %v1405_v48 = vld [vmem:[%s15295_s22 + $0x3f8] sm:$0xff] }
  0x87   : > { %13857 = vmatprep.mubr.msk.f32.mxu1 %vm258_vm1, %v1392_v22  ;;  %13913 = vmatprep.mubr.msk.f32.mxu0 %vm258_vm1, %v1814_v24  ;;  %v1827_v22 = vld [vmem:[%s15295_s22 + $0x5a8] sm:$0xff]  ;;  %v1406_v24 = vld [vmem:[%s15295_s22 + $0x400] sm:$0xff] }
  0x8a   : > { %13858 = vmatmul.mubr.msk.f32.gmra.mxu1 %vm258_vm1, %v1393_v26  ;;  %13914 = vmatmul.mubr.msk.f32.gmra.mxu0 %vm258_vm1, %v1815_v28  ;;  %v1828_v26 = vld [vmem:[%s15295_s22 + $0x5b0] sm:$0xff]  ;;  %v1407_v28 = vld [vmem:[%s15295_s22 + $0x408] sm:$0xff] }
  0x8b   : > { %13860 = vmatprep.mubr.msk.f32.mxu1 %vm258_vm1, %v1394_v30  ;;  %13916 = vmatprep.mubr.msk.f32.mxu0 %vm258_vm1, %v1816_v32  ;;  %v1829_v30 = vld [vmem:[%s15295_s22 + $0x5b8] sm:$0xff]  ;;  %v1408_v32 = vld [vmem:[%s15295_s22 + $0x410] sm:$0xff] }
  0x8e   : > { %13861 = vmatmul.mubr.msk.f32.gmra.mxu1 %vm258_vm1, %v1395_v34  ;;  %13917 = vmatmul.mubr.msk.f32.gmra.mxu0 %vm258_vm1, %v1817_v36  ;;  %v1830_v34 = vld [vmem:[%s15295_s22 + $0x5c0] sm:$0xff]  ;;  %v1409_v36 = vld [vmem:[%s15295_s22 + $0x418] sm:$0xff] }
  0x8f   : > { %13863 = vmatprep.mubr.msk.f32.mxu1 %vm258_vm1, %v1396_v38  ;;  %13919 = vmatprep.mubr.msk.f32.mxu0 %vm258_vm1, %v1818_v40  ;;  %v1831_v38 = vld [vmem:[%s15295_s22 + $0x5c8] sm:$0xff]  ;;  %v1410_v40 = vld [vmem:[%s15295_s22 + $0x420] sm:$0xff] }
  0x92   : > { %13864 = vmatmul.mubr.msk.f32.gmra.mxu1 %vm258_vm1, %v1397_v42  ;;  %13920 = vmatmul.mubr.msk.f32.gmra.mxu0 %vm258_vm1, %v1819_v46  ;;  %v1832_v42 = vld [vmem:[%s15295_s22 + $0x5d0] sm:$0xff]  ;;  %v1411_v46 = vld [vmem:[%s15295_s22 + $0x428] sm:$0xff] }
  0x93   : > { %13866 = vmatprep.mubr.msk.f32.mxu1 %vm258_vm1, %v1398_v52  ;;  %13922 = vmatprep.mubr.msk.f32.mxu0 %vm258_vm1, %v1820_v56  ;;  %v1833_v52 = vld [vmem:[%s15295_s22 + $0x5d8] sm:$0xff]  ;;  %v1412_v56 = vld [vmem:[%s15295_s22 + $0x430] sm:$0xff] }
  0x96   : > { %13867 = vmatmul.mubr.msk.f32.gmra.mxu1 %vm258_vm1, %v1399_v60  ;;  %13923 = vmatmul.mubr.msk.f32.gmra.mxu0 %vm258_vm1, %v1821_v62  ;;  %v1834_v60 = vld [vmem:[%s15295_s22 + $0x5e0] sm:$0xff]  ;;  %v1413_v62 = vld [vmem:[%s15295_s22 + $0x438] sm:$0xff] }
  0x97   : > { %13869 = vmatprep.mubr.msk.f32.mxu1 %vm258_vm1, %v1400_v0  ;;  %13925 = vmatprep.mubr.msk.f32.mxu0 %vm258_vm1, %v1822_v2  ;;  %v1835_v0 = vld [vmem:[%s15295_s22 + $0x5e8] sm:$0xff]  ;;  %v1414_v2 = vld [vmem:[%s15295_s22 + $0x440] sm:$0xff] }
  0x9a   : > { %13870 = vmatmul.mubr.msk.f32.gmra.mxu1 %vm258_vm1, %v1401_v4  ;;  %13926 = vmatmul.mubr.msk.f32.gmra.mxu0 %vm258_vm1, %v1823_v6  ;;  %v1836_v4 = vld [vmem:[%s15295_s22 + $0x5f0] sm:$0xff]  ;;  %v1415_v6 = vld [vmem:[%s15295_s22 + $0x448] sm:$0xff] }
  0x9b   : > { %13872 = vmatprep.mubr.msk.f32.mxu1 %vm258_vm1, %v1402_v8  ;;  %13928 = vmatprep.mubr.msk.f32.mxu0 %vm258_vm1, %v1824_v14  ;;  %v1837_v8 = vld [vmem:[%s15295_s22 + $0x5f8] sm:$0xff]  ;;  %v1416_v14 = vld [vmem:[%s15295_s22 + $0x450] sm:$0xff] }
  0x9e   : > { %13873 = vmatmul.mubr.msk.f32.gmra.mxu1 %vm258_vm1, %v1403_v16  ;;  %13929 = vmatmul.mubr.msk.f32.gmra.mxu0 %vm258_vm1, %v1825_v18  ;;  %v1838_v16 = vld [vmem:[%s15295_s22 + $0x600] sm:$0xff]  ;;  %v1417_v18 = vld [vmem:[%s15295_s22 + $0x458] sm:$0xff] }
  0x9f   : > { %13875 = vmatprep.mubr.msk.f32.mxu1 %vm258_vm1, %v1404_v20  ;;  %13931 = vmatprep.mubr.msk.f32.mxu0 %vm258_vm1, %v1826_v47  ;;  %v1839_v20 = vld [vmem:[%s15295_s22 + $0x608] sm:$0xff]  ;;  %v1418_v47 = vld [vmem:[%s15295_s22 + $0x460] sm:$0xff] }
  0xa2   : > { %13876 = vmatmul.mubr.msk.f32.gmra.mxu1 %vm258_vm1, %v1405_v48  ;;  %13932 = vmatmul.mubr.msk.f32.gmra.mxu0 %vm258_vm1, %v1827_v22  ;;  %v1840_v48 = vld [vmem:[%s15295_s22 + $0x610] sm:$0xff]  ;;  %v1419_v22 = vld [vmem:[%s15295_s22 + $0x468] sm:$0xff] }
  0xa3   : > { %13878 = vmatprep.mubr.msk.f32.mxu1 %vm258_vm1, %v1406_v24  ;;  %13934 = vmatprep.mubr.msk.f32.mxu0 %vm258_vm1, %v1828_v26  ;;  %v1841_v24 = vld [vmem:[%s15295_s22 + $0x618] sm:$0xff]  ;;  %v1420_v26 = vld [vmem:[%s15295_s22 + $0x470] sm:$0xff] }
  0xa6   : > { %13879 = vmatmul.mubr.msk.f32.gmra.mxu1 %vm258_vm1, %v1407_v28  ;;  %13935 = vmatmul.mubr.msk.f32.gmra.mxu0 %vm258_vm1, %v1829_v30  ;;  %v1842_v28 = vld [vmem:[%s15295_s22 + $0x620] sm:$0xff]  ;;  %v1421_v30 = vld [vmem:[%s15295_s22 + $0x478] sm:$0xff] }
  0xa7   : > { %13881 = vmatprep.mubr.msk.f32.mxu1 %vm258_vm1, %v1408_v32  ;;  %13937 = vmatprep.mubr.msk.f32.mxu0 %vm258_vm1, %v1830_v34  ;;  %v1843_v32 = vld [vmem:[%s15295_s22 + $0x628] sm:$0xff] }
  0xa8   : > { %v2230_v34 = vld [vmem:[%s15295_s22 + $0x361] sm:$0xff] }
  0xaa   : > { %13882 = vmatmul.mubr.msk.f32.gmra.mxu1 %vm258_vm1, %v1409_v36  ;;  %13938 = vmatmul.mubr.msk.f32.gmra.mxu0 %vm258_vm1, %v1831_v38  ;;  %v2231_v36 = vld [vmem:[%s15295_s22 + $0x369] sm:$0xff]  ;;  %v2232_v38 = vld [vmem:[%s15295_s22 + $0x371] sm:$0xff] }
  0xab   : > { %13884 = vmatprep.mubr.msk.f32.mxu1 %vm258_vm1, %v1410_v40  ;;  %13940 = vmatprep.mubr.msk.f32.mxu0 %vm258_vm1, %v1832_v42  ;;  %v15826_v40 = vld [vmem:[%s18892_s1 + $0x24] sm:$0xf]  ;;  %v15831_v42 = vld [vmem:[%s18892_s1 + $0x28] sm:$0xf] }
  0xae   : > { %13885 = vmatmul.mubr.msk.f32.gmra.mxu1 %vm258_vm1, %v1411_v46  ;;  %13941 = vmatmul.mubr.msk.f32.gmra.mxu0 %vm258_vm1, %v1833_v52 }
  0xaf   : > { %13887 = vmatprep.mubr.msk.f32.mxu1 %vm258_vm1, %v1412_v56  ;;  %13943 = vmatprep.mubr.msk.f32.mxu0 %vm258_vm1, %v1834_v60  ;;  %v2240_v56 = vld [vmem:[%s15295_s22 + $0x3b1] sm:$0xff] }
  0xb2   : > { %13888 = vmatmul.mubr.msk.f32.gmra.mxu1 %vm258_vm1, %v1413_v62  ;;  %13944 = vmatmul.mubr.msk.f32.gmra.mxu0 %vm258_vm1, %v1835_v0 }
  0xb3   : > { %13890 = vmatprep.mubr.msk.f32.mxu1 %vm258_vm1, %v1414_v2  ;;  %13946 = vmatprep.mubr.msk.f32.mxu0 %vm258_vm1, %v1836_v4  ;;  %v2242_v2 = vld [vmem:[%s15295_s22 + $0x3c1] sm:$0xff] }
  0xb6   : > { %13891 = vmatmul.mubr.msk.f32.gmra.mxu1 %vm258_vm1, %v1415_v6  ;;  %13947 = vmatmul.mubr.msk.f32.gmra.mxu0 %vm258_vm1, %v1837_v8 }
  0xb7   : > { %13893 = vmatprep.mubr.msk.f32.mxu1 %vm258_vm1, %v1416_v14  ;;  %13949 = vmatprep.mubr.msk.f32.mxu0 %vm258_vm1, %v1838_v16  ;;  %v2244_v14 = vld [vmem:[%s15295_s22 + $0x3d1] sm:$0xff] }
  0xba   : > { %13894 = vmatmul.mubr.msk.f32.gmra.mxu1 %vm258_vm1, %v1417_v18  ;;  %13950 = vmatmul.mubr.msk.f32.gmra.mxu0 %vm258_vm1, %v1839_v20 }
  0xbb   : > { %13896 = vmatprep.mubr.msk.f32.mxu1 %vm258_vm1, %v1418_v47  ;;  %13952 = vmatprep.mubr.msk.f32.mxu0 %vm258_vm1, %v1840_v48  ;;  %v2246_v47 = vld [vmem:[%s15295_s22 + $0x3e1] sm:$0xff] }
  0xbe   : > { %13897 = vmatmul.mubr.msk.f32.gmra.mxu1 %vm258_vm1, %v1419_v22  ;;  %13953 = vmatmul.mubr.msk.f32.gmra.mxu0 %vm258_vm1, %v1841_v24 }
  0xbf   : > { %13899 = vmatprep.mubr.msk.f32.mxu1 %vm258_vm1, %v1420_v26  ;;  %13955 = vmatprep.mubr.msk.f32.mxu0 %vm258_vm1, %v1842_v28  ;;  %v2248_v26 = vld [vmem:[%s15295_s22 + $0x3f1] sm:$0xff] }
  0xc2   : > { %13900 = vmatmul.mubr.msk.f32.gmra.mxu1 %vm258_vm1, %v1421_v30  ;;  %13956 = vmatmul.mubr.msk.f32.gmra.mxu0 %vm258_vm1, %v1843_v32 }
  0xc3   : > { %13960 = vmatprep.mubr.msk.f32.mxu1 %vm258_vm1, %v2230_v34  ;;  %14016 = vmatprep.mubr.msk.f32.mxu0 %vm258_vm1, %v15390_v43  ;;  %v2233_v43 = vld [vmem:[%s15295_s22 + $0x379] sm:$0xff]  ;;  %v2250_v34 = vld [vmem:[%s15295_s22 + $0x401] sm:$0xff] }
  0xc6   : > { %13961 = vmatmul.mubr.msk.f32.vlgmr.msra.gmra.mxu1 %vm258_vm1, %v2231_v36  ;;  %14017 = vmatmul.mubr.msk.f32.vlgmr.msra.gmra.mxu0 %vm258_vm1, %v15394_v45  ;;  %v2234_v45 = vld [vmem:[%s15295_s22 + $0x381] sm:$0xff] }
  0xc7   : > { %14071 = vmatpush3.msk.msra.mxu1 %vm367_vm0, %v15665_v10  ;;  %14127 = vmatpush3.msk.msra.mxu0 %vm367_vm0, %v15670_v12  ;;  %v2235_v10 = vld [vmem:[%s15295_s22 + $0x389] sm:$0xff]  ;;  %v2238_v12 = vld [vmem:[%s15295_s22 + $0x3a1] sm:$0xff] }
  0xc8   : > { %13963 = vmatprep.mubr.msk.f32.mxu1 %vm258_vm1, %v2232_v38  ;;  %14019 = vmatprep.mubr.msk.f32.mxu0 %vm258_vm1, %v15415_v49  ;;  %v2236_v49 = vld [vmem:[%s15295_s22 + $0x391] sm:$0xff] }
  0xc9   : > { %14182 = vmatprep.subr.msk.mxu1 %vm367_vm0, %v15826_v40  ;;  %14238 = vmatprep.subr.msk.mxu0 %vm367_vm0, %v15831_v42 }
  0xca   : > { %13964 = vmatmul.mubr.msk.f32.gmra.mxu1 %vm258_vm1, %v2233_v43  ;;  %14020 = vmatmul.mubr.msk.f32.gmra.mxu0 %vm258_vm1, %v15422_v51  ;;  %v2237_v51 = vld [vmem:[%s15295_s22 + $0x399] sm:$0xff] }
  0xcb   : > { %13966 = vmatprep.mubr.msk.f32.mxu1 %vm258_vm1, %v2234_v45  ;;  %14022 = vmatprep.mubr.msk.f32.mxu0 %vm258_vm1, %v15436_v53  ;;  %v2239_v53 = vld [vmem:[%s15295_s22 + $0x3a9] sm:$0xff]  ;;  %v2252_v45 = vld [vmem:[%s15295_s22 + $0x411] sm:$0xff] }
  0xce   : > { %13967 = vmatmul.mubr.msk.f32.gmra.mxu1 %vm258_vm1, %v2235_v10  ;;  %14023 = vmatmul.mubr.msk.f32.gmra.mxu0 %vm258_vm1, %v15440_v55 }
  0xcf   : > { %13969 = vmatprep.mubr.msk.f32.mxu1 %vm258_vm1, %v2236_v49  ;;  %14025 = vmatprep.mubr.msk.f32.mxu0 %vm258_vm1, %v15450_v57 }
  0xd2   : > { %v15862_v46 = vpop.f32.mrf.mxu0  ;;  %v15864_v52 = vpop.f32.mrf.mxu1  ;;  %13970 = vmatmul.mubr.msk.f32.gmra.mxu1 %vm258_vm1, %v2237_v51  ;;  %14026 = vmatmul.mubr.msk.f32.gmra.mxu0 %vm258_vm1, %v15454_v59  ;;  %v2241_v59 = vld [vmem:[%s15295_s22 + $0x3b9] sm:$0xff] }
  0xd3   : > { %13972 = vmatprep.mubr.msk.f32.mxu1 %vm258_vm1, %v2238_v12  ;;  %14028 = vmatprep.mubr.msk.f32.mxu0 %vm258_vm1, %v15464_v61  ;;  %v2254_v12 = vld [vmem:[%s15295_s22 + $0x421] sm:$0xff] }
  0xd4   : > { %v15873_v55 = vpop.f32.mrf.mxu0  ;;  %v15875_v57 = vpop.f32.mrf.mxu1 }
  0xd6   : > { %v15878_v60 = vpop.f32.mrf.mxu0  ;;  %v15880_v62 = vpop.f32.mrf.mxu1  ;;  %13973 = vmatmul.mubr.msk.f32.gmra.mxu1 %vm258_vm1, %v2239_v53  ;;  %14029 = vmatmul.mubr.msk.f32.gmra.mxu0 %vm258_vm1, %v15468_v63  ;;  %v2243_v63 = vld [vmem:[%s15295_s22 + $0x3c9] sm:$0xff] }
  0xd7   : > { %13975 = vmatprep.mubr.msk.f32.mxu1 %vm258_vm1, %v2240_v56  ;;  %14031 = vmatprep.mubr.msk.f32.mxu0 %vm258_vm1, %v15478_v1 }
  0xd8   : > { %v15889_v61 = vpop.f32.mrf.mxu0  ;;  %v15891_v0 = vpop.f32.mrf.mxu1 }
  0xda   : > { %v15894_v4 = vpop.f32.mrf.mxu0  ;;  %v15896_v6 = vpop.f32.mrf.mxu1  ;;  %13976 = vmatmul.mubr.msk.f32.gmra.mxu1 %vm258_vm1, %v2241_v59  ;;  %14032 = vmatmul.mubr.msk.f32.gmra.mxu0 %vm258_vm1, %v15482_v3  ;;  %v2245_v3 = vld [vmem:[%s15295_s22 + $0x3d9] sm:$0xff] }
  0xdb   : > { %13978 = vmatprep.mubr.msk.f32.mxu1 %vm258_vm1, %v2242_v2  ;;  %14034 = vmatprep.mubr.msk.f32.mxu0 %vm258_vm1, %v15492_v5  ;;  %v2256_v2 = vld [vmem:[%s15295_s22 + $0x431] sm:$0xff] }
  0xdc   : > { %v15905_v1 = vpop.f32.mrf.mxu0  ;;  %v15907_v8 = vpop.f32.mrf.mxu1 }
  0xde   : > { %v15910_v16 = vpop.f32.mrf.mxu0  ;;  %v15912_v18 = vpop.f32.mrf.mxu1  ;;  %13979 = vmatmul.mubr.msk.f32.gmra.mxu1 %vm258_vm1, %v2243_v63  ;;  %14035 = vmatmul.mubr.msk.f32.gmra.mxu0 %vm258_vm1, %v15496_v7  ;;  %v2247_v7 = vld [vmem:[%s15295_s22 + $0x3e9] sm:$0xff] }
  0xdf   : > { %13981 = vmatprep.mubr.msk.f32.mxu1 %vm258_vm1, %v2244_v14  ;;  %14037 = vmatprep.mubr.msk.f32.mxu0 %vm258_vm1, %v15506_v9 }
  0xe0   : > { %v15921_v5 = vpop.f32.mrf.mxu0  ;;  %v15923_v20 = vpop.f32.mrf.mxu1 }
  0xe2   : > { %v15926_v48 = vpop.f32.mrf.mxu0  ;;  %v15928_v22 = vpop.f32.mrf.mxu1  ;;  %13982 = vmatmul.mubr.msk.f32.gmra.mxu1 %vm258_vm1, %v2245_v3  ;;  %14038 = vmatmul.mubr.msk.f32.gmra.mxu0 %vm258_vm1, %v15510_v11  ;;  %v2249_v11 = vld [vmem:[%s15295_s22 + $0x3f9] sm:$0xff] }
  0xe3   : > { %13984 = vmatprep.mubr.msk.f32.mxu1 %vm258_vm1, %v2246_v47  ;;  %14040 = vmatprep.mubr.msk.f32.mxu0 %vm258_vm1, %v15520_v13 }
  0xe4   : > { %v477_v9 = vpop.f32.mrf.mxu0  ;;  %v565_v24 = vpop.f32.mrf.mxu1 }
  0xe6   : > { %v15938_v28 = vpop.f32.mrf.mxu0  ;;  %v15940_v30 = vpop.f32.mrf.mxu1  ;;  %13985 = vmatmul.mubr.msk.f32.gmra.mxu1 %vm258_vm1, %v2247_v7  ;;  %14041 = vmatmul.mubr.msk.f32.gmra.mxu0 %vm258_vm1, %v15524_v15  ;;  %v2251_v15 = vld [vmem:[%s15295_s22 + $0x409] sm:$0xff]  ;;  %v2258_v7 = vld [vmem:[%s15295_s22 + $0x441] sm:$0xff] }
  0xe7   : > { %13987 = vmatprep.mubr.msk.f32.mxu1 %vm258_vm1, %v2248_v26  ;;  %14043 = vmatprep.mubr.msk.f32.mxu0 %vm258_vm1, %v15534_v17 }
  0xe8   : > { %v15949_v13 = vpop.f32.mrf.mxu0  ;;  %v15951_v32 = vpop.f32.mrf.mxu1 }
  0xea   : > { %v15954_v36 = vpop.f32.mrf.mxu0  ;;  %v15956_v38 = vpop.f32.mrf.mxu1  ;;  %13988 = vmatmul.mubr.msk.f32.gmra.mxu1 %vm258_vm1, %v2249_v11  ;;  %14044 = vmatmul.mubr.msk.f32.gmra.mxu0 %vm258_vm1, %v15538_v19  ;;  %v2253_v19 = vld [vmem:[%s15295_s22 + $0x419] sm:$0xff] }
  0xeb   : > { %13990 = vmatprep.mubr.msk.f32.mxu1 %vm258_vm1, %v2250_v34  ;;  %14046 = vmatprep.mubr.msk.f32.mxu0 %vm258_vm1, %v15548_v21 }
  0xec   : > { %v15965_v17 = vpop.f32.mrf.mxu0  ;;  %v15967_v43 = vpop.f32.mrf.mxu1 }
  0xee   : > { %v15970_v10 = vpop.f32.mrf.mxu0  ;;  %v15972_v49 = vpop.f32.mrf.mxu1  ;;  %13991 = vmatmul.mubr.msk.f32.gmra.mxu1 %vm258_vm1, %v2251_v15  ;;  %14047 = vmatmul.mubr.msk.f32.gmra.mxu0 %vm258_vm1, %v15552_v23  ;;  %v2255_v23 = vld [vmem:[%s15295_s22 + $0x429] sm:$0xff]  ;;  %v2260_v15 = vld [vmem:[%s15295_s22 + $0x451] sm:$0xff] }
  0xef   : > { %13993 = vmatprep.mubr.msk.f32.mxu1 %vm258_vm1, %v2252_v45  ;;  %14049 = vmatprep.mubr.msk.f32.mxu0 %vm258_vm1, %v15562_v25 }
  0xf0   : > { %v15981_v21 = vpop.f32.mrf.mxu0  ;;  %v15983_v51 = vpop.f32.mrf.mxu1 }
  0xf2   : > { %v13706_v53 = vpop.f32.mrf.mxu0  ;;  %v13733_v56 = vpop.f32.mrf.mxu1  ;;  %13994 = vmatmul.mubr.msk.f32.gmra.mxu1 %vm258_vm1, %v2253_v19  ;;  %14050 = vmatmul.mubr.msk.f32.gmra.mxu0 %vm258_vm1, %v15566_v27 }
  0xf3   : > { %13996 = vmatprep.mubr.msk.f32.mxu1 %vm258_vm1, %v2254_v12  ;;  %14052 = vmatprep.mubr.msk.f32.mxu0 %vm258_vm1, %v15576_v29  ;;  %v2257_v29 = vld [vmem:[%s15295_s22 + $0x439] sm:$0xff] }
  0xf4   : > { %v15993_v25 = vpop.f32.mrf.mxu0  ;;  %v15995_v59 = vpop.f32.mrf.mxu1  ;;  %v2261_v53 = vld [vmem:[%s15295_s22 + $0x459] sm:$0xff] }
  0xf6   : > { %v13738_v63 = vpop.f32.mrf.mxu1  ;;  %v13794_v14 = vpop.f32.mrf.mxu0  ;;  %13997 = vmatmul.mubr.msk.f32.gmra.mxu1 %vm258_vm1, %v2255_v23  ;;  %14053 = vmatmul.mubr.msk.f32.gmra.mxu0 %vm258_vm1, %v15580_v31  ;;  %v2262_v23 = vld [vmem:[%s15295_s22 + $0x461] sm:$0xff] }
  0xf7   : > { %v795_v27 = vadd.f32 %v13738_v63, %v15862_v46  ;;  %13999 = vmatprep.mubr.msk.f32.mxu1 %vm258_vm1, %v2256_v2  ;;  %14055 = vmatprep.mubr.msk.f32.mxu0 %vm258_vm1, %v15590_v33  ;;  %v2259_v46 = vld [vmem:[%s15295_s22 + $0x449] sm:$0xff] }
  0xf8   : > { %v789_v3 = vpop.f32.mrf.mxu1  ;;  %v1179_v47 = vpop.f32.mrf.mxu0 }
  0xf9   : > { %v16007_v9 = vadd.f32 %v13794_v14, %v795_v27  ;;  %v790_v24 = vadd.f32 %v789_v3, %v15873_v55  ;;  %v2263_v27 = vld [vmem:[%s15295_s22 + $0x469] sm:$0xff]  ;;  %v2264_v3 = vld [vmem:[%s15295_s22 + $0x471] sm:$0xff] }
  0xfa   : > { %v13741_v26 = vpop.f32.mrf.mxu1  ;;  %v13797_v11 = vpop.f32.mrf.mxu0  ;;  %14000 = vmatmul.mubr.msk.f32.gmra.mxu1 %vm258_vm1, %v2257_v29  ;;  %14056 = vmatmul.mubr.msk.f32.gmra.mxu0 %vm258_vm1, %v15594_v35 }
  0xfb   : > { %v16013_v31 = vadd.f32 %v1179_v47, %v790_v24  ;;  %v805_v33 = vadd.f32 %v13741_v26, %v15878_v60  ;;  %14002 = vmatprep.mubr.msk.f32.mxu1 %vm258_vm1, %v2258_v7  ;;  %14058 = vmatprep.mubr.msk.f32.mxu0 %vm258_vm1, %v15604_v37  ;;  %v2265_v26 = vld [vmem:[%s15295_s22 + $0x479] sm:$0xff] }
  0xfc   : > { %v799_v34 = vpop.f32.mrf.mxu1  ;;  %v1189_v55 = vpop.f32.mrf.mxu0 }
  0xfd   : > { %v16021_v45 = vadd.f32 %v13797_v11, %v805_v33  ;;  %v800_v19 = vadd.f32 %v799_v34, %v15889_v61  ;;  %v3496_v34 = vld [vmem:[%s15295_s22 + $0x9] sm:$0xff] }
  0xfe   : > { %v13744_v35 = vpop.f32.mrf.mxu1  ;;  %v13800_v12 = vpop.f32.mrf.mxu0  ;;  %14003 = vmatmul.mubr.msk.f32.gmra.mxu1 %vm258_vm1, %v2259_v46  ;;  %14059 = vmatmul.mubr.msk.f32.gmra.mxu0 %vm258_vm1, %v15608_v39  ;;  %v3074_v46 = vld [vmem:[%s15295_s22 + $0x1b8] sm:$0xff] }
  0xff   : > { %v16027_v60 = vadd.f32 %v1189_v55, %v800_v19  ;;  %v815_v37 = vadd.f32 %v13744_v35, %v15894_v4  ;;  %14005 = vmatprep.mubr.msk.f32.mxu1 %vm258_vm1, %v2260_v15  ;;  %14061 = vmatprep.mubr.msk.f32.mxu0 %vm258_vm1, %v15618_v41  ;;  %v3497_v19 = vld [vmem:[%s15295_s22 + $0x11] sm:$0xff] }
 0x100   : > { %v809_v56 = vpop.f32.mrf.mxu1  ;;  %v1199_v61 = vpop.f32.mrf.mxu0 }
 0x101   : > { %v16035_v2 = vadd.f32 %v13800_v12, %v815_v37  ;;  %v810_v63 = vadd.f32 %v809_v56, %v15905_v1  ;;  %v3076_v56 = vld [vmem:[%s15295_s22 + $0x1c8] sm:$0xff] }
 0x102   : > { %v13747_v39 = vpop.f32.mrf.mxu1  ;;  %v13803_v14 = vpop.f32.mrf.mxu0  ;;  %14006 = vmatmul.mubr.msk.f32.gmra.mxu1 %vm258_vm1, %v2261_v53  ;;  %14062 = vmatmul.mubr.msk.f32.gmra.mxu0 %vm258_vm1, %v15622_v44 }
 0x103   : > { %v16041_v4 = vadd.f32 %v1199_v61, %v810_v63  ;;  %v825_v41 = vadd.f32 %v13747_v39, %v15910_v16  ;;  %14008 = vmatprep.mubr.msk.f32.mxu1 %vm258_vm1, %v2262_v23  ;;  %14064 = vmatprep.mubr.msk.f32.mxu0 %vm258_vm1, %v15632_v50  ;;  %v3498_v61 = vld [vmem:[%s15295_s22 + $0x19] sm:$0xff]  ;;  %v16089_v39 = vld [vmem:[%s18892_s1 + $0x30] sm:$0xf] }
 0x104   : > { %v819_v1 = vpop.f32.mrf.mxu1  ;;  %v1209_v29 = vpop.f32.mrf.mxu0 }
 0x105   : > { %v16049_v47 = vadd.f32 %v13803_v14, %v825_v41  ;;  %v820_v44 = vadd.f32 %v819_v1, %v15921_v5  ;;  %v2687_v5 = vld [vmem:[%s15295_s22 + $0x120] sm:$0xff]  ;;  %v3077_v41 = vld [vmem:[%s15295_s22 + $0x1d0] sm:$0xff] }
 0x106   : > { %v13750_v7 = vpop.f32.mrf.mxu1  ;;  %v13806_v24 = vpop.f32.mrf.mxu0  ;;  %14009 = vmatmul.mubr.msk.f32.gmra.mxu1 %vm258_vm1, %v2263_v27  ;;  %14065 = vmatmul.mubr.msk.f32.gmra.mxu0 %vm258_vm1, %v15636_v54  ;;  %v3499_v27 = vld [vmem:[%s15295_s22 + $0x21] sm:$0xff] }
 0x107   : > { %v16055_v16 = vadd.f32 %v1209_v29, %v820_v44  ;;  %v834_v50 = vadd.f32 %v13750_v7, %v15926_v48  ;;  %14011 = vmatprep.mubr.msk.f32.mxu1 %vm258_vm1, %v2264_v3  ;;  %14067 = vmatprep.mubr.msk.f32.mxu0 %vm258_vm1, %v15646_v58  ;;  %v3075_v58 = vld [vmem:[%s15295_s22 + $0x1c0] sm:$0xff]  ;;  %v3078_v3 = vld [vmem:[%s15295_s22 + $0x1d8] sm:$0xff]  ;;  %v3500_v44 = vld [vmem:[%s15295_s22 + $0x29] sm:$0xff] }
 0x108   : > { %v829_v11 = vpop.f32.mrf.mxu1  ;;  %v1219_v33 = vpop.f32.mrf.mxu0 }
 0x109   : > { %v16065_v54 = vadd.f32 %v13806_v24, %v834_v50  ;;  %v3080_v33 = vld [vmem:[%s15295_s22 + $0x1e8] sm:$0xff] }
 0x10a   : > { %v13753_v55 = vpop.f32.mrf.mxu1  ;;  %v13809_v15 = vpop.f32.mrf.mxu0  ;;  %14012 = vmatmul.mubr.msk.f32.gmra.mxu1 %vm258_vm1, %v2265_v26  ;;  %14068 = vmatmul.mubr.msk.f32.gmra.mxu0 %vm258_vm1, %v2687_v5  ;;  %v3501_v26 = vld [vmem:[%s15295_s22 + $0x31] sm:$0xff] }
 0x10b   : > { %v844_v48 = vadd.f32 %v13753_v55, %v15938_v28  ;;  %14072 = vmatprep.mubr.msk.f32.mxu1 %vm258_vm1, %v3074_v46  ;;  %14128 = vmatprep.mubr.msk.f32.mxu0 %vm258_vm1, %v3496_v34  ;;  %v16084_v28 = vld [vmem:[%s18892_s1 + $0x2c] sm:$0xf]  ;;  %v3502_v46 = vld [vmem:[%s15295_s22 + $0x39] sm:$0xff] }
 0x10c   : > { %v838_v35 = vpop.f32.mrf.mxu1  ;;  %v1228_v12 = vpop.f32.mrf.mxu0 }
 0x10d   : > { %v16074_v37 = vadd.f32 %v13809_v15, %v844_v48  ;;  %v839_v53 = vadd.f32 %v838_v35, %v15949_v13 }
 0x10e   : > { %v13756_v23 = vpop.f32.mrf.mxu1  ;;  %v13812_v63 = vpop.f32.mrf.mxu0  ;;  %14073 = vmatmul.mubr.msk.f32.vlgmr.msra.gmra.mxu1 %vm258_vm1, %v3075_v58  ;;  %14129 = vmatmul.mubr.msk.f32.vlgmr.msra.gmra.mxu0 %vm258_vm1, %v3497_v19  ;;  %v3081_v58 = vld [vmem:[%s15295_s22 + $0x1f0] sm:$0xff]  ;;  %v3503_v19 = vld [vmem:[%s15295_s22 + $0x41] sm:$0xff] }
 0x10f   : > { %v16091_v13 = vadd.f32 %v1228_v12, %v839_v53  ;;  %v854_v14 = vadd.f32 %v13756_v23, %v15954_v36  ;;  %14183 = vmatpush3.msk.msra.mxu1 %vm367_vm0, %v15826_v40  ;;  %14239 = vmatpush3.msk.msra.mxu0 %vm367_vm0, %v15831_v42  ;;  %v3504_v53 = vld [vmem:[%s15295_s22 + $0x49] sm:$0xff] }
 0x110   : > { %v848_v1 = vpop.f32.mrf.mxu1  ;;  %v1238_v29 = vpop.f32.mrf.mxu0  ;;  %14075 = vmatprep.mubr.msk.f32.mxu1 %vm258_vm1, %v3076_v56  ;;  %14131 = vmatprep.mubr.msk.f32.mxu0 %vm258_vm1, %v3498_v61 }
 0x111   : > { %v16104_v7 = vadd.f32 %v13812_v63, %v854_v14  ;;  %v849_v40 = vadd.f32 %v848_v1, %v15965_v17  ;;  %14294 = vmatprep.subr.msk.mxu1 %vm367_vm0, %v16084_v28  ;;  %14350 = vmatprep.subr.msk.mxu0 %vm367_vm0, %v16089_v39  ;;  %v3079_v17 = vld [vmem:[%s15295_s22 + $0x1e0] sm:$0xff] }
 0x112   : > { %v13759_v42 = vpop.f32.mrf.mxu1  ;;  %v13815_v36 = vpop.f32.mrf.mxu0  ;;  %14076 = vmatmul.mubr.msk.f32.gmra.mxu1 %vm258_vm1, %v3077_v41  ;;  %14132 = vmatmul.mubr.msk.f32.gmra.mxu0 %vm258_vm1, %v3499_v27  ;;  %v3083_v41 = vld [vmem:[%s15295_s22 + $0x200] sm:$0xff]  ;;  %v3505_v27 = vld [vmem:[%s15295_s22 + $0x51] sm:$0xff] }
 0x113   : > { %v16113_v24 = vadd.f32 %v1238_v29, %v849_v40  ;;  %v864_v50 = vadd.f32 %v13759_v42, %v15970_v10  ;;  %14078 = vmatprep.mubr.msk.f32.mxu1 %vm258_vm1, %v3078_v3  ;;  %14134 = vmatprep.mubr.msk.f32.mxu0 %vm258_vm1, %v3500_v44  ;;  %v3084_v29 = vld [vmem:[%s15295_s22 + $0x208] sm:$0xff]  ;;  %v3506_v3 = vld [vmem:[%s15295_s22 + $0x59] sm:$0xff] }
 0x114   : > { %v858_v5 = vpop.f32.mrf.mxu1  ;;  %v1248_v11 = vpop.f32.mrf.mxu0 }
 0x115   : > { %v16122_v34 = vadd.f32 %v13815_v36, %v864_v50  ;;  %v859_v55 = vadd.f32 %v858_v5, %v15981_v21  ;;  %v3082_v21 = vld [vmem:[%s15295_s22 + $0x1f8] sm:$0xff] }
 0x116   : > { %v13762_v15 = vpop.f32.mrf.mxu1  ;;  %v13818_v10 = vpop.f32.mrf.mxu0  ;;  %14079 = vmatmul.mubr.msk.f32.gmra.mxu1 %vm258_vm1, %v3079_v17  ;;  %14135 = vmatmul.mubr.msk.f32.gmra.mxu0 %vm258_vm1, %v3501_v26  ;;  %v3085_v17 = vld [vmem:[%s15295_s22 + $0x210] sm:$0xff]  ;;  %v3507_v26 = vld [vmem:[%s15295_s22 + $0x61] sm:$0xff] }
 0x117   : > { %v16127_v48 = vadd.f32 %v1248_v11, %v859_v55  ;;  %14081 = vmatprep.mubr.msk.f32.mxu1 %vm258_vm1, %v3080_v33  ;;  %14137 = vmatprep.mubr.msk.f32.mxu0 %vm258_vm1, %v3502_v46  ;;  %v3086_v11 = vld [vmem:[%s15295_s22 + $0x218] sm:$0xff]  ;;  %v3508_v33 = vld [vmem:[%s15295_s22 + $0x69] sm:$0xff] }
 0x118   : > { %v868_v35 = vpop.f32.mrf.mxu1  ;;  %v1258_v12 = vpop.f32.mrf.mxu0 }
 0x119   : > { %v869_v56 = vadd.f32 %v868_v35, %v15993_v25  ;;  %v3509_v35 = vld [vmem:[%s15295_s22 + $0x71] sm:$0xff] }
 0x11a   : > { %v13765_v61 = vpop.f32.mrf.mxu1  ;;  %v13821_v23 = vpop.f32.mrf.mxu0  ;;  %14082 = vmatmul.mubr.msk.f32.gmra.mxu1 %vm258_vm1, %v3081_v58  ;;  %14138 = vmatmul.mubr.msk.f32.gmra.mxu0 %vm258_vm1, %v3503_v19  ;;  %v3087_v19 = vld [vmem:[%s15295_s22 + $0x220] sm:$0xff] }
 0x11b   : > { %v16138_v63 = vadd.f32 %v1258_v12, %v869_v56  ;;  %v883_v14 = vadd.f32 %v13765_v61, %v15864_v52  ;;  %14084 = vmatprep.mubr.msk.f32.mxu1 %vm258_vm1, %v3082_v21  ;;  %14140 = vmatprep.mubr.msk.f32.mxu0 %vm258_vm1, %v3504_v53  ;;  %v3088_v21 = vld [vmem:[%s15295_s22 + $0x228] sm:$0xff]  ;;  %v3510_v53 = vld [vmem:[%s15295_s22 + $0x79] sm:$0xff] }
 0x11c   : > { %v877_v1 = vpop.f32.mrf.mxu1  ;;  %v1267_v25 = vpop.f32.mrf.mxu0 }
 0x11d   : > { %v16147_v44 = vadd.f32 %v13821_v23, %v883_v14  ;;  %v878_v40 = vadd.f32 %v877_v1, %v15875_v57  ;;  %v3511_v1 = vld [vmem:[%s15295_s22 + $0x81] sm:$0xff] }
 0x11e   : > { %v13768_v42 = vpop.f32.mrf.mxu1  ;;  %v13824_v52 = vpop.f32.mrf.mxu0  ;;  %14085 = vmatmul.mubr.msk.f32.gmra.mxu1 %vm258_vm1, %v3083_v41  ;;  %14141 = vmatmul.mubr.msk.f32.gmra.mxu0 %vm258_vm1, %v3505_v27  ;;  %v3089_v27 = vld [vmem:[%s15295_s22 + $0x230] sm:$0xff] }
 0x11f   : > { %v16152_v36 = vadd.f32 %v1267_v25, %v878_v40  ;;  %v893_v50 = vadd.f32 %v13768_v42, %v15880_v62  ;;  %14087 = vmatprep.mubr.msk.f32.mxu1 %vm258_vm1, %v3084_v29  ;;  %14143 = vmatprep.mubr.msk.f32.mxu0 %vm258_vm1, %v3506_v3  ;;  %v3090_v29 = vld [vmem:[%s15295_s22 + $0x238] sm:$0xff]  ;;  %v3512_v3 = vld [vmem:[%s15295_s22 + $0x89] sm:$0xff] }
 0x120   : > { %v887_v5 = vpop.f32.mrf.mxu1  ;;  %v1277_v57 = vpop.f32.mrf.mxu0 }
 0x121   : > { %v16161_v46 = vadd.f32 %v13824_v52, %v893_v50  ;;  %v888_v55 = vadd.f32 %v887_v5, %v15891_v0  ;;  %v3513_v5 = vld [vmem:[%s15295_s22 + $0x91] sm:$0xff] }
 0x122   : > { %v13771_v15 = vpop.f32.mrf.mxu1  ;;  %v13827_v62 = vpop.f32.mrf.mxu0  ;;  %14088 = vmatmul.mubr.msk.f32.gmra.mxu1 %vm258_vm1, %v3085_v17  ;;  %14144 = vmatmul.mubr.msk.f32.gmra.mxu0 %vm258_vm1, %v3507_v26  ;;  %v3091_v26 = vld [vmem:[%s15295_s22 + $0x240] sm:$0xff] }
 0x123   : > { %v16166_v10 = vadd.f32 %v1277_v57, %v888_v55  ;;  %v903_v58 = vadd.f32 %v13771_v15, %v15896_v6  ;;  %14090 = vmatprep.mubr.msk.f32.mxu1 %vm258_vm1, %v3086_v11  ;;  %14146 = vmatprep.mubr.msk.f32.mxu0 %vm258_vm1, %v3508_v33  ;;  %v3092_v11 = vld [vmem:[%s15295_s22 + $0x248] sm:$0xff]  ;;  %v3514_v33 = vld [vmem:[%s15295_s22 + $0x99] sm:$0xff] }
 0x124   : > { %v897_v12 = vpop.f32.mrf.mxu1  ;;  %v1287_v0 = vpop.f32.mrf.mxu0 }
 0x125   : > { %v16175_v56 = vadd.f32 %v13827_v62, %v903_v58  ;;  %v898_v61 = vadd.f32 %v897_v12, %v15907_v8  ;;  %v3093_v58 = vld [vmem:[%s15295_s22 + $0x250] sm:$0xff] }
 0x126   : > { %v13774_v23 = vpop.f32.mrf.mxu1  ;;  %v13830_v6 = vpop.f32.mrf.mxu0  ;;  %14091 = vmatmul.mubr.msk.f32.gmra.mxu1 %vm258_vm1, %v3087_v19  ;;  %14147 = vmatmul.mubr.msk.f32.gmra.mxu0 %vm258_vm1, %v3509_v35  ;;  %v3515_v19 = vld [vmem:[%s15295_s22 + $0xa1] sm:$0xff] }
 0x127   : > { %v16180_v14 = vadd.f32 %v1287_v0, %v898_v61  ;;  %v913_v41 = vadd.f32 %v13774_v23, %v15912_v18  ;;  %14093 = vmatprep.mubr.msk.f32.mxu1 %vm258_vm1, %v3088_v21  ;;  %14149 = vmatprep.mubr.msk.f32.mxu0 %vm258_vm1, %v3510_v53  ;;  %v3094_v0 = vld [vmem:[%s15295_s22 + $0x258] sm:$0xff]  ;;  %v3516_v21 = vld [vmem:[%s15295_s22 + $0xa9] sm:$0xff] }
 0x128   : > { %v907_v25 = vpop.f32.mrf.mxu1  ;;  %v1297_v8 = vpop.f32.mrf.mxu0 }
 0x129   : > { %v16189_v40 = vadd.f32 %v13830_v6, %v913_v41  ;;  %v908_v42 = vadd.f32 %v907_v25, %v15923_v20 }
 0x12a   : > { %v13777_v52 = vpop.f32.mrf.mxu1  ;;  %v13833_v18 = vpop.f32.mrf.mxu0  ;;  %14094 = vmatmul.mubr.msk.f32.gmra.mxu1 %vm258_vm1, %v3089_v27  ;;  %14150 = vmatmul.mubr.msk.f32.gmra.mxu0 %vm258_vm1, %v3511_v1  ;;  %v3095_v27 = vld [vmem:[%s15295_s22 + $0x260] sm:$0xff]  ;;  %v3517_v1 = vld [vmem:[%s15295_s22 + $0xb1] sm:$0xff] }
 0x12b   : > { %v16194_v50 = vadd.f32 %v1297_v8, %v908_v42  ;;  %v922_v17 = vadd.f32 %v13777_v52, %v15928_v22  ;;  %14096 = vmatprep.mubr.msk.f32.mxu1 %vm258_vm1, %v3090_v29  ;;  %14152 = vmatprep.mubr.msk.f32.mxu0 %vm258_vm1, %v3512_v3  ;;  %v3096_v8 = vld [vmem:[%s15295_s22 + $0x268] sm:$0xff]  ;;  %v3518_v29 = vld [vmem:[%s15295_s22 + $0xb9] sm:$0xff] }
 0x12c   : > { %v917_v57 = vpop.f32.mrf.mxu1  ;;  %v1307_v20 = vpop.f32.mrf.mxu0 }
 0x12d   : > { %v16203_v55 = vadd.f32 %v13833_v18, %v922_v17  ;;  %v3098_v20 = vld [vmem:[%s15295_s22 + $0x278] sm:$0xff] }
 0x12e   : > { %v13780_v15 = vpop.f32.mrf.mxu1  ;;  %v13836_v62 = vpop.f32.mrf.mxu0  ;;  %14097 = vmatmul.mubr.msk.f32.gmra.mxu1 %vm258_vm1, %v3091_v26  ;;  %14153 = vmatmul.mubr.msk.f32.gmra.mxu0 %vm258_vm1, %v3513_v5  ;;  %v3097_v26 = vld [vmem:[%s15295_s22 + $0x270] sm:$0xff]  ;;  %v3519_v5 = vld [vmem:[%s15295_s22 + $0xc1] sm:$0xff] }
 0x12f   : > { %v932_v22 = vadd.f32 %v13780_v15, %v15940_v30  ;;  %14099 = vmatprep.mubr.msk.f32.mxu1 %vm258_vm1, %v3092_v11  ;;  %14155 = vmatprep.mubr.msk.f32.mxu0 %vm258_vm1, %v3514_v33  ;;  %v3520_v11 = vld [vmem:[%s15295_s22 + $0xc9] sm:$0xff] }
 0x130   : > { %v926_v35 = vpop.f32.mrf.mxu1  ;;  %v1316_v12 = vpop.f32.mrf.mxu0 }
 0x131   : > { %v16214_v53 = vadd.f32 %v13836_v62, %v932_v22  ;;  %v927_v61 = vadd.f32 %v926_v35, %v15951_v32 }
 0x132   : > { %v13783_v23 = vpop.f32.mrf.mxu1  ;;  %v13839_v30 = vpop.f32.mrf.mxu0  ;;  %14100 = vmatmul.mubr.msk.f32.gmra.mxu1 %vm258_vm1, %v3093_v58  ;;  %14156 = vmatmul.mubr.msk.f32.gmra.mxu0 %vm258_vm1, %v3515_v19  ;;  %v3099_v58 = vld [vmem:[%s15295_s22 + $0x280] sm:$0xff]  ;;  %v3521_v19 = vld [vmem:[%s15295_s22 + $0xd1] sm:$0xff] }
 0x133   : > { %v16219_v6 = vadd.f32 %v1316_v12, %v927_v61  ;;  %v942_v41 = vadd.f32 %v13783_v23, %v15956_v38  ;;  %14102 = vmatprep.mubr.msk.f32.mxu1 %vm258_vm1, %v3094_v0  ;;  %14158 = vmatprep.mubr.msk.f32.mxu0 %vm258_vm1, %v3516_v21  ;;  %v3522_v0 = vld [vmem:[%s15295_s22 + $0xd9] sm:$0xff] }
 0x134   : > { %v936_v25 = vpop.f32.mrf.mxu1  ;;  %v1326_v32 = vpop.f32.mrf.mxu0 }
 0x135   : > { %v16228_v3 = vadd.f32 %v13839_v30, %v942_v41  ;;  %v937_v42 = vadd.f32 %v936_v25, %v15967_v43 }
 0x136   : > { %v13786_v52 = vpop.f32.mrf.mxu1  ;;  %v13842_v38 = vpop.f32.mrf.mxu0  ;;  %14103 = vmatmul.mubr.msk.f32.gmra.mxu1 %vm258_vm1, %v3095_v27  ;;  %14159 = vmatmul.mubr.msk.f32.gmra.mxu0 %vm258_vm1, %v3517_v1  ;;  %v3101_v27 = vld [vmem:[%s15295_s22 + $0x290] sm:$0xff]  ;;  %v3523_v1 = vld [vmem:[%s15295_s22 + $0xe1] sm:$0xff] }
 0x137   : > { %v16233_v18 = vadd.f32 %v1326_v32, %v937_v42  ;;  %v952_v17 = vadd.f32 %v13786_v52, %v15972_v49  ;;  %14105 = vmatprep.mubr.msk.f32.mxu1 %vm258_vm1, %v3096_v8  ;;  %14161 = vmatprep.mubr.msk.f32.mxu0 %vm258_vm1, %v3518_v29  ;;  %v3102_v32 = vld [vmem:[%s15295_s22 + $0x298] sm:$0xff]  ;;  %v3524_v8 = vld [vmem:[%s15295_s22 + $0xe9] sm:$0xff] }
 0x138   : > { %v946_v57 = vpop.f32.mrf.mxu1  ;;  %v1336_v43 = vpop.f32.mrf.mxu0 }
 0x139   : > { %v16242_v33 = vadd.f32 %v13842_v38, %v952_v17  ;;  %v947_v15 = vadd.f32 %v946_v57, %v15983_v51  ;;  %v3100_v51 = vld [vmem:[%s15295_s22 + $0x288] sm:$0xff] }
 0x13a   : > { %v13789_v62 = vpop.f32.mrf.mxu1  ;;  %v13845_v49 = vpop.f32.mrf.mxu0  ;;  %14106 = vmatmul.mubr.msk.f32.gmra.mxu1 %vm258_vm1, %v3097_v26  ;;  %14162 = vmatmul.mubr.msk.f32.gmra.mxu0 %vm258_vm1, %v3519_v5  ;;  %v3103_v26 = vld [vmem:[%s15295_s22 + $0x2a0] sm:$0xff]  ;;  %v3525_v5 = vld [vmem:[%s15295_s22 + $0xf1] sm:$0xff] }
 0x13b   : > { %v16247_v22 = vadd.f32 %v1336_v43, %v947_v15  ;;  %14108 = vmatprep.mubr.msk.f32.mxu1 %vm258_vm1, %v3098_v20  ;;  %14164 = vmatprep.mubr.msk.f32.mxu0 %vm258_vm1, %v3520_v11  ;;  %v3104_v43 = vld [vmem:[%s15295_s22 + $0x2a8] sm:$0xff]  ;;  %v3526_v20 = vld [vmem:[%s15295_s22 + $0xf9] sm:$0xff] }
 0x13c   : > { %v956_v35 = vpop.f32.mrf.mxu1  ;;  %v1346_v12 = vpop.f32.mrf.mxu0 }
 0x13d   : > { %v957_v21 = vadd.f32 %v956_v35, %v15995_v59  ;;  %v3527_v35 = vld [vmem:[%s15295_s22 + $0x101] sm:$0xff] }
 0x13e   : > { %v13850_v61 = vpop.f32.mrf.mxu1  ;;  %v13906_v23 = vpop.f32.mrf.mxu0  ;;  %14109 = vmatmul.mubr.msk.f32.gmra.mxu1 %vm258_vm1, %v3099_v58  ;;  %14165 = vmatmul.mubr.msk.f32.gmra.mxu0 %vm258_vm1, %v3521_v19  ;;  %v3105_v19 = vld [vmem:[%s15295_s22 + $0x2b0] sm:$0xff] }
 0x13f   : > { %v16258_v30 = vadd.f32 %v1346_v12, %v957_v21  ;;  %v1777_v41 = vadd.f32 %v13850_v61, %v16007_v9  ;;  %14111 = vmatprep.mubr.msk.f32.mxu1 %vm258_vm1, %v3100_v51  ;;  %14167 = vmatprep.mubr.msk.f32.mxu0 %vm258_vm1, %v3522_v0  ;;  %v3106_v51 = vld [vmem:[%s15295_s22 + $0x2b8] sm:$0xff]  ;;  %v3528_v0 = vld [vmem:[%s15295_s22 + $0x109] sm:$0xff] }
 0x140   : > { %v1601_v25 = vpop.f32.mrf.mxu1  ;;  %v2023_v59 = vpop.f32.mrf.mxu0 }
 0x141   : > { %v16267_v29 = vadd.f32 %v13906_v23, %v1777_v41  ;;  %v1776_v42 = vadd.f32 %v1601_v25, %v16013_v31  ;;  %v3529_v25 = vld [vmem:[%s15295_s22 + $0x111] sm:$0xff] }
 0x142   : > { %v13853_v52 = vpop.f32.mrf.mxu1  ;;  %v13909_v9 = vpop.f32.mrf.mxu0  ;;  %14112 = vmatmul.mubr.msk.f32.gmra.mxu1 %vm258_vm1, %v3101_v27  ;;  %14168 = vmatmul.mubr.msk.f32.gmra.mxu0 %vm258_vm1, %v3523_v1  ;;  %v3107_v1 = vld [vmem:[%s15295_s22 + $0x2c0] sm:$0xff] }
 0x143   : > { %v16272_v38 = vadd.f32 %v2023_v59, %v1776_v42  ;;  %v1779_v17 = vadd.f32 %v13853_v52, %v16021_v45  ;;  %14114 = vmatprep.mubr.msk.f32.mxu1 %vm258_vm1, %v3102_v32  ;;  %14170 = vmatprep.mubr.msk.f32.mxu0 %vm258_vm1, %v3524_v8  ;;  %v3108_v32 = vld [vmem:[%s15295_s22 + $0x2c8] sm:$0xff]  ;;  %v3530_v8 = vld [vmem:[%s15295_s22 + $0x119] sm:$0xff] }
 0x144   : > { %v1611_v57 = vpop.f32.mrf.mxu1  ;;  %v2033_v31 = vpop.f32.mrf.mxu0 }
 0x145   : > { %v16281_v11 = vadd.f32 %v13909_v9, %v1779_v17  ;;  %v1778_v15 = vadd.f32 %v1611_v57, %v16027_v60  ;;  %v3531_v57 = vld [vmem:[%s15295_s22 + $0x121] sm:$0xff] }
 0x146   : > { %v13856_v62 = vpop.f32.mrf.mxu1  ;;  %v13912_v45 = vpop.f32.mrf.mxu0  ;;  %14115 = vmatmul.mubr.msk.f32.gmra.mxu1 %vm258_vm1, %v3103_v26  ;;  %14171 = vmatmul.mubr.msk.f32.gmra.mxu0 %vm258_vm1, %v3525_v5  ;;  %v3109_v5 = vld [vmem:[%s15295_s22 + $0x2d0] sm:$0xff] }
 0x147   : > { %v16286_v49 = vadd.f32 %v2033_v31, %v1778_v15  ;;  %v1781_v58 = vadd.f32 %v13856_v62, %v16035_v2  ;;  %14117 = vmatprep.mubr.msk.f32.mxu1 %vm258_vm1, %v3104_v43  ;;  %14173 = vmatprep.mubr.msk.f32.mxu0 %vm258_vm1, %v3526_v20  ;;  %v3918_v43 = vld [vmem:[%s15295_s22 + $0x6c0] sm:$0xff]  ;;  %v4340_v20 = vld [vmem:[%s15295_s22 + $0x870] sm:$0xff] }
 0x148   : > { %v1621_v12 = vpop.f32.mrf.mxu1  ;;  %v2043_v60 = vpop.f32.mrf.mxu0 }
 0x149   : > { %v16295_v21 = vadd.f32 %v13912_v45, %v1781_v58  ;;  %v1780_v61 = vadd.f32 %v1621_v12, %v16041_v4  ;;  %v3919_v58 = vld [vmem:[%s15295_s22 + $0x6c8] sm:$0xff] }
 0x14a   : > { %v13859_v23 = vpop.f32.mrf.mxu1  ;;  %v13915_v2 = vpop.f32.mrf.mxu0  ;;  %14118 = vmatmul.mubr.msk.f32.gmra.mxu1 %vm258_vm1, %v3105_v19  ;;  %14174 = vmatmul.mubr.msk.f32.gmra.mxu0 %vm258_vm1, %v3527_v35  ;;  %v4341_v19 = vld [vmem:[%s15295_s22 + $0x878] sm:$0xff] }
 0x14b   : > { %v16300_v41 = vadd.f32 %v2043_v60, %v1780_v61  ;;  %v1783_v27 = vadd.f32 %v13859_v23, %v16049_v47  ;;  %14120 = vmatprep.mubr.msk.f32.mxu1 %vm258_vm1, %v3106_v51  ;;  %14176 = vmatprep.mubr.msk.f32.mxu0 %vm258_vm1, %v3528_v0  ;;  %v3920_v0 = vld [vmem:[%s15295_s22 + $0x6d0] sm:$0xff]  ;;  %v4342_v61 = vld [vmem:[%s15295_s22 + $0x880] sm:$0xff] }
 0x14c   : > { %v1631_v59 = vpop.f32.mrf.mxu1  ;;  %v2053_v4 = vpop.f32.mrf.mxu0 }
 0x14d   : > { %v16309_v42 = vadd.f32 %v13915_v2, %v1783_v27  ;;  %v1782_v52 = vadd.f32 %v1631_v59, %v16055_v16  ;;  %v16347_v27 = vld [vmem:[%s18892_s1 + $0x38] sm:$0xf]  ;;  %v4343_v59 = vld [vmem:[%s15295_s22 + $0x888] sm:$0xff] }
 0x14e   : > { %v13862_v9 = vpop.f32.mrf.mxu1  ;;  %v13918_v47 = vpop.f32.mrf.mxu0  ;;  %14121 = vmatmul.mubr.msk.f32.gmra.mxu1 %vm258_vm1, %v3107_v1  ;;  %14177 = vmatmul.mubr.msk.f32.gmra.mxu0 %vm258_vm1, %v3529_v25  ;;  %v3921_v25 = vld [vmem:[%s15295_s22 + $0x6d8] sm:$0xff] }
 0x14f   : > { %v16314_v17 = vadd.f32 %v2053_v4, %v1782_v52  ;;  %v1784_v26 = vadd.f32 %v13862_v9, %v16065_v54  ;;  %14123 = vmatprep.mubr.msk.f32.mxu1 %vm258_vm1, %v3108_v32  ;;  %14179 = vmatprep.mubr.msk.f32.mxu0 %vm258_vm1, %v3530_v8  ;;  %v3922_v8 = vld [vmem:[%s15295_s22 + $0x6e0] sm:$0xff]  ;;  %v4344_v52 = vld [vmem:[%s15295_s22 + $0x890] sm:$0xff] }
 0x150   : > { %v1641_v31 = vpop.f32.mrf.mxu1  ;;  %v2063_v16 = vpop.f32.mrf.mxu0 }
 0x151   : > { %v16323_v15 = vadd.f32 %v13918_v47, %v1784_v26  ;;  %v3924_v16 = vld [vmem:[%s15295_s22 + $0x6f0] sm:$0xff] }
 0x152   : > { %v13865_v62 = vpop.f32.mrf.mxu1  ;;  %v13921_v45 = vpop.f32.mrf.mxu0  ;;  %14124 = vmatmul.mubr.msk.f32.gmra.mxu1 %vm258_vm1, %v3109_v5  ;;  %14180 = vmatmul.mubr.msk.f32.gmra.mxu0 %vm258_vm1, %v3531_v57  ;;  %v4345_v5 = vld [vmem:[%s15295_s22 + $0x898] sm:$0xff] }
 0x153   : > { %v1786_v54 = vadd.f32 %v13865_v62, %v16074_v37  ;;  %14184 = vmatprep.mubr.msk.f32.mxu1 %vm258_vm1, %v3918_v43  ;;  %14240 = vmatprep.mubr.msk.f32.mxu0 %vm258_vm1, %v4340_v20  ;;  %v16342_v37 = vld [vmem:[%s18892_s1 + $0x34] sm:$0xf]  ;;  %v4346_v43 = vld [vmem:[%s15295_s22 + $0x8a0] sm:$0xff] }
 0x154   : > { %v1650_v35 = vpop.f32.mrf.mxu1  ;;  %v2072_v12 = vpop.f32.mrf.mxu0 }
 0x155   : > { %v16332_v60 = vadd.f32 %v13921_v45, %v1786_v54  ;;  %v1785_v51 = vadd.f32 %v1650_v35, %v16091_v13 }
 0x156   : > { %v13868_v23 = vpop.f32.mrf.mxu1  ;;  %v13924_v2 = vpop.f32.mrf.mxu0  ;;  %14185 = vmatmul.mubr.msk.f32.vlgmr.msra.gmra.mxu1 %vm258_vm1, %v3919_v58  ;;  %14241 = vmatmul.mubr.msk.f32.vlgmr.msra.gmra.mxu0 %vm258_vm1, %v4341_v19  ;;  %v3925_v58 = vld [vmem:[%s15295_s22 + $0x6f8] sm:$0xff]  ;;  %v4347_v19 = vld [vmem:[%s15295_s22 + $0x8a8] sm:$0xff] }
 0x157   : > { %v16349_v13 = vadd.f32 %v2072_v12, %v1785_v51  ;;  %v1788_v1 = vadd.f32 %v13868_v23, %v16104_v7  ;;  %14295 = vmatpush3.msk.msra.mxu1 %vm367_vm0, %v16084_v28  ;;  %14351 = vmatpush3.msk.msra.mxu0 %vm367_vm0, %v16089_v39  ;;  %v4348_v51 = vld [vmem:[%s15295_s22 + $0x8b0] sm:$0xff] }
 0x158   : > { %v1660_v4 = vpop.f32.mrf.mxu1  ;;  %v2082_v32 = vpop.f32.mrf.mxu0  ;;  %14187 = vmatprep.mubr.msk.f32.mxu1 %vm258_vm1, %v3920_v0  ;;  %14243 = vmatprep.mubr.msk.f32.mxu0 %vm258_vm1, %v4342_v61 }
 0x159   : > { %v16362_v9 = vadd.f32 %v13924_v2, %v1788_v1  ;;  %v1787_v28 = vadd.f32 %v1660_v4, %v16113_v24  ;;  %14406 = vmatprep.subr.msk.mxu1 %vm367_vm0, %v16342_v37  ;;  %14462 = vmatprep.subr.msk.mxu0 %vm367_vm0, %v16347_v27  ;;  %v3923_v24 = vld [vmem:[%s15295_s22 + $0x6e8] sm:$0xff] }
 0x15a   : > { %v13871_v39 = vpop.f32.mrf.mxu1  ;;  %v13927_v7 = vpop.f32.mrf.mxu0  ;;  %14188 = vmatmul.mubr.msk.f32.gmra.mxu1 %vm258_vm1, %v3921_v25  ;;  %14244 = vmatmul.mubr.msk.f32.gmra.mxu0 %vm258_vm1, %v4343_v59  ;;  %v3927_v25 = vld [vmem:[%s15295_s22 + $0x708] sm:$0xff]  ;;  %v4349_v59 = vld [vmem:[%s15295_s22 + $0x8b8] sm:$0xff] }
 0x15b   : > { %v16371_v47 = vadd.f32 %v2082_v32, %v1787_v28  ;;  %v1790_v26 = vadd.f32 %v13871_v39, %v16122_v34  ;;  %14190 = vmatprep.mubr.msk.f32.mxu1 %vm258_vm1, %v3922_v8  ;;  %14246 = vmatprep.mubr.msk.f32.mxu0 %vm258_vm1, %v4344_v52  ;;  %v3928_v32 = vld [vmem:[%s15295_s22 + $0x710] sm:$0xff]  ;;  %v4350_v8 = vld [vmem:[%s15295_s22 + $0x8c0] sm:$0xff] }
 0x15c   : > { %v1670_v57 = vpop.f32.mrf.mxu1  ;;  %v2092_v31 = vpop.f32.mrf.mxu0 }
 0x15d   : > { %v16380_v20 = vadd.f32 %v13927_v7, %v1790_v26  ;;  %v1789_v62 = vadd.f32 %v1670_v57, %v16127_v48  ;;  %v3926_v48 = vld [vmem:[%s15295_s22 + $0x700] sm:$0xff] }
 0x15e   : > { %v13874_v45 = vpop.f32.mrf.mxu1  ;;  %v13930_v34 = vpop.f32.mrf.mxu0  ;;  %14191 = vmatmul.mubr.msk.f32.gmra.mxu1 %vm258_vm1, %v3923_v24  ;;  %14247 = vmatmul.mubr.msk.f32.gmra.mxu0 %vm258_vm1, %v4345_v5  ;;  %v3929_v24 = vld [vmem:[%s15295_s22 + $0x718] sm:$0xff]  ;;  %v4351_v5 = vld [vmem:[%s15295_s22 + $0x8c8] sm:$0xff] }
 0x15f   : > { %v16385_v54 = vadd.f32 %v2092_v31, %v1789_v62  ;;  %14193 = vmatprep.mubr.msk.f32.mxu1 %vm258_vm1, %v3924_v16  ;;  %14249 = vmatprep.mubr.msk.f32.mxu0 %vm258_vm1, %v4346_v43  ;;  %v3930_v31 = vld [vmem:[%s15295_s22 + $0x720] sm:$0xff]  ;;  %v4352_v16 = vld [vmem:[%s15295_s22 + $0x8d0] sm:$0xff] }
 0x160   : > { %v1680_v35 = vpop.f32.mrf.mxu1  ;;  %v2102_v12 = vpop.f32.mrf.mxu0 }
 0x161   : > { %v1791_v0 = vadd.f32 %v1680_v35, %v16138_v63  ;;  %v4353_v35 = vld [vmem:[%s15295_s22 + $0x8d8] sm:$0xff] }
 0x162   : > { %v13877_v61 = vpop.f32.mrf.mxu1  ;;  %v13933_v23 = vpop.f32.mrf.mxu0  ;;  %14194 = vmatmul.mubr.msk.f32.gmra.mxu1 %vm258_vm1, %v3925_v58  ;;  %14250 = vmatmul.mubr.msk.f32.gmra.mxu0 %vm258_vm1, %v4347_v19  ;;  %v3931_v19 = vld [vmem:[%s15295_s22 + $0x728] sm:$0xff] }
 0x163   : > { %v16396_v2 = vadd.f32 %v2102_v12, %v1791_v0  ;;  %v1793_v1 = vadd.f32 %v13877_v61, %v16147_v44  ;;  %14196 = vmatprep.mubr.msk.f32.mxu1 %vm258_vm1, %v3926_v48  ;;  %14252 = vmatprep.mubr.msk.f32.mxu0 %vm258_vm1, %v4348_v51  ;;  %v3932_v48 = vld [vmem:[%s15295_s22 + $0x730] sm:$0xff]  ;;  %v4354_v51 = vld [vmem:[%s15295_s22 + $0x8e0] sm:$0xff] }
 0x164   : > { %v1689_v4 = vpop.f32.mrf.mxu1  ;;  %v2111_v63 = vpop.f32.mrf.mxu0 }
 0x165   : > { %v16405_v52 = vadd.f32 %v13933_v23, %v1793_v1  ;;  %v1792_v28 = vadd.f32 %v1689_v4, %v16152_v36  ;;  %v4355_v4 = vld [vmem:[%s15295_s22 + $0x8e8] sm:$0xff] }
 0x166   : > { %v13880_v39 = vpop.f32.mrf.mxu1  ;;  %v13936_v44 = vpop.f32.mrf.mxu0  ;;  %14197 = vmatmul.mubr.msk.f32.gmra.mxu1 %vm258_vm1, %v3927_v25  ;;  %14253 = vmatmul.mubr.msk.f32.gmra.mxu0 %vm258_vm1, %v4349_v59  ;;  %v3933_v59 = vld [vmem:[%s15295_s22 + $0x738] sm:$0xff] }
 0x167   : > { %v16410_v7 = vadd.f32 %v2111_v63, %v1792_v28  ;;  %v1795_v26 = vadd.f32 %v13880_v39, %v16161_v46  ;;  %14199 = vmatprep.mubr.msk.f32.mxu1 %vm258_vm1, %v3928_v32  ;;  %14255 = vmatprep.mubr.msk.f32.mxu0 %vm258_vm1, %v4350_v8  ;;  %v3934_v32 = vld [vmem:[%s15295_s22 + $0x740] sm:$0xff]  ;;  %v4356_v8 = vld [vmem:[%s15295_s22 + $0x8f0] sm:$0xff] }
 0x168   : > { %v1699_v57 = vpop.f32.mrf.mxu1  ;;  %v2121_v36 = vpop.f32.mrf.mxu0 }
 0x169   : > { %v16419_v43 = vadd.f32 %v13936_v44, %v1795_v26  ;;  %v1794_v62 = vadd.f32 %v1699_v57, %v16166_v10  ;;  %v4357_v57 = vld [vmem:[%s15295_s22 + $0x8f8] sm:$0xff] }
 0x16a   : > { %v13883_v45 = vpop.f32.mrf.mxu1  ;;  %v13939_v46 = vpop.f32.mrf.mxu0  ;;  %14200 = vmatmul.mubr.msk.f32.gmra.mxu1 %vm258_vm1, %v3929_v24  ;;  %14256 = vmatmul.mubr.msk.f32.gmra.mxu0 %vm258_vm1, %v4351_v5  ;;  %v3935_v5 = vld [vmem:[%s15295_s22 + $0x748] sm:$0xff] }
 0x16b   : > { %v16424_v34 = vadd.f32 %v2121_v36, %v1794_v62  ;;  %v1797_v58 = vadd.f32 %v13883_v45, %v16175_v56  ;;  %14202 = vmatprep.mubr.msk.f32.mxu1 %vm258_vm1, %v3930_v31  ;;  %14258 = vmatprep.mubr.msk.f32.mxu0 %vm258_vm1, %v4352_v16  ;;  %v3936_v31 = vld [vmem:[%s15295_s22 + $0x750] sm:$0xff]  ;;  %v4358_v16 = vld [vmem:[%s15295_s22 + $0x900] sm:$0xff] }
 0x16c   : > { %v1709_v12 = vpop.f32.mrf.mxu1  ;;  %v2131_v10 = vpop.f32.mrf.mxu0 }
 0x16d   : > { %v16433_v0 = vadd.f32 %v13939_v46, %v1797_v58  ;;  %v1796_v61 = vadd.f32 %v1709_v12, %v16180_v14  ;;  %v3937_v58 = vld [vmem:[%s15295_s22 + $0x758] sm:$0xff] }
 0x16e   : > { %v13886_v23 = vpop.f32.mrf.mxu1  ;;  %v13942_v56 = vpop.f32.mrf.mxu0  ;;  %14203 = vmatmul.mubr.msk.f32.gmra.mxu1 %vm258_vm1, %v3931_v19  ;;  %14259 = vmatmul.mubr.msk.f32.gmra.mxu0 %vm258_vm1, %v4353_v35  ;;  %v4359_v19 = vld [vmem:[%s15295_s22 + $0x908] sm:$0xff] }
 0x16f   : > { %v16438_v1 = vadd.f32 %v2131_v10, %v1796_v61  ;;  %v1799_v25 = vadd.f32 %v13886_v23, %v16189_v40  ;;  %14205 = vmatprep.mubr.msk.f32.mxu1 %vm258_vm1, %v3932_v48  ;;  %14261 = vmatprep.mubr.msk.f32.mxu0 %vm258_vm1, %v4354_v51  ;;  %v3938_v10 = vld [vmem:[%s15295_s22 + $0x760] sm:$0xff]  ;;  %v4360_v48 = vld [vmem:[%s15295_s22 + $0x910] sm:$0xff] }
 0x170   : > { %v1719_v63 = vpop.f32.mrf.mxu1  ;;  %v2141_v14 = vpop.f32.mrf.mxu0 }
 0x171   : > { %v16447_v28 = vadd.f32 %v13942_v56, %v1799_v25  ;;  %v1798_v39 = vadd.f32 %v1719_v63, %v16194_v50 }
 0x172   : > { %v13889_v44 = vpop.f32.mrf.mxu1  ;;  %v13945_v40 = vpop.f32.mrf.mxu0  ;;  %14206 = vmatmul.mubr.msk.f32.gmra.mxu1 %vm258_vm1, %v3933_v59  ;;  %14262 = vmatmul.mubr.msk.f32.gmra.mxu0 %vm258_vm1, %v4355_v4  ;;  %v3939_v59 = vld [vmem:[%s15295_s22 + $0x768] sm:$0xff]  ;;  %v4361_v4 = vld [vmem:[%s15295_s22 + $0x918] sm:$0xff] }
 0x173   : > { %v16452_v26 = vadd.f32 %v2141_v14, %v1798_v39  ;;  %v1800_v24 = vadd.f32 %v13889_v44, %v16203_v55  ;;  %14208 = vmatprep.mubr.msk.f32.mxu1 %vm258_vm1, %v3934_v32  ;;  %14264 = vmatprep.mubr.msk.f32.mxu0 %vm258_vm1, %v4356_v8  ;;  %v3940_v14 = vld [vmem:[%s15295_s22 + $0x770] sm:$0xff]  ;;  %v4362_v32 = vld [vmem:[%s15295_s22 + $0x920] sm:$0xff] }
 0x174   : > { %v1729_v36 = vpop.f32.mrf.mxu1  ;;  %v2151_v50 = vpop.f32.mrf.mxu0 }
 0x175   : > { %v16461_v62 = vadd.f32 %v13945_v40, %v1800_v24  ;;  %v3942_v50 = vld [vmem:[%s15295_s22 + $0x780] sm:$0xff] }
 0x176   : > { %v13892_v45 = vpop.f32.mrf.mxu1  ;;  %v13948_v46 = vpop.f32.mrf.mxu0  ;;  %14209 = vmatmul.mubr.msk.f32.gmra.mxu1 %vm258_vm1, %v3935_v5  ;;  %14265 = vmatmul.mubr.msk.f32.gmra.mxu0 %vm258_vm1, %v4357_v57  ;;  %v3941_v5 = vld [vmem:[%s15295_s22 + $0x778] sm:$0xff]  ;;  %v4363_v57 = vld [vmem:[%s15295_s22 + $0x928] sm:$0xff] }
 0x177   : > { %v1802_v55 = vadd.f32 %v13892_v45, %v16214_v53  ;;  %14211 = vmatprep.mubr.msk.f32.mxu1 %vm258_vm1, %v3936_v31  ;;  %14267 = vmatprep.mubr.msk.f32.mxu0 %vm258_vm1, %v4358_v16  ;;  %v4364_v31 = vld [vmem:[%s15295_s22 + $0x930] sm:$0xff] }
 0x178   : > { %v1738_v35 = vpop.f32.mrf.mxu1  ;;  %v2160_v12 = vpop.f32.mrf.mxu0 }
 0x179   : > { %v16472_v51 = vadd.f32 %v13948_v46, %v1802_v55  ;;  %v1801_v61 = vadd.f32 %v1738_v35, %v16219_v6 }
 0x17a   : > { %v13895_v23 = vpop.f32.mrf.mxu1  ;;  %v13951_v53 = vpop.f32.mrf.mxu0  ;;  %14212 = vmatmul.mubr.msk.f32.gmra.mxu1 %vm258_vm1, %v3937_v58  ;;  %14268 = vmatmul.mubr.msk.f32.gmra.mxu0 %vm258_vm1, %v4359_v19  ;;  %v3943_v58 = vld [vmem:[%s15295_s22 + $0x788] sm:$0xff]  ;;  %v4365_v19 = vld [vmem:[%s15295_s22 + $0x938] sm:$0xff] }
 0x17b   : > { %v16477_v56 = vadd.f32 %v2160_v12, %v1801_v61  ;;  %v1804_v25 = vadd.f32 %v13895_v23, %v16228_v3  ;;  %14214 = vmatprep.mubr.msk.f32.mxu1 %vm258_vm1, %v3938_v10  ;;  %14270 = vmatprep.mubr.msk.f32.mxu0 %vm258_vm1, %v4360_v48  ;;  %v4366_v10 = vld [vmem:[%s15295_s22 + $0x940] sm:$0xff] }
 0x17c   : > { %v1748_v63 = vpop.f32.mrf.mxu1  ;;  %v2170_v6 = vpop.f32.mrf.mxu0 }
 0x17d   : > { %v16486_v8 = vadd.f32 %v13951_v53, %v1804_v25  ;;  %v1803_v39 = vadd.f32 %v1748_v63, %v16233_v18 }
 0x17e   : > { %v13898_v44 = vpop.f32.mrf.mxu1  ;;  %v13954_v3 = vpop.f32.mrf.mxu0  ;;  %14215 = vmatmul.mubr.msk.f32.gmra.mxu1 %vm258_vm1, %v3939_v59  ;;  %14271 = vmatmul.mubr.msk.f32.gmra.mxu0 %vm258_vm1, %v4361_v4  ;;  %v3945_v59 = vld [vmem:[%s15295_s22 + $0x798] sm:$0xff]  ;;  %v4367_v4 = vld [vmem:[%s15295_s22 + $0x948] sm:$0xff] }
 0x17f   : > { %v16491_v40 = vadd.f32 %v2170_v6, %v1803_v39  ;;  %v1806_v24 = vadd.f32 %v13898_v44, %v16242_v33  ;;  %14217 = vmatprep.mubr.msk.f32.mxu1 %vm258_vm1, %v3940_v14  ;;  %14273 = vmatprep.mubr.msk.f32.mxu0 %vm258_vm1, %v4362_v32  ;;  %v3946_v6 = vld [vmem:[%s15295_s22 + $0x7a0] sm:$0xff]  ;;  %v4368_v14 = vld [vmem:[%s15295_s22 + $0x950] sm:$0xff] }
 0x180   : > { %v1758_v36 = vpop.f32.mrf.mxu1  ;;  %v2180_v18 = vpop.f32.mrf.mxu0 }
 0x181   : > { %v16500_v16 = vadd.f32 %v13954_v3, %v1806_v24  ;;  %v1805_v45 = vadd.f32 %v1758_v36, %v16247_v22  ;;  %v3944_v22 = vld [vmem:[%s15295_s22 + $0x790] sm:$0xff] }
 0x182   : > { %v13901_v46 = vpop.f32.mrf.mxu1  ;;  %v13957_v33 = vpop.f32.mrf.mxu0  ;;  %14218 = vmatmul.mubr.msk.f32.gmra.mxu1 %vm258_vm1, %v3941_v5  ;;  %14274 = vmatmul.mubr.msk.f32.gmra.mxu0 %vm258_vm1, %v4363_v57  ;;  %v3947_v5 = vld [vmem:[%s15295_s22 + $0x7a8] sm:$0xff]  ;;  %v4369_v57 = vld [vmem:[%s15295_s22 + $0x958] sm:$0xff] }
 0x183   : > { %v16505_v55 = vadd.f32 %v2180_v18, %v1805_v45  ;;  %14220 = vmatprep.mubr.msk.f32.mxu1 %vm258_vm1, %v3942_v50  ;;  %14276 = vmatprep.mubr.msk.f32.mxu0 %vm258_vm1, %v4364_v31  ;;  %v3948_v18 = vld [vmem:[%s15295_s22 + $0x7b0] sm:$0xff]  ;;  %v4370_v50 = vld [vmem:[%s15295_s22 + $0x960] sm:$0xff] }
 0x184   : > { %v1768_v35 = vpop.f32.mrf.mxu1  ;;  %v2190_v12 = vpop.f32.mrf.mxu0 }
 0x185   : > { %v1807_v48 = vadd.f32 %v1768_v35, %v16258_v30  ;;  %v4371_v35 = vld [vmem:[%s15295_s22 + $0x968] sm:$0xff] }
 0x186   : > { %v13962_v61 = vpop.f32.mrf.mxu1  ;;  %v14018_v23 = vpop.f32.mrf.mxu0  ;;  %14221 = vmatmul.mubr.msk.f32.gmra.mxu1 %vm258_vm1, %v3943_v58  ;;  %14277 = vmatmul.mubr.msk.f32.gmra.mxu0 %vm258_vm1, %v4365_v19  ;;  %v3949_v19 = vld [vmem:[%s15295_s22 + $0x7b8] sm:$0xff] }
 0x187   : > { %v16516_v53 = vadd.f32 %v2190_v12, %v1807_v48  ;;  %v2621_v25 = vadd.f32 %v13962_v61, %v16267_v29  ;;  %14223 = vmatprep.mubr.msk.f32.mxu1 %vm258_vm1, %v3944_v22  ;;  %14279 = vmatprep.mubr.msk.f32.mxu0 %vm258_vm1, %v4366_v10  ;;  %v3950_v22 = vld [vmem:[%s15295_s22 + $0x7c0] sm:$0xff]  ;;  %v4372_v10 = vld [vmem:[%s15295_s22 + $0x970] sm:$0xff] }
 0x188   : > { %v2445_v63 = vpop.f32.mrf.mxu1  ;;  %v2867_v30 = vpop.f32.mrf.mxu0 }
 0x189   : > { %v16525_v32 = vadd.f32 %v14018_v23, %v2621_v25  ;;  %v2620_v39 = vadd.f32 %v2445_v63, %v16272_v38  ;;  %v4373_v63 = vld [vmem:[%s15295_s22 + $0x978] sm:$0xff] }
 0x18a   : > { %v13965_v44 = vpop.f32.mrf.mxu1  ;;  %v14021_v29 = vpop.f32.mrf.mxu0  ;;  %14224 = vmatmul.mubr.msk.f32.gmra.mxu1 %vm258_vm1, %v3945_v59  ;;  %14280 = vmatmul.mubr.msk.f32.gmra.mxu0 %vm258_vm1, %v4367_v4  ;;  %v3951_v4 = vld [vmem:[%s15295_s22 + $0x7c8] sm:$0xff] }
 0x18b   : > { %v16530_v3 = vadd.f32 %v2867_v30, %v2620_v39  ;;  %v2623_v24 = vadd.f32 %v13965_v44, %v16281_v11  ;;  %14226 = vmatprep.mubr.msk.f32.mxu1 %vm258_vm1, %v3946_v6  ;;  %14282 = vmatprep.mubr.msk.f32.mxu0 %vm258_vm1, %v4368_v14  ;;  %v3952_v6 = vld [vmem:[%s15295_s22 + $0x7d0] sm:$0xff]  ;;  %v4374_v14 = vld [vmem:[%s15295_s22 + $0x980] sm:$0xff] }
 0x18c   : > { %v2455_v36 = vpop.f32.mrf.mxu1  ;;  %v2877_v38 = vpop.f32.mrf.mxu0 }
 0x18d   : > { %v16539_v31 = vadd.f32 %v14021_v29, %v2623_v24  ;;  %v2622_v45 = vadd.f32 %v2455_v36, %v16286_v49  ;;  %v4375_v36 = vld [vmem:[%s15295_s22 + $0x988] sm:$0xff] }
 0x18e   : > { %v13968_v46 = vpop.f32.mrf.mxu1  ;;  %v14024_v11 = vpop.f32.mrf.mxu0  ;;  %14227 = vmatmul.mubr.msk.f32.gmra.mxu1 %vm258_vm1, %v3947_v5  ;;  %14283 = vmatmul.mubr.msk.f32.gmra.mxu0 %vm258_vm1, %v4369_v57  ;;  %v3953_v57 = vld [vmem:[%s15295_s22 + $0x7d8] sm:$0xff] }
 0x18f   : > { %v16544_v33 = vadd.f32 %v2877_v38, %v2622_v45  ;;  %v2625_v58 = vadd.f32 %v13968_v46, %v16295_v21  ;;  %14229 = vmatprep.mubr.msk.f32.mxu1 %vm258_vm1, %v3948_v18  ;;  %14285 = vmatprep.mubr.msk.f32.mxu0 %vm258_vm1, %v4370_v50  ;;  %v4762_v18 = vld [vmem:[%s15295_s22 + $0x6c1] sm:$0xff] }
 0x190   : > { %v2465_v12 = vpop.f32.mrf.mxu1  ;;  %v2887_v49 = vpop.f32.mrf.mxu0  ;;  %v5184_v50 = vld [vmem:[%s15295_s22 + $0xa20] sm:$0xff] }
 0x191   : > { %v16553_v48 = vadd.f32 %v14024_v11, %v2625_v58  ;;  %v2624_v61 = vadd.f32 %v2465_v12, %v16300_v41  ;;  %v4763_v58 = vld [vmem:[%s15295_s22 + $0x6c9] sm:$0xff] }
 0x192   : > { %v13971_v23 = vpop.f32.mrf.mxu1  ;;  %v14027_v21 = vpop.f32.mrf.mxu0  ;;  %14230 = vmatmul.mubr.msk.f32.gmra.mxu1 %vm258_vm1, %v3949_v19  ;;  %14286 = vmatmul.mubr.msk.f32.gmra.mxu0 %vm258_vm1, %v4371_v35  ;;  %v5185_v19 = vld [vmem:[%s15295_s22 + $0xa28] sm:$0xff] }
 0x193   : > { %v16558_v25 = vadd.f32 %v2887_v49, %v2624_v61  ;;  %v2627_v59 = vadd.f32 %v13971_v23, %v16309_v42  ;;  %14232 = vmatprep.mubr.msk.f32.mxu1 %vm258_vm1, %v3950_v22  ;;  %14288 = vmatprep.mubr.msk.f32.mxu0 %vm258_vm1, %v4372_v10  ;;  %v4764_v10 = vld [vmem:[%s15295_s22 + $0x6d1] sm:$0xff] }
 0x194   : > { %v2475_v30 = vpop.f32.mrf.mxu1  ;;  %v2897_v41 = vpop.f32.mrf.mxu0  ;;  %v5186_v61 = vld [vmem:[%s15295_s22 + $0xa30] sm:$0xff] }
 0x195   : > { %v16567_v39 = vadd.f32 %v14027_v21, %v2627_v59  ;;  %v2626_v44 = vadd.f32 %v2475_v30, %v16314_v17  ;;  %v16605_v59 = vld [vmem:[%s18892_s1 + $0x40] sm:$0xf]  ;;  %v5187_v30 = vld [vmem:[%s15295_s22 + $0xa38] sm:$0xff] }
 0x196   : > { %v13974_v29 = vpop.f32.mrf.mxu1  ;;  %v14030_v42 = vpop.f32.mrf.mxu0  ;;  %14233 = vmatmul.mubr.msk.f32.gmra.mxu1 %vm258_vm1, %v3951_v4  ;;  %14289 = vmatmul.mubr.msk.f32.gmra.mxu0 %vm258_vm1, %v4373_v63  ;;  %v4765_v63 = vld [vmem:[%s15295_s22 + $0x6d9] sm:$0xff] }
 0x197   : > { %v16572_v24 = vadd.f32 %v2897_v41, %v2626_v44  ;;  %v2628_v5 = vadd.f32 %v13974_v29, %v16323_v15  ;;  %14235 = vmatprep.mubr.msk.f32.mxu1 %vm258_vm1, %v3952_v6  ;;  %14291 = vmatprep.mubr.msk.f32.mxu0 %vm258_vm1, %v4374_v14  ;;  %v4766_v14 = vld [vmem:[%s15295_s22 + $0x6e1] sm:$0xff] }
 0x198   : > { %v2485_v38 = vpop.f32.mrf.mxu1  ;;  %v2907_v17 = vpop.f32.mrf.mxu0  ;;  %v5188_v44 = vld [vmem:[%s15295_s22 + $0xa40] sm:$0xff] }
 0x199   : > { %v16581_v45 = vadd.f32 %v14030_v42, %v2628_v5  ;;  %v4768_v17 = vld [vmem:[%s15295_s22 + $0x6f1] sm:$0xff] }
 0x19a   : > { %v13977_v46 = vpop.f32.mrf.mxu1  ;;  %v14033_v11 = vpop.f32.mrf.mxu0  ;;  %14236 = vmatmul.mubr.msk.f32.gmra.mxu1 %vm258_vm1, %v3953_v57  ;;  %14292 = vmatmul.mubr.msk.f32.gmra.mxu0 %vm258_vm1, %v4375_v36  ;;  %v5189_v57 = vld [vmem:[%s15295_s22 + $0xa48] sm:$0xff] }
 0x19b   : > { %v2630_v15 = vadd.f32 %v13977_v46, %v16332_v60  ;;  %14296 = vmatprep.mubr.msk.f32.mxu1 %vm258_vm1, %v4762_v18  ;;  %14352 = vmatprep.mubr.msk.f32.mxu0 %vm258_vm1, %v5184_v50  ;;  %v16600_v60 = vld [vmem:[%s18892_s1 + $0x3c] sm:$0xf]  ;;  %v5190_v18 = vld [vmem:[%s15295_s22 + $0xa50] sm:$0xff] }
 0x19c   : > { %v2494_v35 = vpop.f32.mrf.mxu1  ;;  %v2916_v12 = vpop.f32.mrf.mxu0 }
 0x19d   : > { %v16590_v49 = vadd.f32 %v14033_v11, %v2630_v15  ;;  %v2629_v22 = vadd.f32 %v2494_v35, %v16349_v13 }
 0x19e   : > { %v13980_v23 = vpop.f32.mrf.mxu1  ;;  %v14036_v21 = vpop.f32.mrf.mxu0  ;;  %14297 = vmatmul.mubr.msk.f32.vlgmr.msra.gmra.mxu1 %vm258_vm1, %v4763_v58  ;;  %14353 = vmatmul.mubr.msk.f32.vlgmr.msra.gmra.mxu0 %vm258_vm1, %v5185_v19  ;;  %v4769_v58 = vld [vmem:[%s15295_s22 + $0x6f9] sm:$0xff] }
 0x19f   : > { %v16607_v13 = vadd.f32 %v2916_v12, %v2629_v22  ;;  %v2632_v4 = vadd.f32 %v13980_v23, %v16362_v9  ;;  %14407 = vmatpush3.msk.msra.mxu1 %vm367_vm0, %v16342_v37  ;;  %14463 = vmatpush3.msk.msra.mxu0 %vm367_vm0, %v16347_v27  ;;  %v5191_v19 = vld [vmem:[%s15295_s22 + $0xa58] sm:$0xff]  ;;  %v5192_v22 = vld [vmem:[%s15295_s22 + $0xa60] sm:$0xff] }
 0x1a0   : > { %v2504_v41 = vpop.f32.mrf.mxu1  ;;  %v2926_v6 = vpop.f32.mrf.mxu0  ;;  %14299 = vmatprep.mubr.msk.f32.mxu1 %vm258_vm1, %v4764_v10  ;;  %14355 = vmatprep.mubr.msk.f32.mxu0 %vm258_vm1, %v5186_v61 }
 0x1a1   : > { %v16620_v29 = vadd.f32 %v14036_v21, %v2632_v4  ;;  %v2631_v37 = vadd.f32 %v2504_v41, %v16371_v47  ;;  %14518 = vmatprep.subr.msk.mxu1 %vm367_vm0, %v16600_v60  ;;  %14574 = vmatprep.subr.msk.mxu0 %vm367_vm0, %v16605_v59  ;;  %v4767_v47 = vld [vmem:[%s15295_s22 + $0x6e9] sm:$0xff] }
 0x1a2   : > { %v13983_v27 = vpop.f32.mrf.mxu1  ;;  %v14039_v9 = vpop.f32.mrf.mxu0  ;;  %14300 = vmatmul.mubr.msk.f32.gmra.mxu1 %vm258_vm1, %v4765_v63  ;;  %14356 = vmatmul.mubr.msk.f32.gmra.mxu0 %vm258_vm1, %v5187_v30  ;;  %v4771_v63 = vld [vmem:[%s15295_s22 + $0x709] sm:$0xff] }
 0x1a3   : > { %v16629_v42 = vadd.f32 %v2926_v6, %v2631_v37  ;;  %v2634_v5 = vadd.f32 %v13983_v27, %v16380_v20  ;;  %14302 = vmatprep.mubr.msk.f32.mxu1 %vm258_vm1, %v4766_v14  ;;  %14358 = vmatprep.mubr.msk.f32.mxu0 %vm258_vm1, %v5188_v44  ;;  %v5193_v30 = vld [vmem:[%s15295_s22 + $0xa68] sm:$0xff]  ;;  %v4772_v6 = vld [vmem:[%s15295_s22 + $0x711] sm:$0xff] }
 0x1a4   : > { %v2514_v36 = vpop.f32.mrf.mxu1  ;;  %v2936_v38 = vpop.f32.mrf.mxu0  ;;  %v5194_v14 = vld [vmem:[%s15295_s22 + $0xa70] sm:$0xff] }
 0x1a5   : > { %v16638_v50 = vadd.f32 %v14039_v9, %v2634_v5  ;;  %v2633_v46 = vadd.f32 %v2514_v36, %v16385_v54  ;;  %v4770_v54 = vld [vmem:[%s15295_s22 + $0x701] sm:$0xff] }
 0x1a6   : > { %v13986_v11 = vpop.f32.mrf.mxu1  ;;  %v14042_v20 = vpop.f32.mrf.mxu0  ;;  %14303 = vmatmul.mubr.msk.f32.gmra.mxu1 %vm258_vm1, %v4767_v47  ;;  %14359 = vmatmul.mubr.msk.f32.gmra.mxu0 %vm258_vm1, %v5189_v57  ;;  %v4773_v47 = vld [vmem:[%s15295_s22 + $0x719] sm:$0xff] }
 0x1a7   : > { %v16643_v15 = vadd.f32 %v2936_v38, %v2633_v46  ;;  %14305 = vmatprep.mubr.msk.f32.mxu1 %vm258_vm1, %v4768_v17  ;;  %14361 = vmatprep.mubr.msk.f32.mxu0 %vm258_vm1, %v5190_v18  ;;  %v5195_v57 = vld [vmem:[%s15295_s22 + $0xa78] sm:$0xff]  ;;  %v4774_v38 = vld [vmem:[%s15295_s22 + $0x721] sm:$0xff] }
 0x1a8   : > { %v2524_v35 = vpop.f32.mrf.mxu1  ;;  %v2946_v12 = vpop.f32.mrf.mxu0  ;;  %v5196_v17 = vld [vmem:[%s15295_s22 + $0xa80] sm:$0xff] }
 0x1a9   : > { %v2635_v10 = vadd.f32 %v2524_v35, %v16396_v2  ;;  %v5197_v35 = vld [vmem:[%s15295_s22 + $0xa88] sm:$0xff] }
 0x1aa   : > { %v13989_v61 = vpop.f32.mrf.mxu1  ;;  %v14045_v23 = vpop.f32.mrf.mxu0  ;;  %14306 = vmatmul.mubr.msk.f32.gmra.mxu1 %vm258_vm1, %v4769_v58  ;;  %14362 = vmatmul.mubr.msk.f32.gmra.mxu0 %vm258_vm1, %v5191_v19  ;;  %v4775_v19 = vld [vmem:[%s15295_s22 + $0x729] sm:$0xff] }
 0x1ab   : > { %v16654_v21 = vadd.f32 %v2946_v12, %v2635_v10  ;;  %v2637_v4 = vadd.f32 %v13989_v61, %v16405_v52  ;;  %14308 = vmatprep.mubr.msk.f32.mxu1 %vm258_vm1, %v4770_v54  ;;  %14364 = vmatprep.mubr.msk.f32.mxu0 %vm258_vm1, %v5192_v22  ;;  %v4776_v54 = vld [vmem:[%s15295_s22 + $0x731] sm:$0xff] }
 0x1ac   : > { %v2533_v41 = vpop.f32.mrf.mxu1  ;;  %v2955_v2 = vpop.f32.mrf.mxu0  ;;  %v5198_v22 = vld [vmem:[%s15295_s22 + $0xa90] sm:$0xff] }
 0x1ad   : > { %v16663_v44 = vadd.f32 %v14045_v23, %v2637_v4  ;;  %v2636_v37 = vadd.f32 %v2533_v41, %v16410_v7  ;;  %v5199_v41 = vld [vmem:[%s15295_s22 + $0xa98] sm:$0xff] }
 0x1ae   : > { %v13992_v27 = vpop.f32.mrf.mxu1  ;;  %v14048_v52 = vpop.f32.mrf.mxu0  ;;  %14309 = vmatmul.mubr.msk.f32.gmra.mxu1 %vm258_vm1, %v4771_v63  ;;  %14365 = vmatmul.mubr.msk.f32.gmra.mxu0 %vm258_vm1, %v5193_v30  ;;  %v4777_v30 = vld [vmem:[%s15295_s22 + $0x739] sm:$0xff] }
 0x1af   : > { %v16668_v9 = vadd.f32 %v2955_v2, %v2636_v37  ;;  %v2639_v5 = vadd.f32 %v13992_v27, %v16419_v43  ;;  %14311 = vmatprep.mubr.msk.f32.mxu1 %vm258_vm1, %v4772_v6  ;;  %14367 = vmatprep.mubr.msk.f32.mxu0 %vm258_vm1, %v5194_v14  ;;  %v4778_v6 = vld [vmem:[%s15295_s22 + $0x741] sm:$0xff] }
 0x1b0   : > { %v2543_v36 = vpop.f32.mrf.mxu1  ;;  %v2965_v7 = vpop.f32.mrf.mxu0  ;;  %v5200_v14 = vld [vmem:[%s15295_s22 + $0xaa0] sm:$0xff] }
 0x1b1   : > { %v16677_v18 = vadd.f32 %v14048_v52, %v2639_v5  ;;  %v2638_v46 = vadd.f32 %v2543_v36, %v16424_v34  ;;  %v5201_v36 = vld [vmem:[%s15295_s22 + $0xaa8] sm:$0xff] }
 0x1b2   : > { %v13995_v11 = vpop.f32.mrf.mxu1  ;;  %v14051_v43 = vpop.f32.mrf.mxu0  ;;  %14312 = vmatmul.mubr.msk.f32.gmra.mxu1 %vm258_vm1, %v4773_v47  ;;  %14368 = vmatmul.mubr.msk.f32.gmra.mxu0 %vm258_vm1, %v5195_v57  ;;  %v4779_v57 = vld [vmem:[%s15295_s22 + $0x749] sm:$0xff] }
 0x1b3   : > { %v16682_v20 = vadd.f32 %v2965_v7, %v2638_v46  ;;  %v2641_v58 = vadd.f32 %v13995_v11, %v16433_v0  ;;  %14314 = vmatprep.mubr.msk.f32.mxu1 %vm258_vm1, %v4774_v38  ;;  %14370 = vmatprep.mubr.msk.f32.mxu0 %vm258_vm1, %v5196_v17  ;;  %v4780_v38 = vld [vmem:[%s15295_s22 + $0x751] sm:$0xff] }
 0x1b4   : > { %v2553_v12 = vpop.f32.mrf.mxu1  ;;  %v2975_v34 = vpop.f32.mrf.mxu0  ;;  %v5202_v17 = vld [vmem:[%s15295_s22 + $0xab0] sm:$0xff] }
 0x1b5   : > { %v16691_v10 = vadd.f32 %v14051_v43, %v2641_v58  ;;  %v2640_v61 = vadd.f32 %v2553_v12, %v16438_v1  ;;  %v4781_v58 = vld [vmem:[%s15295_s22 + $0x759] sm:$0xff] }
 0x1b6   : > { %v13998_v23 = vpop.f32.mrf.mxu1  ;;  %v14054_v0 = vpop.f32.mrf.mxu0  ;;  %14315 = vmatmul.mubr.msk.f32.gmra.mxu1 %vm258_vm1, %v4775_v19  ;;  %14371 = vmatmul.mubr.msk.f32.gmra.mxu0 %vm258_vm1, %v5197_v35  ;;  %v5203_v19 = vld [vmem:[%s15295_s22 + $0xab8] sm:$0xff] }
 0x1b7   : > { %v16696_v4 = vadd.f32 %v2975_v34, %v2640_v61  ;;  %v2643_v63 = vadd.f32 %v13998_v23, %v16447_v28  ;;  %14317 = vmatprep.mubr.msk.f32.mxu1 %vm258_vm1, %v4776_v54  ;;  %14373 = vmatprep.mubr.msk.f32.mxu0 %vm258_vm1, %v5198_v22  ;;  %v4782_v34 = vld [vmem:[%s15295_s22 + $0x761] sm:$0xff] }
 0x1b8   : > { %v2563_v2 = vpop.f32.mrf.mxu1  ;;  %v2985_v1 = vpop.f32.mrf.mxu0  ;;  %v5204_v54 = vld [vmem:[%s15295_s22 + $0xac0] sm:$0xff] }
 0x1b9   : > { %v16705_v37 = vadd.f32 %v14054_v0, %v2643_v63  ;;  %v2642_v27 = vadd.f32 %v2563_v2, %v16452_v26 }
 0x1ba   : > { %v14001_v52 = vpop.f32.mrf.mxu1  ;;  %v14057_v28 = vpop.f32.mrf.mxu0  ;;  %14318 = vmatmul.mubr.msk.f32.gmra.mxu1 %vm258_vm1, %v4777_v30  ;;  %14374 = vmatmul.mubr.msk.f32.gmra.mxu0 %vm258_vm1, %v5199_v41  ;;  %v4783_v30 = vld [vmem:[%s15295_s22 + $0x769] sm:$0xff] }
 0x1bb   : > { %v16710_v5 = vadd.f32 %v2985_v1, %v2642_v27  ;;  %v2644_v47 = vadd.f32 %v14001_v52, %v16461_v62  ;;  %14320 = vmatprep.mubr.msk.f32.mxu1 %vm258_vm1, %v4778_v6  ;;  %14376 = vmatprep.mubr.msk.f32.mxu0 %vm258_vm1, %v5200_v14  ;;  %v5205_v41 = vld [vmem:[%s15295_s22 + $0xac8] sm:$0xff]  ;;  %v4784_v1 = vld [vmem:[%s15295_s22 + $0x771] sm:$0xff] }
 0x1bc   : > { %v2573_v7 = vpop.f32.mrf.mxu1  ;;  %v2995_v26 = vpop.f32.mrf.mxu0  ;;  %v5206_v6 = vld [vmem:[%s15295_s22 + $0xad0] sm:$0xff] }
 0x1bd   : > { %v16719_v46 = vadd.f32 %v14057_v28, %v2644_v47  ;;  %v4786_v26 = vld [vmem:[%s15295_s22 + $0x781] sm:$0xff] }
 0x1be   : > { %v14004_v11 = vpop.f32.mrf.mxu1  ;;  %v14060_v43 = vpop.f32.mrf.mxu0  ;;  %14321 = vmatmul.mubr.msk.f32.gmra.mxu1 %vm258_vm1, %v4779_v57  ;;  %14377 = vmatmul.mubr.msk.f32.gmra.mxu0 %vm258_vm1, %v5201_v36  ;;  %v4785_v57 = vld [vmem:[%s15295_s22 + $0x779] sm:$0xff] }
 0x1bf   : > { %v2646_v62 = vadd.f32 %v14004_v11, %v16472_v51  ;;  %14323 = vmatprep.mubr.msk.f32.mxu1 %vm258_vm1, %v4780_v38  ;;  %14379 = vmatprep.mubr.msk.f32.mxu0 %vm258_vm1, %v5202_v17  ;;  %v5207_v36 = vld [vmem:[%s15295_s22 + $0xad8] sm:$0xff]  ;;  %v5208_v38 = vld [vmem:[%s15295_s22 + $0xae0] sm:$0xff] }
 0x1c0   : > { %v2582_v35 = vpop.f32.mrf.mxu1  ;;  %v3004_v12 = vpop.f32.mrf.mxu0 }
 0x1c1   : > { %v16730_v22 = vadd.f32 %v14060_v43, %v2646_v62  ;;  %v2645_v61 = vadd.f32 %v2582_v35, %v16477_v56 }
 0x1c2   : > { %v14007_v23 = vpop.f32.mrf.mxu1  ;;  %v14063_v51 = vpop.f32.mrf.mxu0  ;;  %14324 = vmatmul.mubr.msk.f32.gmra.mxu1 %vm258_vm1, %v4781_v58  ;;  %14380 = vmatmul.mubr.msk.f32.gmra.mxu0 %vm258_vm1, %v5203_v19  ;;  %v4787_v58 = vld [vmem:[%s15295_s22 + $0x789] sm:$0xff] }
 0x1c3   : > { %v16735_v0 = vadd.f32 %v3004_v12, %v2645_v61  ;;  %v2648_v63 = vadd.f32 %v14007_v23, %v16486_v8  ;;  %14326 = vmatprep.mubr.msk.f32.mxu1 %vm258_vm1, %v4782_v34  ;;  %14382 = vmatprep.mubr.msk.f32.mxu0 %vm258_vm1, %v5204_v54  ;;  %v5209_v19 = vld [vmem:[%s15295_s22 + $0xae8] sm:$0xff]  ;;  %v5210_v34 = vld [vmem:[%s15295_s22 + $0xaf0] sm:$0xff] }
 0x1c4   : > { %v2592_v2 = vpop.f32.mrf.mxu1  ;;  %v3014_v56 = vpop.f32.mrf.mxu0 }
 0x1c5   : > { %v16744_v14 = vadd.f32 %v14063_v51, %v2648_v63  ;;  %v2647_v27 = vadd.f32 %v2592_v2, %v16491_v40 }
 0x1c6   : > { %v14010_v52 = vpop.f32.mrf.mxu1  ;;  %v14066_v8 = vpop.f32.mrf.mxu0  ;;  %14327 = vmatmul.mubr.msk.f32.gmra.mxu1 %vm258_vm1, %v4783_v30  ;;  %14383 = vmatmul.mubr.msk.f32.gmra.mxu0 %vm258_vm1, %v5205_v41  ;;  %v4789_v30 = vld [vmem:[%s15295_s22 + $0x799] sm:$0xff] }
 0x1c7   : > { %v16749_v28 = vadd.f32 %v3014_v56, %v2647_v27  ;;  %v2650_v47 = vadd.f32 %v14010_v52, %v16500_v16  ;;  %14329 = vmatprep.mubr.msk.f32.mxu1 %vm258_vm1, %v4784_v1  ;;  %14385 = vmatprep.mubr.msk.f32.mxu0 %vm258_vm1, %v5206_v6  ;;  %v5211_v41 = vld [vmem:[%s15295_s22 + $0xaf8] sm:$0xff]  ;;  %v4790_v56 = vld [vmem:[%s15295_s22 + $0x7a1] sm:$0xff] }
 0x1c8   : > { %v2602_v7 = vpop.f32.mrf.mxu1  ;;  %v3024_v40 = vpop.f32.mrf.mxu0  ;;  %v5212_v1 = vld [vmem:[%s15295_s22 + $0xb00] sm:$0xff] }
 0x1c9   : > { %v16758_v17 = vadd.f32 %v14066_v8, %v2650_v47  ;;  %v2649_v11 = vadd.f32 %v2602_v7, %v16505_v55  ;;  %v4788_v55 = vld [vmem:[%s15295_s22 + $0x791] sm:$0xff] }
 0x1ca   : > { %v14013_v43 = vpop.f32.mrf.mxu1  ;;  %v14069_v16 = vpop.f32.mrf.mxu0  ;;  %14330 = vmatmul.mubr.msk.f32.gmra.mxu1 %vm258_vm1, %v4785_v57  ;;  %14386 = vmatmul.mubr.msk.f32.gmra.mxu0 %vm258_vm1, %v5207_v36  ;;  %v4791_v57 = vld [vmem:[%s15295_s22 + $0x7a9] sm:$0xff] }
 0x1cb   : > { %v16763_v62 = vadd.f32 %v3024_v40, %v2649_v11  ;;  %14332 = vmatprep.mubr.msk.f32.mxu1 %vm258_vm1, %v4786_v26  ;;  %14388 = vmatprep.mubr.msk.f32.mxu0 %vm258_vm1, %v5208_v38  ;;  %v5213_v36 = vld [vmem:[%s15295_s22 + $0xb08] sm:$0xff]  ;;  %v4792_v40 = vld [vmem:[%s15295_s22 + $0x7b1] sm:$0xff] }
 0x1cc   : > { %v2612_v35 = vpop.f32.mrf.mxu1  ;;  %v3034_v12 = vpop.f32.mrf.mxu0  ;;  %v5214_v26 = vld [vmem:[%s15295_s22 + $0xb10] sm:$0xff] }
 0x1cd   : > { %v2651_v54 = vadd.f32 %v2612_v35, %v16516_v53  ;;  %v5215_v35 = vld [vmem:[%s15295_s22 + $0xb18] sm:$0xff] }
 0x1ce   : > { %v14074_v61 = vpop.f32.mrf.mxu1  ;;  %v14130_v23 = vpop.f32.mrf.mxu0  ;;  %14333 = vmatmul.mubr.msk.f32.gmra.mxu1 %vm258_vm1, %v4787_v58  ;;  %14389 = vmatmul.mubr.msk.f32.gmra.mxu0 %vm258_vm1, %v5209_v19  ;;  %v4793_v19 = vld [vmem:[%s15295_s22 + $0x7b9] sm:$0xff] }
 0x1cf   : > { %v16774_v51 = vadd.f32 %v3034_v12, %v2651_v54  ;;  %v3465_v63 = vadd.f32 %v14074_v61, %v16525_v32  ;;  %14335 = vmatprep.mubr.msk.f32.mxu1 %vm258_vm1, %v4788_v55  ;;  %14391 = vmatprep.mubr.msk.f32.mxu0 %vm258_vm1, %v5210_v34  ;;  %v4794_v55 = vld [vmem:[%s15295_s22 + $0x7c1] sm:$0xff] }
 0x1d0   : > { %v3289_v2 = vpop.f32.mrf.mxu1  ;;  %v3711_v53 = vpop.f32.mrf.mxu0  ;;  %v5216_v34 = vld [vmem:[%s15295_s22 + $0xb20] sm:$0xff] }
 0x1d1   : > { %v16783_v6 = vadd.f32 %v14130_v23, %v3465_v63  ;;  %v3464_v27 = vadd.f32 %v3289_v2, %v16530_v3  ;;  %v5217_v2 = vld [vmem:[%s15295_s22 + $0xb28] sm:$0xff] }
 0x1d2   : > { %v14077_v52 = vpop.f32.mrf.mxu1  ;;  %v14133_v32 = vpop.f32.mrf.mxu0  ;;  %14336 = vmatmul.mubr.msk.f32.gmra.mxu1 %vm258_vm1, %v4789_v30  ;;  %14392 = vmatmul.mubr.msk.f32.gmra.mxu0 %vm258_vm1, %v5211_v41  ;;  %v4795_v41 = vld [vmem:[%s15295_s22 + $0x7c9] sm:$0xff] }
 0x1d3   : > { %v16788_v8 = vadd.f32 %v3711_v53, %v3464_v27  ;;  %v3467_v47 = vadd.f32 %v14077_v52, %v16539_v31  ;;  %14338 = vmatprep.mubr.msk.f32.mxu1 %vm258_vm1, %v4790_v56  ;;  %14394 = vmatprep.mubr.msk.f32.mxu0 %vm258_vm1, %v5212_v1  ;;  %v4796_v56 = vld [vmem:[%s15295_s22 + $0x7d1] sm:$0xff] }
 0x1d4   : > { %v3299_v7 = vpop.f32.mrf.mxu1  ;;  %v3721_v3 = vpop.f32.mrf.mxu0  ;;  %v5218_v1 = vld [vmem:[%s15295_s22 + $0xb30] sm:$0xff] }
 0x1d5   : > { %v16797_v38 = vadd.f32 %v14133_v32, %v3467_v47  ;;  %v3466_v11 = vadd.f32 %v3299_v7, %v16544_v33  ;;  %v5219_v7 = vld [vmem:[%s15295_s22 + $0xb38] sm:$0xff] }
 0x1d6   : > { %v14080_v43 = vpop.f32.mrf.mxu1  ;;  %v14136_v31 = vpop.f32.mrf.mxu0  ;;  %14339 = vmatmul.mubr.msk.f32.gmra.mxu1 %vm258_vm1, %v4791_v57  ;;  %14395 = vmatmul.mubr.msk.f32.gmra.mxu0 %vm258_vm1, %v5213_v36  ;;  %v4797_v36 = vld [vmem:[%s15295_s22 + $0x7d9] sm:$0xff] }
 0x1d7   : > { %v16802_v16 = vadd.f32 %v3721_v3, %v3466_v11  ;;  %v3469_v58 = vadd.f32 %v14080_v43, %v16553_v48  ;;  %14341 = vmatprep.mubr.msk.f32.mxu1 %vm258_vm1, %v4792_v40  ;;  %14397 = vmatprep.mubr.msk.f32.mxu0 %vm258_vm1, %v5214_v26  ;;  %v5606_v40 = vld [vmem:[%s15295_s22 + $0xbd0] sm:$0xff]  ;;  %v6028_v26 = vld [vmem:[%s15295_s22 + $0xa21] sm:$0xff] }
 0x1d8   : > { %v3309_v12 = vpop.f32.mrf.mxu1  ;;  %v3731_v33 = vpop.f32.mrf.mxu0 }
 0x1d9   : > { %v16811_v54 = vadd.f32 %v14136_v31, %v3469_v58  ;;  %v3468_v61 = vadd.f32 %v3309_v12, %v16558_v25  ;;  %v5607_v58 = vld [vmem:[%s15295_s22 + $0xbd8] sm:$0xff] }
 0x1da   : > { %v14083_v23 = vpop.f32.mrf.mxu1  ;;  %v14139_v48 = vpop.f32.mrf.mxu0  ;;  %14342 = vmatmul.mubr.msk.f32.gmra.mxu1 %vm258_vm1, %v4793_v19  ;;  %14398 = vmatmul.mubr.msk.f32.gmra.mxu0 %vm258_vm1, %v5215_v35  ;;  %v6029_v19 = vld [vmem:[%s15295_s22 + $0xa29] sm:$0xff] }
 0x1db   : > { %v16816_v63 = vadd.f32 %v3731_v33, %v3468_v61  ;;  %v3471_v30 = vadd.f32 %v14083_v23, %v16567_v39  ;;  %14344 = vmatprep.mubr.msk.f32.mxu1 %vm258_vm1, %v4794_v55  ;;  %14400 = vmatprep.mubr.msk.f32.mxu0 %vm258_vm1, %v5216_v34  ;;  %v5608_v34 = vld [vmem:[%s15295_s22 + $0xbe0] sm:$0xff]  ;;  %v6030_v61 = vld [vmem:[%s15295_s22 + $0xa31] sm:$0xff] }
 0x1dc   : > { %v3319_v53 = vpop.f32.mrf.mxu1  ;;  %v3741_v25 = vpop.f32.mrf.mxu0 }
 0x1dd   : > { %v16825_v27 = vadd.f32 %v14139_v48, %v3471_v30  ;;  %v3470_v52 = vadd.f32 %v3319_v53, %v16572_v24  ;;  %v16863_v30 = vld [vmem:[%s18892_s1 + $0x48] sm:$0xf]  ;;  %v6031_v53 = vld [vmem:[%s15295_s22 + $0xa39] sm:$0xff] }
 0x1de   : > { %v14086_v32 = vpop.f32.mrf.mxu1  ;;  %v14142_v39 = vpop.f32.mrf.mxu0  ;;  %14345 = vmatmul.mubr.msk.f32.gmra.mxu1 %vm258_vm1, %v4795_v41  ;;  %14401 = vmatmul.mubr.msk.f32.gmra.mxu0 %vm258_vm1, %v5217_v2  ;;  %v5609_v2 = vld [vmem:[%s15295_s22 + $0xbe8] sm:$0xff] }
 0x1df   : > { %v16830_v47 = vadd.f32 %v3741_v25, %v3470_v52  ;;  %v3472_v57 = vadd.f32 %v14086_v32, %v16581_v45  ;;  %14347 = vmatprep.mubr.msk.f32.mxu1 %vm258_vm1, %v4796_v56  ;;  %14403 = vmatprep.mubr.msk.f32.mxu0 %vm258_vm1, %v5218_v1  ;;  %v5610_v1 = vld [vmem:[%s15295_s22 + $0xbf0] sm:$0xff]  ;;  %v6032_v52 = vld [vmem:[%s15295_s22 + $0xa41] sm:$0xff] }
 0x1e0   : > { %v3329_v3 = vpop.f32.mrf.mxu1  ;;  %v3751_v24 = vpop.f32.mrf.mxu0 }
 0x1e1   : > { %v16839_v11 = vadd.f32 %v14142_v39, %v3472_v57  ;;  %v5612_v24 = vld [vmem:[%s15295_s22 + $0xc00] sm:$0xff] }
 0x1e2   : > { %v14089_v43 = vpop.f32.mrf.mxu1  ;;  %v14145_v31 = vpop.f32.mrf.mxu0  ;;  %14348 = vmatmul.mubr.msk.f32.gmra.mxu1 %vm258_vm1, %v4797_v36  ;;  %14404 = vmatmul.mubr.msk.f32.gmra.mxu0 %vm258_vm1, %v5219_v7  ;;  %v6033_v36 = vld [vmem:[%s15295_s22 + $0xa49] sm:$0xff] }
 0x1e3   : > { %v3474_v45 = vadd.f32 %v14089_v43, %v16590_v49  ;;  %14408 = vmatprep.mubr.msk.f32.mxu1 %vm258_vm1, %v5606_v40  ;;  %14464 = vmatprep.mubr.msk.f32.mxu0 %vm258_vm1, %v6028_v26  ;;  %v16858_v49 = vld [vmem:[%s18892_s1 + $0x44] sm:$0xf]  ;;  %v6034_v40 = vld [vmem:[%s15295_s22 + $0xa51] sm:$0xff] }
 0x1e4   : > { %v3338_v35 = vpop.f32.mrf.mxu1  ;;  %v3760_v12 = vpop.f32.mrf.mxu0 }
 0x1e5   : > { %v16848_v33 = vadd.f32 %v14145_v31, %v3474_v45  ;;  %v3473_v55 = vadd.f32 %v3338_v35, %v16607_v13 }
 0x1e6   : > { %v14092_v23 = vpop.f32.mrf.mxu1  ;;  %v14148_v48 = vpop.f32.mrf.mxu0  ;;  %14409 = vmatmul.mubr.msk.f32.vlgmr.msra.gmra.mxu1 %vm258_vm1, %v5607_v58  ;;  %14465 = vmatmul.mubr.msk.f32.vlgmr.msra.gmra.mxu0 %vm258_vm1, %v6029_v19  ;;  %v5613_v58 = vld [vmem:[%s15295_s22 + $0xc08] sm:$0xff]  ;;  %v6035_v19 = vld [vmem:[%s15295_s22 + $0xa59] sm:$0xff] }
 0x1e7   : > { %v16865_v13 = vadd.f32 %v3760_v12, %v3473_v55  ;;  %v3476_v41 = vadd.f32 %v14092_v23, %v16620_v29  ;;  %14519 = vmatpush3.msk.msra.mxu1 %vm367_vm0, %v16600_v60  ;;  %14575 = vmatpush3.msk.msra.mxu0 %vm367_vm0, %v16605_v59  ;;  %v6036_v55 = vld [vmem:[%s15295_s22 + $0xa61] sm:$0xff] }
 0x1e8   : > { %v3348_v25 = vpop.f32.mrf.mxu1  ;;  %v3770_v56 = vpop.f32.mrf.mxu0  ;;  %14411 = vmatprep.mubr.msk.f32.mxu1 %vm258_vm1, %v5608_v34  ;;  %14467 = vmatprep.mubr.msk.f32.mxu0 %vm258_vm1, %v6030_v61 }
 0x1e9   : > { %v16878_v32 = vadd.f32 %v14148_v48, %v3476_v41  ;;  %v3475_v60 = vadd.f32 %v3348_v25, %v16629_v42  ;;  %14630 = vmatprep.subr.msk.mxu1 %vm367_vm0, %v16858_v49  ;;  %14686 = vmatprep.subr.msk.mxu0 %vm367_vm0, %v16863_v30  ;;  %v5611_v42 = vld [vmem:[%s15295_s22 + $0xbf8] sm:$0xff] }
 0x1ea   : > { %v14095_v59 = vpop.f32.mrf.mxu1  ;;  %v14151_v29 = vpop.f32.mrf.mxu0  ;;  %14412 = vmatmul.mubr.msk.f32.gmra.mxu1 %vm258_vm1, %v5609_v2  ;;  %14468 = vmatmul.mubr.msk.f32.gmra.mxu0 %vm258_vm1, %v6031_v53  ;;  %v5615_v2 = vld [vmem:[%s15295_s22 + $0xc18] sm:$0xff]  ;;  %v6037_v53 = vld [vmem:[%s15295_s22 + $0xa69] sm:$0xff] }
 0x1eb   : > { %v16887_v39 = vadd.f32 %v3770_v56, %v3475_v60  ;;  %v3478_v57 = vadd.f32 %v14095_v59, %v16638_v50  ;;  %14414 = vmatprep.mubr.msk.f32.mxu1 %vm258_vm1, %v5610_v1  ;;  %14470 = vmatprep.mubr.msk.f32.mxu0 %vm258_vm1, %v6032_v52  ;;  %v5616_v56 = vld [vmem:[%s15295_s22 + $0xc20] sm:$0xff]  ;;  %v6038_v1 = vld [vmem:[%s15295_s22 + $0xa71] sm:$0xff] }
 0x1ec   : > { %v3358_v7 = vpop.f32.mrf.mxu1  ;;  %v3780_v3 = vpop.f32.mrf.mxu0 }
 0x1ed   : > { %v16896_v26 = vadd.f32 %v14151_v29, %v3478_v57  ;;  %v3477_v43 = vadd.f32 %v3358_v7, %v16643_v15  ;;  %v5614_v15 = vld [vmem:[%s15295_s22 + $0xc10] sm:$0xff] }
 0x1ee   : > { %v14098_v31 = vpop.f32.mrf.mxu1  ;;  %v14154_v50 = vpop.f32.mrf.mxu0  ;;  %14415 = vmatmul.mubr.msk.f32.gmra.mxu1 %vm258_vm1, %v5611_v42  ;;  %14471 = vmatmul.mubr.msk.f32.gmra.mxu0 %vm258_vm1, %v6033_v36  ;;  %v5617_v42 = vld [vmem:[%s15295_s22 + $0xc28] sm:$0xff]  ;;  %v6039_v36 = vld [vmem:[%s15295_s22 + $0xa79] sm:$0xff] }
 0x1ef   : > { %v16901_v45 = vadd.f32 %v3780_v3, %v3477_v43  ;;  %14417 = vmatprep.mubr.msk.f32.mxu1 %vm258_vm1, %v5612_v24  ;;  %14473 = vmatprep.mubr.msk.f32.mxu0 %vm258_vm1, %v6034_v40  ;;  %v5618_v3 = vld [vmem:[%s15295_s22 + $0xc30] sm:$0xff]  ;;  %v6040_v24 = vld [vmem:[%s15295_s22 + $0xa81] sm:$0xff] }
 0x1f0   : > { %v3368_v35 = vpop.f32.mrf.mxu1  ;;  %v3790_v12 = vpop.f32.mrf.mxu0 }
 0x1f1   : > { %v3479_v34 = vadd.f32 %v3368_v35, %v16654_v21  ;;  %v6041_v35 = vld [vmem:[%s15295_s22 + $0xa89] sm:$0xff] }
 0x1f2   : > { %v14101_v61 = vpop.f32.mrf.mxu1  ;;  %v14157_v23 = vpop.f32.mrf.mxu0  ;;  %14418 = vmatmul.mubr.msk.f32.gmra.mxu1 %vm258_vm1, %v5613_v58  ;;  %14474 = vmatmul.mubr.msk.f32.gmra.mxu0 %vm258_vm1, %v6035_v19  ;;  %v5619_v19 = vld [vmem:[%s15295_s22 + $0xc38] sm:$0xff] }
 0x1f3   : > { %v16912_v48 = vadd.f32 %v3790_v12, %v3479_v34  ;;  %v3481_v41 = vadd.f32 %v14101_v61, %v16663_v44  ;;  %14420 = vmatprep.mubr.msk.f32.mxu1 %vm258_vm1, %v5614_v15  ;;  %14476 = vmatprep.mubr.msk.f32.mxu0 %vm258_vm1, %v6036_v55  ;;  %v5620_v15 = vld [vmem:[%s15295_s22 + $0xc40] sm:$0xff]  ;;  %v6042_v55 = vld [vmem:[%s15295_s22 + $0xa91] sm:$0xff] }
 0x1f4   : > { %v3377_v25 = vpop.f32.mrf.mxu1  ;;  %v3799_v21 = vpop.f32.mrf.mxu0 }
 0x1f5   : > { %v16921_v52 = vadd.f32 %v14157_v23, %v3481_v41  ;;  %v3480_v60 = vadd.f32 %v3377_v25, %v16668_v9  ;;  %v6043_v25 = vld [vmem:[%s15295_s22 + $0xa99] sm:$0xff] }
 0x1f6   : > { %v14104_v59 = vpop.f32.mrf.mxu1  ;;  %v14160_v44 = vpop.f32.mrf.mxu0  ;;  %14421 = vmatmul.mubr.msk.f32.gmra.mxu1 %vm258_vm1, %v5615_v2  ;;  %14477 = vmatmul.mubr.msk.f32.gmra.mxu0 %vm258_vm1, %v6037_v53  ;;  %v5621_v53 = vld [vmem:[%s15295_s22 + $0xc48] sm:$0xff] }
 0x1f7   : > { %v16926_v29 = vadd.f32 %v3799_v21, %v3480_v60  ;;  %v3483_v57 = vadd.f32 %v14104_v59, %v16677_v18  ;;  %14423 = vmatprep.mubr.msk.f32.mxu1 %vm258_vm1, %v5616_v56  ;;  %14479 = vmatprep.mubr.msk.f32.mxu0 %vm258_vm1, %v6038_v1  ;;  %v5622_v56 = vld [vmem:[%s15295_s22 + $0xc50] sm:$0xff]  ;;  %v6044_v1 = vld [vmem:[%s15295_s22 + $0xaa1] sm:$0xff] }
 0x1f8   : > { %v3387_v7 = vpop.f32.mrf.mxu1  ;;  %v3809_v9 = vpop.f32.mrf.mxu0 }
 0x1f9   : > { %v16935_v40 = vadd.f32 %v14160_v44, %v3483_v57  ;;  %v3482_v43 = vadd.f32 %v3387_v7, %v16682_v20  ;;  %v6045_v7 = vld [vmem:[%s15295_s22 + $0xaa9] sm:$0xff] }
 0x1fa   : > { %v14107_v31 = vpop.f32.mrf.mxu1  ;;  %v14163_v18 = vpop.f32.mrf.mxu0  ;;  %14424 = vmatmul.mubr.msk.f32.gmra.mxu1 %vm258_vm1, %v5617_v42  ;;  %14480 = vmatmul.mubr.msk.f32.gmra.mxu0 %vm258_vm1, %v6039_v36  ;;  %v5623_v36 = vld [vmem:[%s15295_s22 + $0xc58] sm:$0xff] }
 0x1fb   : > { %v16940_v50 = vadd.f32 %v3809_v9, %v3482_v43  ;;  %v3485_v58 = vadd.f32 %v14107_v31, %v16691_v10  ;;  %14426 = vmatprep.mubr.msk.f32.mxu1 %vm258_vm1, %v5618_v3  ;;  %14482 = vmatprep.mubr.msk.f32.mxu0 %vm258_vm1, %v6040_v24  ;;  %v5624_v3 = vld [vmem:[%s15295_s22 + $0xc60] sm:$0xff]  ;;  %v6046_v24 = vld [vmem:[%s15295_s22 + $0xab1] sm:$0xff] }
 0x1fc   : > { %v3397_v12 = vpop.f32.mrf.mxu1  ;;  %v3819_v20 = vpop.f32.mrf.mxu0 }
 0x1fd   : > { %v16949_v34 = vadd.f32 %v14163_v18, %v3485_v58  ;;  %v3484_v61 = vadd.f32 %v3397_v12, %v16696_v4  ;;  %v5625_v58 = vld [vmem:[%s15295_s22 + $0xc68] sm:$0xff] }
 0x1fe   : > { %v14110_v23 = vpop.f32.mrf.mxu1  ;;  %v14166_v10 = vpop.f32.mrf.mxu0  ;;  %14427 = vmatmul.mubr.msk.f32.gmra.mxu1 %vm258_vm1, %v5619_v19  ;;  %14483 = vmatmul.mubr.msk.f32.gmra.mxu0 %vm258_vm1, %v6041_v35  ;;  %v6047_v19 = vld [vmem:[%s15295_s22 + $0xab9] sm:$0xff] }
 0x1ff   : > { %v16954_v41 = vadd.f32 %v3819_v20, %v3484_v61  ;;  %v3487_v2 = vadd.f32 %v14110_v23, %v16705_v37  ;;  %14429 = vmatprep.mubr.msk.f32.mxu1 %vm258_vm1, %v5620_v15  ;;  %14485 = vmatprep.mubr.msk.f32.mxu0 %vm258_vm1, %v6042_v55  ;;  %v5626_v20 = vld [vmem:[%s15295_s22 + $0xc70] sm:$0xff]  ;;  %v6048_v15 = vld [vmem:[%s15295_s22 + $0xac1] sm:$0xff] }
 0x200   : > { %v3407_v21 = vpop.f32.mrf.mxu1  ;;  %v3829_v4 = vpop.f32.mrf.mxu0 }
 0x201   : > { %v16963_v60 = vadd.f32 %v14166_v10, %v3487_v2  ;;  %v3486_v59 = vadd.f32 %v3407_v21, %v16710_v5 }
 0x202   : > { %v14113_v44 = vpop.f32.mrf.mxu1  ;;  %v14169_v37 = vpop.f32.mrf.mxu0  ;;  %14430 = vmatmul.mubr.msk.f32.gmra.mxu1 %vm258_vm1, %v5621_v53  ;;  %14486 = vmatmul.mubr.msk.f32.gmra.mxu0 %vm258_vm1, %v6043_v25  ;;  %v5627_v53 = vld [vmem:[%s15295_s22 + $0xc78] sm:$0xff]  ;;  %v6049_v25 = vld [vmem:[%s15295_s22 + $0xac9] sm:$0xff] }
 0x203   : > { %v16968_v57 = vadd.f32 %v3829_v4, %v3486_v59  ;;  %v3488_v42 = vadd.f32 %v14113_v44, %v16719_v46  ;;  %14432 = vmatprep.mubr.msk.f32.mxu1 %vm258_vm1, %v5622_v56  ;;  %14488 = vmatprep.mubr.msk.f32.mxu0 %vm258_vm1, %v6044_v1  ;;  %v5628_v4 = vld [vmem:[%s15295_s22 + $0xc80] sm:$0xff]  ;;  %v6050_v56 = vld [vmem:[%s15295_s22 + $0xad1] sm:$0xff] }
 0x204   : > { %v3417_v9 = vpop.f32.mrf.mxu1  ;;  %v3839_v5 = vpop.f32.mrf.mxu0 }
 0x205   : > { %v16977_v43 = vadd.f32 %v14169_v37, %v3488_v42  ;;  %v5630_v5 = vld [vmem:[%s15295_s22 + $0xc90] sm:$0xff] }
 0x206   : > { %v14116_v31 = vpop.f32.mrf.mxu1  ;;  %v14172_v18 = vpop.f32.mrf.mxu0  ;;  %14433 = vmatmul.mubr.msk.f32.gmra.mxu1 %vm258_vm1, %v5623_v36  ;;  %14489 = vmatmul.mubr.msk.f32.gmra.mxu0 %vm258_vm1, %v6045_v7  ;;  %v5629_v36 = vld [vmem:[%s15295_s22 + $0xc88] sm:$0xff]  ;;  %v6051_v7 = vld [vmem:[%s15295_s22 + $0xad9] sm:$0xff] }
 0x207   : > { %v3490_v46 = vadd.f32 %v14116_v31, %v16730_v22  ;;  %14435 = vmatprep.mubr.msk.f32.mxu1 %vm258_vm1, %v5624_v3  ;;  %14491 = vmatprep.mubr.msk.f32.mxu0 %vm258_vm1, %v6046_v24  ;;  %v6052_v3 = vld [vmem:[%s15295_s22 + $0xae1] sm:$0xff] }
 0x208   : > { %v3426_v35 = vpop.f32.mrf.mxu1  ;;  %v3848_v12 = vpop.f32.mrf.mxu0 }
 0x209   : > { %v16988_v55 = vadd.f32 %v14172_v18, %v3490_v46  ;;  %v3489_v61 = vadd.f32 %v3426_v35, %v16735_v0 }
 0x20a   : > { %v14119_v23 = vpop.f32.mrf.mxu1  ;;  %v14175_v22 = vpop.f32.mrf.mxu0  ;;  %14436 = vmatmul.mubr.msk.f32.gmra.mxu1 %vm258_vm1, %v5625_v58  ;;  %14492 = vmatmul.mubr.msk.f32.gmra.mxu0 %vm258_vm1, %v6047_v19  ;;  %v5631_v58 = vld [vmem:[%s15295_s22 + $0xc98] sm:$0xff]  ;;  %v6053_v19 = vld [vmem:[%s15295_s22 + $0xae9] sm:$0xff] }
 0x20b   : > { %v16993_v10 = vadd.f32 %v3848_v12, %v3489_v61  ;;  %v3492_v2 = vadd.f32 %v14119_v23, %v16744_v14  ;;  %14438 = vmatprep.mubr.msk.f32.mxu1 %vm258_vm1, %v5626_v20  ;;  %14494 = vmatprep.mubr.msk.f32.mxu0 %vm258_vm1, %v6048_v15  ;;  %v6054_v20 = vld [vmem:[%s15295_s22 + $0xaf1] sm:$0xff] }
 0x20c   : > { %v3436_v21 = vpop.f32.mrf.mxu1  ;;  %v3858_v0 = vpop.f32.mrf.mxu0 }
 0x20d   : > { %v17002_v1 = vadd.f32 %v14175_v22, %v3492_v2  ;;  %v3491_v59 = vadd.f32 %v3436_v21, %v16749_v28 }
 0x20e   : > { %v14122_v44 = vpop.f32.mrf.mxu1  ;;  %v14178_v14 = vpop.f32.mrf.mxu0  ;;  %14439 = vmatmul.mubr.msk.f32.gmra.mxu1 %vm258_vm1, %v5627_v53  ;;  %14495 = vmatmul.mubr.msk.f32.gmra.mxu0 %vm258_vm1, %v6049_v25  ;;  %v5633_v53 = vld [vmem:[%s15295_s22 + $0xca8] sm:$0xff]  ;;  %v6055_v25 = vld [vmem:[%s15295_s22 + $0xaf9] sm:$0xff] }
 0x20f   : > { %v17007_v37 = vadd.f32 %v3858_v0, %v3491_v59  ;;  %v3494_v42 = vadd.f32 %v14122_v44, %v16758_v17  ;;  %14441 = vmatprep.mubr.msk.f32.mxu1 %vm258_vm1, %v5628_v4  ;;  %14497 = vmatprep.mubr.msk.f32.mxu0 %vm258_vm1, %v6050_v56  ;;  %v5634_v0 = vld [vmem:[%s15295_s22 + $0xcb0] sm:$0xff]  ;;  %v6056_v4 = vld [vmem:[%s15295_s22 + $0xb01] sm:$0xff] }
 0x210   : > { %v3446_v9 = vpop.f32.mrf.mxu1  ;;  %v3868_v28 = vpop.f32.mrf.mxu0 }
 0x211   : > { %v17016_v24 = vadd.f32 %v14178_v14, %v3494_v42  ;;  %v3493_v31 = vadd.f32 %v3446_v9, %v16763_v62  ;;  %v5632_v62 = vld [vmem:[%s15295_s22 + $0xca0] sm:$0xff] }
 0x212   : > { %v14125_v18 = vpop.f32.mrf.mxu1  ;;  %v14181_v17 = vpop.f32.mrf.mxu0  ;;  %14442 = vmatmul.mubr.msk.f32.gmra.mxu1 %vm258_vm1, %v5629_v36  ;;  %14498 = vmatmul.mubr.msk.f32.gmra.mxu0 %vm258_vm1, %v6051_v7  ;;  %v5635_v36 = vld [vmem:[%s15295_s22 + $0xcb8] sm:$0xff]  ;;  %v6057_v7 = vld [vmem:[%s15295_s22 + $0xb09] sm:$0xff] }
 0x213   : > { %v17021_v46 = vadd.f32 %v3868_v28, %v3493_v31  ;;  %14444 = vmatprep.mubr.msk.f32.mxu1 %vm258_vm1, %v5630_v5  ;;  %14500 = vmatprep.mubr.msk.f32.mxu0 %vm258_vm1, %v6052_v3  ;;  %v5636_v28 = vld [vmem:[%s15295_s22 + $0xcc0] sm:$0xff]  ;;  %v6058_v5 = vld [vmem:[%s15295_s22 + $0xb11] sm:$0xff] }
 0x214   : > { %v3456_v35 = vpop.f32.mrf.mxu1  ;;  %v3878_v12 = vpop.f32.mrf.mxu0 }
 0x215   : > { %v3495_v15 = vadd.f32 %v3456_v35, %v16774_v51  ;;  %v6059_v35 = vld [vmem:[%s15295_s22 + $0xb19] sm:$0xff] }
 0x216   : > { %v14186_v61 = vpop.f32.mrf.mxu1  ;;  %v14242_v23 = vpop.f32.mrf.mxu0  ;;  %14445 = vmatmul.mubr.msk.f32.gmra.mxu1 %vm258_vm1, %v5631_v58  ;;  %14501 = vmatmul.mubr.msk.f32.gmra.mxu0 %vm258_vm1, %v6053_v19  ;;  %v5637_v19 = vld [vmem:[%s15295_s22 + $0xcc8] sm:$0xff] }
 0x217   : > { %v17032_v22 = vadd.f32 %v3878_v12, %v3495_v15  ;;  %v4309_v2 = vadd.f32 %v14186_v61, %v16783_v6  ;;  %14447 = vmatprep.mubr.msk.f32.mxu1 %vm258_vm1, %v5632_v62  ;;  %14503 = vmatprep.mubr.msk.f32.mxu0 %vm258_vm1, %v6054_v20  ;;  %v5638_v62 = vld [vmem:[%s15295_s22 + $0xcd0] sm:$0xff]  ;;  %v6060_v20 = vld [vmem:[%s15295_s22 + $0xb21] sm:$0xff] }
 0x218   : > { %v4133_v21 = vpop.f32.mrf.mxu1  ;;  %v4555_v51 = vpop.f32.mrf.mxu0 }
 0x219   : > { %v17041_v56 = vadd.f32 %v14242_v23, %v4309_v2  ;;  %v4308_v59 = vadd.f32 %v4133_v21, %v16788_v8  ;;  %v6061_v21 = vld [vmem:[%s15295_s22 + $0xb29] sm:$0xff] }
 0x21a   : > { %v14189_v44 = vpop.f32.mrf.mxu1  ;;  %v14245_v6 = vpop.f32.mrf.mxu0  ;;  %14448 = vmatmul.mubr.msk.f32.gmra.mxu1 %vm258_vm1, %v5633_v53  ;;  %14504 = vmatmul.mubr.msk.f32.gmra.mxu0 %vm258_vm1, %v6055_v25  ;;  %v5639_v25 = vld [vmem:[%s15295_s22 + $0xcd8] sm:$0xff] }
 0x21b   : > { %v17046_v14 = vadd.f32 %v4555_v51, %v4308_v59  ;;  %v4311_v42 = vadd.f32 %v14189_v44, %v16797_v38  ;;  %14450 = vmatprep.mubr.msk.f32.mxu1 %vm258_vm1, %v5634_v0  ;;  %14506 = vmatprep.mubr.msk.f32.mxu0 %vm258_vm1, %v6056_v4  ;;  %v5640_v0 = vld [vmem:[%s15295_s22 + $0xce0] sm:$0xff]  ;;  %v6062_v4 = vld [vmem:[%s15295_s22 + $0xb31] sm:$0xff] }
 0x21c   : > { %v4143_v9 = vpop.f32.mrf.mxu1  ;;  %v4565_v8 = vpop.f32.mrf.mxu0 }
 0x21d   : > { %v17055_v3 = vadd.f32 %v14245_v6, %v4311_v42  ;;  %v4310_v31 = vadd.f32 %v4143_v9, %v16802_v16  ;;  %v6063_v9 = vld [vmem:[%s15295_s22 + $0xb39] sm:$0xff] }
 0x21e   : > { %v14192_v18 = vpop.f32.mrf.mxu1  ;;  %v14248_v38 = vpop.f32.mrf.mxu0  ;;  %14451 = vmatmul.mubr.msk.f32.gmra.mxu1 %vm258_vm1, %v5635_v36  ;;  %14507 = vmatmul.mubr.msk.f32.gmra.mxu0 %vm258_vm1, %v6057_v7  ;;  %v5641_v7 = vld [vmem:[%s15295_s22 + $0xce8] sm:$0xff] }
 0x21f   : > { %v17060_v17 = vadd.f32 %v4565_v8, %v4310_v31  ;;  %v4313_v58 = vadd.f32 %v14192_v18, %v16811_v54  ;;  %14453 = vmatprep.mubr.msk.f32.mxu1 %vm258_vm1, %v5636_v28  ;;  %14509 = vmatprep.mubr.msk.f32.mxu0 %vm258_vm1, %v6058_v5  ;;  %v6450_v28 = vld [vmem:[%s15295_s22 + $0x6c8] sm:$0xff]  ;;  %v6872_v5 = vld [vmem:[%s15295_s22 + $0x878] sm:$0xff] }
 0x220   : > { %v4153_v12 = vpop.f32.mrf.mxu1  ;;  %v4575_v16 = vpop.f32.mrf.mxu0 }
 0x221   : > { %v17069_v15 = vadd.f32 %v14248_v38, %v4313_v58  ;;  %v4312_v61 = vadd.f32 %v4153_v12, %v16816_v63  ;;  %v6451_v58 = vld [vmem:[%s15295_s22 + $0x6d0] sm:$0xff] }
 0x222   : > { %v14195_v23 = vpop.f32.mrf.mxu1  ;;  %v14251_v54 = vpop.f32.mrf.mxu0  ;;  %14454 = vmatmul.mubr.msk.f32.gmra.mxu1 %vm258_vm1, %v5637_v19  ;;  %14510 = vmatmul.mubr.msk.f32.gmra.mxu0 %vm258_vm1, %v6059_v35  ;;  %v6873_v19 = vld [vmem:[%s15295_s22 + $0x880] sm:$0xff] }
 0x223   : > { %v17074_v2 = vadd.f32 %v4575_v16, %v4312_v61  ;;  %v4315_v53 = vadd.f32 %v14195_v23, %v16825_v27  ;;  %14456 = vmatprep.mubr.msk.f32.mxu1 %vm258_vm1, %v5638_v62  ;;  %14512 = vmatprep.mubr.msk.f32.mxu0 %vm258_vm1, %v6060_v20  ;;  %v6452_v20 = vld [vmem:[%s15295_s22 + $0x6d8] sm:$0xff]  ;;  %v6874_v61 = vld [vmem:[%s15295_s22 + $0x888] sm:$0xff] }
 0x224   : > { %v4163_v51 = vpop.f32.mrf.mxu1  ;;  %v4585_v63 = vpop.f32.mrf.mxu0 }
 0x225   : > { %v17083_v59 = vadd.f32 %v14251_v54, %v4315_v53  ;;  %v4314_v44 = vadd.f32 %v4163_v51, %v16830_v47  ;;  %v17121_v53 = vld [vmem:[%s18892_s1 + $0x50] sm:$0xf] }
 0x226   : > { %v14198_v6 = vpop.f32.mrf.mxu1  ;;  %v14254_v27 = vpop.f32.mrf.mxu0  ;;  %14457 = vmatmul.mubr.msk.f32.gmra.mxu1 %vm258_vm1, %v5639_v25  ;;  %14513 = vmatmul.mubr.msk.f32.gmra.mxu0 %vm258_vm1, %v6061_v21  ;;  %v6453_v21 = vld [vmem:[%s15295_s22 + $0x6e0] sm:$0xff]  ;;  %v6875_v51 = vld [vmem:[%s15295_s22 + $0x890] sm:$0xff] }
 0x227   : > { %v17088_v42 = vadd.f32 %v4585_v63, %v4314_v44  ;;  %v4316_v36 = vadd.f32 %v14198_v6, %v16839_v11  ;;  %14459 = vmatprep.mubr.msk.f32.mxu1 %vm258_vm1, %v5640_v0  ;;  %14515 = vmatprep.mubr.msk.f32.mxu0 %vm258_vm1, %v6062_v4  ;;  %v6454_v4 = vld [vmem:[%s15295_s22 + $0x6e8] sm:$0xff]  ;;  %v6876_v44 = vld [vmem:[%s15295_s22 + $0x898] sm:$0xff] }
 0x228   : > { %v4173_v8 = vpop.f32.mrf.mxu1  ;;  %v4595_v47 = vpop.f32.mrf.mxu0 }
 0x229   : > { %v17097_v31 = vadd.f32 %v14254_v27, %v4316_v36  ;;  %v6456_v47 = vld [vmem:[%s15295_s22 + $0x6f8] sm:$0xff] }
 0x22a   : > { %v14201_v18 = vpop.f32.mrf.mxu1  ;;  %v14257_v38 = vpop.f32.mrf.mxu0  ;;  %14460 = vmatmul.mubr.msk.f32.gmra.mxu1 %vm258_vm1, %v5641_v7  ;;  %14516 = vmatmul.mubr.msk.f32.gmra.mxu0 %vm258_vm1, %v6063_v9  ;;  %v6877_v7 = vld [vmem:[%s15295_s22 + $0x8a0] sm:$0xff] }
 0x22b   : > { %v4318_v11 = vadd.f32 %v14201_v18, %v16848_v33  ;;  %14520 = vmatprep.mubr.msk.f32.mxu1 %vm258_vm1, %v6450_v28  ;;  %14576 = vmatprep.mubr.msk.f32.mxu0 %vm258_vm1, %v6872_v5  ;;  %v17116_v33 = vld [vmem:[%s18892_s1 + $0x4c] sm:$0xf] }
 0x22c   : > { %v4182_v35 = vpop.f32.mrf.mxu1  ;;  %v4604_v12 = vpop.f32.mrf.mxu0  ;;  %v6878_v28 = vld [vmem:[%s15295_s22 + $0x8a8] sm:$0xff] }
 0x22d   : > { %v17106_v16 = vadd.f32 %v14257_v38, %v4318_v11  ;;  %v4317_v62 = vadd.f32 %v4182_v35, %v16865_v13 }
 0x22e   : > { %v14204_v23 = vpop.f32.mrf.mxu1  ;;  %v14260_v54 = vpop.f32.mrf.mxu0  ;;  %14521 = vmatmul.mubr.msk.f32.vlgmr.msra.gmra.mxu1 %vm258_vm1, %v6451_v58  ;;  %14577 = vmatmul.mubr.msk.f32.vlgmr.msra.gmra.mxu0 %vm258_vm1, %v6873_v19  ;;  %v6457_v58 = vld [vmem:[%s15295_s22 + $0x700] sm:$0xff]  ;;  %v6879_v19 = vld [vmem:[%s15295_s22 + $0x8b0] sm:$0xff] }
 0x22f   : > { %v17123_v13 = vadd.f32 %v4604_v12, %v4317_v62  ;;  %v4320_v25 = vadd.f32 %v14204_v23, %v16878_v32  ;;  %14631 = vmatpush3.msk.msra.mxu1 %vm367_vm0, %v16858_v49  ;;  %14687 = vmatpush3.msk.msra.mxu0 %vm367_vm0, %v16863_v30  ;;  %v6880_v62 = vld [vmem:[%s15295_s22 + $0x8b8] sm:$0xff] }
 0x230   : > { %v4192_v63 = vpop.f32.mrf.mxu1  ;;  %v4614_v0 = vpop.f32.mrf.mxu0  ;;  %14523 = vmatprep.mubr.msk.f32.mxu1 %vm258_vm1, %v6452_v20  ;;  %14579 = vmatprep.mubr.msk.f32.mxu0 %vm258_vm1, %v6874_v61 }
 0x231   : > { %v17136_v6 = vadd.f32 %v14260_v54, %v4320_v25  ;;  %v4319_v49 = vadd.f32 %v4192_v63, %v16887_v39  ;;  %14742 = vmatprep.subr.msk.mxu1 %vm367_vm0, %v17116_v33  ;;  %14798 = vmatprep.subr.msk.mxu0 %vm367_vm0, %v17121_v53  ;;  %v6455_v39 = vld [vmem:[%s15295_s22 + $0x6f0] sm:$0xff] }
 0x232   : > { %v14207_v30 = vpop.f32.mrf.mxu1  ;;  %v14263_v32 = vpop.f32.mrf.mxu0  ;;  %14524 = vmatmul.mubr.msk.f32.gmra.mxu1 %vm258_vm1, %v6453_v21  ;;  %14580 = vmatmul.mubr.msk.f32.gmra.mxu0 %vm258_vm1, %v6875_v51  ;;  %v6459_v21 = vld [vmem:[%s15295_s22 + $0x710] sm:$0xff]  ;;  %v6881_v51 = vld [vmem:[%s15295_s22 + $0x8c0] sm:$0xff] }
 0x233   : > { %v17145_v27 = vadd.f32 %v4614_v0, %v4319_v49  ;;  %v4322_v36 = vadd.f32 %v14207_v30, %v16896_v26  ;;  %14526 = vmatprep.mubr.msk.f32.mxu1 %vm258_vm1, %v6454_v4  ;;  %14582 = vmatprep.mubr.msk.f32.mxu0 %vm258_vm1, %v6876_v44  ;;  %v6460_v0 = vld [vmem:[%s15295_s22 + $0x718] sm:$0xff]  ;;  %v6882_v4 = vld [vmem:[%s15295_s22 + $0x8c8] sm:$0xff] }
 0x234   : > { %v4202_v9 = vpop.f32.mrf.mxu1  ;;  %v4624_v8 = vpop.f32.mrf.mxu0 }
 0x235   : > { %v17154_v5 = vadd.f32 %v14263_v32, %v4322_v36  ;;  %v4321_v18 = vadd.f32 %v4202_v9, %v16901_v45  ;;  %v6458_v45 = vld [vmem:[%s15295_s22 + $0x708] sm:$0xff] }
 0x236   : > { %v14210_v38 = vpop.f32.mrf.mxu1  ;;  %v14266_v26 = vpop.f32.mrf.mxu0  ;;  %14527 = vmatmul.mubr.msk.f32.gmra.mxu1 %vm258_vm1, %v6455_v39  ;;  %14583 = vmatmul.mubr.msk.f32.gmra.mxu0 %vm258_vm1, %v6877_v7  ;;  %v6461_v39 = vld [vmem:[%s15295_s22 + $0x720] sm:$0xff]  ;;  %v6883_v7 = vld [vmem:[%s15295_s22 + $0x8d0] sm:$0xff] }
 0x237   : > { %v17159_v11 = vadd.f32 %v4624_v8, %v4321_v18  ;;  %14529 = vmatprep.mubr.msk.f32.mxu1 %vm258_vm1, %v6456_v47  ;;  %14585 = vmatprep.mubr.msk.f32.mxu0 %vm258_vm1, %v6878_v28  ;;  %v6462_v8 = vld [vmem:[%s15295_s22 + $0x728] sm:$0xff]  ;;  %v6884_v47 = vld [vmem:[%s15295_s22 + $0x8d8] sm:$0xff] }
 0x238   : > { %v4212_v35 = vpop.f32.mrf.mxu1  ;;  %v4634_v12 = vpop.f32.mrf.mxu0 }
 0x239   : > { %v4323_v20 = vadd.f32 %v4212_v35, %v16912_v48  ;;  %v6885_v35 = vld [vmem:[%s15295_s22 + $0x8e0] sm:$0xff] }
 0x23a   : > { %v14213_v61 = vpop.f32.mrf.mxu1  ;;  %v14269_v23 = vpop.f32.mrf.mxu0  ;;  %14530 = vmatmul.mubr.msk.f32.gmra.mxu1 %vm258_vm1, %v6457_v58  ;;  %14586 = vmatmul.mubr.msk.f32.gmra.mxu0 %vm258_vm1, %v6879_v19  ;;  %v6463_v19 = vld [vmem:[%s15295_s22 + $0x730] sm:$0xff] }
 0x23b   : > { %v17170_v54 = vadd.f32 %v4634_v12, %v4323_v20  ;;  %v4325_v25 = vadd.f32 %v14213_v61, %v16921_v52  ;;  %14532 = vmatprep.mubr.msk.f32.mxu1 %vm258_vm1, %v6458_v45  ;;  %14588 = vmatprep.mubr.msk.f32.mxu0 %vm258_vm1, %v6880_v62  ;;  %v6464_v45 = vld [vmem:[%s15295_s22 + $0x738] sm:$0xff]  ;;  %v6886_v62 = vld [vmem:[%s15295_s22 + $0x8e8] sm:$0xff] }
 0x23c   : > { %v4221_v63 = vpop.f32.mrf.mxu1  ;;  %v4643_v48 = vpop.f32.mrf.mxu0 }
 0x23d   : > { %v17179_v44 = vadd.f32 %v14269_v23, %v4325_v25  ;;  %v4324_v49 = vadd.f32 %v4221_v63, %v16926_v29  ;;  %v6887_v63 = vld [vmem:[%s15295_s22 + $0x8f0] sm:$0xff] }
 0x23e   : > { %v14216_v30 = vpop.f32.mrf.mxu1  ;;  %v14272_v52 = vpop.f32.mrf.mxu0  ;;  %14533 = vmatmul.mubr.msk.f32.gmra.mxu1 %vm258_vm1, %v6459_v21  ;;  %14589 = vmatmul.mubr.msk.f32.gmra.mxu0 %vm258_vm1, %v6881_v51  ;;  %v6465_v51 = vld [vmem:[%s15295_s22 + $0x740] sm:$0xff] }
 0x23f   : > { %v17184_v32 = vadd.f32 %v4643_v48, %v4324_v49  ;;  %v4327_v36 = vadd.f32 %v14216_v30, %v16935_v40  ;;  %14535 = vmatprep.mubr.msk.f32.mxu1 %vm258_vm1, %v6460_v0  ;;  %14591 = vmatprep.mubr.msk.f32.mxu0 %vm258_vm1, %v6882_v4  ;;  %v6466_v0 = vld [vmem:[%s15295_s22 + $0x748] sm:$0xff]  ;;  %v6888_v4 = vld [vmem:[%s15295_s22 + $0x8f8] sm:$0xff] }
 0x240   : > { %v4231_v9 = vpop.f32.mrf.mxu1  ;;  %v4653_v29 = vpop.f32.mrf.mxu0 }
 0x241   : > { %v17193_v28 = vadd.f32 %v14272_v52, %v4327_v36  ;;  %v4326_v18 = vadd.f32 %v4231_v9, %v16940_v50  ;;  %v6889_v9 = vld [vmem:[%s15295_s22 + $0x900] sm:$0xff] }
 0x242   : > { %v14219_v38 = vpop.f32.mrf.mxu1  ;;  %v14275_v40 = vpop.f32.mrf.mxu0  ;;  %14536 = vmatmul.mubr.msk.f32.gmra.mxu1 %vm258_vm1, %v6461_v39  ;;  %14592 = vmatmul.mubr.msk.f32.gmra.mxu0 %vm258_vm1, %v6883_v7  ;;  %v6467_v7 = vld [vmem:[%s15295_s22 + $0x750] sm:$0xff] }
 0x243   : > { %v17198_v26 = vadd.f32 %v4653_v29, %v4326_v18  ;;  %v4329_v58 = vadd.f32 %v14219_v38, %v16949_v34  ;;  %14538 = vmatprep.mubr.msk.f32.mxu1 %vm258_vm1, %v6462_v8  ;;  %14594 = vmatprep.mubr.msk.f32.mxu0 %vm258_vm1, %v6884_v47  ;;  %v6468_v8 = vld [vmem:[%s15295_s22 + $0x758] sm:$0xff]  ;;  %v6890_v47 = vld [vmem:[%s15295_s22 + $0x908] sm:$0xff] }
 0x244   : > { %v4241_v12 = vpop.f32.mrf.mxu1  ;;  %v4663_v50 = vpop.f32.mrf.mxu0 }
 0x245   : > { %v17207_v20 = vadd.f32 %v14275_v40, %v4329_v58  ;;  %v4328_v61 = vadd.f32 %v4241_v12, %v16954_v41  ;;  %v6469_v58 = vld [vmem:[%s15295_s22 + $0x760] sm:$0xff] }
 0x246   : > { %v14222_v23 = vpop.f32.mrf.mxu1  ;;  %v14278_v34 = vpop.f32.mrf.mxu0  ;;  %14539 = vmatmul.mubr.msk.f32.gmra.mxu1 %vm258_vm1, %v6463_v19  ;;  %14595 = vmatmul.mubr.msk.f32.gmra.mxu0 %vm258_vm1, %v6885_v35  ;;  %v6891_v19 = vld [vmem:[%s15295_s22 + $0x910] sm:$0xff] }
 0x247   : > { %v17212_v25 = vadd.f32 %v4663_v50, %v4328_v61  ;;  %v4331_v21 = vadd.f32 %v14222_v23, %v16963_v60  ;;  %14541 = vmatprep.mubr.msk.f32.mxu1 %vm258_vm1, %v6464_v45  ;;  %14597 = vmatprep.mubr.msk.f32.mxu0 %vm258_vm1, %v6886_v62  ;;  %v6470_v50 = vld [vmem:[%s15295_s22 + $0x768] sm:$0xff]  ;;  %v6892_v45 = vld [vmem:[%s15295_s22 + $0x918] sm:$0xff] }
 0x248   : > { %v4251_v48 = vpop.f32.mrf.mxu1  ;;  %v4673_v41 = vpop.f32.mrf.mxu0 }
 0x249   : > { %v17221_v49 = vadd.f32 %v14278_v34, %v4331_v21  ;;  %v4330_v30 = vadd.f32 %v4251_v48, %v16968_v57 }
 0x24a   : > { %v14225_v52 = vpop.f32.mrf.mxu1  ;;  %v14281_v60 = vpop.f32.mrf.mxu0  ;;  %14542 = vmatmul.mubr.msk.f32.gmra.mxu1 %vm258_vm1, %v6465_v51  ;;  %14598 = vmatmul.mubr.msk.f32.gmra.mxu0 %vm258_vm1, %v6887_v63  ;;  %v6471_v51 = vld [vmem:[%s15295_s22 + $0x770] sm:$0xff]  ;;  %v6893_v63 = vld [vmem:[%s15295_s22 + $0x920] sm:$0xff] }
 0x24b   : > { %v17226_v36 = vadd.f32 %v4673_v41, %v4330_v30  ;;  %v4332_v39 = vadd.f32 %v14225_v52, %v16977_v43  ;;  %14544 = vmatprep.mubr.msk.f32.mxu1 %vm258_vm1, %v6466_v0  ;;  %14600 = vmatprep.mubr.msk.f32.mxu0 %vm258_vm1, %v6888_v4  ;;  %v6472_v41 = vld [vmem:[%s15295_s22 + $0x778] sm:$0xff]  ;;  %v6894_v0 = vld [vmem:[%s15295_s22 + $0x928] sm:$0xff] }
 0x24c   : > { %v4261_v29 = vpop.f32.mrf.mxu1  ;;  %v4683_v57 = vpop.f32.mrf.mxu0 }
 0x24d   : > { %v17235_v18 = vadd.f32 %v14281_v60, %v4332_v39  ;;  %v6474_v57 = vld [vmem:[%s15295_s22 + $0x788] sm:$0xff] }
 0x24e   : > { %v14228_v38 = vpop.f32.mrf.mxu1  ;;  %v14284_v40 = vpop.f32.mrf.mxu0  ;;  %14545 = vmatmul.mubr.msk.f32.gmra.mxu1 %vm258_vm1, %v6467_v7  ;;  %14601 = vmatmul.mubr.msk.f32.gmra.mxu0 %vm258_vm1, %v6889_v9  ;;  %v6473_v7 = vld [vmem:[%s15295_s22 + $0x780] sm:$0xff]  ;;  %v6895_v9 = vld [vmem:[%s15295_s22 + $0x930] sm:$0xff] }
 0x24f   : > { %v4334_v43 = vadd.f32 %v14228_v38, %v16988_v55  ;;  %14547 = vmatprep.mubr.msk.f32.mxu1 %vm258_vm1, %v6468_v8  ;;  %14603 = vmatprep.mubr.msk.f32.mxu0 %vm258_vm1, %v6890_v47  ;;  %v6896_v8 = vld [vmem:[%s15295_s22 + $0x938] sm:$0xff] }
 0x250   : > { %v4270_v35 = vpop.f32.mrf.mxu1  ;;  %v4692_v12 = vpop.f32.mrf.mxu0 }
 0x251   : > { %v17246_v62 = vadd.f32 %v14284_v40, %v4334_v43  ;;  %v4333_v61 = vadd.f32 %v4270_v35, %v16993_v10 }
 0x252   : > { %v14231_v23 = vpop.f32.mrf.mxu1  ;;  %v14287_v55 = vpop.f32.mrf.mxu0  ;;  %14548 = vmatmul.mubr.msk.f32.gmra.mxu1 %vm258_vm1, %v6469_v58  ;;  %14604 = vmatmul.mubr.msk.f32.gmra.mxu0 %vm258_vm1, %v6891_v19  ;;  %v6475_v58 = vld [vmem:[%s15295_s22 + $0x790] sm:$0xff]  ;;  %v6897_v19 = vld [vmem:[%s15295_s22 + $0x940] sm:$0xff] }
 0x253   : > { %v17251_v34 = vadd.f32 %v4692_v12, %v4333_v61  ;;  %v4336_v21 = vadd.f32 %v14231_v23, %v17002_v1  ;;  %14550 = vmatprep.mubr.msk.f32.mxu1 %vm258_vm1, %v6470_v50  ;;  %14606 = vmatprep.mubr.msk.f32.mxu0 %vm258_vm1, %v6892_v45  ;;  %v6898_v50 = vld [vmem:[%s15295_s22 + $0x948] sm:$0xff] }
 0x254   : > { %v4280_v48 = vpop.f32.mrf.mxu1  ;;  %v4702_v10 = vpop.f32.mrf.mxu0 }
 0x255   : > { %v17260_v4 = vadd.f32 %v14287_v55, %v4336_v21  ;;  %v4335_v30 = vadd.f32 %v4280_v48, %v17007_v37 }
 0x256   : > { %v14234_v52 = vpop.f32.mrf.mxu1  ;;  %v14290_v1 = vpop.f32.mrf.mxu0  ;;  %14551 = vmatmul.mubr.msk.f32.gmra.mxu1 %vm258_vm1, %v6471_v51  ;;  %14607 = vmatmul.mubr.msk.f32.gmra.mxu0 %vm258_vm1, %v6893_v63  ;;  %v6477_v51 = vld [vmem:[%s15295_s22 + $0x7a0] sm:$0xff]  ;;  %v6899_v63 = vld [vmem:[%s15295_s22 + $0x950] sm:$0xff] }
 0x257   : > { %v17265_v60 = vadd.f32 %v4702_v10, %v4335_v30  ;;  %v4338_v39 = vadd.f32 %v14234_v52, %v17016_v24  ;;  %14553 = vmatprep.mubr.msk.f32.mxu1 %vm258_vm1, %v6472_v41  ;;  %14609 = vmatprep.mubr.msk.f32.mxu0 %vm258_vm1, %v6894_v0  ;;  %v6478_v10 = vld [vmem:[%s15295_s22 + $0x7a8] sm:$0xff]  ;;  %v6900_v41 = vld [vmem:[%s15295_s22 + $0x958] sm:$0xff] }
 0x258   : > { %v4290_v29 = vpop.f32.mrf.mxu1  ;;  %v4712_v37 = vpop.f32.mrf.mxu0 }
 0x259   : > { %v17274_v47 = vadd.f32 %v14290_v1, %v4338_v39  ;;  %v4337_v38 = vadd.f32 %v4290_v29, %v17021_v46  ;;  %v6476_v46 = vld [vmem:[%s15295_s22 + $0x798] sm:$0xff] }
 0x25a   : > { %v14237_v40 = vpop.f32.mrf.mxu1  ;;  %v14293_v24 = vpop.f32.mrf.mxu0  ;;  %14554 = vmatmul.mubr.msk.f32.gmra.mxu1 %vm258_vm1, %v6473_v7  ;;  %14610 = vmatmul.mubr.msk.f32.gmra.mxu0 %vm258_vm1, %v6895_v9  ;;  %v6479_v7 = vld [vmem:[%s15295_s22 + $0x7b0] sm:$0xff]  ;;  %v6901_v9 = vld [vmem:[%s15295_s22 + $0x960] sm:$0xff] }
 0x25b   : > { %v17279_v43 = vadd.f32 %v4712_v37, %v4337_v38  ;;  %14556 = vmatprep.mubr.msk.f32.mxu1 %vm258_vm1, %v6474_v57  ;;  %14612 = vmatprep.mubr.msk.f32.mxu0 %vm258_vm1, %v6896_v8  ;;  %v6480_v37 = vld [vmem:[%s15295_s22 + $0x7b8] sm:$0xff]  ;;  %v6902_v57 = vld [vmem:[%s15295_s22 + $0x968] sm:$0xff] }
 0x25c   : > { %v4300_v35 = vpop.f32.mrf.mxu1  ;;  %v4722_v12 = vpop.f32.mrf.mxu0 }
 0x25d   : > { %v4339_v45 = vadd.f32 %v4300_v35, %v17032_v22  ;;  %v6903_v35 = vld [vmem:[%s15295_s22 + $0x970] sm:$0xff] }
 0x25e   : > { %v14298_v61 = vpop.f32.mrf.mxu1  ;;  %v14354_v23 = vpop.f32.mrf.mxu0  ;;  %14557 = vmatmul.mubr.msk.f32.gmra.mxu1 %vm258_vm1, %v6475_v58  ;;  %14613 = vmatmul.mubr.msk.f32.gmra.mxu0 %vm258_vm1, %v6897_v19  ;;  %v6481_v19 = vld [vmem:[%s15295_s22 + $0x7c0] sm:$0xff] }
 0x25f   : > { %v17290_v55 = vadd.f32 %v4722_v12, %v4339_v45  ;;  %v5153_v21 = vadd.f32 %v14298_v61, %v17041_v56  ;;  %14559 = vmatprep.mubr.msk.f32.mxu1 %vm258_vm1, %v6476_v46  ;;  %14615 = vmatprep.mubr.msk.f32.mxu0 %vm258_vm1, %v6898_v50  ;;  %v6482_v46 = vld [vmem:[%s15295_s22 + $0x7c8] sm:$0xff]  ;;  %v6904_v50 = vld [vmem:[%s15295_s22 + $0x978] sm:$0xff] }
 0x260   : > { %v4977_v48 = vpop.f32.mrf.mxu1  ;;  %v5399_v22 = vpop.f32.mrf.mxu0 }
 0x261   : > { %v17299_v0 = vadd.f32 %v14354_v23, %v5153_v21  ;;  %v5152_v30 = vadd.f32 %v4977_v48, %v17046_v14  ;;  %v6905_v48 = vld [vmem:[%s15295_s22 + $0x980] sm:$0xff] }
 0x262   : > { %v14301_v52 = vpop.f32.mrf.mxu1  ;;  %v14357_v56 = vpop.f32.mrf.mxu0  ;;  %14560 = vmatmul.mubr.msk.f32.gmra.mxu1 %vm258_vm1, %v6477_v51  ;;  %14616 = vmatmul.mubr.msk.f32.gmra.mxu0 %vm258_vm1, %v6899_v63  ;;  %v6483_v63 = vld [vmem:[%s15295_s22 + $0x7d0] sm:$0xff] }
 0x263   : > { %v17304_v1 = vadd.f32 %v5399_v22, %v5152_v30  ;;  %v5155_v39 = vadd.f32 %v14301_v52, %v17055_v3  ;;  %14562 = vmatprep.mubr.msk.f32.mxu1 %vm258_vm1, %v6478_v10  ;;  %14618 = vmatprep.mubr.msk.f32.mxu0 %vm258_vm1, %v6900_v41  ;;  %v6484_v10 = vld [vmem:[%s15295_s22 + $0x7d8] sm:$0xff]  ;;  %v6906_v41 = vld [vmem:[%s15295_s22 + $0x988] sm:$0xff] }
 0x264   : > { %v4987_v29 = vpop.f32.mrf.mxu1  ;;  %v5409_v14 = vpop.f32.mrf.mxu0 }
 0x265   : > { %v17313_v8 = vadd.f32 %v14357_v56, %v5155_v39  ;;  %v5154_v38 = vadd.f32 %v4987_v29, %v17060_v17  ;;  %v6907_v29 = vld [vmem:[%s15295_s22 + $0x990] sm:$0xff] }
 0x266   : > { %v14304_v40 = vpop.f32.mrf.mxu1  ;;  %v14360_v3 = vpop.f32.mrf.mxu0  ;;  %14563 = vmatmul.mubr.msk.f32.gmra.mxu1 %vm258_vm1, %v6479_v7  ;;  %14619 = vmatmul.mubr.msk.f32.gmra.mxu0 %vm258_vm1, %v6901_v9  ;;  %v6485_v9 = vld [vmem:[%s15295_s22 + $0x7e0] sm:$0xff] }
 0x267   : > { %v17318_v24 = vadd.f32 %v5409_v14, %v5154_v38  ;;  %v5157_v58 = vadd.f32 %v14304_v40, %v17069_v15  ;;  %14565 = vmatprep.mubr.msk.f32.mxu1 %vm258_vm1, %v6480_v37  ;;  %14621 = vmatprep.mubr.msk.f32.mxu0 %vm258_vm1, %v6902_v57  ;;  %v7294_v37 = vld [vmem:[%s15295_s22 + $0x6c9] sm:$0xff] }
 0x268   : > { %v4997_v12 = vpop.f32.mrf.mxu1  ;;  %v5419_v17 = vpop.f32.mrf.mxu0  ;;  %v7716_v57 = vld [vmem:[%s15295_s22 + $0x48] sm:$0xff] }
 0x269   : > { %v17327_v45 = vadd.f32 %v14360_v3, %v5157_v58  ;;  %v5156_v61 = vadd.f32 %v4997_v12, %v17074_v2  ;;  %v7295_v58 = vld [vmem:[%s15295_s22 + $0x6d1] sm:$0xff] }
 0x26a   : > { %v14307_v23 = vpop.f32.mrf.mxu1  ;;  %v14363_v15 = vpop.f32.mrf.mxu0  ;;  %14566 = vmatmul.mubr.msk.f32.gmra.mxu1 %vm258_vm1, %v6481_v19  ;;  %14622 = vmatmul.mubr.msk.f32.gmra.mxu0 %vm258_vm1, %v6903_v35  ;;  %v7717_v19 = vld [vmem:[%s15295_s22 + $0x50] sm:$0xff] }
 0x26b   : > { %v17332_v21 = vadd.f32 %v5419_v17, %v5156_v61  ;;  %v5159_v51 = vadd.f32 %v14307_v23, %v17083_v59  ;;  %14568 = vmatprep.mubr.msk.f32.mxu1 %vm258_vm1, %v6482_v46  ;;  %14624 = vmatprep.mubr.msk.f32.mxu0 %vm258_vm1, %v6904_v50  ;;  %v7296_v50 = vld [vmem:[%s15295_s22 + $0x6d9] sm:$0xff] }
 0x26c   : > { %v5007_v22 = vpop.f32.mrf.mxu1  ;;  %v5429_v2 = vpop.f32.mrf.mxu0  ;;  %v7718_v61 = vld [vmem:[%s15295_s22 + $0x58] sm:$0xff] }
 0x26d   : > { %v17341_v30 = vadd.f32 %v14363_v15, %v5159_v51  ;;  %v5158_v52 = vadd.f32 %v5007_v22, %v17088_v42  ;;  %v17379_v51 = vld [vmem:[%s18892_s1 + $0x58] sm:$0xf]  ;;  %v7719_v22 = vld [vmem:[%s15295_s22 + $0x60] sm:$0xff] }
 0x26e   : > { %v14310_v56 = vpop.f32.mrf.mxu1  ;;  %v14366_v59 = vpop.f32.mrf.mxu0  ;;  %14569 = vmatmul.mubr.msk.f32.gmra.mxu1 %vm258_vm1, %v6483_v63  ;;  %14625 = vmatmul.mubr.msk.f32.gmra.mxu0 %vm258_vm1, %v6905_v48  ;;  %v7297_v48 = vld [vmem:[%s15295_s22 + $0x6e1] sm:$0xff] }
 0x26f   : > { %v17346_v39 = vadd.f32 %v5429_v2, %v5158_v52  ;;  %v5160_v7 = vadd.f32 %v14310_v56, %v17097_v31  ;;  %14571 = vmatprep.mubr.msk.f32.mxu1 %vm258_vm1, %v6484_v10  ;;  %14627 = vmatprep.mubr.msk.f32.mxu0 %vm258_vm1, %v6906_v41  ;;  %v7298_v41 = vld [vmem:[%s15295_s22 + $0x6e9] sm:$0xff] }
 0x270   : > { %v5017_v14 = vpop.f32.mrf.mxu1  ;;  %v5439_v42 = vpop.f32.mrf.mxu0  ;;  %v7720_v52 = vld [vmem:[%s15295_s22 + $0x68] sm:$0xff] }
 0x271   : > { %v17355_v38 = vadd.f32 %v14366_v59, %v5160_v7  ;;  %v7300_v42 = vld [vmem:[%s15295_s22 + $0x6f9] sm:$0xff] }
 0x272   : > { %v14313_v40 = vpop.f32.mrf.mxu1  ;;  %v14369_v3 = vpop.f32.mrf.mxu0  ;;  %14572 = vmatmul.mubr.msk.f32.gmra.mxu1 %vm258_vm1, %v6485_v9  ;;  %14628 = vmatmul.mubr.msk.f32.gmra.mxu0 %vm258_vm1, %v6907_v29  ;;  %v7721_v9 = vld [vmem:[%s15295_s22 + $0x70] sm:$0xff] }
 0x273   : > { %v5162_v31 = vadd.f32 %v14313_v40, %v17106_v16  ;;  %14632 = vmatprep.mubr.msk.f32.mxu1 %vm258_vm1, %v7294_v37  ;;  %14688 = vmatprep.mubr.msk.f32.mxu0 %vm258_vm1, %v7716_v57  ;;  %v17374_v16 = vld [vmem:[%s18892_s1 + $0x54] sm:$0xf]  ;;  %v7722_v37 = vld [vmem:[%s15295_s22 + $0x78] sm:$0xff] }
 0x274   : > { %v5026_v35 = vpop.f32.mrf.mxu1  ;;  %v5448_v12 = vpop.f32.mrf.mxu0 }
 0x275   : > { %v17364_v17 = vadd.f32 %v14369_v3, %v5162_v31  ;;  %v5161_v46 = vadd.f32 %v5026_v35, %v17123_v13 }
 0x276   : > { %v14316_v23 = vpop.f32.mrf.mxu1  ;;  %v14372_v15 = vpop.f32.mrf.mxu0  ;;  %14633 = vmatmul.mubr.msk.f32.vlgmr.msra.gmra.mxu1 %vm258_vm1, %v7295_v58  ;;  %14689 = vmatmul.mubr.msk.f32.vlgmr.msra.gmra.mxu0 %vm258_vm1, %v7717_v19  ;;  %v7301_v58 = vld [vmem:[%s15295_s22 + $0x701] sm:$0xff] }
 0x277   : > { %v17381_v13 = vadd.f32 %v5448_v12, %v5161_v46  ;;  %v5164_v63 = vadd.f32 %v14316_v23, %v17136_v6  ;;  %14743 = vmatpush3.msk.msra.mxu1 %vm367_vm0, %v17116_v33  ;;  %14799 = vmatpush3.msk.msra.mxu0 %vm367_vm0, %v17121_v53  ;;  %v7723_v19 = vld [vmem:[%s15295_s22 + $0x80] sm:$0xff]  ;;  %v7724_v46 = vld [vmem:[%s15295_s22 + $0x88] sm:$0xff] }
 0x278   : > { %v5036_v2 = vpop.f32.mrf.mxu1  ;;  %v5458_v10 = vpop.f32.mrf.mxu0  ;;  %14635 = vmatprep.mubr.msk.f32.mxu1 %vm258_vm1, %v7296_v50  ;;  %14691 = vmatprep.mubr.msk.f32.mxu0 %vm258_vm1, %v7718_v61 }
 0x279   : > { %v17394_v56 = vadd.f32 %v14372_v15, %v5164_v63  ;;  %v5163_v33 = vadd.f32 %v5036_v2, %v17145_v27  ;;  %14854 = vmatprep.subr.msk.mxu1 %vm367_vm0, %v17374_v16  ;;  %14910 = vmatprep.subr.msk.mxu0 %vm367_vm0, %v17379_v51  ;;  %v7299_v27 = vld [vmem:[%s15295_s22 + $0x6f1] sm:$0xff] }
 0x27a   : > { %v14319_v53 = vpop.f32.mrf.mxu1  ;;  %v14375_v6 = vpop.f32.mrf.mxu0  ;;  %14636 = vmatmul.mubr.msk.f32.gmra.mxu1 %vm258_vm1, %v7297_v48  ;;  %14692 = vmatmul.mubr.msk.f32.gmra.mxu0 %vm258_vm1, %v7719_v22  ;;  %v7303_v48 = vld [vmem:[%s15295_s22 + $0x711] sm:$0xff] }
 0x27b   : > { %v17403_v59 = vadd.f32 %v5458_v10, %v5163_v33  ;;  %v5166_v7 = vadd.f32 %v14319_v53, %v17154_v5  ;;  %14638 = vmatprep.mubr.msk.f32.mxu1 %vm258_vm1, %v7298_v41  ;;  %14694 = vmatprep.mubr.msk.f32.mxu0 %vm258_vm1, %v7720_v52  ;;  %v7725_v22 = vld [vmem:[%s15295_s22 + $0x90] sm:$0xff]  ;;  %v7304_v10 = vld [vmem:[%s15295_s22 + $0x719] sm:$0xff] }
 0x27c   : > { %v5046_v29 = vpop.f32.mrf.mxu1  ;;  %v5468_v14 = vpop.f32.mrf.mxu0  ;;  %v7726_v41 = vld [vmem:[%s15295_s22 + $0x98] sm:$0xff] }
 0x27d   : > { %v17412_v57 = vadd.f32 %v14375_v6, %v5166_v7  ;;  %v5165_v40 = vadd.f32 %v5046_v29, %v17159_v11  ;;  %v7302_v11 = vld [vmem:[%s15295_s22 + $0x709] sm:$0xff] }
 0x27e   : > { %v14322_v3 = vpop.f32.mrf.mxu1  ;;  %v14378_v5 = vpop.f32.mrf.mxu0  ;;  %14639 = vmatmul.mubr.msk.f32.gmra.mxu1 %vm258_vm1, %v7299_v27  ;;  %14695 = vmatmul.mubr.msk.f32.gmra.mxu0 %vm258_vm1, %v7721_v9  ;;  %v7305_v27 = vld [vmem:[%s15295_s22 + $0x721] sm:$0xff] }
 0x27f   : > { %v17417_v31 = vadd.f32 %v5468_v14, %v5165_v40  ;;  %14641 = vmatprep.mubr.msk.f32.mxu1 %vm258_vm1, %v7300_v42  ;;  %14697 = vmatprep.mubr.msk.f32.mxu0 %vm258_vm1, %v7722_v37  ;;  %v7727_v9 = vld [vmem:[%s15295_s22 + $0xa0] sm:$0xff]  ;;  %v7306_v14 = vld [vmem:[%s15295_s22 + $0x729] sm:$0xff] }
 0x280   : > { %v5056_v35 = vpop.f32.mrf.mxu1  ;;  %v5478_v12 = vpop.f32.mrf.mxu0  ;;  %v7728_v42 = vld [vmem:[%s15295_s22 + $0xa8] sm:$0xff] }
 0x281   : > { %v5167_v50 = vadd.f32 %v5056_v35, %v17170_v54  ;;  %v7729_v35 = vld [vmem:[%s15295_s22 + $0xb0] sm:$0xff] }
 0x282   : > { %v14325_v61 = vpop.f32.mrf.mxu1  ;;  %v14381_v23 = vpop.f32.mrf.mxu0  ;;  %14642 = vmatmul.mubr.msk.f32.gmra.mxu1 %vm258_vm1, %v7301_v58  ;;  %14698 = vmatmul.mubr.msk.f32.gmra.mxu0 %vm258_vm1, %v7723_v19  ;;  %v7307_v19 = vld [vmem:[%s15295_s22 + $0x731] sm:$0xff] }
 0x283   : > { %v17428_v15 = vadd.f32 %v5478_v12, %v5167_v50  ;;  %v5169_v63 = vadd.f32 %v14325_v61, %v17179_v44  ;;  %14644 = vmatprep.mubr.msk.f32.mxu1 %vm258_vm1, %v7302_v11  ;;  %14700 = vmatprep.mubr.msk.f32.mxu0 %vm258_vm1, %v7724_v46  ;;  %v7308_v11 = vld [vmem:[%s15295_s22 + $0x739] sm:$0xff] }
 0x284   : > { %v5065_v2 = vpop.f32.mrf.mxu1  ;;  %v5487_v54 = vpop.f32.mrf.mxu0  ;;  %v7730_v46 = vld [vmem:[%s15295_s22 + $0xb8] sm:$0xff] }
 0x285   : > { %v17437_v52 = vadd.f32 %v14381_v23, %v5169_v63  ;;  %v5168_v33 = vadd.f32 %v5065_v2, %v17184_v32  ;;  %v7731_v2 = vld [vmem:[%s15295_s22 + $0xc0] sm:$0xff] }
 0x286   : > { %v14328_v53 = vpop.f32.mrf.mxu1  ;;  %v14384_v44 = vpop.f32.mrf.mxu0  ;;  %14645 = vmatmul.mubr.msk.f32.gmra.mxu1 %vm258_vm1, %v7303_v48  ;;  %14701 = vmatmul.mubr.msk.f32.gmra.mxu0 %vm258_vm1, %v7725_v22  ;;  %v7309_v22 = vld [vmem:[%s15295_s22 + $0x741] sm:$0xff] }
 0x287   : > { %v17442_v6 = vadd.f32 %v5487_v54, %v5168_v33  ;;  %v5171_v7 = vadd.f32 %v14328_v53, %v17193_v28  ;;  %14647 = vmatprep.mubr.msk.f32.mxu1 %vm258_vm1, %v7304_v10  ;;  %14703 = vmatprep.mubr.msk.f32.mxu0 %vm258_vm1, %v7726_v41  ;;  %v7310_v10 = vld [vmem:[%s15295_s22 + $0x749] sm:$0xff] }
 0x288   : > { %v5075_v29 = vpop.f32.mrf.mxu1  ;;  %v5497_v32 = vpop.f32.mrf.mxu0  ;;  %v7732_v41 = vld [vmem:[%s15295_s22 + $0xc8] sm:$0xff] }
 0x289   : > { %v17451_v37 = vadd.f32 %v14384_v44, %v5171_v7  ;;  %v5170_v40 = vadd.f32 %v5075_v29, %v17198_v26  ;;  %v7733_v29 = vld [vmem:[%s15295_s22 + $0xd0] sm:$0xff] }
 0x28a   : > { %v14331_v3 = vpop.f32.mrf.mxu1  ;;  %v14387_v28 = vpop.f32.mrf.mxu0  ;;  %14648 = vmatmul.mubr.msk.f32.gmra.mxu1 %vm258_vm1, %v7305_v27  ;;  %14704 = vmatmul.mubr.msk.f32.gmra.mxu0 %vm258_vm1, %v7727_v9  ;;  %v7311_v9 = vld [vmem:[%s15295_s22 + $0x751] sm:$0xff] }
 0x28b   : > { %v17456_v5 = vadd.f32 %v5497_v32, %v5170_v40  ;;  %v5173_v58 = vadd.f32 %v14331_v3, %v17207_v20  ;;  %14650 = vmatprep.mubr.msk.f32.mxu1 %vm258_vm1, %v7306_v14  ;;  %14706 = vmatprep.mubr.msk.f32.mxu0 %vm258_vm1, %v7728_v42  ;;  %v7312_v14 = vld [vmem:[%s15295_s22 + $0x759] sm:$0xff] }
 0x28c   : > { %v5085_v12 = vpop.f32.mrf.mxu1  ;;  %v5507_v26 = vpop.f32.mrf.mxu0  ;;  %v7734_v42 = vld [vmem:[%s15295_s22 + $0xd8] sm:$0xff] }
 0x28d   : > { %v17465_v50 = vadd.f32 %v14387_v28, %v5173_v58  ;;  %v5172_v61 = vadd.f32 %v5085_v12, %v17212_v25  ;;  %v7313_v58 = vld [vmem:[%s15295_s22 + $0x761] sm:$0xff] }
 0x28e   : > { %v14334_v23 = vpop.f32.mrf.mxu1  ;;  %v14390_v20 = vpop.f32.mrf.mxu0  ;;  %14651 = vmatmul.mubr.msk.f32.gmra.mxu1 %vm258_vm1, %v7307_v19  ;;  %14707 = vmatmul.mubr.msk.f32.gmra.mxu0 %vm258_vm1, %v7729_v35  ;;  %v7735_v19 = vld [vmem:[%s15295_s22 + $0xe0] sm:$0xff] }
 0x28f   : > { %v17470_v63 = vadd.f32 %v5507_v26, %v5172_v61  ;;  %v5175_v48 = vadd.f32 %v14334_v23, %v17221_v49  ;;  %14653 = vmatprep.mubr.msk.f32.mxu1 %vm258_vm1, %v7308_v11  ;;  %14709 = vmatprep.mubr.msk.f32.mxu0 %vm258_vm1, %v7730_v46  ;;  %v7314_v26 = vld [vmem:[%s15295_s22 + $0x769] sm:$0xff] }
 0x290   : > { %v5095_v54 = vpop.f32.mrf.mxu1  ;;  %v5517_v25 = vpop.f32.mrf.mxu0  ;;  %v7736_v11 = vld [vmem:[%s15295_s22 + $0xe8] sm:$0xff] }
 0x291   : > { %v17479_v33 = vadd.f32 %v14390_v20, %v5175_v48  ;;  %v5174_v53 = vadd.f32 %v5095_v54, %v17226_v36 }
 0x292   : > { %v14337_v44 = vpop.f32.mrf.mxu1  ;;  %v14393_v49 = vpop.f32.mrf.mxu0  ;;  %14654 = vmatmul.mubr.msk.f32.gmra.mxu1 %vm258_vm1, %v7309_v22  ;;  %14710 = vmatmul.mubr.msk.f32.gmra.mxu0 %vm258_vm1, %v7731_v2  ;;  %v7315_v22 = vld [vmem:[%s15295_s22 + $0x771] sm:$0xff] }
 0x293   : > { %v17484_v7 = vadd.f32 %v5517_v25, %v5174_v53  ;;  %v5176_v27 = vadd.f32 %v14337_v44, %v17235_v18  ;;  %14656 = vmatprep.mubr.msk.f32.mxu1 %vm258_vm1, %v7310_v10  ;;  %14712 = vmatprep.mubr.msk.f32.mxu0 %vm258_vm1, %v7732_v41  ;;  %v7737_v2 = vld [vmem:[%s15295_s22 + $0xf0] sm:$0xff]  ;;  %v7316_v25 = vld [vmem:[%s15295_s22 + $0x779] sm:$0xff] }
 0x294   : > { %v5105_v32 = vpop.f32.mrf.mxu1  ;;  %v5527_v36 = vpop.f32.mrf.mxu0  ;;  %v7738_v10 = vld [vmem:[%s15295_s22 + $0xf8] sm:$0xff] }
 0x295   : > { %v17493_v40 = vadd.f32 %v14393_v49, %v5176_v27  ;;  %v7318_v36 = vld [vmem:[%s15295_s22 + $0x789] sm:$0xff] }
 0x296   : > { %v14340_v3 = vpop.f32.mrf.mxu1  ;;  %v14396_v28 = vpop.f32.mrf.mxu0  ;;  %14657 = vmatmul.mubr.msk.f32.gmra.mxu1 %vm258_vm1, %v7311_v9  ;;  %14713 = vmatmul.mubr.msk.f32.gmra.mxu0 %vm258_vm1, %v7733_v29  ;;  %v7317_v9 = vld [vmem:[%s15295_s22 + $0x781] sm:$0xff] }
 0x297   : > { %v5178_v18 = vadd.f32 %v14340_v3, %v17246_v62  ;;  %14659 = vmatprep.mubr.msk.f32.mxu1 %vm258_vm1, %v7312_v14  ;;  %14715 = vmatprep.mubr.msk.f32.mxu0 %vm258_vm1, %v7734_v42  ;;  %v7739_v29 = vld [vmem:[%s15295_s22 + $0x100] sm:$0xff]  ;;  %v7740_v14 = vld [vmem:[%s15295_s22 + $0x108] sm:$0xff] }
 0x298   : > { %v5114_v35 = vpop.f32.mrf.mxu1  ;;  %v5536_v12 = vpop.f32.mrf.mxu0 }
 0x299   : > { %v17504_v46 = vadd.f32 %v14396_v28, %v5178_v18  ;;  %v5177_v61 = vadd.f32 %v5114_v35, %v17251_v34 }
 0x29a   : > { %v14343_v23 = vpop.f32.mrf.mxu1  ;;  %v14399_v62 = vpop.f32.mrf.mxu0  ;;  %14660 = vmatmul.mubr.msk.f32.gmra.mxu1 %vm258_vm1, %v7313_v58  ;;  %14716 = vmatmul.mubr.msk.f32.gmra.mxu0 %vm258_vm1, %v7735_v19  ;;  %v7319_v58 = vld [vmem:[%s15295_s22 + $0x791] sm:$0xff] }
 0x29b   : > { %v17509_v20 = vadd.f32 %v5536_v12, %v5177_v61  ;;  %v5180_v48 = vadd.f32 %v14343_v23, %v17260_v4  ;;  %14662 = vmatprep.mubr.msk.f32.mxu1 %vm258_vm1, %v7314_v26  ;;  %14718 = vmatprep.mubr.msk.f32.mxu0 %vm258_vm1, %v7736_v11  ;;  %v7741_v19 = vld [vmem:[%s15295_s22 + $0x110] sm:$0xff]  ;;  %v7742_v26 = vld [vmem:[%s15295_s22 + $0x118] sm:$0xff] }
 0x29c   : > { %v5124_v54 = vpop.f32.mrf.mxu1  ;;  %v5546_v34 = vpop.f32.mrf.mxu0 }
 0x29d   : > { %v17518_v41 = vadd.f32 %v14399_v62, %v5180_v48  ;;  %v5179_v53 = vadd.f32 %v5124_v54, %v17265_v60 }
 0x29e   : > { %v14346_v44 = vpop.f32.mrf.mxu1  ;;  %v14402_v4 = vpop.f32.mrf.mxu0  ;;  %14663 = vmatmul.mubr.msk.f32.gmra.mxu1 %vm258_vm1, %v7315_v22  ;;  %14719 = vmatmul.mubr.msk.f32.gmra.mxu0 %vm258_vm1, %v7737_v2  ;;  %v7321_v22 = vld [vmem:[%s15295_s22 + $0x7a1] sm:$0xff] }
 0x29f   : > { %v17523_v49 = vadd.f32 %v5546_v34, %v5179_v53  ;;  %v5182_v27 = vadd.f32 %v14346_v44, %v17274_v47  ;;  %14665 = vmatprep.mubr.msk.f32.mxu1 %vm258_vm1, %v7316_v25  ;;  %14721 = vmatprep.mubr.msk.f32.mxu0 %vm258_vm1, %v7738_v10  ;;  %v7743_v2 = vld [vmem:[%s15295_s22 + $0x120] sm:$0xff]  ;;  %v7322_v34 = vld [vmem:[%s15295_s22 + $0x7a9] sm:$0xff] }
 0x2a0   : > { %v5134_v32 = vpop.f32.mrf.mxu1  ;;  %v5556_v60 = vpop.f32.mrf.mxu0  ;;  %v7744_v25 = vld [vmem:[%s15295_s22 + $0x128] sm:$0xff] }
 0x2a1   : > { %v17532_v42 = vadd.f32 %v14402_v4, %v5182_v27  ;;  %v5181_v3 = vadd.f32 %v5134_v32, %v17279_v43  ;;  %v7320_v43 = vld [vmem:[%s15295_s22 + $0x799] sm:$0xff] }
 0x2a2   : > { %v14349_v28 = vpop.f32.mrf.mxu1  ;;  %v14405_v47 = vpop.f32.mrf.mxu0  ;;  %14666 = vmatmul.mubr.msk.f32.gmra.mxu1 %vm258_vm1, %v7317_v9  ;;  %14722 = vmatmul.mubr.msk.f32.gmra.mxu0 %vm258_vm1, %v7739_v29  ;;  %v7323_v9 = vld [vmem:[%s15295_s22 + $0x7b1] sm:$0xff] }
 0x2a3   : > { %v17537_v18 = vadd.f32 %v5556_v60, %v5181_v3  ;;  %14668 = vmatprep.mubr.msk.f32.mxu1 %vm258_vm1, %v7318_v36  ;;  %14724 = vmatprep.mubr.msk.f32.mxu0 %vm258_vm1, %v7740_v14  ;;  %v7745_v29 = vld [vmem:[%s15295_s22 + $0x130] sm:$0xff]  ;;  %v7324_v60 = vld [vmem:[%s15295_s22 + $0x7b9] sm:$0xff] }
 0x2a4   : > { %v5144_v35 = vpop.f32.mrf.mxu1  ;;  %v5566_v12 = vpop.f32.mrf.mxu0  ;;  %v7746_v36 = vld [vmem:[%s15295_s22 + $0x138] sm:$0xff] }
 0x2a5   : > { %v5183_v11 = vadd.f32 %v5144_v35, %v17290_v55  ;;  %v7747_v35 = vld [vmem:[%s15295_s22 + $0x140] sm:$0xff] }
 0x2a6   : > { %v14410_v61 = vpop.f32.mrf.mxu1  ;;  %v14466_v23 = vpop.f32.mrf.mxu0  ;;  %14669 = vmatmul.mubr.msk.f32.gmra.mxu1 %vm258_vm1, %v7319_v58  ;;  %14725 = vmatmul.mubr.msk.f32.gmra.mxu0 %vm258_vm1, %v7741_v19  ;;  %v7325_v19 = vld [vmem:[%s15295_s22 + $0x7c1] sm:$0xff] }
 0x2a7   : > { %v17548_v62 = vadd.f32 %v5566_v12, %v5183_v11  ;;  %v5997_v48 = vadd.f32 %v14410_v61, %v17299_v0  ;;  %14671 = vmatprep.mubr.msk.f32.mxu1 %vm258_vm1, %v7320_v43  ;;  %14727 = vmatprep.mubr.msk.f32.mxu0 %vm258_vm1, %v7742_v26  ;;  %v7326_v43 = vld [vmem:[%s15295_s22 + $0x7c9] sm:$0xff] }
 0x2a8   : > { %v5821_v54 = vpop.f32.mrf.mxu1  ;;  %v6243_v55 = vpop.f32.mrf.mxu0  ;;  %v7748_v26 = vld [vmem:[%s15295_s22 + $0x148] sm:$0xff] }
 0x2a9   : > { %v17557_v10 = vadd.f32 %v14466_v23, %v5997_v48  ;;  %v5996_v53 = vadd.f32 %v5821_v54, %v17304_v1  ;;  %v7749_v54 = vld [vmem:[%s15295_s22 + $0x150] sm:$0xff] }
 0x2aa   : > { %v14413_v44 = vpop.f32.mrf.mxu1  ;;  %v14469_v0 = vpop.f32.mrf.mxu0  ;;  %14672 = vmatmul.mubr.msk.f32.gmra.mxu1 %vm258_vm1, %v7321_v22  ;;  %14728 = vmatmul.mubr.msk.f32.gmra.mxu0 %vm258_vm1, %v7743_v2  ;;  %v7327_v2 = vld [vmem:[%s15295_s22 + $0x7d1] sm:$0xff] }
 0x2ab   : > { %v17562_v4 = vadd.f32 %v6243_v55, %v5996_v53  ;;  %v5999_v27 = vadd.f32 %v14413_v44, %v17313_v8  ;;  %14674 = vmatprep.mubr.msk.f32.mxu1 %vm258_vm1, %v7322_v34  ;;  %14730 = vmatprep.mubr.msk.f32.mxu0 %vm258_vm1, %v7744_v25  ;;  %v7328_v34 = vld [vmem:[%s15295_s22 + $0x7d9] sm:$0xff] }
 0x2ac   : > { %v5831_v32 = vpop.f32.mrf.mxu1  ;;  %v6253_v1 = vpop.f32.mrf.mxu0  ;;  %v7750_v25 = vld [vmem:[%s15295_s22 + $0x158] sm:$0xff] }
 0x2ad   : > { %v17571_v14 = vadd.f32 %v14469_v0, %v5999_v27  ;;  %v5998_v3 = vadd.f32 %v5831_v32, %v17318_v24  ;;  %v7751_v32 = vld [vmem:[%s15295_s22 + $0x160] sm:$0xff] }
 0x2ae   : > { %v14416_v28 = vpop.f32.mrf.mxu1  ;;  %v14472_v8 = vpop.f32.mrf.mxu0  ;;  %14675 = vmatmul.mubr.msk.f32.gmra.mxu1 %vm258_vm1, %v7323_v9  ;;  %14731 = vmatmul.mubr.msk.f32.gmra.mxu0 %vm258_vm1, %v7745_v29  ;;  %v7329_v29 = vld [vmem:[%s15295_s22 + $0x7e1] sm:$0xff] }
 0x2af   : > { %v17576_v47 = vadd.f32 %v6253_v1, %v5998_v3  ;;  %v6001_v58 = vadd.f32 %v14416_v28, %v17327_v45  ;;  %14677 = vmatprep.mubr.msk.f32.mxu1 %vm258_vm1, %v7324_v60  ;;  %14733 = vmatprep.mubr.msk.f32.mxu0 %vm258_vm1, %v7746_v36  ;;  %v8138_v60 = vld [vmem:[%s15295_s22 + $0x1f8] sm:$0xff]  ;;  %v8560_v36 = vld [vmem:[%s15295_s22 + $0x49] sm:$0xff] }
 0x2b0   : > { %v5841_v12 = vpop.f32.mrf.mxu1  ;;  %v6263_v24 = vpop.f32.mrf.mxu0 }
 0x2b1   : > { %v17585_v11 = vadd.f32 %v14472_v8, %v6001_v58  ;;  %v6000_v61 = vadd.f32 %v5841_v12, %v17332_v21  ;;  %v8139_v58 = vld [vmem:[%s15295_s22 + $0x200] sm:$0xff] }
 0x2b2   : > { %v14419_v23 = vpop.f32.mrf.mxu1  ;;  %v14475_v45 = vpop.f32.mrf.mxu0  ;;  %14678 = vmatmul.mubr.msk.f32.gmra.mxu1 %vm258_vm1, %v7325_v19  ;;  %14734 = vmatmul.mubr.msk.f32.gmra.mxu0 %vm258_vm1, %v7747_v35  ;;  %v8561_v19 = vld [vmem:[%s15295_s22 + $0x51] sm:$0xff] }
 0x2b3   : > { %v17590_v48 = vadd.f32 %v6263_v24, %v6000_v61  ;;  %v6003_v22 = vadd.f32 %v14419_v23, %v17341_v30  ;;  %14680 = vmatprep.mubr.msk.f32.mxu1 %vm258_vm1, %v7326_v43  ;;  %14736 = vmatprep.mubr.msk.f32.mxu0 %vm258_vm1, %v7748_v26  ;;  %v8140_v26 = vld [vmem:[%s15295_s22 + $0x208] sm:$0xff]  ;;  %v8562_v61 = vld [vmem:[%s15295_s22 + $0x59] sm:$0xff] }
 0x2b4   : > { %v5851_v55 = vpop.f32.mrf.mxu1  ;;  %v6273_v21 = vpop.f32.mrf.mxu0 }
 0x2b5   : > { %v17599_v53 = vadd.f32 %v14475_v45, %v6003_v22  ;;  %v6002_v44 = vadd.f32 %v5851_v55, %v17346_v39  ;;  %v17637_v22 = vld [vmem:[%s18892_s1 + $0x60] sm:$0xf] }
 0x2b6   : > { %v14422_v0 = vpop.f32.mrf.mxu1  ;;  %v14478_v30 = vpop.f32.mrf.mxu0  ;;  %14681 = vmatmul.mubr.msk.f32.gmra.mxu1 %vm258_vm1, %v7327_v2  ;;  %14737 = vmatmul.mubr.msk.f32.gmra.mxu0 %vm258_vm1, %v7749_v54  ;;  %v8141_v54 = vld [vmem:[%s15295_s22 + $0x210] sm:$0xff]  ;;  %v8563_v55 = vld [vmem:[%s15295_s22 + $0x61] sm:$0xff] }
 0x2b7   : > { %v17604_v27 = vadd.f32 %v6273_v21, %v6002_v44  ;;  %v6004_v9 = vadd.f32 %v14422_v0, %v17355_v38  ;;  %14683 = vmatprep.mubr.msk.f32.mxu1 %vm258_vm1, %v7328_v34  ;;  %14739 = vmatprep.mubr.msk.f32.mxu0 %vm258_vm1, %v7750_v25  ;;  %v8142_v25 = vld [vmem:[%s15295_s22 + $0x218] sm:$0xff]  ;;  %v8564_v44 = vld [vmem:[%s15295_s22 + $0x69] sm:$0xff] }
 0x2b8   : > { %v5861_v1 = vpop.f32.mrf.mxu1  ;;  %v6283_v39 = vpop.f32.mrf.mxu0 }
 0x2b9   : > { %v17613_v3 = vadd.f32 %v14478_v30, %v6004_v9  ;;  %v8144_v39 = vld [vmem:[%s15295_s22 + $0x228] sm:$0xff] }
 0x2ba   : > { %v14425_v28 = vpop.f32.mrf.mxu1  ;;  %v14481_v8 = vpop.f32.mrf.mxu0  ;;  %14684 = vmatmul.mubr.msk.f32.gmra.mxu1 %vm258_vm1, %v7329_v29  ;;  %14740 = vmatmul.mubr.msk.f32.gmra.mxu0 %vm258_vm1, %v7751_v32  ;;  %v8565_v29 = vld [vmem:[%s15295_s22 + $0x71] sm:$0xff] }
 0x2bb   : > { %v6006_v38 = vadd.f32 %v14425_v28, %v17364_v17  ;;  %14744 = vmatprep.mubr.msk.f32.mxu1 %vm258_vm1, %v8138_v60  ;;  %14800 = vmatprep.mubr.msk.f32.mxu0 %vm258_vm1, %v8560_v36  ;;  %v17632_v17 = vld [vmem:[%s18892_s1 + $0x5c] sm:$0xf] }
 0x2bc   : > { %v5870_v35 = vpop.f32.mrf.mxu1  ;;  %v6292_v12 = vpop.f32.mrf.mxu0  ;;  %v8566_v60 = vld [vmem:[%s15295_s22 + $0x79] sm:$0xff] }
 0x2bd   : > { %v17622_v24 = vadd.f32 %v14481_v8, %v6006_v38  ;;  %v6005_v43 = vadd.f32 %v5870_v35, %v17381_v13 }
 0x2be   : > { %v14428_v23 = vpop.f32.mrf.mxu1  ;;  %v14484_v45 = vpop.f32.mrf.mxu0  ;;  %14745 = vmatmul.mubr.msk.f32.vlgmr.msra.gmra.mxu1 %vm258_vm1, %v8139_v58  ;;  %14801 = vmatmul.mubr.msk.f32.vlgmr.msra.gmra.mxu0 %vm258_vm1, %v8561_v19  ;;  %v8145_v58 = vld [vmem:[%s15295_s22 + $0x230] sm:$0xff]  ;;  %v8567_v19 = vld [vmem:[%s15295_s22 + $0x81] sm:$0xff] }
 0x2bf   : > { %v17639_v13 = vadd.f32 %v6292_v12, %v6005_v43  ;;  %v6008_v2 = vadd.f32 %v14428_v23, %v17394_v56  ;;  %14855 = vmatpush3.msk.msra.mxu1 %vm367_vm0, %v17374_v16  ;;  %14911 = vmatpush3.msk.msra.mxu0 %vm367_vm0, %v17379_v51  ;;  %v8568_v43 = vld [vmem:[%s15295_s22 + $0x89] sm:$0xff] }
 0x2c0   : > { %v5880_v21 = vpop.f32.mrf.mxu1  ;;  %v6302_v34 = vpop.f32.mrf.mxu0  ;;  %14747 = vmatprep.mubr.msk.f32.mxu1 %vm258_vm1, %v8140_v26  ;;  %14803 = vmatprep.mubr.msk.f32.mxu0 %vm258_vm1, %v8562_v61 }
 0x2c1   : > { %v17652_v0 = vadd.f32 %v14484_v45, %v6008_v2  ;;  %v6007_v16 = vadd.f32 %v5880_v21, %v17403_v59  ;;  %14966 = vmatprep.subr.msk.mxu1 %vm367_vm0, %v17632_v17  ;;  %15022 = vmatprep.subr.msk.mxu0 %vm367_vm0, %v17637_v22  ;;  %v8143_v59 = vld [vmem:[%s15295_s22 + $0x220] sm:$0xff] }
 0x2c2   : > { %v14431_v51 = vpop.f32.mrf.mxu1  ;;  %v14487_v56 = vpop.f32.mrf.mxu0  ;;  %14748 = vmatmul.mubr.msk.f32.gmra.mxu1 %vm258_vm1, %v8141_v54  ;;  %14804 = vmatmul.mubr.msk.f32.gmra.mxu0 %vm258_vm1, %v8563_v55  ;;  %v8147_v54 = vld [vmem:[%s15295_s22 + $0x240] sm:$0xff]  ;;  %v8569_v55 = vld [vmem:[%s15295_s22 + $0x91] sm:$0xff] }
 0x2c3   : > { %v17661_v30 = vadd.f32 %v6302_v34, %v6007_v16  ;;  %v6010_v9 = vadd.f32 %v14431_v51, %v17412_v57  ;;  %14750 = vmatprep.mubr.msk.f32.mxu1 %vm258_vm1, %v8142_v25  ;;  %14806 = vmatprep.mubr.msk.f32.mxu0 %vm258_vm1, %v8564_v44  ;;  %v8148_v34 = vld [vmem:[%s15295_s22 + $0x248] sm:$0xff]  ;;  %v8570_v25 = vld [vmem:[%s15295_s22 + $0x99] sm:$0xff] }
 0x2c4   : > { %v5890_v32 = vpop.f32.mrf.mxu1  ;;  %v6312_v1 = vpop.f32.mrf.mxu0 }
 0x2c5   : > { %v17670_v36 = vadd.f32 %v14487_v56, %v6010_v9  ;;  %v6009_v28 = vadd.f32 %v5890_v32, %v17417_v31  ;;  %v8146_v31 = vld [vmem:[%s15295_s22 + $0x238] sm:$0xff] }
 0x2c6   : > { %v14434_v8 = vpop.f32.mrf.mxu1  ;;  %v14490_v57 = vpop.f32.mrf.mxu0  ;;  %14751 = vmatmul.mubr.msk.f32.gmra.mxu1 %vm258_vm1, %v8143_v59  ;;  %14807 = vmatmul.mubr.msk.f32.gmra.mxu0 %vm258_vm1, %v8565_v29  ;;  %v8149_v59 = vld [vmem:[%s15295_s22 + $0x250] sm:$0xff]  ;;  %v8571_v29 = vld [vmem:[%s15295_s22 + $0xa1] sm:$0xff] }
 0x2c7   : > { %v17675_v38 = vadd.f32 %v6312_v1, %v6009_v28  ;;  %14753 = vmatprep.mubr.msk.f32.mxu1 %vm258_vm1, %v8144_v39  ;;  %14809 = vmatprep.mubr.msk.f32.mxu0 %vm258_vm1, %v8566_v60  ;;  %v8150_v1 = vld [vmem:[%s15295_s22 + $0x258] sm:$0xff]  ;;  %v8572_v39 = vld [vmem:[%s15295_s22 + $0xa9] sm:$0xff] }
 0x2c8   : > { %v5900_v35 = vpop.f32.mrf.mxu1  ;;  %v6322_v12 = vpop.f32.mrf.mxu0 }
 0x2c9   : > { %v6011_v26 = vadd.f32 %v5900_v35, %v17428_v15  ;;  %v8573_v35 = vld [vmem:[%s15295_s22 + $0xb1] sm:$0xff] }
 0x2ca   : > { %v14437_v61 = vpop.f32.mrf.mxu1  ;;  %v14493_v23 = vpop.f32.mrf.mxu0  ;;  %14754 = vmatmul.mubr.msk.f32.gmra.mxu1 %vm258_vm1, %v8145_v58  ;;  %14810 = vmatmul.mubr.msk.f32.gmra.mxu0 %vm258_vm1, %v8567_v19  ;;  %v8151_v19 = vld [vmem:[%s15295_s22 + $0x260] sm:$0xff] }
 0x2cb   : > { %v17686_v45 = vadd.f32 %v6322_v12, %v6011_v26  ;;  %v6013_v2 = vadd.f32 %v14437_v61, %v17437_v52  ;;  %14756 = vmatprep.mubr.msk.f32.mxu1 %vm258_vm1, %v8146_v31  ;;  %14812 = vmatprep.mubr.msk.f32.mxu0 %vm258_vm1, %v8568_v43  ;;  %v8152_v31 = vld [vmem:[%s15295_s22 + $0x268] sm:$0xff]  ;;  %v8574_v43 = vld [vmem:[%s15295_s22 + $0xb9] sm:$0xff] }
 0x2cc   : > { %v5909_v21 = vpop.f32.mrf.mxu1  ;;  %v6331_v15 = vpop.f32.mrf.mxu0 }
 0x2cd   : > { %v17695_v44 = vadd.f32 %v14493_v23, %v6013_v2  ;;  %v6012_v16 = vadd.f32 %v5909_v21, %v17442_v6  ;;  %v8575_v21 = vld [vmem:[%s15295_s22 + $0xc1] sm:$0xff] }
 0x2ce   : > { %v14440_v51 = vpop.f32.mrf.mxu1  ;;  %v14496_v52 = vpop.f32.mrf.mxu0  ;;  %14757 = vmatmul.mubr.msk.f32.gmra.mxu1 %vm258_vm1, %v8147_v54  ;;  %14813 = vmatmul.mubr.msk.f32.gmra.mxu0 %vm258_vm1, %v8569_v55  ;;  %v8153_v55 = vld [vmem:[%s15295_s22 + $0x270] sm:$0xff] }
 0x2cf   : > { %v17700_v56 = vadd.f32 %v6331_v15, %v6012_v16  ;;  %v6015_v9 = vadd.f32 %v14440_v51, %v17451_v37  ;;  %14759 = vmatprep.mubr.msk.f32.mxu1 %vm258_vm1, %v8148_v34  ;;  %14815 = vmatprep.mubr.msk.f32.mxu0 %vm258_vm1, %v8570_v25  ;;  %v8154_v34 = vld [vmem:[%s15295_s22 + $0x278] sm:$0xff]  ;;  %v8576_v25 = vld [vmem:[%s15295_s22 + $0xc9] sm:$0xff] }
 0x2d0   : > { %v5919_v32 = vpop.f32.mrf.mxu1  ;;  %v6341_v6 = vpop.f32.mrf.mxu0 }
 0x2d1   : > { %v17709_v60 = vadd.f32 %v14496_v52, %v6015_v9  ;;  %v6014_v28 = vadd.f32 %v5919_v32, %v17456_v5  ;;  %v8577_v32 = vld [vmem:[%s15295_s22 + $0xd1] sm:$0xff] }
 0x2d2   : > { %v14443_v8 = vpop.f32.mrf.mxu1  ;;  %v14499_v37 = vpop.f32.mrf.mxu0  ;;  %14760 = vmatmul.mubr.msk.f32.gmra.mxu1 %vm258_vm1, %v8149_v59  ;;  %14816 = vmatmul.mubr.msk.f32.gmra.mxu0 %vm258_vm1, %v8571_v29  ;;  %v8155_v29 = vld [vmem:[%s15295_s22 + $0x280] sm:$0xff] }
 0x2d3   : > { %v17714_v57 = vadd.f32 %v6341_v6, %v6014_v28  ;;  %v6017_v58 = vadd.f32 %v14443_v8, %v17465_v50  ;;  %14762 = vmatprep.mubr.msk.f32.mxu1 %vm258_vm1, %v8150_v1  ;;  %14818 = vmatprep.mubr.msk.f32.mxu0 %vm258_vm1, %v8572_v39  ;;  %v8156_v1 = vld [vmem:[%s15295_s22 + $0x288] sm:$0xff]  ;;  %v8578_v39 = vld [vmem:[%s15295_s22 + $0xd9] sm:$0xff] }
 0x2d4   : > { %v5929_v12 = vpop.f32.mrf.mxu1  ;;  %v6351_v5 = vpop.f32.mrf.mxu0 }
 0x2d5   : > { %v17723_v26 = vadd.f32 %v14499_v37, %v6017_v58  ;;  %v6016_v61 = vadd.f32 %v5929_v12, %v17470_v63  ;;  %v8157_v58 = vld [vmem:[%s15295_s22 + $0x290] sm:$0xff] }
 0x2d6   : > { %v14446_v23 = vpop.f32.mrf.mxu1  ;;  %v14502_v50 = vpop.f32.mrf.mxu0  ;;  %14763 = vmatmul.mubr.msk.f32.gmra.mxu1 %vm258_vm1, %v8151_v19  ;;  %14819 = vmatmul.mubr.msk.f32.gmra.mxu0 %vm258_vm1, %v8573_v35  ;;  %v8579_v19 = vld [vmem:[%s15295_s22 + $0xe1] sm:$0xff] }
 0x2d7   : > { %v17728_v2 = vadd.f32 %v6351_v5, %v6016_v61  ;;  %v6019_v54 = vadd.f32 %v14446_v23, %v17479_v33  ;;  %14765 = vmatprep.mubr.msk.f32.mxu1 %vm258_vm1, %v8152_v31  ;;  %14821 = vmatprep.mubr.msk.f32.mxu0 %vm258_vm1, %v8574_v43  ;;  %v8158_v5 = vld [vmem:[%s15295_s22 + $0x298] sm:$0xff]  ;;  %v8580_v31 = vld [vmem:[%s15295_s22 + $0xe9] sm:$0xff] }
 0x2d8   : > { %v5939_v15 = vpop.f32.mrf.mxu1  ;;  %v6361_v63 = vpop.f32.mrf.mxu0 }
 0x2d9   : > { %v17737_v16 = vadd.f32 %v14502_v50, %v6019_v54  ;;  %v6018_v51 = vadd.f32 %v5939_v15, %v17484_v7 }
 0x2da   : > { %v14449_v52 = vpop.f32.mrf.mxu1  ;;  %v14505_v33 = vpop.f32.mrf.mxu0  ;;  %14766 = vmatmul.mubr.msk.f32.gmra.mxu1 %vm258_vm1, %v8153_v55  ;;  %14822 = vmatmul.mubr.msk.f32.gmra.mxu0 %vm258_vm1, %v8575_v21  ;;  %v8159_v55 = vld [vmem:[%s15295_s22 + $0x2a0] sm:$0xff]  ;;  %v8581_v21 = vld [vmem:[%s15295_s22 + $0xf1] sm:$0xff] }
 0x2db   : > { %v17742_v9 = vadd.f32 %v6361_v63, %v6018_v51  ;;  %v6020_v59 = vadd.f32 %v14449_v52, %v17493_v40  ;;  %14768 = vmatprep.mubr.msk.f32.mxu1 %vm258_vm1, %v8154_v34  ;;  %14824 = vmatprep.mubr.msk.f32.mxu0 %vm258_vm1, %v8576_v25  ;;  %v8160_v63 = vld [vmem:[%s15295_s22 + $0x2a8] sm:$0xff]  ;;  %v8582_v34 = vld [vmem:[%s15295_s22 + $0xf9] sm:$0xff] }
 0x2dc   : > { %v5949_v6 = vpop.f32.mrf.mxu1  ;;  %v6371_v7 = vpop.f32.mrf.mxu0 }
 0x2dd   : > { %v17751_v28 = vadd.f32 %v14505_v33, %v6020_v59  ;;  %v8162_v7 = vld [vmem:[%s15295_s22 + $0x2b8] sm:$0xff] }
 0x2de   : > { %v14452_v8 = vpop.f32.mrf.mxu1  ;;  %v14508_v37 = vpop.f32.mrf.mxu0  ;;  %14769 = vmatmul.mubr.msk.f32.gmra.mxu1 %vm258_vm1, %v8155_v29  ;;  %14825 = vmatmul.mubr.msk.f32.gmra.mxu0 %vm258_vm1, %v8577_v32  ;;  %v8161_v29 = vld [vmem:[%s15295_s22 + $0x2b0] sm:$0xff]  ;;  %v8583_v32 = vld [vmem:[%s15295_s22 + $0x101] sm:$0xff] }
 0x2df   : > { %v6022_v40 = vadd.f32 %v14452_v8, %v17504_v46  ;;  %14771 = vmatprep.mubr.msk.f32.mxu1 %vm258_vm1, %v8156_v1  ;;  %14827 = vmatprep.mubr.msk.f32.mxu0 %vm258_vm1, %v8578_v39  ;;  %v8584_v1 = vld [vmem:[%s15295_s22 + $0x109] sm:$0xff] }
 0x2e0   : > { %v5958_v35 = vpop.f32.mrf.mxu1  ;;  %v6380_v12 = vpop.f32.mrf.mxu0 }
 0x2e1   : > { %v17762_v43 = vadd.f32 %v14508_v37, %v6022_v40  ;;  %v6021_v61 = vadd.f32 %v5958_v35, %v17509_v20 }
 0x2e2   : > { %v14455_v23 = vpop.f32.mrf.mxu1  ;;  %v14511_v46 = vpop.f32.mrf.mxu0  ;;  %14772 = vmatmul.mubr.msk.f32.gmra.mxu1 %vm258_vm1, %v8157_v58  ;;  %14828 = vmatmul.mubr.msk.f32.gmra.mxu0 %vm258_vm1, %v8579_v19  ;;  %v8163_v58 = vld [vmem:[%s15295_s22 + $0x2c0] sm:$0xff]  ;;  %v8585_v19 = vld [vmem:[%s15295_s22 + $0x111] sm:$0xff] }
 0x2e3   : > { %v17767_v50 = vadd.f32 %v6380_v12, %v6021_v61  ;;  %v6024_v54 = vadd.f32 %v14455_v23, %v17518_v41  ;;  %14774 = vmatprep.mubr.msk.f32.mxu1 %vm258_vm1, %v8158_v5  ;;  %14830 = vmatprep.mubr.msk.f32.mxu0 %vm258_vm1, %v8580_v31  ;;  %v8586_v5 = vld [vmem:[%s15295_s22 + $0x119] sm:$0xff] }
 0x2e4   : > { %v5968_v15 = vpop.f32.mrf.mxu1  ;;  %v6390_v20 = vpop.f32.mrf.mxu0 }
 0x2e5   : > { %v17776_v25 = vadd.f32 %v14511_v46, %v6024_v54  ;;  %v6023_v51 = vadd.f32 %v5968_v15, %v17523_v49 }
 0x2e6   : > { %v14458_v52 = vpop.f32.mrf.mxu1  ;;  %v14514_v41 = vpop.f32.mrf.mxu0  ;;  %14775 = vmatmul.mubr.msk.f32.gmra.mxu1 %vm258_vm1, %v8159_v55  ;;  %14831 = vmatmul.mubr.msk.f32.gmra.mxu0 %vm258_vm1, %v8581_v21  ;;  %v8165_v55 = vld [vmem:[%s15295_s22 + $0x2d0] sm:$0xff]  ;;  %v8587_v21 = vld [vmem:[%s15295_s22 + $0x121] sm:$0xff] }
 0x2e7   : > { %v17781_v33 = vadd.f32 %v6390_v20, %v6023_v51  ;;  %v6026_v59 = vadd.f32 %v14458_v52, %v17532_v42  ;;  %14777 = vmatprep.mubr.msk.f32.mxu1 %vm258_vm1, %v8160_v63  ;;  %14833 = vmatprep.mubr.msk.f32.mxu0 %vm258_vm1, %v8582_v34  ;;  %v8166_v20 = vld [vmem:[%s15295_s22 + $0x2d8] sm:$0xff]  ;;  %v8588_v63 = vld [vmem:[%s15295_s22 + $0x129] sm:$0xff] }
 0x2e8   : > { %v5978_v6 = vpop.f32.mrf.mxu1  ;;  %v6400_v49 = vpop.f32.mrf.mxu0 }
 0x2e9   : > { %v17790_v39 = vadd.f32 %v14514_v41, %v6026_v59  ;;  %v6025_v8 = vadd.f32 %v5978_v6, %v17537_v18  ;;  %v8164_v18 = vld [vmem:[%s15295_s22 + $0x2c8] sm:$0xff] }
 0x2ea   : > { %v14461_v37 = vpop.f32.mrf.mxu1  ;;  %v14517_v42 = vpop.f32.mrf.mxu0  ;;  %14778 = vmatmul.mubr.msk.f32.gmra.mxu1 %vm258_vm1, %v8161_v29  ;;  %14834 = vmatmul.mubr.msk.f32.gmra.mxu0 %vm258_vm1, %v8583_v32  ;;  %v8167_v29 = vld [vmem:[%s15295_s22 + $0x2e0] sm:$0xff]  ;;  %v8589_v32 = vld [vmem:[%s15295_s22 + $0x131] sm:$0xff] }
 0x2eb   : > { %v17795_v40 = vadd.f32 %v6400_v49, %v6025_v8  ;;  %14780 = vmatprep.mubr.msk.f32.mxu1 %vm258_vm1, %v8162_v7  ;;  %14836 = vmatprep.mubr.msk.f32.mxu0 %vm258_vm1, %v8584_v1  ;;  %v8168_v49 = vld [vmem:[%s15295_s22 + $0x2e8] sm:$0xff]  ;;  %v8590_v7 = vld [vmem:[%s15295_s22 + $0x139] sm:$0xff] }
 0x2ec   : > { %v5988_v35 = vpop.f32.mrf.mxu1  ;;  %v6410_v12 = vpop.f32.mrf.mxu0 }
 0x2ed   : > { %v6027_v31 = vadd.f32 %v5988_v35, %v17548_v62  ;;  %v8591_v35 = vld [vmem:[%s15295_s22 + $0x141] sm:$0xff] }
 0x2ee   : > { %v14522_v61 = vpop.f32.mrf.mxu1  ;;  %v14578_v23 = vpop.f32.mrf.mxu0  ;;  %14781 = vmatmul.mubr.msk.f32.gmra.mxu1 %vm258_vm1, %v8163_v58  ;;  %14837 = vmatmul.mubr.msk.f32.gmra.mxu0 %vm258_vm1, %v8585_v19  ;;  %v8169_v19 = vld [vmem:[%s15295_s22 + $0x2f0] sm:$0xff] }
 0x2ef   : > { %v17806_v46 = vadd.f32 %v6410_v12, %v6027_v31  ;;  %v6841_v54 = vadd.f32 %v14522_v61, %v17557_v10  ;;  %14783 = vmatprep.mubr.msk.f32.mxu1 %vm258_vm1, %v8164_v18  ;;  %14839 = vmatprep.mubr.msk.f32.mxu0 %vm258_vm1, %v8586_v5  ;;  %v8170_v18 = vld [vmem:[%s15295_s22 + $0x2f8] sm:$0xff]  ;;  %v8592_v5 = vld [vmem:[%s15295_s22 + $0x149] sm:$0xff] }
 0x2f0   : > { %v6665_v15 = vpop.f32.mrf.mxu1  ;;  %v7087_v62 = vpop.f32.mrf.mxu0 }
 0x2f1   : > { %v17815_v34 = vadd.f32 %v14578_v23, %v6841_v54  ;;  %v6840_v51 = vadd.f32 %v6665_v15, %v17562_v4  ;;  %v8593_v15 = vld [vmem:[%s15295_s22 + $0x151] sm:$0xff] }
 0x2f2   : > { %v14525_v52 = vpop.f32.mrf.mxu1  ;;  %v14581_v10 = vpop.f32.mrf.mxu0  ;;  %14784 = vmatmul.mubr.msk.f32.gmra.mxu1 %vm258_vm1, %v8165_v55  ;;  %14840 = vmatmul.mubr.msk.f32.gmra.mxu0 %vm258_vm1, %v8587_v21  ;;  %v8171_v21 = vld [vmem:[%s15295_s22 + $0x300] sm:$0xff] }
 0x2f3   : > { %v17820_v41 = vadd.f32 %v7087_v62, %v6840_v51  ;;  %v6843_v59 = vadd.f32 %v14525_v52, %v17571_v14  ;;  %14786 = vmatprep.mubr.msk.f32.mxu1 %vm258_vm1, %v8166_v20  ;;  %14842 = vmatprep.mubr.msk.f32.mxu0 %vm258_vm1, %v8588_v63  ;;  %v8172_v20 = vld [vmem:[%s15295_s22 + $0x308] sm:$0xff]  ;;  %v8594_v63 = vld [vmem:[%s15295_s22 + $0x159] sm:$0xff] }
 0x2f4   : > { %v6675_v6 = vpop.f32.mrf.mxu1  ;;  %v7097_v4 = vpop.f32.mrf.mxu0 }
 0x2f5   : > { %v17829_v1 = vadd.f32 %v14581_v10, %v6843_v59  ;;  %v6842_v8 = vadd.f32 %v6675_v6, %v17576_v47  ;;  %v8595_v6 = vld [vmem:[%s15295_s22 + $0x161] sm:$0xff] }
 0x2f6   : > { %v14528_v37 = vpop.f32.mrf.mxu1  ;;  %v14584_v14 = vpop.f32.mrf.mxu0  ;;  %14787 = vmatmul.mubr.msk.f32.gmra.mxu1 %vm258_vm1, %v8167_v29  ;;  %14843 = vmatmul.mubr.msk.f32.gmra.mxu0 %vm258_vm1, %v8589_v32  ;;  %v8173_v32 = vld [vmem:[%s15295_s22 + $0x310] sm:$0xff] }
 0x2f7   : > { %v17834_v42 = vadd.f32 %v7097_v4, %v6842_v8  ;;  %v6845_v58 = vadd.f32 %v14528_v37, %v17585_v11  ;;  %14789 = vmatprep.mubr.msk.f32.mxu1 %vm258_vm1, %v8168_v49  ;;  %14845 = vmatprep.mubr.msk.f32.mxu0 %vm258_vm1, %v8590_v7  ;;  %v8982_v49 = vld [vmem:[%s15295_s22 + $0x3a8] sm:$0xff]  ;;  %v9404_v7 = vld [vmem:[%s15295_s22 + $0x558] sm:$0xff] }
 0x2f8   : > { %v6685_v12 = vpop.f32.mrf.mxu1  ;;  %v7107_v47 = vpop.f32.mrf.mxu0 }
 0x2f9   : > { %v17843_v31 = vadd.f32 %v14584_v14, %v6845_v58  ;;  %v6844_v61 = vadd.f32 %v6685_v12, %v17590_v48  ;;  %v8983_v58 = vld [vmem:[%s15295_s22 + $0x3b0] sm:$0xff] }
 0x2fa   : > { %v14531_v23 = vpop.f32.mrf.mxu1  ;;  %v14587_v11 = vpop.f32.mrf.mxu0  ;;  %14790 = vmatmul.mubr.msk.f32.gmra.mxu1 %vm258_vm1, %v8169_v19  ;;  %14846 = vmatmul.mubr.msk.f32.gmra.mxu0 %vm258_vm1, %v8591_v35  ;;  %v9405_v19 = vld [vmem:[%s15295_s22 + $0x560] sm:$0xff] }
 0x2fb   : > { %v17848_v54 = vadd.f32 %v7107_v47, %v6844_v61  ;;  %v6847_v55 = vadd.f32 %v14531_v23, %v17599_v53  ;;  %14792 = vmatprep.mubr.msk.f32.mxu1 %vm258_vm1, %v8170_v18  ;;  %14848 = vmatprep.mubr.msk.f32.mxu0 %vm258_vm1, %v8592_v5  ;;  %v8984_v5 = vld [vmem:[%s15295_s22 + $0x3b8] sm:$0xff]  ;;  %v9406_v61 = vld [vmem:[%s15295_s22 + $0x568] sm:$0xff] }
 0x2fc   : > { %v6695_v62 = vpop.f32.mrf.mxu1  ;;  %v7117_v48 = vpop.f32.mrf.mxu0 }
 0x2fd   : > { %v17857_v51 = vadd.f32 %v14587_v11, %v6847_v55  ;;  %v6846_v52 = vadd.f32 %v6695_v62, %v17604_v27  ;;  %v17895_v55 = vld [vmem:[%s18892_s1 + $0x68] sm:$0xf]  ;;  %v9407_v62 = vld [vmem:[%s15295_s22 + $0x570] sm:$0xff] }
 0x2fe   : > { %v14534_v10 = vpop.f32.mrf.mxu1  ;;  %v14590_v53 = vpop.f32.mrf.mxu0  ;;  %14793 = vmatmul.mubr.msk.f32.gmra.mxu1 %vm258_vm1, %v8171_v21  ;;  %14849 = vmatmul.mubr.msk.f32.gmra.mxu0 %vm258_vm1, %v8593_v15  ;;  %v8985_v15 = vld [vmem:[%s15295_s22 + $0x3c0] sm:$0xff] }
 0x2ff   : > { %v17862_v59 = vadd.f32 %v7117_v48, %v6846_v52  ;;  %v6848_v29 = vadd.f32 %v14534_v10, %v17613_v3  ;;  %14795 = vmatprep.mubr.msk.f32.mxu1 %vm258_vm1, %v8172_v20  ;;  %14851 = vmatprep.mubr.msk.f32.mxu0 %vm258_vm1, %v8594_v63  ;;  %v8986_v63 = vld [vmem:[%s15295_s22 + $0x3c8] sm:$0xff]  ;;  %v9408_v52 = vld [vmem:[%s15295_s22 + $0x578] sm:$0xff] }
 0x300   : > { %v6705_v4 = vpop.f32.mrf.mxu1  ;;  %v7127_v27 = vpop.f32.mrf.mxu0 }
 0x301   : > { %v17871_v8 = vadd.f32 %v14590_v53, %v6848_v29  ;;  %v8988_v27 = vld [vmem:[%s15295_s22 + $0x3d8] sm:$0xff] }
 0x302   : > { %v14537_v37 = vpop.f32.mrf.mxu1  ;;  %v14593_v14 = vpop.f32.mrf.mxu0  ;;  %14796 = vmatmul.mubr.msk.f32.gmra.mxu1 %vm258_vm1, %v8173_v32  ;;  %14852 = vmatmul.mubr.msk.f32.gmra.mxu0 %vm258_vm1, %v8595_v6  ;;  %v9409_v32 = vld [vmem:[%s15295_s22 + $0x580] sm:$0xff] }
 0x303   : > { %v6850_v3 = vadd.f32 %v14537_v37, %v17622_v24  ;;  %14856 = vmatprep.mubr.msk.f32.mxu1 %vm258_vm1, %v8982_v49  ;;  %14912 = vmatprep.mubr.msk.f32.mxu0 %vm258_vm1, %v9404_v7  ;;  %v17890_v24 = vld [vmem:[%s18892_s1 + $0x64] sm:$0xf]  ;;  %v9410_v49 = vld [vmem:[%s15295_s22 + $0x588] sm:$0xff] }
 0x304   : > { %v6714_v35 = vpop.f32.mrf.mxu1  ;;  %v7136_v12 = vpop.f32.mrf.mxu0 }
 0x305   : > { %v17880_v47 = vadd.f32 %v14593_v14, %v6850_v3  ;;  %v6849_v18 = vadd.f32 %v6714_v35, %v17639_v13 }
 0x306   : > { %v14540_v23 = vpop.f32.mrf.mxu1  ;;  %v14596_v11 = vpop.f32.mrf.mxu0  ;;  %14857 = vmatmul.mubr.msk.f32.vlgmr.msra.gmra.mxu1 %vm258_vm1, %v8983_v58  ;;  %14913 = vmatmul.mubr.msk.f32.vlgmr.msra.gmra.mxu0 %vm258_vm1, %v9405_v19  ;;  %v8989_v58 = vld [vmem:[%s15295_s22 + $0x3e0] sm:$0xff]  ;;  %v9411_v19 = vld [vmem:[%s15295_s22 + $0x590] sm:$0xff] }
 0x307   : > { %v17897_v13 = vadd.f32 %v7136_v12, %v6849_v18  ;;  %v6852_v21 = vadd.f32 %v14540_v23, %v17652_v0  ;;  %14967 = vmatpush3.msk.msra.mxu1 %vm367_vm0, %v17632_v17  ;;  %15023 = vmatpush3.msk.msra.mxu0 %vm367_vm0, %v17637_v22  ;;  %v9412_v18 = vld [vmem:[%s15295_s22 + $0x598] sm:$0xff] }
 0x308   : > { %v6724_v48 = vpop.f32.mrf.mxu1  ;;  %v7146_v20 = vpop.f32.mrf.mxu0  ;;  %14859 = vmatprep.mubr.msk.f32.mxu1 %vm258_vm1, %v8984_v5  ;;  %14915 = vmatprep.mubr.msk.f32.mxu0 %vm258_vm1, %v9406_v61 }
 0x309   : > { %v17910_v10 = vadd.f32 %v14596_v11, %v6852_v21  ;;  %v6851_v17 = vadd.f32 %v6724_v48, %v17661_v30  ;;  %15078 = vmatprep.subr.msk.mxu1 %vm367_vm0, %v17890_v24  ;;  %15134 = vmatprep.subr.msk.mxu0 %vm367_vm0, %v17895_v55  ;;  %v8987_v30 = vld [vmem:[%s15295_s22 + $0x3d0] sm:$0xff] }
 0x30a   : > { %v14543_v22 = vpop.f32.mrf.mxu1  ;;  %v14599_v0 = vpop.f32.mrf.mxu0  ;;  %14860 = vmatmul.mubr.msk.f32.gmra.mxu1 %vm258_vm1, %v8985_v15  ;;  %14916 = vmatmul.mubr.msk.f32.gmra.mxu0 %vm258_vm1, %v9407_v62  ;;  %v8991_v15 = vld [vmem:[%s15295_s22 + $0x3f0] sm:$0xff]  ;;  %v9413_v62 = vld [vmem:[%s15295_s22 + $0x5a0] sm:$0xff] }
 0x30b   : > { %v17919_v53 = vadd.f32 %v7146_v20, %v6851_v17  ;;  %v6854_v29 = vadd.f32 %v14543_v22, %v17670_v36  ;;  %14862 = vmatprep.mubr.msk.f32.mxu1 %vm258_vm1, %v8986_v63  ;;  %14918 = vmatprep.mubr.msk.f32.mxu0 %vm258_vm1, %v9408_v52  ;;  %v8992_v20 = vld [vmem:[%s15295_s22 + $0x3f8] sm:$0xff]  ;;  %v9414_v63 = vld [vmem:[%s15295_s22 + $0x5a8] sm:$0xff] }
 0x30c   : > { %v6734_v6 = vpop.f32.mrf.mxu1  ;;  %v7156_v4 = vpop.f32.mrf.mxu0 }
 0x30d   : > { %v17928_v7 = vadd.f32 %v14599_v0, %v6854_v29  ;;  %v6853_v37 = vadd.f32 %v6734_v6, %v17675_v38  ;;  %v8990_v38 = vld [vmem:[%s15295_s22 + $0x3e8] sm:$0xff] }
 0x30e   : > { %v14546_v14 = vpop.f32.mrf.mxu1  ;;  %v14602_v36 = vpop.f32.mrf.mxu0  ;;  %14863 = vmatmul.mubr.msk.f32.gmra.mxu1 %vm258_vm1, %v8987_v30  ;;  %14919 = vmatmul.mubr.msk.f32.gmra.mxu0 %vm258_vm1, %v9409_v32  ;;  %v8993_v30 = vld [vmem:[%s15295_s22 + $0x400] sm:$0xff]  ;;  %v9415_v32 = vld [vmem:[%s15295_s22 + $0x5b0] sm:$0xff] }
 0x30f   : > { %v17933_v3 = vadd.f32 %v7156_v4, %v6853_v37  ;;  %14865 = vmatprep.mubr.msk.f32.mxu1 %vm258_vm1, %v8988_v27  ;;  %14921 = vmatprep.mubr.msk.f32.mxu0 %vm258_vm1, %v9410_v49  ;;  %v8994_v4 = vld [vmem:[%s15295_s22 + $0x408] sm:$0xff]  ;;  %v9416_v27 = vld [vmem:[%s15295_s22 + $0x5b8] sm:$0xff] }
 0x310   : > { %v6744_v35 = vpop.f32.mrf.mxu1  ;;  %v7166_v12 = vpop.f32.mrf.mxu0 }
 0x311   : > { %v6855_v5 = vadd.f32 %v6744_v35, %v17686_v45  ;;  %v9417_v35 = vld [vmem:[%s15295_s22 + $0x5c0] sm:$0xff] }
 0x312   : > { %v14549_v61 = vpop.f32.mrf.mxu1  ;;  %v14605_v23 = vpop.f32.mrf.mxu0  ;;  %14866 = vmatmul.mubr.msk.f32.gmra.mxu1 %vm258_vm1, %v8989_v58  ;;  %14922 = vmatmul.mubr.msk.f32.gmra.mxu0 %vm258_vm1, %v9411_v19  ;;  %v8995_v19 = vld [vmem:[%s15295_s22 + $0x410] sm:$0xff] }
 0x313   : > { %v17944_v11 = vadd.f32 %v7166_v12, %v6855_v5  ;;  %v6857_v21 = vadd.f32 %v14549_v61, %v17695_v44  ;;  %14868 = vmatprep.mubr.msk.f32.mxu1 %vm258_vm1, %v8990_v38  ;;  %14924 = vmatprep.mubr.msk.f32.mxu0 %vm258_vm1, %v9412_v18  ;;  %v8996_v38 = vld [vmem:[%s15295_s22 + $0x418] sm:$0xff]  ;;  %v9418_v18 = vld [vmem:[%s15295_s22 + $0x5c8] sm:$0xff] }
 0x314   : > { %v6753_v48 = vpop.f32.mrf.mxu1  ;;  %v7175_v45 = vpop.f32.mrf.mxu0 }
 0x315   : > { %v17953_v52 = vadd.f32 %v14605_v23, %v6857_v21  ;;  %v6856_v17 = vadd.f32 %v6753_v48, %v17700_v56  ;;  %v9419_v48 = vld [vmem:[%s15295_s22 + $0x5d0] sm:$0xff] }
 0x316   : > { %v14552_v22 = vpop.f32.mrf.mxu1  ;;  %v14608_v44 = vpop.f32.mrf.mxu0  ;;  %14869 = vmatmul.mubr.msk.f32.gmra.mxu1 %vm258_vm1, %v8991_v15  ;;  %14925 = vmatmul.mubr.msk.f32.gmra.mxu0 %vm258_vm1, %v9413_v62  ;;  %v8997_v62 = vld [vmem:[%s15295_s22 + $0x420] sm:$0xff] }
 0x317   : > { %v17958_v0 = vadd.f32 %v7175_v45, %v6856_v17  ;;  %v6859_v29 = vadd.f32 %v14552_v22, %v17709_v60  ;;  %14871 = vmatprep.mubr.msk.f32.mxu1 %vm258_vm1, %v8992_v20  ;;  %14927 = vmatprep.mubr.msk.f32.mxu0 %vm258_vm1, %v9414_v63  ;;  %v8998_v20 = vld [vmem:[%s15295_s22 + $0x428] sm:$0xff]  ;;  %v9420_v63 = vld [vmem:[%s15295_s22 + $0x5d8] sm:$0xff] }
 0x318   : > { %v6763_v6 = vpop.f32.mrf.mxu1  ;;  %v7185_v56 = vpop.f32.mrf.mxu0 }
 0x319   : > { %v17967_v49 = vadd.f32 %v14608_v44, %v6859_v29  ;;  %v6858_v37 = vadd.f32 %v6763_v6, %v17714_v57  ;;  %v9421_v6 = vld [vmem:[%s15295_s22 + $0x5e0] sm:$0xff] }
 0x31a   : > { %v14555_v14 = vpop.f32.mrf.mxu1  ;;  %v14611_v60 = vpop.f32.mrf.mxu0  ;;  %14872 = vmatmul.mubr.msk.f32.gmra.mxu1 %vm258_vm1, %v8993_v30  ;;  %14928 = vmatmul.mubr.msk.f32.gmra.mxu0 %vm258_vm1, %v9415_v32  ;;  %v8999_v32 = vld [vmem:[%s15295_s22 + $0x430] sm:$0xff] }
 0x31b   : > { %v17972_v36 = vadd.f32 %v7185_v56, %v6858_v37  ;;  %v6861_v58 = vadd.f32 %v14555_v14, %v17723_v26  ;;  %14874 = vmatprep.mubr.msk.f32.mxu1 %vm258_vm1, %v8994_v4  ;;  %14930 = vmatprep.mubr.msk.f32.mxu0 %vm258_vm1, %v9416_v27  ;;  %v9000_v4 = vld [vmem:[%s15295_s22 + $0x438] sm:$0xff]  ;;  %v9422_v27 = vld [vmem:[%s15295_s22 + $0x5e8] sm:$0xff] }
 0x31c   : > { %v6773_v12 = vpop.f32.mrf.mxu1  ;;  %v7195_v57 = vpop.f32.mrf.mxu0 }
 0x31d   : > { %v17981_v5 = vadd.f32 %v14611_v60, %v6861_v58  ;;  %v6860_v61 = vadd.f32 %v6773_v12, %v17728_v2  ;;  %v9001_v58 = vld [vmem:[%s15295_s22 + $0x440] sm:$0xff] }
 0x31e   : > { %v14558_v23 = vpop.f32.mrf.mxu1  ;;  %v14614_v26 = vpop.f32.mrf.mxu0  ;;  %14875 = vmatmul.mubr.msk.f32.gmra.mxu1 %vm258_vm1, %v8995_v19  ;;  %14931 = vmatmul.mubr.msk.f32.gmra.mxu0 %vm258_vm1, %v9417_v35  ;;  %v9423_v19 = vld [vmem:[%s15295_s22 + $0x5f0] sm:$0xff] }
 0x31f   : > { %v17986_v21 = vadd.f32 %v7195_v57, %v6860_v61  ;;  %v6863_v15 = vadd.f32 %v14558_v23, %v17737_v16  ;;  %14877 = vmatprep.mubr.msk.f32.mxu1 %vm258_vm1, %v8996_v38  ;;  %14933 = vmatprep.mubr.msk.f32.mxu0 %vm258_vm1, %v9418_v18  ;;  %v9002_v57 = vld [vmem:[%s15295_s22 + $0x448] sm:$0xff]  ;;  %v9424_v38 = vld [vmem:[%s15295_s22 + $0x5f8] sm:$0xff] }
 0x320   : > { %v6783_v45 = vpop.f32.mrf.mxu1  ;;  %v7205_v2 = vpop.f32.mrf.mxu0 }
 0x321   : > { %v17995_v17 = vadd.f32 %v14614_v26, %v6863_v15  ;;  %v6862_v22 = vadd.f32 %v6783_v45, %v17742_v9 }
 0x322   : > { %v14561_v44 = vpop.f32.mrf.mxu1  ;;  %v14617_v16 = vpop.f32.mrf.mxu0  ;;  %14878 = vmatmul.mubr.msk.f32.gmra.mxu1 %vm258_vm1, %v8997_v62  ;;  %14934 = vmatmul.mubr.msk.f32.gmra.mxu0 %vm258_vm1, %v9419_v48  ;;  %v9003_v62 = vld [vmem:[%s15295_s22 + $0x450] sm:$0xff]  ;;  %v9425_v48 = vld [vmem:[%s15295_s22 + $0x600] sm:$0xff] }
 0x323   : > { %v18000_v29 = vadd.f32 %v7205_v2, %v6862_v22  ;;  %v6864_v30 = vadd.f32 %v14561_v44, %v17751_v28  ;;  %14880 = vmatprep.mubr.msk.f32.mxu1 %vm258_vm1, %v8998_v20  ;;  %14936 = vmatprep.mubr.msk.f32.mxu0 %vm258_vm1, %v9420_v63  ;;  %v9004_v2 = vld [vmem:[%s15295_s22 + $0x458] sm:$0xff]  ;;  %v9426_v20 = vld [vmem:[%s15295_s22 + $0x608] sm:$0xff] }
 0x324   : > { %v6793_v56 = vpop.f32.mrf.mxu1  ;;  %v7215_v9 = vpop.f32.mrf.mxu0 }
 0x325   : > { %v18009_v37 = vadd.f32 %v14617_v16, %v6864_v30  ;;  %v9006_v9 = vld [vmem:[%s15295_s22 + $0x468] sm:$0xff] }
 0x326   : > { %v14564_v14 = vpop.f32.mrf.mxu1  ;;  %v14620_v60 = vpop.f32.mrf.mxu0  ;;  %14881 = vmatmul.mubr.msk.f32.gmra.mxu1 %vm258_vm1, %v8999_v32  ;;  %14937 = vmatmul.mubr.msk.f32.gmra.mxu0 %vm258_vm1, %v9421_v6  ;;  %v9005_v32 = vld [vmem:[%s15295_s22 + $0x460] sm:$0xff]  ;;  %v9427_v6 = vld [vmem:[%s15295_s22 + $0x610] sm:$0xff] }
 0x327   : > { %v6866_v28 = vadd.f32 %v14564_v14, %v17762_v43  ;;  %14883 = vmatprep.mubr.msk.f32.mxu1 %vm258_vm1, %v9000_v4  ;;  %14939 = vmatprep.mubr.msk.f32.mxu0 %vm258_vm1, %v9422_v27  ;;  %v9428_v4 = vld [vmem:[%s15295_s22 + $0x618] sm:$0xff] }
 0x328   : > { %v6802_v35 = vpop.f32.mrf.mxu1  ;;  %v7224_v12 = vpop.f32.mrf.mxu0 }
 0x329   : > { %v18020_v18 = vadd.f32 %v14620_v60, %v6866_v28  ;;  %v6865_v61 = vadd.f32 %v6802_v35, %v17767_v50 }
 0x32a   : > { %v14567_v23 = vpop.f32.mrf.mxu1  ;;  %v14623_v43 = vpop.f32.mrf.mxu0  ;;  %14884 = vmatmul.mubr.msk.f32.gmra.mxu1 %vm258_vm1, %v9001_v58  ;;  %14940 = vmatmul.mubr.msk.f32.gmra.mxu0 %vm258_vm1, %v9423_v19  ;;  %v9007_v58 = vld [vmem:[%s15295_s22 + $0x470] sm:$0xff]  ;;  %v9429_v19 = vld [vmem:[%s15295_s22 + $0x620] sm:$0xff] }
 0x32b   : > { %v18025_v26 = vadd.f32 %v7224_v12, %v6865_v61  ;;  %v6868_v15 = vadd.f32 %v14567_v23, %v17776_v25  ;;  %14886 = vmatprep.mubr.msk.f32.mxu1 %vm258_vm1, %v9002_v57  ;;  %14942 = vmatprep.mubr.msk.f32.mxu0 %vm258_vm1, %v9424_v38  ;;  %v9430_v57 = vld [vmem:[%s15295_s22 + $0x628] sm:$0xff] }
 0x32c   : > { %v6812_v45 = vpop.f32.mrf.mxu1  ;;  %v7234_v50 = vpop.f32.mrf.mxu0 }
 0x32d   : > { %v18034_v63 = vadd.f32 %v14623_v43, %v6868_v15  ;;  %v6867_v22 = vadd.f32 %v6812_v45, %v17781_v33 }
 0x32e   : > { %v14570_v44 = vpop.f32.mrf.mxu1  ;;  %v14626_v25 = vpop.f32.mrf.mxu0  ;;  %14887 = vmatmul.mubr.msk.f32.gmra.mxu1 %vm258_vm1, %v9003_v62  ;;  %14943 = vmatmul.mubr.msk.f32.gmra.mxu0 %vm258_vm1, %v9425_v48  ;;  %v9009_v62 = vld [vmem:[%s15295_s22 + $0x480] sm:$0xff]  ;;  %v9431_v48 = vld [vmem:[%s15295_s22 + $0x630] sm:$0xff] }
 0x32f   : > { %v18039_v16 = vadd.f32 %v7234_v50, %v6867_v22  ;;  %v6870_v30 = vadd.f32 %v14570_v44, %v17790_v39  ;;  %14889 = vmatprep.mubr.msk.f32.mxu1 %vm258_vm1, %v9004_v2  ;;  %14945 = vmatprep.mubr.msk.f32.mxu0 %vm258_vm1, %v9426_v20  ;;  %v9010_v50 = vld [vmem:[%s15295_s22 + $0x488] sm:$0xff]  ;;  %v9432_v2 = vld [vmem:[%s15295_s22 + $0x638] sm:$0xff] }
 0x330   : > { %v6822_v56 = vpop.f32.mrf.mxu1  ;;  %v7244_v33 = vpop.f32.mrf.mxu0 }
 0x331   : > { %v18048_v27 = vadd.f32 %v14626_v25, %v6870_v30  ;;  %v6869_v14 = vadd.f32 %v6822_v56, %v17795_v40  ;;  %v9008_v40 = vld [vmem:[%s15295_s22 + $0x478] sm:$0xff] }
 0x332   : > { %v14573_v60 = vpop.f32.mrf.mxu1  ;;  %v14629_v39 = vpop.f32.mrf.mxu0  ;;  %14890 = vmatmul.mubr.msk.f32.gmra.mxu1 %vm258_vm1, %v9005_v32  ;;  %14946 = vmatmul.mubr.msk.f32.gmra.mxu0 %vm258_vm1, %v9427_v6  ;;  %v9011_v32 = vld [vmem:[%s15295_s22 + $0x490] sm:$0xff]  ;;  %v9433_v6 = vld [vmem:[%s15295_s22 + $0x640] sm:$0xff] }
 0x333   : > { %v18053_v28 = vadd.f32 %v7244_v33, %v6869_v14  ;;  %14892 = vmatprep.mubr.msk.f32.mxu1 %vm258_vm1, %v9006_v9  ;;  %14948 = vmatprep.mubr.msk.f32.mxu0 %vm258_vm1, %v9428_v4  ;;  %v9012_v33 = vld [vmem:[%s15295_s22 + $0x498] sm:$0xff]  ;;  %v9434_v9 = vld [vmem:[%s15295_s22 + $0x648] sm:$0xff] }
 0x334   : > { %v6832_v35 = vpop.f32.mrf.mxu1  ;;  %v7254_v12 = vpop.f32.mrf.mxu0 }
 0x335   : > { %v6871_v38 = vadd.f32 %v6832_v35, %v17806_v46  ;;  %v9435_v35 = vld [vmem:[%s15295_s22 + $0x650] sm:$0xff] }
 0x336   : > { %v14634_v61 = vpop.f32.mrf.mxu1  ;;  %v14690_v23 = vpop.f32.mrf.mxu0  ;;  %14893 = vmatmul.mubr.msk.f32.gmra.mxu1 %vm258_vm1, %v9007_v58  ;;  %14949 = vmatmul.mubr.msk.f32.gmra.mxu0 %vm258_vm1, %v9429_v19  ;;  %v9013_v19 = vld [vmem:[%s15295_s22 + $0x4a0] sm:$0xff] }
 0x337   : > { %v18064_v43 = vadd.f32 %v7254_v12, %v6871_v38  ;;  %v7685_v15 = vadd.f32 %v14634_v61, %v17815_v34  ;;  %14895 = vmatprep.mubr.msk.f32.mxu1 %vm258_vm1, %v9008_v40  ;;  %14951 = vmatprep.mubr.msk.f32.mxu0 %vm258_vm1, %v9430_v57  ;;  %v9014_v40 = vld [vmem:[%s15295_s22 + $0x4a8] sm:$0xff]  ;;  %v9436_v57 = vld [vmem:[%s15295_s22 + $0x658] sm:$0xff] }
 0x338   : > { %v7509_v45 = vpop.f32.mrf.mxu1  ;;  %v7931_v46 = vpop.f32.mrf.mxu0 }
 0x339   : > { %v18073_v20 = vadd.f32 %v14690_v23, %v7685_v15  ;;  %v7684_v22 = vadd.f32 %v7509_v45, %v17820_v41  ;;  %v9437_v45 = vld [vmem:[%s15295_s22 + $0x660] sm:$0xff] }
 0x33a   : > { %v14637_v44 = vpop.f32.mrf.mxu1  ;;  %v14693_v34 = vpop.f32.mrf.mxu0  ;;  %14896 = vmatmul.mubr.msk.f32.gmra.mxu1 %vm258_vm1, %v9009_v62  ;;  %14952 = vmatmul.mubr.msk.f32.gmra.mxu0 %vm258_vm1, %v9431_v48  ;;  %v9015_v48 = vld [vmem:[%s15295_s22 + $0x4b0] sm:$0xff] }
 0x33b   : > { %v18078_v25 = vadd.f32 %v7931_v46, %v7684_v22  ;;  %v7687_v30 = vadd.f32 %v14637_v44, %v17829_v1  ;;  %14898 = vmatprep.mubr.msk.f32.mxu1 %vm258_vm1, %v9010_v50  ;;  %14954 = vmatprep.mubr.msk.f32.mxu0 %vm258_vm1, %v9432_v2  ;;  %v9016_v50 = vld [vmem:[%s15295_s22 + $0x4b8] sm:$0xff]  ;;  %v9438_v2 = vld [vmem:[%s15295_s22 + $0x668] sm:$0xff] }
 0x33c   : > { %v7519_v56 = vpop.f32.mrf.mxu1  ;;  %v7941_v41 = vpop.f32.mrf.mxu0 }
 0x33d   : > { %v18087_v4 = vadd.f32 %v14693_v34, %v7687_v30  ;;  %v7686_v14 = vadd.f32 %v7519_v56, %v17834_v42  ;;  %v9439_v56 = vld [vmem:[%s15295_s22 + $0x670] sm:$0xff] }
 0x33e   : > { %v14640_v60 = vpop.f32.mrf.mxu1  ;;  %v14696_v1 = vpop.f32.mrf.mxu0  ;;  %14899 = vmatmul.mubr.msk.f32.gmra.mxu1 %vm258_vm1, %v9011_v32  ;;  %14955 = vmatmul.mubr.msk.f32.gmra.mxu0 %vm258_vm1, %v9433_v6  ;;  %v9017_v6 = vld [vmem:[%s15295_s22 + $0x4c0] sm:$0xff] }
 0x33f   : > { %v18092_v39 = vadd.f32 %v7941_v41, %v7686_v14  ;;  %v7689_v58 = vadd.f32 %v14640_v60, %v17843_v31  ;;  %14901 = vmatprep.mubr.msk.f32.mxu1 %vm258_vm1, %v9012_v33  ;;  %14957 = vmatprep.mubr.msk.f32.mxu0 %vm258_vm1, %v9434_v9  ;;  %v9826_v33 = vld [vmem:[%s15295_s22 + $0x3a9] sm:$0xff] }
 0x340   : > { %v7529_v12 = vpop.f32.mrf.mxu1  ;;  %v7951_v42 = vpop.f32.mrf.mxu0  ;;  %v10248_v9 = vld [vmem:[%s15295_s22 + $0x50] sm:$0xff] }
 0x341   : > { %v18101_v38 = vadd.f32 %v14696_v1, %v7689_v58  ;;  %v7688_v61 = vadd.f32 %v7529_v12, %v17848_v54  ;;  %v9827_v58 = vld [vmem:[%s15295_s22 + $0x3b1] sm:$0xff] }
 0x342   : > { %v14643_v23 = vpop.f32.mrf.mxu1  ;;  %v14699_v31 = vpop.f32.mrf.mxu0  ;;  %14902 = vmatmul.mubr.msk.f32.gmra.mxu1 %vm258_vm1, %v9013_v19  ;;  %14958 = vmatmul.mubr.msk.f32.gmra.mxu0 %vm258_vm1, %v9435_v35  ;;  %v10249_v19 = vld [vmem:[%s15295_s22 + $0x58] sm:$0xff] }
 0x343   : > { %v18106_v15 = vadd.f32 %v7951_v42, %v7688_v61  ;;  %v7691_v62 = vadd.f32 %v14643_v23, %v17857_v51  ;;  %14904 = vmatprep.mubr.msk.f32.mxu1 %vm258_vm1, %v9014_v40  ;;  %14960 = vmatprep.mubr.msk.f32.mxu0 %vm258_vm1, %v9436_v57  ;;  %v9828_v57 = vld [vmem:[%s15295_s22 + $0x3b9] sm:$0xff] }
 0x344   : > { %v7539_v46 = vpop.f32.mrf.mxu1  ;;  %v7961_v54 = vpop.f32.mrf.mxu0  ;;  %v10250_v61 = vld [vmem:[%s15295_s22 + $0x60] sm:$0xff] }
 0x345   : > { %v18115_v22 = vadd.f32 %v14699_v31, %v7691_v62  ;;  %v7690_v44 = vadd.f32 %v7539_v46, %v17862_v59 }
 0x346   : > { %v14646_v34 = vpop.f32.mrf.mxu1  ;;  %v14702_v51 = vpop.f32.mrf.mxu0  ;;  %14905 = vmatmul.mubr.msk.f32.gmra.mxu1 %vm258_vm1, %v9015_v48  ;;  %14961 = vmatmul.mubr.msk.f32.gmra.mxu0 %vm258_vm1, %v9437_v45  ;;  %v10251_v48 = vld [vmem:[%s15295_s22 + $0x68] sm:$0xff] }
 0x347   : > { %v18120_v30 = vadd.f32 %v7961_v54, %v7690_v44  ;;  %v7692_v32 = vadd.f32 %v14646_v34, %v17871_v8  ;;  %14907 = vmatprep.mubr.msk.f32.mxu1 %vm258_vm1, %v9016_v50  ;;  %14963 = vmatprep.mubr.msk.f32.mxu0 %vm258_vm1, %v9438_v2  ;;  %v9830_v54 = vld [vmem:[%s15295_s22 + $0x3c9] sm:$0xff] }
 0x348   : > { %v7549_v41 = vpop.f32.mrf.mxu1  ;;  %v7971_v59 = vpop.f32.mrf.mxu0  ;;  %v10252_v50 = vld [vmem:[%s15295_s22 + $0x70] sm:$0xff] }
 0x349   : > { %v18129_v14 = vadd.f32 %v14702_v51, %v7692_v32  ;;  %v9831_v51 = vld [vmem:[%s15295_s22 + $0x3d1] sm:$0xff]  ;;  %v10254_v41 = vld [vmem:[%s15295_s22 + $0x80] sm:$0xff] }
 0x34a   : > { %v14649_v60 = vpop.f32.mrf.mxu1  ;;  %v14705_v1 = vpop.f32.mrf.mxu0  ;;  %14908 = vmatmul.mubr.msk.f32.gmra.mxu1 %vm258_vm1, %v9017_v6  ;;  %14964 = vmatmul.mubr.msk.f32.gmra.mxu0 %vm258_vm1, %v9439_v56  ;;  %v10253_v32 = vld [vmem:[%s15295_s22 + $0x78] sm:$0xff] }
 0x34b   : > { %v7694_v8 = vadd.f32 %v14649_v60, %v17880_v47  ;;  %14968 = vmatprep.mubr.msk.f32.mxu1 %vm258_vm1, %v9826_v33  ;;  %15024 = vmatprep.mubr.msk.f32.mxu0 %vm258_vm1, %v10248_v9  ;;  %v9832_v56 = vld [vmem:[%s15295_s22 + $0x3d9] sm:$0xff] }
 0x34c   : > { %v7558_v35 = vpop.f32.mrf.mxu1  ;;  %v7980_v12 = vpop.f32.mrf.mxu0 }
 0x34d   : > { %v18138_v42 = vadd.f32 %v14705_v1, %v7694_v8  ;;  %v7693_v40 = vadd.f32 %v7558_v35, %v17897_v13  ;;  %v9829_v13 = vld [vmem:[%s15295_s22 + $0x3c1] sm:$0xff]  ;;  %v10256_v35 = vld [vmem:[%s15295_s22 + $0x90] sm:$0xff] }
 0x34e   : > { %v14652_v23 = vpop.f32.mrf.mxu1  ;;  %v14708_v47 = vpop.f32.mrf.mxu0  ;;  %14969 = vmatmul.mubr.msk.f32.vlgmr.msra.gmra.mxu1 %vm258_vm1, %v9827_v58  ;;  %15025 = vmatmul.mubr.msk.f32.vlgmr.msra.gmra.mxu0 %vm258_vm1, %v10249_v19  ;;  %v9833_v1 = vld [vmem:[%s15295_s22 + $0x3e1] sm:$0xff] }
 0x34f   : > { %v18145_v31 = vadd.f32 %v7980_v12, %v7693_v40  ;;  %v7696_v62 = vadd.f32 %v14652_v23, %v17910_v10  ;;  %15079 = vmatpush3.msk.msra.mxu1 %vm367_vm0, %v17890_v24  ;;  %15135 = vmatpush3.msk.msra.mxu0 %vm367_vm0, %v17895_v55  ;;  %v10255_v8 = vld [vmem:[%s15295_s22 + $0x88] sm:$0xff] }
 0x350   : > { %v7568_v45 = vpop.f32.mrf.mxu1  ;;  %v7990_v46 = vpop.f32.mrf.mxu0  ;;  %14971 = vmatprep.mubr.msk.f32.mxu1 %vm258_vm1, %v9828_v57  ;;  %15027 = vmatprep.mubr.msk.f32.mxu0 %vm258_vm1, %v10250_v61 }
 0x351   : > { %v18158_v10 = vadd.f32 %v14708_v47, %v7696_v62  ;;  %v7695_v24 = vadd.f32 %v7568_v45, %v17919_v53  ;;  %v9835_v47 = vld [vmem:[%s15295_s22 + $0x3f1] sm:$0xff]  ;;  %v10258_v45 = vld [vmem:[%s15295_s22 + $0xa0] sm:$0xff] }
 0x352   : > { %v14655_v2 = vpop.f32.mrf.mxu1  ;;  %v14711_v55 = vpop.f32.mrf.mxu0  ;;  %14972 = vmatmul.mubr.msk.f32.gmra.mxu1 %vm258_vm1, %v9829_v13  ;;  %15028 = vmatmul.mubr.msk.f32.gmra.mxu0 %vm258_vm1, %v10251_v48  ;;  %v10257_v62 = vld [vmem:[%s15295_s22 + $0x98] sm:$0xff] }
 0x353   : > { %v18163_v44 = vadd.f32 %v7990_v46, %v7695_v24  ;;  %v7698_v34 = vadd.f32 %v14655_v2, %v17928_v7  ;;  %14974 = vmatprep.mubr.msk.f32.mxu1 %vm258_vm1, %v9830_v54  ;;  %15030 = vmatprep.mubr.msk.f32.mxu0 %vm258_vm1, %v10252_v50  ;;  %v9836_v48 = vld [vmem:[%s15295_s22 + $0x3f9] sm:$0xff] }
 0x354   : > { %v7578_v6 = vpop.f32.mrf.mxu1  ;;  %v8000_v53 = vpop.f32.mrf.mxu0 }
 0x355   : > { %v18172_v59 = vadd.f32 %v14711_v55, %v7698_v34  ;;  %v7697_v33 = vadd.f32 %v7578_v6, %v17933_v3  ;;  %v9834_v3 = vld [vmem:[%s15295_s22 + $0x3e9] sm:$0xff]  ;;  %v9837_v55 = vld [vmem:[%s15295_s22 + $0x401] sm:$0xff] }
 0x356   : > { %v14658_v9 = vpop.f32.mrf.mxu1  ;;  %v14714_v7 = vpop.f32.mrf.mxu0  ;;  %14975 = vmatmul.mubr.msk.f32.gmra.mxu1 %vm258_vm1, %v9831_v51  ;;  %15031 = vmatmul.mubr.msk.f32.gmra.mxu0 %vm258_vm1, %v10253_v32  ;;  %v10259_v34 = vld [vmem:[%s15295_s22 + $0xa8] sm:$0xff]  ;;  %v10260_v6 = vld [vmem:[%s15295_s22 + $0xb0] sm:$0xff] }
 0x357   : > { %v18177_v60 = vadd.f32 %v8000_v53, %v7697_v33  ;;  %14977 = vmatprep.mubr.msk.f32.mxu1 %vm258_vm1, %v9832_v56  ;;  %15033 = vmatprep.mubr.msk.f32.mxu0 %vm258_vm1, %v10254_v41  ;;  %v9838_v32 = vld [vmem:[%s15295_s22 + $0x409] sm:$0xff]  ;;  %v9839_v7 = vld [vmem:[%s15295_s22 + $0x411] sm:$0xff] }
 0x358   : > { %v7588_v58 = vpop.f32.mrf.mxu1  ;;  %v8010_v19 = vpop.f32.mrf.mxu0 }
 0x359   : > { %v7699_v12 = vadd.f32 %v7588_v58, %v17944_v11  ;;  %v9840_v58 = vld [vmem:[%s15295_s22 + $0x419] sm:$0xff] }
 0x35a   : > { %v14661_v40 = vpop.f32.mrf.mxu1  ;;  %v14717_v57 = vpop.f32.mrf.mxu0  ;;  %14978 = vmatmul.mubr.msk.f32.gmra.mxu1 %vm258_vm1, %v9833_v1  ;;  %15034 = vmatmul.mubr.msk.f32.gmra.mxu0 %vm258_vm1, %v10255_v8  ;;  %v10261_v1 = vld [vmem:[%s15295_s22 + $0xb8] sm:$0xff] }
 0x35b   : > { %v18188_v61 = vadd.f32 %v8010_v19, %v7699_v12  ;;  %v7701_v23 = vadd.f32 %v14661_v40, %v17953_v52  ;;  %14980 = vmatprep.mubr.msk.f32.mxu1 %vm258_vm1, %v9834_v3  ;;  %15036 = vmatprep.mubr.msk.f32.mxu0 %vm258_vm1, %v10256_v35  ;;  %v10262_v19 = vld [vmem:[%s15295_s22 + $0xc0] sm:$0xff] }
 0x35c   : > { %v7597_v13 = vpop.f32.mrf.mxu1  ;;  %v8019_v11 = vpop.f32.mrf.mxu0 }
 0x35d   : > { %v18197_v46 = vadd.f32 %v14717_v57, %v7701_v23  ;;  %v7700_v54 = vadd.f32 %v7597_v13, %v17958_v0  ;;  %v9841_v23 = vld [vmem:[%s15295_s22 + $0x421] sm:$0xff]  ;;  %v9842_v13 = vld [vmem:[%s15295_s22 + $0x429] sm:$0xff] }
 0x35e   : > { %v14664_v50 = vpop.f32.mrf.mxu1  ;;  %v14720_v52 = vpop.f32.mrf.mxu0  ;;  %14981 = vmatmul.mubr.msk.f32.gmra.mxu1 %vm258_vm1, %v9835_v47  ;;  %15037 = vmatmul.mubr.msk.f32.gmra.mxu0 %vm258_vm1, %v10257_v62  ;;  %v10263_v47 = vld [vmem:[%s15295_s22 + $0xc8] sm:$0xff] }
 0x35f   : > { %v18202_v24 = vadd.f32 %v8019_v11, %v7700_v54  ;;  %v7703_v2 = vadd.f32 %v14664_v50, %v17967_v49  ;;  %14983 = vmatprep.mubr.msk.f32.mxu1 %vm258_vm1, %v9836_v48  ;;  %15039 = vmatprep.mubr.msk.f32.mxu0 %vm258_vm1, %v10258_v45  ;;  %v10264_v11 = vld [vmem:[%s15295_s22 + $0xd0] sm:$0xff] }
 0x360   : > { %v7607_v51 = vpop.f32.mrf.mxu1  ;;  %v8029_v0 = vpop.f32.mrf.mxu0 }
 0x361   : > { %v18211_v53 = vadd.f32 %v14720_v52, %v7703_v2  ;;  %v7702_v56 = vadd.f32 %v7607_v51, %v17972_v36  ;;  %v9843_v2 = vld [vmem:[%s15295_s22 + $0x431] sm:$0xff]  ;;  %v9844_v51 = vld [vmem:[%s15295_s22 + $0x439] sm:$0xff] }
 0x362   : > { %v14667_v41 = vpop.f32.mrf.mxu1  ;;  %v14723_v49 = vpop.f32.mrf.mxu0  ;;  %14984 = vmatmul.mubr.msk.f32.gmra.mxu1 %vm258_vm1, %v9837_v55  ;;  %15040 = vmatmul.mubr.msk.f32.gmra.mxu0 %vm258_vm1, %v10259_v34  ;;  %v10265_v55 = vld [vmem:[%s15295_s22 + $0xd8] sm:$0xff] }
 0x363   : > { %v18216_v33 = vadd.f32 %v8029_v0, %v7702_v56  ;;  %v7705_v9 = vadd.f32 %v14667_v41, %v17981_v5  ;;  %14986 = vmatprep.mubr.msk.f32.mxu1 %vm258_vm1, %v9838_v32  ;;  %15042 = vmatprep.mubr.msk.f32.mxu0 %vm258_vm1, %v10260_v6  ;;  %v10266_v0 = vld [vmem:[%s15295_s22 + $0xe0] sm:$0xff] }
 0x364   : > { %v7617_v8 = vpop.f32.mrf.mxu1  ;;  %v8039_v36 = vpop.f32.mrf.mxu0  ;;  %v9845_v41 = vld [vmem:[%s15295_s22 + $0x441] sm:$0xff] }
 0x365   : > { %v18225_v3 = vadd.f32 %v14723_v49, %v7705_v9  ;;  %v7704_v35 = vadd.f32 %v7617_v8, %v17986_v21  ;;  %v10267_v49 = vld [vmem:[%s15295_s22 + $0xe8] sm:$0xff]  ;;  %v10268_v8 = vld [vmem:[%s15295_s22 + $0xf0] sm:$0xff] }
 0x366   : > { %v14670_v12 = vpop.f32.mrf.mxu1  ;;  %v14726_v5 = vpop.f32.mrf.mxu0  ;;  %14987 = vmatmul.mubr.msk.f32.gmra.mxu1 %vm258_vm1, %v9839_v7  ;;  %15043 = vmatmul.mubr.msk.f32.gmra.mxu0 %vm258_vm1, %v10261_v1  ;;  %v9846_v1 = vld [vmem:[%s15295_s22 + $0x449] sm:$0xff] }
 0x367   : > { %v18230_v40 = vadd.f32 %v8039_v36, %v7704_v35  ;;  %v7707_v57 = vadd.f32 %v14670_v12, %v17995_v17  ;;  %14989 = vmatprep.mubr.msk.f32.mxu1 %vm258_vm1, %v9840_v58  ;;  %15045 = vmatprep.mubr.msk.f32.mxu0 %vm258_vm1, %v10262_v19 }
 0x368   : > { %v7627_v62 = vpop.f32.mrf.mxu1  ;;  %v8049_v21 = vpop.f32.mrf.mxu0 }
 0x369   : > { %v18239_v48 = vadd.f32 %v14726_v5, %v7707_v57  ;;  %v7706_v45 = vadd.f32 %v7627_v62, %v18000_v29  ;;  %v9847_v5 = vld [vmem:[%s15295_s22 + $0x451] sm:$0xff]  ;;  %v10270_v62 = vld [vmem:[%s15295_s22 + $0x100] sm:$0xff] }
 0x36a   : > { %v14673_v54 = vpop.f32.mrf.mxu1  ;;  %v14729_v17 = vpop.f32.mrf.mxu0  ;;  %14990 = vmatmul.mubr.msk.f32.gmra.mxu1 %vm258_vm1, %v9841_v23  ;;  %15046 = vmatmul.mubr.msk.f32.gmra.mxu0 %vm258_vm1, %v10263_v47  ;;  %v10269_v57 = vld [vmem:[%s15295_s22 + $0xf8] sm:$0xff] }
 0x36b   : > { %v18244_v50 = vadd.f32 %v8049_v21, %v7706_v45  ;;  %v7708_v52 = vadd.f32 %v14673_v54, %v18009_v37  ;;  %14992 = vmatprep.mubr.msk.f32.mxu1 %vm258_vm1, %v9842_v13  ;;  %15048 = vmatprep.mubr.msk.f32.mxu0 %vm258_vm1, %v10264_v11  ;;  %v9848_v47 = vld [vmem:[%s15295_s22 + $0x459] sm:$0xff] }
 0x36c   : > { %v7637_v34 = vpop.f32.mrf.mxu1  ;;  %v8059_v29 = vpop.f32.mrf.mxu0 }
 0x36d   : > { %v18253_v32 = vadd.f32 %v14729_v17, %v7708_v52  ;;  %v9849_v17 = vld [vmem:[%s15295_s22 + $0x461] sm:$0xff]  ;;  %v10272_v34 = vld [vmem:[%s15295_s22 + $0x110] sm:$0xff] }
 0x36e   : > { %v14676_v6 = vpop.f32.mrf.mxu1  ;;  %v14732_v56 = vpop.f32.mrf.mxu0  ;;  %14993 = vmatmul.mubr.msk.f32.gmra.mxu1 %vm258_vm1, %v9843_v2  ;;  %15049 = vmatmul.mubr.msk.f32.gmra.mxu0 %vm258_vm1, %v10265_v55  ;;  %v10271_v52 = vld [vmem:[%s15295_s22 + $0x108] sm:$0xff] }
 0x36f   : > { %v7710_v37 = vadd.f32 %v14676_v6, %v18020_v18  ;;  %14995 = vmatprep.mubr.msk.f32.mxu1 %vm258_vm1, %v9844_v51  ;;  %15051 = vmatprep.mubr.msk.f32.mxu0 %vm258_vm1, %v10266_v0  ;;  %v9850_v55 = vld [vmem:[%s15295_s22 + $0x469] sm:$0xff] }
 0x370   : > { %v7646_v9 = vpop.f32.mrf.mxu1  ;;  %v8068_v7 = vpop.f32.mrf.mxu0 }
 0x371   : > { %v18264_v36 = vadd.f32 %v14732_v56, %v7710_v37  ;;  %v7709_v58 = vadd.f32 %v7646_v9, %v18025_v26  ;;  %v9851_v56 = vld [vmem:[%s15295_s22 + $0x471] sm:$0xff]  ;;  %v10274_v9 = vld [vmem:[%s15295_s22 + $0x120] sm:$0xff] }
 0x372   : > { %v14679_v19 = vpop.f32.mrf.mxu1  ;;  %v14735_v18 = vpop.f32.mrf.mxu0  ;;  %14996 = vmatmul.mubr.msk.f32.gmra.mxu1 %vm258_vm1, %v9845_v41  ;;  %15052 = vmatmul.mubr.msk.f32.gmra.mxu0 %vm258_vm1, %v10267_v49  ;;  %v10273_v37 = vld [vmem:[%s15295_s22 + $0x118] sm:$0xff] }
 0x373   : > { %v18269_v35 = vadd.f32 %v8068_v7, %v7709_v58  ;;  %v7712_v12 = vadd.f32 %v14679_v19, %v18034_v63  ;;  %14998 = vmatprep.mubr.msk.f32.mxu1 %vm258_vm1, %v9846_v1  ;;  %15054 = vmatprep.mubr.msk.f32.mxu0 %vm258_vm1, %v10268_v8 }
 0x374   : > { %v7656_v23 = vpop.f32.mrf.mxu1  ;;  %v8078_v26 = vpop.f32.mrf.mxu0 }
 0x375   : > { %v18278_v21 = vadd.f32 %v14735_v18, %v7712_v12  ;;  %v7711_v13 = vadd.f32 %v7656_v23, %v18039_v16  ;;  %v9853_v18 = vld [vmem:[%s15295_s22 + $0x481] sm:$0xff]  ;;  %v10276_v23 = vld [vmem:[%s15295_s22 + $0x130] sm:$0xff] }
 0x376   : > { %v14682_v11 = vpop.f32.mrf.mxu1  ;;  %v14738_v63 = vpop.f32.mrf.mxu0  ;;  %14999 = vmatmul.mubr.msk.f32.gmra.mxu1 %vm258_vm1, %v9847_v5  ;;  %15055 = vmatmul.mubr.msk.f32.gmra.mxu0 %vm258_vm1, %v10269_v57  ;;  %v10275_v12 = vld [vmem:[%s15295_s22 + $0x128] sm:$0xff] }
 0x377   : > { %v18283_v45 = vadd.f32 %v8078_v26, %v7711_v13  ;;  %v7714_v54 = vadd.f32 %v14682_v11, %v18048_v27  ;;  %15001 = vmatprep.mubr.msk.f32.mxu1 %vm258_vm1, %v9848_v47  ;;  %15057 = vmatprep.mubr.msk.f32.mxu0 %vm258_vm1, %v10270_v62  ;;  %v9854_v57 = vld [vmem:[%s15295_s22 + $0x489] sm:$0xff] }
 0x378   : > { %v7666_v2 = vpop.f32.mrf.mxu1  ;;  %v8088_v16 = vpop.f32.mrf.mxu0 }
 0x379   : > { %v18292_v29 = vadd.f32 %v14738_v63, %v7714_v54  ;;  %v7713_v51 = vadd.f32 %v7666_v2, %v18053_v28  ;;  %v9852_v28 = vld [vmem:[%s15295_s22 + $0x479] sm:$0xff]  ;;  %v9855_v63 = vld [vmem:[%s15295_s22 + $0x491] sm:$0xff] }
 0x37a   : > { %v14685_v0 = vpop.f32.mrf.mxu1  ;;  %v14741_v27 = vpop.f32.mrf.mxu0  ;;  %15002 = vmatmul.mubr.msk.f32.gmra.mxu1 %vm258_vm1, %v9849_v17  ;;  %15058 = vmatmul.mubr.msk.f32.gmra.mxu0 %vm258_vm1, %v10271_v52  ;;  %v10277_v54 = vld [vmem:[%s15295_s22 + $0x138] sm:$0xff]  ;;  %v10278_v2 = vld [vmem:[%s15295_s22 + $0x140] sm:$0xff] }
 0x37b   : > { %v18297_v6 = vadd.f32 %v8088_v16, %v7713_v51  ;;  %15004 = vmatprep.mubr.msk.f32.mxu1 %vm258_vm1, %v9850_v55  ;;  %15060 = vmatprep.mubr.msk.f32.mxu0 %vm258_vm1, %v10272_v34  ;;  %v9856_v52 = vld [vmem:[%s15295_s22 + $0x499] sm:$0xff]  ;;  %v9857_v27 = vld [vmem:[%s15295_s22 + $0x4a1] sm:$0xff] }
 0x37c   : > { %v7676_v41 = vpop.f32.mrf.mxu1  ;;  %v8098_v49 = vpop.f32.mrf.mxu0 }
 0x37d   : > { %v7715_v7 = vadd.f32 %v7676_v41, %v18064_v43  ;;  %v9858_v41 = vld [vmem:[%s15295_s22 + $0x4a9] sm:$0xff] }
 0x37e   : > { %v14746_v1 = vpop.f32.mrf.mxu1  ;;  %v14802_v8 = vpop.f32.mrf.mxu0  ;;  %15005 = vmatmul.mubr.msk.f32.gmra.mxu1 %vm258_vm1, %v9851_v56  ;;  %15061 = vmatmul.mubr.msk.f32.gmra.mxu0 %vm258_vm1, %v10273_v37  ;;  %v10279_v56 = vld [vmem:[%s15295_s22 + $0x148] sm:$0xff] }
 0x37f   : > { %v18308_v58 = vadd.f32 %v8098_v49, %v7715_v7  ;;  %v8529_v19 = vadd.f32 %v14746_v1, %v18073_v20  ;;  %15007 = vmatprep.mubr.msk.f32.mxu1 %vm258_vm1, %v9852_v28  ;;  %15063 = vmatprep.mubr.msk.f32.mxu0 %vm258_vm1, %v10274_v9  ;;  %v10280_v49 = vld [vmem:[%s15295_s22 + $0x150] sm:$0xff] }
 0x380   : > { %v8353_v5 = vpop.f32.mrf.mxu1  ;;  %v8775_v43 = vpop.f32.mrf.mxu0 }
 0x381   : > { %v18317_v26 = vadd.f32 %v14802_v8, %v8529_v19  ;;  %v8528_v47 = vadd.f32 %v8353_v5, %v18078_v25  ;;  %v9859_v19 = vld [vmem:[%s15295_s22 + $0x4b1] sm:$0xff]  ;;  %v9860_v5 = vld [vmem:[%s15295_s22 + $0x4b9] sm:$0xff] }
 0x382   : > { %v14749_v62 = vpop.f32.mrf.mxu1  ;;  %v14805_v20 = vpop.f32.mrf.mxu0  ;;  %15008 = vmatmul.mubr.msk.f32.gmra.mxu1 %vm258_vm1, %v9853_v18  ;;  %15064 = vmatmul.mubr.msk.f32.gmra.mxu0 %vm258_vm1, %v10275_v12  ;;  %v10281_v18 = vld [vmem:[%s15295_s22 + $0x158] sm:$0xff] }
 0x383   : > { %v18322_v13 = vadd.f32 %v8775_v43, %v8528_v47  ;;  %v8531_v11 = vadd.f32 %v14749_v62, %v18087_v4  ;;  %15010 = vmatprep.mubr.msk.f32.mxu1 %vm258_vm1, %v9854_v57  ;;  %15066 = vmatprep.mubr.msk.f32.mxu0 %vm258_vm1, %v10276_v23  ;;  %v10282_v43 = vld [vmem:[%s15295_s22 + $0x160] sm:$0xff] }
 0x384   : > { %v8363_v17 = vpop.f32.mrf.mxu1  ;;  %v8785_v25 = vpop.f32.mrf.mxu0 }
 0x385   : > { %v18331_v16 = vadd.f32 %v14805_v20, %v8531_v11  ;;  %v8530_v55 = vadd.f32 %v8363_v17, %v18092_v39  ;;  %v9861_v11 = vld [vmem:[%s15295_s22 + $0x4c1] sm:$0xff] }
 0x386   : > { %v14752_v34 = vpop.f32.mrf.mxu1  ;;  %v14808_v4 = vpop.f32.mrf.mxu0  ;;  %15011 = vmatmul.mubr.msk.f32.gmra.mxu1 %vm258_vm1, %v9855_v63  ;;  %15067 = vmatmul.mubr.msk.f32.gmra.mxu0 %vm258_vm1, %v10277_v54  ;;  %v10283_v63 = vld [vmem:[%s15295_s22 + $0x168] sm:$0xff]  ;;  %v10670_v17 = vld [vmem:[%s15295_s22 + $0x200] sm:$0xff] }
 0x387   : > { %v18336_v51 = vadd.f32 %v8785_v25, %v8530_v55  ;;  %v8533_v0 = vadd.f32 %v14752_v34, %v18101_v38  ;;  %15013 = vmatprep.mubr.msk.f32.mxu1 %vm258_vm1, %v9856_v52  ;;  %15069 = vmatprep.mubr.msk.f32.mxu0 %vm258_vm1, %v10278_v2  ;;  %v11092_v25 = vld [vmem:[%s15295_s22 + $0x51] sm:$0xff]  ;;  %v10671_v34 = vld [vmem:[%s15295_s22 + $0x208] sm:$0xff] }
 0x388   : > { %v8373_v37 = vpop.f32.mrf.mxu1  ;;  %v8795_v39 = vpop.f32.mrf.mxu0 }
 0x389   : > { %v18345_v28 = vadd.f32 %v14808_v4, %v8533_v0  ;;  %v8532_v9 = vadd.f32 %v8373_v37, %v18106_v15  ;;  %v11093_v4 = vld [vmem:[%s15295_s22 + $0x59] sm:$0xff]  ;;  %v11094_v37 = vld [vmem:[%s15295_s22 + $0x61] sm:$0xff] }
 0x38a   : > { %v14755_v7 = vpop.f32.mrf.mxu1  ;;  %v14811_v38 = vpop.f32.mrf.mxu0  ;;  %15014 = vmatmul.mubr.msk.f32.gmra.mxu1 %vm258_vm1, %v9857_v27  ;;  %15070 = vmatmul.mubr.msk.f32.gmra.mxu0 %vm258_vm1, %v10279_v56  ;;  %v10672_v56 = vld [vmem:[%s15295_s22 + $0x210] sm:$0xff] }
 0x38b   : > { %v18350_v1 = vadd.f32 %v8795_v39, %v8532_v9  ;;  %v8535_v8 = vadd.f32 %v14755_v7, %v18115_v22  ;;  %15016 = vmatprep.mubr.msk.f32.mxu1 %vm258_vm1, %v9858_v41  ;;  %15072 = vmatprep.mubr.msk.f32.mxu0 %vm258_vm1, %v10280_v49 }
 0x38c   : > { %v8383_v12 = vpop.f32.mrf.mxu1  ;;  %v8805_v15 = vpop.f32.mrf.mxu0 }
 0x38d   : > { %v18359_v57 = vadd.f32 %v14811_v38, %v8535_v8  ;;  %v8534_v23 = vadd.f32 %v8383_v12, %v18120_v30  ;;  %v10673_v38 = vld [vmem:[%s15295_s22 + $0x218] sm:$0xff]  ;;  %v11095_v8 = vld [vmem:[%s15295_s22 + $0x69] sm:$0xff] }
 0x38e   : > { %v14758_v47 = vpop.f32.mrf.mxu1  ;;  %v14814_v22 = vpop.f32.mrf.mxu0  ;;  %15017 = vmatmul.mubr.msk.f32.gmra.mxu1 %vm258_vm1, %v9859_v19  ;;  %15073 = vmatmul.mubr.msk.f32.gmra.mxu0 %vm258_vm1, %v10281_v18  ;;  %v10674_v18 = vld [vmem:[%s15295_s22 + $0x220] sm:$0xff]  ;;  %v11096_v12 = vld [vmem:[%s15295_s22 + $0x71] sm:$0xff] }
 0x38f   : > { %v18364_v62 = vadd.f32 %v8805_v15, %v8534_v23  ;;  %v8536_v20 = vadd.f32 %v14758_v47, %v18129_v14  ;;  %15019 = vmatprep.mubr.msk.f32.mxu1 %vm258_vm1, %v9860_v5  ;;  %15075 = vmatprep.mubr.msk.f32.mxu0 %vm258_vm1, %v10282_v43 }
 0x390   : > { %v8393_v54 = vpop.f32.mrf.mxu1  ;;  %v8815_v30 = vpop.f32.mrf.mxu0 }
 0x391   : > { %v18373_v52 = vadd.f32 %v14814_v22, %v8536_v20  ;;  %v10675_v22 = vld [vmem:[%s15295_s22 + $0x228] sm:$0xff]  ;;  %v11097_v20 = vld [vmem:[%s15295_s22 + $0x79] sm:$0xff] }
 0x392   : > { %v14761_v2 = vpop.f32.mrf.mxu1  ;;  %v14817_v55 = vpop.f32.mrf.mxu0  ;;  %15020 = vmatmul.mubr.msk.f32.gmra.mxu1 %vm258_vm1, %v9861_v11  ;;  %15076 = vmatmul.mubr.msk.f32.gmra.mxu0 %vm258_vm1, %v10283_v63  ;;  %v10676_v63 = vld [vmem:[%s15295_s22 + $0x230] sm:$0xff]  ;;  %v11098_v54 = vld [vmem:[%s15295_s22 + $0x81] sm:$0xff] }
 0x393   : > { %v8538_v14 = vadd.f32 %v14761_v2, %v18138_v42  ;;  %15080 = vmatprep.mubr.msk.f32.mxu1 %vm258_vm1, %v10670_v17  ;;  %15136 = vmatprep.mubr.msk.f32.mxu0 %vm258_vm1, %v11092_v25 }
 0x394   : > { %v8402_v0 = vpop.f32.mrf.mxu1  ;;  %v8824_v27 = vpop.f32.mrf.mxu0 }
 0x395   : > { %v18384_v39 = vadd.f32 %v14817_v55, %v8538_v14  ;;  %v8537_v41 = vadd.f32 %v8402_v0, %v18145_v31  ;;  %v10677_v55 = vld [vmem:[%s15295_s22 + $0x238] sm:$0xff]  ;;  %v11099_v14 = vld [vmem:[%s15295_s22 + $0x89] sm:$0xff] }
 0x396   : > { %v14764_v49 = vpop.f32.mrf.mxu1  ;;  %v14820_v42 = vpop.f32.mrf.mxu0  ;;  %15081 = vmatmul.mubr.msk.f32.vlgmr.msra.gmra.mxu1 %vm258_vm1, %v10671_v34  ;;  %15137 = vmatmul.mubr.msk.f32.vlgmr.msra.gmra.mxu0 %vm258_vm1, %v11093_v4  ;;  %v11100_v0 = vld [vmem:[%s15295_s22 + $0x91] sm:$0xff] }
 0x397   : > { %v18389_v9 = vadd.f32 %v8824_v27, %v8537_v41  ;;  %v8540_v7 = vadd.f32 %v14764_v49, %v18158_v10  ;;  %15083 = vmatprep.mubr.msk.f32.mxu1 %vm258_vm1, %v10672_v56  ;;  %15139 = vmatprep.mubr.msk.f32.mxu0 %vm258_vm1, %v11094_v37 }
 0x398   : > { %v8412_v19 = vpop.f32.mrf.mxu1  ;;  %v8834_v31 = vpop.f32.mrf.mxu0 }
 0x399   : > { %v18398_v15 = vadd.f32 %v14820_v42, %v8540_v7  ;;  %v8539_v5 = vadd.f32 %v8412_v19, %v18163_v44  ;;  %v10679_v42 = vld [vmem:[%s15295_s22 + $0x248] sm:$0xff]  ;;  %v11101_v7 = vld [vmem:[%s15295_s22 + $0x99] sm:$0xff] }
 0x39a   : > { %v14767_v43 = vpop.f32.mrf.mxu1  ;;  %v14823_v10 = vpop.f32.mrf.mxu0  ;;  %15084 = vmatmul.mubr.msk.f32.gmra.mxu1 %vm258_vm1, %v10673_v38  ;;  %15140 = vmatmul.mubr.msk.f32.gmra.mxu0 %vm258_vm1, %v11095_v8  ;;  %v10680_v8 = vld [vmem:[%s15295_s22 + $0x250] sm:$0xff]  ;;  %v11102_v19 = vld [vmem:[%s15295_s22 + $0xa1] sm:$0xff] }
 0x39b   : > { %v18403_v23 = vadd.f32 %v8834_v31, %v8539_v5  ;;  %v8542_v47 = vadd.f32 %v14767_v43, %v18172_v59  ;;  %15086 = vmatprep.mubr.msk.f32.mxu1 %vm258_vm1, %v10674_v18  ;;  %15142 = vmatprep.mubr.msk.f32.mxu0 %vm258_vm1, %v11096_v12 }
 0x39c   : > { %v8422_v11 = vpop.f32.mrf.mxu1  ;;  %v8844_v44 = vpop.f32.mrf.mxu0 }
 0x39d   : > { %v18412_v30 = vadd.f32 %v14823_v10, %v8542_v47  ;;  %v8541_v17 = vadd.f32 %v8422_v11, %v18177_v60  ;;  %v10678_v60 = vld [vmem:[%s15295_s22 + $0x240] sm:$0xff]  ;;  %v10681_v10 = vld [vmem:[%s15295_s22 + $0x258] sm:$0xff]  ;;  %v11103_v47 = vld [vmem:[%s15295_s22 + $0xa9] sm:$0xff] }
 0x39e   : > { %v14770_v25 = vpop.f32.mrf.mxu1  ;;  %v14826_v59 = vpop.f32.mrf.mxu0  ;;  %15087 = vmatmul.mubr.msk.f32.gmra.mxu1 %vm258_vm1, %v10675_v22  ;;  %15143 = vmatmul.mubr.msk.f32.gmra.mxu0 %vm258_vm1, %v11097_v20  ;;  %v10682_v20 = vld [vmem:[%s15295_s22 + $0x260] sm:$0xff]  ;;  %v11104_v11 = vld [vmem:[%s15295_s22 + $0xb1] sm:$0xff] }
 0x39f   : > { %v18417_v2 = vadd.f32 %v8844_v44, %v8541_v17  ;;  %15089 = vmatprep.mubr.msk.f32.mxu1 %vm258_vm1, %v10676_v63  ;;  %15145 = vmatprep.mubr.msk.f32.mxu0 %vm258_vm1, %v11098_v54  ;;  %v10683_v59 = vld [vmem:[%s15295_s22 + $0x268] sm:$0xff] }
 0x3a0   : > { %v8432_v34 = vpop.f32.mrf.mxu1  ;;  %v8854_v4 = vpop.f32.mrf.mxu0 }
 0x3a1   : > { %v8543_v27 = vadd.f32 %v8432_v34, %v18188_v61  ;;  %v10684_v34 = vld [vmem:[%s15295_s22 + $0x270] sm:$0xff] }
 0x3a2   : > { %v14773_v56 = vpop.f32.mrf.mxu1  ;;  %v14829_v37 = vpop.f32.mrf.mxu0  ;;  %15090 = vmatmul.mubr.msk.f32.gmra.mxu1 %vm258_vm1, %v10677_v55  ;;  %15146 = vmatmul.mubr.msk.f32.gmra.mxu0 %vm258_vm1, %v11099_v14  ;;  %v11105_v55 = vld [vmem:[%s15295_s22 + $0xb9] sm:$0xff] }
 0x3a3   : > { %v18428_v41 = vadd.f32 %v8854_v4, %v8543_v27  ;;  %v8545_v49 = vadd.f32 %v14773_v56, %v18197_v46  ;;  %15092 = vmatprep.mubr.msk.f32.mxu1 %vm258_vm1, %v10678_v60  ;;  %15148 = vmatprep.mubr.msk.f32.mxu0 %vm258_vm1, %v11100_v0  ;;  %v11106_v4 = vld [vmem:[%s15295_s22 + $0xc1] sm:$0xff] }
 0x3a4   : > { %v8441_v38 = vpop.f32.mrf.mxu1  ;;  %v8863_v61 = vpop.f32.mrf.mxu0 }
 0x3a5   : > { %v18437_v31 = vadd.f32 %v14829_v37, %v8545_v49  ;;  %v8544_v18 = vadd.f32 %v8441_v38, %v18202_v24  ;;  %v10685_v49 = vld [vmem:[%s15295_s22 + $0x278] sm:$0xff]  ;;  %v10686_v38 = vld [vmem:[%s15295_s22 + $0x280] sm:$0xff] }
 0x3a6   : > { %v14776_v12 = vpop.f32.mrf.mxu1  ;;  %v14832_v46 = vpop.f32.mrf.mxu0  ;;  %15093 = vmatmul.mubr.msk.f32.gmra.mxu1 %vm258_vm1, %v10679_v42  ;;  %15149 = vmatmul.mubr.msk.f32.gmra.mxu0 %vm258_vm1, %v11101_v7  ;;  %v11107_v42 = vld [vmem:[%s15295_s22 + $0xc9] sm:$0xff] }
 0x3a7   : > { %v18442_v5 = vadd.f32 %v8863_v61, %v8544_v18  ;;  %v8547_v43 = vadd.f32 %v14776_v12, %v18211_v53  ;;  %15095 = vmatprep.mubr.msk.f32.mxu1 %vm258_vm1, %v10680_v8  ;;  %15151 = vmatprep.mubr.msk.f32.mxu0 %vm258_vm1, %v11102_v19  ;;  %v11108_v61 = vld [vmem:[%s15295_s22 + $0xd1] sm:$0xff] }
 0x3a8   : > { %v8451_v22 = vpop.f32.mrf.mxu1  ;;  %v8873_v24 = vpop.f32.mrf.mxu0 }
 0x3a9   : > { %v18451_v44 = vadd.f32 %v14832_v46, %v8547_v43  ;;  %v8546_v63 = vadd.f32 %v8451_v22, %v18216_v33  ;;  %v10687_v43 = vld [vmem:[%s15295_s22 + $0x288] sm:$0xff]  ;;  %v10688_v22 = vld [vmem:[%s15295_s22 + $0x290] sm:$0xff] }
 0x3aa   : > { %v14779_v54 = vpop.f32.mrf.mxu1  ;;  %v14835_v53 = vpop.f32.mrf.mxu0  ;;  %15096 = vmatmul.mubr.msk.f32.gmra.mxu1 %vm258_vm1, %v10681_v10  ;;  %15152 = vmatmul.mubr.msk.f32.gmra.mxu0 %vm258_vm1, %v11103_v47  ;;  %v11109_v10 = vld [vmem:[%s15295_s22 + $0xd9] sm:$0xff] }
 0x3ab   : > { %v18456_v17 = vadd.f32 %v8873_v24, %v8546_v63  ;;  %v8549_v25 = vadd.f32 %v14779_v54, %v18225_v3  ;;  %15098 = vmatprep.mubr.msk.f32.mxu1 %vm258_vm1, %v10682_v20  ;;  %15154 = vmatprep.mubr.msk.f32.mxu0 %vm258_vm1, %v11104_v11  ;;  %v11110_v24 = vld [vmem:[%s15295_s22 + $0xe1] sm:$0xff]  ;;  %v10689_v54 = vld [vmem:[%s15295_s22 + $0x298] sm:$0xff] }
 0x3ac   : > { %v8461_v14 = vpop.f32.mrf.mxu1  ;;  %v8883_v33 = vpop.f32.mrf.mxu0 }
 0x3ad   : > { %v18465_v60 = vadd.f32 %v14835_v53, %v8549_v25  ;;  %v8548_v0 = vadd.f32 %v8461_v14, %v18230_v40  ;;  %v11111_v53 = vld [vmem:[%s15295_s22 + $0xe9] sm:$0xff]  ;;  %v11112_v14 = vld [vmem:[%s15295_s22 + $0xf1] sm:$0xff] }
 0x3ae   : > { %v14782_v27 = vpop.f32.mrf.mxu1  ;;  %v14838_v3 = vpop.f32.mrf.mxu0  ;;  %15099 = vmatmul.mubr.msk.f32.gmra.mxu1 %vm258_vm1, %v10683_v59  ;;  %15155 = vmatmul.mubr.msk.f32.gmra.mxu0 %vm258_vm1, %v11105_v55  ;;  %v10690_v55 = vld [vmem:[%s15295_s22 + $0x2a0] sm:$0xff] }
 0x3af   : > { %v18470_v56 = vadd.f32 %v8883_v33, %v8548_v0  ;;  %v8551_v37 = vadd.f32 %v14782_v27, %v18239_v48  ;;  %15101 = vmatprep.mubr.msk.f32.mxu1 %vm258_vm1, %v10684_v34  ;;  %15157 = vmatprep.mubr.msk.f32.mxu0 %vm258_vm1, %v11106_v4 }
 0x3b0   : > { %v8471_v7 = vpop.f32.mrf.mxu1  ;;  %v8893_v40 = vpop.f32.mrf.mxu0 }
 0x3b1   : > { %v18479_v8 = vadd.f32 %v14838_v3, %v8551_v37  ;;  %v8550_v19 = vadd.f32 %v8471_v7, %v18244_v50  ;;  %v10691_v3 = vld [vmem:[%s15295_s22 + $0x2a8] sm:$0xff]  ;;  %v11113_v37 = vld [vmem:[%s15295_s22 + $0xf9] sm:$0xff] }
 0x3b2   : > { %v14785_v18 = vpop.f32.mrf.mxu1  ;;  %v14841_v48 = vpop.f32.mrf.mxu0  ;;  %15102 = vmatmul.mubr.msk.f32.gmra.mxu1 %vm258_vm1, %v10685_v49  ;;  %15158 = vmatmul.mubr.msk.f32.gmra.mxu0 %vm258_vm1, %v11107_v42  ;;  %v10692_v42 = vld [vmem:[%s15295_s22 + $0x2b0] sm:$0xff]  ;;  %v11114_v7 = vld [vmem:[%s15295_s22 + $0x101] sm:$0xff] }
 0x3b3   : > { %v18484_v12 = vadd.f32 %v8893_v40, %v8550_v19  ;;  %v8552_v46 = vadd.f32 %v14785_v18, %v18253_v32  ;;  %15104 = vmatprep.mubr.msk.f32.mxu1 %vm258_vm1, %v10686_v38  ;;  %15160 = vmatprep.mubr.msk.f32.mxu0 %vm258_vm1, %v11108_v61 }
 0x3b4   : > { %v8481_v47 = vpop.f32.mrf.mxu1  ;;  %v8903_v50 = vpop.f32.mrf.mxu0 }
 0x3b5   : > { %v18493_v20 = vadd.f32 %v14841_v48, %v8552_v46  ;;  %v10693_v48 = vld [vmem:[%s15295_s22 + $0x2b8] sm:$0xff]  ;;  %v11115_v46 = vld [vmem:[%s15295_s22 + $0x109] sm:$0xff] }
 0x3b6   : > { %v14788_v11 = vpop.f32.mrf.mxu1  ;;  %v14844_v63 = vpop.f32.mrf.mxu0  ;;  %15105 = vmatmul.mubr.msk.f32.gmra.mxu1 %vm258_vm1, %v10687_v43  ;;  %15161 = vmatmul.mubr.msk.f32.gmra.mxu0 %vm258_vm1, %v11109_v10  ;;  %v10694_v10 = vld [vmem:[%s15295_s22 + $0x2c0] sm:$0xff]  ;;  %v11116_v47 = vld [vmem:[%s15295_s22 + $0x111] sm:$0xff] }
 0x3b7   : > { %v8554_v32 = vadd.f32 %v14788_v11, %v18264_v36  ;;  %15107 = vmatprep.mubr.msk.f32.mxu1 %vm258_vm1, %v10688_v22  ;;  %15163 = vmatprep.mubr.msk.f32.mxu0 %vm258_vm1, %v11110_v24 }
 0x3b8   : > { %v8490_v25 = vpop.f32.mrf.mxu1  ;;  %v8912_v59 = vpop.f32.mrf.mxu0 }
 0x3b9   : > { %v18504_v33 = vadd.f32 %v14844_v63, %v8554_v32  ;;  %v8553_v34 = vadd.f32 %v8490_v25, %v18269_v35  ;;  %v10695_v63 = vld [vmem:[%s15295_s22 + $0x2c8] sm:$0xff]  ;;  %v11117_v32 = vld [vmem:[%s15295_s22 + $0x119] sm:$0xff] }
 0x3ba   : > { %v14791_v4 = vpop.f32.mrf.mxu1  ;;  %v14847_v36 = vpop.f32.mrf.mxu0  ;;  %15108 = vmatmul.mubr.msk.f32.gmra.mxu1 %vm258_vm1, %v10689_v54  ;;  %15164 = vmatmul.mubr.msk.f32.gmra.mxu0 %vm258_vm1, %v11111_v53  ;;  %v11118_v25 = vld [vmem:[%s15295_s22 + $0x121] sm:$0xff] }
 0x3bb   : > { %v18509_v0 = vadd.f32 %v8912_v59, %v8553_v34  ;;  %v8556_v27 = vadd.f32 %v14791_v4, %v18278_v21  ;;  %15110 = vmatprep.mubr.msk.f32.mxu1 %vm258_vm1, %v10690_v55  ;;  %15166 = vmatprep.mubr.msk.f32.mxu0 %vm258_vm1, %v11112_v14 }
 0x3bc   : > { %v8500_v49 = vpop.f32.mrf.mxu1  ;;  %v8922_v35 = vpop.f32.mrf.mxu0 }
 0x3bd   : > { %v18518_v40 = vadd.f32 %v14847_v36, %v8556_v27  ;;  %v8555_v38 = vadd.f32 %v8500_v49, %v18283_v45  ;;  %v10697_v36 = vld [vmem:[%s15295_s22 + $0x2d8] sm:$0xff]  ;;  %v11119_v27 = vld [vmem:[%s15295_s22 + $0x129] sm:$0xff] }
 0x3be   : > { %v14794_v61 = vpop.f32.mrf.mxu1  ;;  %v14850_v21 = vpop.f32.mrf.mxu0  ;;  %15111 = vmatmul.mubr.msk.f32.gmra.mxu1 %vm258_vm1, %v10691_v3  ;;  %15167 = vmatmul.mubr.msk.f32.gmra.mxu0 %vm258_vm1, %v11113_v37  ;;  %v10698_v37 = vld [vmem:[%s15295_s22 + $0x2e0] sm:$0xff]  ;;  %v11120_v49 = vld [vmem:[%s15295_s22 + $0x131] sm:$0xff] }
 0x3bf   : > { %v18523_v19 = vadd.f32 %v8922_v35, %v8555_v38  ;;  %v8558_v18 = vadd.f32 %v14794_v61, %v18292_v29  ;;  %15113 = vmatprep.mubr.msk.f32.mxu1 %vm258_vm1, %v10692_v42  ;;  %15169 = vmatprep.mubr.msk.f32.mxu0 %vm258_vm1, %v11114_v7 }
 0x3c0   : > { %v8510_v43 = vpop.f32.mrf.mxu1  ;;  %v8932_v45 = vpop.f32.mrf.mxu0 }
 0x3c1   : > { %v18532_v50 = vadd.f32 %v14850_v21, %v8558_v18  ;;  %v8557_v22 = vadd.f32 %v8510_v43, %v18297_v6  ;;  %v10696_v6 = vld [vmem:[%s15295_s22 + $0x2d0] sm:$0xff]  ;;  %v10699_v21 = vld [vmem:[%s15295_s22 + $0x2e8] sm:$0xff]  ;;  %v11121_v18 = vld [vmem:[%s15295_s22 + $0x139] sm:$0xff] }
 0x3c2   : > { %v14797_v24 = vpop.f32.mrf.mxu1  ;;  %v14853_v29 = vpop.f32.mrf.mxu0  ;;  %15114 = vmatmul.mubr.msk.f32.gmra.mxu1 %vm258_vm1, %v10693_v48  ;;  %15170 = vmatmul.mubr.msk.f32.gmra.mxu0 %vm258_vm1, %v11115_v46  ;;  %v10700_v46 = vld [vmem:[%s15295_s22 + $0x2f0] sm:$0xff]  ;;  %v11122_v43 = vld [vmem:[%s15295_s22 + $0x141] sm:$0xff] }
 0x3c3   : > { %v18537_v11 = vadd.f32 %v8932_v45, %v8557_v22  ;;  %15116 = vmatprep.mubr.msk.f32.mxu1 %vm258_vm1, %v10694_v10  ;;  %15172 = vmatprep.mubr.msk.f32.mxu0 %vm258_vm1, %v11116_v47  ;;  %v10701_v29 = vld [vmem:[%s15295_s22 + $0x2f8] sm:$0xff] }
 0x3c4   : > { %v8520_v54 = vpop.f32.mrf.mxu1  ;;  %v8942_v53 = vpop.f32.mrf.mxu0 }
 0x3c5   : > { %v8559_v59 = vadd.f32 %v8520_v54, %v18308_v58  ;;  %v10702_v54 = vld [vmem:[%s15295_s22 + $0x300] sm:$0xff] }
 0x3c6   : > { %v14858_v55 = vpop.f32.mrf.mxu1  ;;  %v14914_v14 = vpop.f32.mrf.mxu0  ;;  %15117 = vmatmul.mubr.msk.f32.gmra.mxu1 %vm258_vm1, %v10695_v63  ;;  %15173 = vmatmul.mubr.msk.f32.gmra.mxu0 %vm258_vm1, %v11117_v32  ;;  %v11123_v63 = vld [vmem:[%s15295_s22 + $0x149] sm:$0xff] }
 0x3c7   : > { %v18548_v34 = vadd.f32 %v8942_v53, %v8559_v59  ;;  %v9373_v4 = vadd.f32 %v14858_v55, %v18317_v26  ;;  %15119 = vmatprep.mubr.msk.f32.mxu1 %vm258_vm1, %v10696_v6  ;;  %15175 = vmatprep.mubr.msk.f32.mxu0 %vm258_vm1, %v11118_v25  ;;  %v11124_v53 = vld [vmem:[%s15295_s22 + $0x151] sm:$0xff] }
 0x3c8   : > { %v9197_v3 = vpop.f32.mrf.mxu1  ;;  %v9619_v58 = vpop.f32.mrf.mxu0 }
 0x3c9   : > { %v18557_v35 = vadd.f32 %v14914_v14, %v9373_v4  ;;  %v9372_v42 = vadd.f32 %v9197_v3, %v18322_v13  ;;  %v10703_v4 = vld [vmem:[%s15295_s22 + $0x308] sm:$0xff]  ;;  %v10704_v3 = vld [vmem:[%s15295_s22 + $0x310] sm:$0xff] }
 0x3ca   : > { %v14861_v7 = vpop.f32.mrf.mxu1  ;;  %v14917_v26 = vpop.f32.mrf.mxu0  ;;  %15120 = vmatmul.mubr.msk.f32.gmra.mxu1 %vm258_vm1, %v10697_v36  ;;  %15176 = vmatmul.mubr.msk.f32.gmra.mxu0 %vm258_vm1, %v11119_v27  ;;  %v11125_v36 = vld [vmem:[%s15295_s22 + $0x159] sm:$0xff] }
 0x3cb   : > { %v18562_v38 = vadd.f32 %v9619_v58, %v9372_v42  ;;  %v9375_v61 = vadd.f32 %v14861_v7, %v18331_v16  ;;  %15122 = vmatprep.mubr.msk.f32.mxu1 %vm258_vm1, %v10698_v37  ;;  %15178 = vmatprep.mubr.msk.f32.mxu0 %vm258_vm1, %v11120_v49  ;;  %v11126_v58 = vld [vmem:[%s15295_s22 + $0x161] sm:$0xff] }
 0x3cc   : > { %v9207_v48 = vpop.f32.mrf.mxu1  ;;  %v9629_v13 = vpop.f32.mrf.mxu0 }
 0x3cd   : > { %v18571_v45 = vadd.f32 %v14917_v26, %v9375_v61  ;;  %v9374_v10 = vadd.f32 %v9207_v48, %v18336_v51  ;;  %v10705_v61 = vld [vmem:[%s15295_s22 + $0x318] sm:$0xff] }
 0x3ce   : > { %v14864_v47 = vpop.f32.mrf.mxu1  ;;  %v14920_v16 = vpop.f32.mrf.mxu0  ;;  %15123 = vmatmul.mubr.msk.f32.gmra.mxu1 %vm258_vm1, %v10699_v21  ;;  %15179 = vmatmul.mubr.msk.f32.gmra.mxu0 %vm258_vm1, %v11121_v18  ;;  %v11127_v21 = vld [vmem:[%s15295_s22 + $0x169] sm:$0xff]  ;;  %s12678_s22 = sshll.u32 %s18899_s9, 8 }
 0x3cf   : > { %v18576_v22 = vadd.f32 %v9629_v13, %v9374_v10  ;;  %v9377_v24 = vadd.f32 %v14864_v47, %v18345_v28  ;;  %15125 = vmatprep.mubr.msk.f32.mxu1 %vm258_vm1, %v10700_v46  ;;  %15181 = vmatprep.mubr.msk.f32.mxu0 %vm258_vm1, %v11122_v43  ;;  %s18785_s27 = scalar_lea.vmem %s18893_s2, %s12678_s22 }
 0x3d0   : > { %v9217_v32 = vpop.f32.mrf.mxu1  ;;  %v9639_v51 = vpop.f32.mrf.mxu0 }
 0x3d1   : > { %v18585_v6 = vadd.f32 %v14920_v16, %v9377_v24  ;;  %v9376_v25 = vadd.f32 %v9217_v32, %v18350_v1 }
 0x3d2   : > { %v14867_v59 = vpop.f32.mrf.mxu1  ;;  %v14923_v28 = vpop.f32.mrf.mxu0  ;;  %15126 = vmatmul.mubr.msk.f32.gmra.mxu1 %vm258_vm1, %v10701_v29  ;;  %15182 = vmatmul.mubr.msk.f32.gmra.mxu0 %vm258_vm1, %v11123_v63 }
 0x3d3   : > { %v18590_v55 = vadd.f32 %v9639_v51, %v9376_v25  ;;  %v9379_v14 = vadd.f32 %v14867_v59, %v18359_v57  ;;  %15128 = vmatprep.mubr.msk.f32.mxu1 %vm258_vm1, %v10702_v54  ;;  %15184 = vmatprep.mubr.msk.f32.mxu0 %vm258_vm1, %v11124_v53 }
 0x3d4   : > { %v9227_v27 = vpop.f32.mrf.mxu1  ;;  %v9649_v1 = vpop.f32.mrf.mxu0 }
 0x3d5   : > { %v18599_v37 = vadd.f32 %v14923_v28, %v9379_v14  ;;  %v9378_v49 = vadd.f32 %v9227_v27, %v18364_v62 }
 0x3d6   : > { %v14870_v42 = vpop.f32.mrf.mxu1  ;;  %v14926_v7 = vpop.f32.mrf.mxu0  ;;  %15129 = vmatmul.mubr.msk.f32.gmra.mxu1 %vm258_vm1, %v10703_v4  ;;  %15185 = vmatmul.mubr.msk.f32.gmra.mxu0 %vm258_vm1, %v11125_v36 }
 0x3d7   : > { %v18604_v57 = vadd.f32 %v9649_v1, %v9378_v49  ;;  %v9380_v26 = vadd.f32 %v14870_v42, %v18373_v52  ;;  %15131 = vmatprep.mubr.msk.f32.mxu1 %vm258_vm1, %v10704_v3  ;;  %15187 = vmatprep.mubr.msk.f32.mxu0 %vm258_vm1, %v11126_v58 }
 0x3d8   : > { %v9237_v18 = vpop.f32.mrf.mxu1  ;;  %v9659_v48 = vpop.f32.mrf.mxu0 }
 0x3d9   : > { %v18611_v13 = vadd.f32 %v14926_v7, %v9380_v26 }
 0x3da   : > { %v14873_v62 = vpop.f32.mrf.mxu1  ;;  %v14929_v46 = vpop.f32.mrf.mxu0  ;;  %15132 = vmatmul.mubr.msk.f32.gmra.mxu1 %vm258_vm1, %v10705_v61  ;;  %15188 = vmatmul.mubr.msk.f32.gmra.mxu0 %vm258_vm1, %v11127_v21 }
 0x3db   : > { %v9382_v43 = vadd.f32 %v14873_v62, %v18384_v39 }
 0x3dc   : > { %v9246_v10 = vpop.f32.mrf.mxu1  ;;  %v9668_v52 = vpop.f32.mrf.mxu0 }
 0x3dd   : > { %v18616_v47 = vadd.f32 %v14929_v46, %v9382_v43  ;;  %v9381_v16 = vadd.f32 %v9246_v10, %v18389_v9 }
 0x3de   : > { %v14876_v24 = vpop.f32.mrf.mxu1  ;;  %v14932_v29 = vpop.f32.mrf.mxu0 }
 0x3df   : > { %v18619_v63 = vadd.f32 %v9668_v52, %v9381_v16  ;;  %v9384_v32 = vadd.f32 %v14876_v24, %v18398_v15 }
 0x3e0   : > { %v9256_v51 = vpop.f32.mrf.mxu1  ;;  %v9678_v54 = vpop.f32.mrf.mxu0 }
 0x3e1   : > { %v18622_v53 = vadd.f32 %v14932_v29, %v9384_v32  ;;  %v9383_v25 = vadd.f32 %v9256_v51, %v18403_v23 }
 0x3e2   : > { %v14879_v59 = vpop.f32.mrf.mxu1  ;;  %v14935_v39 = vpop.f32.mrf.mxu0 }
 0x3e3   : > { %v18625_v28 = vadd.f32 %v9678_v54, %v9383_v25  ;;  %v9386_v14 = vadd.f32 %v14879_v59, %v18412_v30 }
 0x3e4   : > { %v9266_v4 = vpop.f32.mrf.mxu1  ;;  %v9688_v9 = vpop.f32.mrf.mxu0 }
 0x3e5   : > { %v18628_v36 = vadd.f32 %v14935_v39, %v9386_v14  ;;  %v9385_v27 = vadd.f32 %v9266_v4, %v18417_v2 }
 0x3e6   : > { %v14882_v1 = vpop.f32.mrf.mxu1  ;;  %v14938_v15 = vpop.f32.mrf.mxu0 }
 0x3e7   : > { %v18631_v3 = vadd.f32 %v9688_v9, %v9385_v27 }
 0x3e8   : > { %v9276_v58 = vpop.f32.mrf.mxu1  ;;  %v9698_v49 = vpop.f32.mrf.mxu0 }
 0x3e9   : > { %v9387_v23 = vadd.f32 %v9276_v58, %v18428_v41 }
 0x3ea   : > { %v14885_v42 = vpop.f32.mrf.mxu1  ;;  %v14941_v7 = vpop.f32.mrf.mxu0 }
 0x3eb   : > { %v18634_v26 = vadd.f32 %v9698_v49, %v9387_v23  ;;  %v9389_v30 = vadd.f32 %v14885_v42, %v18437_v31 }
 0x3ec   : > { %v9285_v61 = vpop.f32.mrf.mxu1  ;;  %v9707_v21 = vpop.f32.mrf.mxu0 }
 0x3ed   : > { %v18637_v18 = vadd.f32 %v14941_v7, %v9389_v30  ;;  %v9388_v2 = vadd.f32 %v9285_v61, %v18442_v5 }
 0x3ee   : > { %v14888_v48 = vpop.f32.mrf.mxu1  ;;  %v14944_v62 = vpop.f32.mrf.mxu0 }
 0x3ef   : > { %v18640_v46 = vadd.f32 %v9707_v21, %v9388_v2  ;;  %v9391_v43 = vadd.f32 %v14888_v48, %v18451_v44 }
 0x3f0   : > { %v9295_v10 = vpop.f32.mrf.mxu1  ;;  %v9717_v41 = vpop.f32.mrf.mxu0 }
 0x3f1   : > { %v18643_v52 = vadd.f32 %v14944_v62, %v9391_v43  ;;  %v9390_v16 = vadd.f32 %v9295_v10, %v18456_v17 }
 0x3f2   : > { %v14891_v24 = vpop.f32.mrf.mxu1  ;;  %v14947_v31 = vpop.f32.mrf.mxu0 }
 0x3f3   : > { %v18646_v29 = vadd.f32 %v9717_v41, %v9390_v16  ;;  %v9393_v32 = vadd.f32 %v14891_v24, %v18465_v60 }
 0x3f4   : > { %v9305_v51 = vpop.f32.mrf.mxu1  ;;  %v9727_v5 = vpop.f32.mrf.mxu0 }
 0x3f5   : > { %v18649_v54 = vadd.f32 %v14947_v31, %v9393_v32  ;;  %v9392_v25 = vadd.f32 %v9305_v51, %v18470_v56 }
 0x3f6   : > { %v14894_v59 = vpop.f32.mrf.mxu1  ;;  %v14950_v44 = vpop.f32.mrf.mxu0 }
 0x3f7   : > { %v18652_v39 = vadd.f32 %v9727_v5, %v9392_v25  ;;  %v9395_v14 = vadd.f32 %v14894_v59, %v18479_v8 }
 0x3f8   : > { %v9315_v4 = vpop.f32.mrf.mxu1  ;;  %v9737_v17 = vpop.f32.mrf.mxu0 }
 0x3f9   : > { %v18655_v9 = vadd.f32 %v14950_v44, %v9395_v14  ;;  %v9394_v27 = vadd.f32 %v9315_v4, %v18484_v12 }
 0x3fa   : > { %v14897_v1 = vpop.f32.mrf.mxu1  ;;  %v14953_v60 = vpop.f32.mrf.mxu0 }
 0x3fb   : > { %v18658_v15 = vadd.f32 %v9737_v17, %v9394_v27  ;;  %v9396_v58 = vadd.f32 %v14897_v1, %v18493_v20 }
 0x3fc   : > { %v9325_v49 = vpop.f32.mrf.mxu1  ;;  %v9747_v56 = vpop.f32.mrf.mxu0 }
 0x3fd   : > { %v18661_v23 = vadd.f32 %v14953_v60, %v9396_v58 }
 0x3fe   : > { %v14900_v42 = vpop.f32.mrf.mxu1  ;;  %v14956_v7 = vpop.f32.mrf.mxu0 }
 0x3ff   : > { %v9398_v8 = vadd.f32 %v14900_v42, %v18504_v33 }
 0x400   : > { %v9334_v30 = vpop.f32.mrf.mxu1  ;;  %v9756_v61 = vpop.f32.mrf.mxu0 }
 0x401   : > { %v18664_v21 = vadd.f32 %v14956_v7, %v9398_v8  ;;  %v9397_v12 = vadd.f32 %v9334_v30, %v18509_v0 }
 0x402   : > { %v14903_v2 = vpop.f32.mrf.mxu1  ;;  %v14959_v48 = vpop.f32.mrf.mxu0 }
 0x403   : > { %v18667_v62 = vadd.f32 %v9756_v61, %v9397_v12  ;;  %v9400_v20 = vadd.f32 %v14903_v2, %v18518_v40 }
 0x404   : > { %v9344_v43 = vpop.f32.mrf.mxu1  ;;  %v9766_v10 = vpop.f32.mrf.mxu0 }
 0x405   : > { %v18670_v41 = vadd.f32 %v14959_v48, %v9400_v20  ;;  %v9399_v16 = vadd.f32 %v9344_v43, %v18523_v19 }
 0x406   : > { %v14906_v24 = vpop.f32.mrf.mxu1  ;;  %v14962_v33 = vpop.f32.mrf.mxu0 }
 0x407   : > { %v18673_v31 = vadd.f32 %v9766_v10, %v9399_v16  ;;  %v9402_v32 = vadd.f32 %v14906_v24, %v18532_v50 }
 0x408   : > { %v9354_v51 = vpop.f32.mrf.mxu1  ;;  %v9776_v0 = vpop.f32.mrf.mxu0 }
 0x409   : > { %v18676_v5 = vadd.f32 %v14962_v33, %v9402_v32  ;;  %v9401_v25 = vadd.f32 %v9354_v51, %v18537_v11 }
 0x40a   : > { %v14909_v59 = vpop.f32.mrf.mxu1  ;;  %v14965_v40 = vpop.f32.mrf.mxu0 }
 0x40b   : > { %v18679_v44 = vadd.f32 %v9776_v0, %v9401_v25 }
 0x40c   : > { %v9364_v14 = vpop.f32.mrf.mxu1  ;;  %v9786_v4 = vpop.f32.mrf.mxu0 }
 0x40d   : > { %v9403_v19 = vadd.f32 %v9364_v14, %v18548_v34 }
 0x40e   : > { %v14970_v17 = vpop.f32.mrf.mxu1  ;;  %v15026_v27 = vpop.f32.mrf.mxu0 }
 0x40f   : > { %v18682_v1 = vadd.f32 %v9786_v4, %v9403_v19  ;;  %v10217_v50 = vadd.f32 %v14970_v17, %v18557_v35 }
 0x410   : > { %v10041_v60 = vpop.f32.mrf.mxu1  ;;  %v10463_v58 = vpop.f32.mrf.mxu0 }
 0x411   : > { %v18685_v49 = vadd.f32 %v15026_v27, %v10217_v50  ;;  %v10216_v11 = vadd.f32 %v10041_v60, %v18562_v38 }
 0x412   : > { %v14973_v56 = vpop.f32.mrf.mxu1  ;;  %v15029_v42 = vpop.f32.mrf.mxu0 }
 0x413   : > { %v18688_v7 = vadd.f32 %v10463_v58, %v10216_v11  ;;  %v10219_v8 = vadd.f32 %v14973_v56, %v18571_v45 }
 0x414   : > { %v10051_v30 = vpop.f32.mrf.mxu1  ;;  %v10473_v34 = vpop.f32.mrf.mxu0 }
 0x415   : > { %v18691_v61 = vadd.f32 %v15029_v42, %v10219_v8  ;;  %v10218_v12 = vadd.f32 %v10051_v30, %v18576_v22 }
 0x416   : > { %v14976_v2 = vpop.f32.mrf.mxu1  ;;  %v15032_v35 = vpop.f32.mrf.mxu0 }
 0x417   : > { %v18694_v48 = vadd.f32 %v10473_v34, %v10218_v12  ;;  %v10221_v20 = vadd.f32 %v14976_v2, %v18585_v6 }
 0x418   : > { %v10061_v43 = vpop.f32.mrf.mxu1  ;;  %v10483_v38 = vpop.f32.mrf.mxu0 }
 0x419   : > { %v18697_v10 = vadd.f32 %v15032_v35, %v10221_v20  ;;  %v10220_v16 = vadd.f32 %v10061_v43, %v18590_v55 }
 0x41a   : > { %v14979_v24 = vpop.f32.mrf.mxu1  ;;  %v15035_v45 = vpop.f32.mrf.mxu0 }
 0x41b   : > { %v18700_v33 = vadd.f32 %v10483_v38, %v10220_v16  ;;  %v10223_v32 = vadd.f32 %v14979_v24, %v18599_v37 }
 0x41c   : > { %v10071_v51 = vpop.f32.mrf.mxu1  ;;  %v10493_v22 = vpop.f32.mrf.mxu0 }
 0x41d   : > { %v18703_v0 = vadd.f32 %v15035_v45, %v10223_v32  ;;  %v10222_v25 = vadd.f32 %v10071_v51, %v18604_v57 }
 0x41e   : > { %v14982_v59 = vpop.f32.mrf.mxu1  ;;  %v15038_v6 = vpop.f32.mrf.mxu0 }
 0x41f   : > { %v18706_v40 = vadd.f32 %v10493_v22, %v10222_v25  ;;  %v10224_v14 = vadd.f32 %v14982_v59, %v18611_v13 }
 0x420   : > { %v10081_v4 = vpop.f32.mrf.mxu1  ;;  %v10503_v55 = vpop.f32.mrf.mxu0 }
 0x421   : > { %v18709_v19 = vadd.f32 %v15038_v6, %v10224_v14 }
 0x422   : > { %v14985_v17 = vpop.f32.mrf.mxu1  ;;  %v15041_v27 = vpop.f32.mrf.mxu0 }
 0x423   : > { %v10226_v37 = vadd.f32 %v14985_v17, %v18616_v47 }
 0x424   : > { %v10090_v50 = vpop.f32.mrf.mxu1  ;;  %v10512_v60 = vpop.f32.mrf.mxu0 }
 0x425   : > { %v18712_v58 = vadd.f32 %v15041_v27, %v10226_v37  ;;  %v10225_v57 = vadd.f32 %v10090_v50, %v18619_v63 }
 0x426   : > { %v14988_v11 = vpop.f32.mrf.mxu1  ;;  %v15044_v56 = vpop.f32.mrf.mxu0 }
 0x427   : > { %v18715_v42 = vadd.f32 %v10512_v60, %v10225_v57  ;;  %v10228_v13 = vadd.f32 %v14988_v11, %v18622_v53 }
 0x428   : > { %v10100_v8 = vpop.f32.mrf.mxu1  ;;  %v10522_v30 = vpop.f32.mrf.mxu0 }
 0x429   : > { %v18718_v34 = vadd.f32 %v15044_v56, %v10228_v13  ;;  %v10227_v12 = vadd.f32 %v10100_v8, %v18625_v28 }
 0x42a   : > { %v14991_v2 = vpop.f32.mrf.mxu1  ;;  %v15047_v47 = vpop.f32.mrf.mxu0 }
 0x42b   : > { %v18721_v35 = vadd.f32 %v10522_v30, %v10227_v12  ;;  %v10230_v20 = vadd.f32 %v14991_v2, %v18628_v36 }
 0x42c   : > { %v10110_v43 = vpop.f32.mrf.mxu1  ;;  %v10532_v63 = vpop.f32.mrf.mxu0 }
 0x42d   : > { %v18724_v38 = vadd.f32 %v15047_v47, %v10230_v20  ;;  %v10229_v16 = vadd.f32 %v10110_v43, %v18631_v3 }
 0x42e   : > { %v14994_v24 = vpop.f32.mrf.mxu1  ;;  %v15050_v53 = vpop.f32.mrf.mxu0 }
 0x42f   : > { %v18727_v45 = vadd.f32 %v10532_v63, %v10229_v16 }
 0x430   : > { %v10120_v32 = vpop.f32.mrf.mxu1  ;;  %v10542_v51 = vpop.f32.mrf.mxu0 }
 0x431   : > { %v10231_v28 = vadd.f32 %v10120_v32, %v18634_v26 }
 0x432   : > { %v14997_v22 = vpop.f32.mrf.mxu1  ;;  %v15053_v25 = vpop.f32.mrf.mxu0 }
 0x433   : > { %v18730_v59 = vadd.f32 %v10542_v51, %v10231_v28  ;;  %v10233_v36 = vadd.f32 %v14997_v22, %v18637_v18 }
 0x434   : > { %v10129_v6 = vpop.f32.mrf.mxu1  ;;  %v10551_v14 = vpop.f32.mrf.mxu0 }
 0x435   : > { %v18733_v4 = vadd.f32 %v15053_v25, %v10233_v36  ;;  %v10232_v3 = vadd.f32 %v10129_v6, %v18640_v46 }
 0x436   : > { %v15000_v55 = vpop.f32.mrf.mxu1  ;;  %v15056_v17 = vpop.f32.mrf.mxu0 }
 0x437   : > { %v18736_v27 = vadd.f32 %v10551_v14, %v10232_v3  ;;  %v10235_v37 = vadd.f32 %v15000_v55, %v18643_v52 }
 0x438   : > { %v10139_v50 = vpop.f32.mrf.mxu1  ;;  %v10561_v26 = vpop.f32.mrf.mxu0 }
 0x439   : > { %v18739_v60 = vadd.f32 %v15056_v17, %v10235_v37  ;;  %v10234_v57 = vadd.f32 %v10139_v50, %v18646_v29 }
 0x43a   : > { %v15003_v11 = vpop.f32.mrf.mxu1  ;;  %v15059_v18 = vpop.f32.mrf.mxu0 }
 0x43b   : > { %v18742_v56 = vadd.f32 %v10561_v26, %v10234_v57  ;;  %v10237_v13 = vadd.f32 %v15003_v11, %v18649_v54 }
 0x43c   : > { %v10149_v8 = vpop.f32.mrf.mxu1  ;;  %v10571_v46 = vpop.f32.mrf.mxu0 }
 0x43d   : > { %v18745_v30 = vadd.f32 %v15059_v18, %v10237_v13  ;;  %v10236_v12 = vadd.f32 %v10149_v8, %v18652_v39 }
 0x43e   : > { %v15006_v2 = vpop.f32.mrf.mxu1  ;;  %v15062_v52 = vpop.f32.mrf.mxu0 }
 0x43f   : > { %v18748_v47 = vadd.f32 %v10571_v46, %v10236_v12  ;;  %v10239_v20 = vadd.f32 %v15006_v2, %v18655_v9 }
 0x440   : > { %v10159_v43 = vpop.f32.mrf.mxu1  ;;  %v10581_v29 = vpop.f32.mrf.mxu0 }
 0x441   : > { %v18751_v63 = vadd.f32 %v15062_v52, %v10239_v20  ;;  %v10238_v16 = vadd.f32 %v10159_v43, %v18658_v15 }
 0x442   : > { %v15009_v24 = vpop.f32.mrf.mxu1  ;;  %v15065_v54 = vpop.f32.mrf.mxu0 }
 0x443   : > { %v18754_v53 = vadd.f32 %v10581_v29, %v10238_v16  ;;  %v10240_v32 = vadd.f32 %v15009_v24, %v18661_v23 }
 0x444   : > { %v10169_v51 = vpop.f32.mrf.mxu1  ;;  %v10591_v39 = vpop.f32.mrf.mxu0 }
 0x445   : > { %v18757_v28 = vadd.f32 %v15065_v54, %v10240_v32 }
 0x446   : > { %v15012_v22 = vpop.f32.mrf.mxu1  ;;  %v15068_v25 = vpop.f32.mrf.mxu0 }
 0x447   : > { %v10242_v9 = vadd.f32 %v15012_v22, %v18664_v21 }
 0x448   : > { %v10178_v36 = vpop.f32.mrf.mxu1  ;;  %v10600_v6 = vpop.f32.mrf.mxu0 }
 0x449   : > { %v18760_v14 = vadd.f32 %v15068_v25, %v10242_v9  ;;  %v10241_v15 = vadd.f32 %v10178_v36, %v18667_v62 }
 0x44a   : > { %v15015_v3 = vpop.f32.mrf.mxu1  ;;  %v15071_v55 = vpop.f32.mrf.mxu0 }
 0x44b   : > { %v18763_v17 = vadd.f32 %v10600_v6, %v10241_v15  ;;  %v10244_v23 = vadd.f32 %v15015_v3, %v18670_v41 }
 0x44c   : > { %v10188_v37 = vpop.f32.mrf.mxu1  ;;  %v10610_v50 = vpop.f32.mrf.mxu0 }
 0x44d   : > { %v18766_v26 = vadd.f32 %v15071_v55, %v10244_v23  ;;  %v10243_v57 = vadd.f32 %v10188_v37, %v18673_v31 }
 0x44e   : > { %v15018_v21 = vpop.f32.mrf.mxu1  ;;  %v15074_v11 = vpop.f32.mrf.mxu0 }
 0x44f   : > { %v18769_v18 = vadd.f32 %v10610_v50, %v10243_v57  ;;  %v10246_v13 = vadd.f32 %v15018_v21, %v18676_v5 }
 0x450   : > { %v10198_v62 = vpop.f32.mrf.mxu1  ;;  %v10620_v8 = vpop.f32.mrf.mxu0 }
 0x451   : > { %v18772_v46 = vadd.f32 %v15074_v11, %v10246_v13  ;;  %v10245_v12 = vadd.f32 %v10198_v62, %v18679_v44 }
 0x452   : > { %v15021_v41 = vpop.f32.mrf.mxu1  ;;  %v15077_v2 = vpop.f32.mrf.mxu0 }
 0x453   : > { %v18775_v52 = vadd.f32 %v10620_v8, %v10245_v12 }
 0x454   : > { %v10208_v20 = vpop.f32.mrf.mxu1  ;;  %v10630_v43 = vpop.f32.mrf.mxu0 }
 0x455   : > { %v10247_v31 = vadd.f32 %v10208_v20, %v18682_v1 }
 0x456   : > { %v15082_v29 = vpop.f32.mrf.mxu1  ;;  %v15138_v16 = vpop.f32.mrf.mxu0 }
 0x457   : > { %v18779_v24 = vadd.f32 %v10630_v43, %v10247_v31  ;;  %v11061_v5 = vadd.f32 %v15082_v29, %v18685_v49 }
 0x458   : > { %v10885_v44 = vpop.f32.mrf.mxu1  ;;  %v11307_v54 = vpop.f32.mrf.mxu0 }
 0x459   : > { %v11483_v32 = vadd.f32 %v15138_v16, %v11061_v5  ;;  %v11060_v1 = vadd.f32 %v10885_v44, %v18688_v7 }
 0x45a   : > { %v15085_v51 = vpop.f32.mrf.mxu1  ;;  %v15141_v39 = vpop.f32.mrf.mxu0 }
 0x45b   : > { %11516 = vst.msk [vmem:[%s18785_s27 + $0x8] sm:$0x3f] %vm11514_vm2, %v11483_v32  ;;  %v11482_v49 = vadd.f32 %v11307_v54, %v11060_v1  ;;  %v11063_v22 = vadd.f32 %v15085_v51, %v18691_v61 }
 0x45c   : > { %v10895_v25 = vpop.f32.mrf.mxu1  ;;  %v11317_v9 = vpop.f32.mrf.mxu0 }
 0x45d   : > { %11515 = vst.msk [vmem:[%s18785_s27] sm:$0x3f] %vm11514_vm2, %v11482_v49  ;;  %v11485_v36 = vadd.f32 %v15141_v39, %v11063_v22  ;;  %v11062_v6 = vadd.f32 %v10895_v25, %v18694_v48 }
 0x45e   : > { %v15088_v15 = vpop.f32.mrf.mxu1  ;;  %v15144_v3 = vpop.f32.mrf.mxu0 }
 0x45f   : > { %11518 = vst.msk [vmem:[%s18785_s27 + $0x18] sm:$0x3f] %vm11514_vm2, %v11485_v36  ;;  %v11484_v7 = vadd.f32 %v11317_v9, %v11062_v6  ;;  %v11065_v55 = vadd.f32 %v15088_v15, %v18697_v10 }
 0x460   : > { %v10905_v23 = vpop.f32.mrf.mxu1  ;;  %v11327_v37 = vpop.f32.mrf.mxu0 }
 0x461   : > { %11517 = vst.msk [vmem:[%s18785_s27 + $0x10] sm:$0x3f] %vm11514_vm2, %v11484_v7  ;;  %v11487_v61 = vadd.f32 %v15144_v3, %v11065_v55  ;;  %v11064_v50 = vadd.f32 %v10905_v23, %v18700_v33 }
 0x462   : > { %v15091_v57 = vpop.f32.mrf.mxu1  ;;  %v15147_v21 = vpop.f32.mrf.mxu0 }
 0x463   : > { %11520 = vst.msk [vmem:[%s18785_s27 + $0x28] sm:$0x3f] %vm11514_vm2, %v11487_v61  ;;  %v11486_v48 = vadd.f32 %v11327_v37, %v11064_v50  ;;  %v11067_v11 = vadd.f32 %v15091_v57, %v18703_v0 }
 0x464   : > { %v10915_v13 = vpop.f32.mrf.mxu1  ;;  %v11337_v62 = vpop.f32.mrf.mxu0 }
 0x465   : > { %11519 = vst.msk [vmem:[%s18785_s27 + $0x20] sm:$0x3f] %vm11514_vm2, %v11486_v48  ;;  %v11489_v10 = vadd.f32 %v15147_v21, %v11067_v11  ;;  %v11066_v8 = vadd.f32 %v10915_v13, %v18706_v40 }
 0x466   : > { %v15094_v12 = vpop.f32.mrf.mxu1  ;;  %v15150_v41 = vpop.f32.mrf.mxu0 }
 0x467   : > { %11522 = vst.msk [vmem:[%s18785_s27 + $0x38] sm:$0x3f] %vm11514_vm2, %v11489_v10  ;;  %v11488_v33 = vadd.f32 %v11337_v62, %v11066_v8  ;;  %v11068_v2 = vadd.f32 %v15094_v12, %v18709_v19 }
 0x468   : > { %v10925_v20 = vpop.f32.mrf.mxu1  ;;  %v11347_v43 = vpop.f32.mrf.mxu0 }
 0x469   : > { %11521 = vst.msk [vmem:[%s18785_s27 + $0x30] sm:$0x3f] %vm11514_vm2, %v11488_v33  ;;  %v11490_v0 = vadd.f32 %v15150_v41, %v11068_v2 }
 0x46a   : > { %v15097_v31 = vpop.f32.mrf.mxu1  ;;  %v15153_v29 = vpop.f32.mrf.mxu0 }
 0x46b   : > { %11523 = vst.msk [vmem:[%s18785_s27 + $0x40] sm:$0x3f] %vm11514_vm2, %v11490_v0  ;;  %v11070_v40 = vadd.f32 %v15097_v31, %v18712_v58 }
 0x46c   : > { %v10934_v16 = vpop.f32.mrf.mxu1  ;;  %v11356_v5 = vpop.f32.mrf.mxu0 }
 0x46d   : > { %v11492_v44 = vadd.f32 %v15153_v29, %v11070_v40  ;;  %v11069_v54 = vadd.f32 %v10934_v16, %v18715_v42 }
 0x46e   : > { %v15100_v32 = vpop.f32.mrf.mxu1  ;;  %v15156_v19 = vpop.f32.mrf.mxu0 }
 0x46f   : > { %11525 = vst.msk [vmem:[%s18785_s27 + $0x50] sm:$0x3f] %vm11514_vm2, %v11492_v44  ;;  %v11491_v1 = vadd.f32 %v11356_v5, %v11069_v54  ;;  %v11072_v51 = vadd.f32 %v15100_v32, %v18718_v34 }
 0x470   : > { %v10944_v39 = vpop.f32.mrf.mxu1  ;;  %v11366_v49 = vpop.f32.mrf.mxu0 }
 0x471   : > { %11524 = vst.msk [vmem:[%s18785_s27 + $0x48] sm:$0x3f] %vm11514_vm2, %v11491_v1  ;;  %v11494_v58 = vadd.f32 %v15156_v19, %v11072_v51  ;;  %v11071_v22 = vadd.f32 %v10944_v39, %v18721_v35 }
 0x472   : > { %v15103_v25 = vpop.f32.mrf.mxu1  ;;  %v15159_v9 = vpop.f32.mrf.mxu0 }
 0x473   : > { %11527 = vst.msk [vmem:[%s18785_s27 + $0x60] sm:$0x3f] %vm11514_vm2, %v11494_v58  ;;  %v11493_v42 = vadd.f32 %v11366_v49, %v11071_v22  ;;  %v11074_v36 = vadd.f32 %v15103_v25, %v18724_v38 }
 0x474   : > { %v10954_v6 = vpop.f32.mrf.mxu1  ;;  %v11376_v15 = vpop.f32.mrf.mxu0 }
 0x475   : > { %11526 = vst.msk [vmem:[%s18785_s27 + $0x58] sm:$0x3f] %vm11514_vm2, %v11493_v42  ;;  %v11496_v34 = vadd.f32 %v15159_v9, %v11074_v36  ;;  %v11073_v3 = vadd.f32 %v10954_v6, %v18727_v45 }
 0x476   : > { %v15106_v7 = vpop.f32.mrf.mxu1  ;;  %v15162_v55 = vpop.f32.mrf.mxu0 }
 0x477   : > { %11529 = vst.msk [vmem:[%s18785_s27 + $0x70] sm:$0x3f] %vm11514_vm2, %v11496_v34  ;;  %v11495_v35 = vadd.f32 %v11376_v15, %v11073_v3 }
 0x478   : > { %v10964_v23 = vpop.f32.mrf.mxu1  ;;  %v11386_v37 = vpop.f32.mrf.mxu0 }
 0x479   : > { %11528 = vst.msk [vmem:[%s18785_s27 + $0x68] sm:$0x3f] %vm11514_vm2, %v11495_v35  ;;  %v11075_v38 = vadd.f32 %v10964_v23, %v18730_v59 }
 0x47a   : > { %v15109_v61 = vpop.f32.mrf.mxu1  ;;  %v15165_v50 = vpop.f32.mrf.mxu0 }
 0x47b   : > { %v11497_v57 = vadd.f32 %v11386_v37, %v11075_v38  ;;  %v11077_v21 = vadd.f32 %v15109_v61, %v18733_v4 }
 0x47c   : > { %v10973_v48 = vpop.f32.mrf.mxu1  ;;  %v11395_v45 = vpop.f32.mrf.mxu0 }
 0x47d   : > { %11530 = vst.msk [vmem:[%s18785_s27 + $0x78] sm:$0x3f] %vm11514_vm2, %v11497_v57  ;;  %v11499_v11 = vadd.f32 %v15165_v50, %v11077_v21  ;;  %v11076_v13 = vadd.f32 %v10973_v48, %v18736_v27 }
 0x47e   : > { %v15112_v62 = vpop.f32.mrf.mxu1  ;;  %v15168_v10 = vpop.f32.mrf.mxu0 }
 0x47f   : > { %11532 = vst.msk [vmem:[%s18785_s27 + $0x88] sm:$0x3f] %vm11514_vm2, %v11499_v11  ;;  %v11498_v59 = vadd.f32 %v11395_v45, %v11076_v13  ;;  %v11079_v8 = vadd.f32 %v15112_v62, %v18739_v60 }
 0x480   : > { %v10983_v12 = vpop.f32.mrf.mxu1  ;;  %v11405_v41 = vpop.f32.mrf.mxu0 }
 0x481   : > { %11531 = vst.msk [vmem:[%s18785_s27 + $0x80] sm:$0x3f] %vm11514_vm2, %v11498_v59  ;;  %v11501_v4 = vadd.f32 %v15168_v10, %v11079_v8  ;;  %v11078_v33 = vadd.f32 %v10983_v12, %v18742_v56 }
 0x482   : > { %v15115_v2 = vpop.f32.mrf.mxu1  ;;  %v15171_v20 = vpop.f32.mrf.mxu0 }
 0x483   : > { %11534 = vst.msk [vmem:[%s18785_s27 + $0x98] sm:$0x3f] %vm11514_vm2, %v11501_v4  ;;  %v11500_v27 = vadd.f32 %v11405_v41, %v11078_v33  ;;  %v11081_v43 = vadd.f32 %v15115_v2, %v18745_v30 }
 0x484   : > { %v10993_v0 = vpop.f32.mrf.mxu1  ;;  %v11415_v31 = vpop.f32.mrf.mxu0 }
 0x485   : > { %11533 = vst.msk [vmem:[%s18785_s27 + $0x90] sm:$0x3f] %vm11514_vm2, %v11500_v27  ;;  %v11503_v60 = vadd.f32 %v15171_v20, %v11081_v43  ;;  %v11080_v29 = vadd.f32 %v10993_v0, %v18748_v47 }
 0x486   : > { %v15118_v40 = vpop.f32.mrf.mxu1  ;;  %v15174_v16 = vpop.f32.mrf.mxu0 }
 0x487   : > { %11536 = vst.msk [vmem:[%s18785_s27 + $0xa8] sm:$0x3f] %vm11514_vm2, %v11503_v60  ;;  %v11502_v56 = vadd.f32 %v11415_v31, %v11080_v29  ;;  %v11083_v5 = vadd.f32 %v15118_v40, %v18751_v63 }
 0x488   : > { %v11003_v44 = vpop.f32.mrf.mxu1  ;;  %v11425_v54 = vpop.f32.mrf.mxu0 }
 0x489   : > { %11535 = vst.msk [vmem:[%s18785_s27 + $0xa0] sm:$0x3f] %vm11514_vm2, %v11502_v56  ;;  %v11505_v30 = vadd.f32 %v15174_v16, %v11083_v5  ;;  %v11082_v32 = vadd.f32 %v11003_v44, %v18754_v53 }
 0x48a   : > { %v15121_v19 = vpop.f32.mrf.mxu1  ;;  %v15177_v1 = vpop.f32.mrf.mxu0 }
 0x48b   : > { %11538 = vst.msk [vmem:[%s18785_s27 + $0xb8] sm:$0x3f] %vm11514_vm2, %v11505_v30  ;;  %v11504_v47 = vadd.f32 %v11425_v54, %v11082_v32  ;;  %v11084_v51 = vadd.f32 %v15121_v19, %v18757_v28 }
 0x48c   : > { %v11013_v39 = vpop.f32.mrf.mxu1  ;;  %v11435_v49 = vpop.f32.mrf.mxu0 }
 0x48d   : > { %11537 = vst.msk [vmem:[%s18785_s27 + $0xb0] sm:$0x3f] %vm11514_vm2, %v11504_v47  ;;  %v11506_v63 = vadd.f32 %v15177_v1, %v11084_v51 }
 0x48e   : > { %v15124_v58 = vpop.f32.mrf.mxu1  ;;  %v15180_v22 = vpop.f32.mrf.mxu0 }
 0x48f   : > { %11539 = vst.msk [vmem:[%s18785_s27 + $0xc0] sm:$0x3f] %vm11514_vm2, %v11506_v63  ;;  %v11086_v53 = vadd.f32 %v15124_v58, %v18760_v14 }
 0x490   : > { %v11022_v25 = vpop.f32.mrf.mxu1  ;;  %v11444_v9 = vpop.f32.mrf.mxu0 }
 0x491   : > { %v11508_v42 = vadd.f32 %v15180_v22, %v11086_v53  ;;  %v11085_v36 = vadd.f32 %v11022_v25, %v18763_v17 }
 0x492   : > { %v15127_v6 = vpop.f32.mrf.mxu1  ;;  %v15183_v28 = vpop.f32.mrf.mxu0 }
 0x493   : > { %11541 = vst.msk [vmem:[%s18785_s27 + $0xd0] sm:$0x3f] %vm11514_vm2, %v11508_v42  ;;  %v11507_v15 = vadd.f32 %v11444_v9, %v11085_v36  ;;  %v11088_v34 = vadd.f32 %v15127_v6, %v18766_v26 }
 0x494   : > { %v11032_v3 = vpop.f32.mrf.mxu1  ;;  %v11454_v7 = vpop.f32.mrf.mxu0 }
 0x495   : > { %11540 = vst.msk [vmem:[%s18785_s27 + $0xc8] sm:$0x3f] %vm11514_vm2, %v11507_v15  ;;  %v11510_v14 = vadd.f32 %v15183_v28, %v11088_v34  ;;  %v11087_v55 = vadd.f32 %v11032_v3, %v18769_v18 }
 0x496   : > { %v15130_v35 = vpop.f32.mrf.mxu1  ;;  %v15186_v23 = vpop.f32.mrf.mxu0 }
 0x497   : > { %11543 = vst.msk [vmem:[%s18785_s27 + $0xe0] sm:$0x3f] %vm11514_vm2, %v11510_v14  ;;  %v11509_v17 = vadd.f32 %v11454_v7, %v11087_v55  ;;  %v11090_v37 = vadd.f32 %v15130_v35, %v18772_v46 }
 0x498   : > { %v11042_v38 = vpop.f32.mrf.mxu1  ;;  %v11464_v61 = vpop.f32.mrf.mxu0 }
 0x499   : > { %11542 = vst.msk [vmem:[%s18785_s27 + $0xd8] sm:$0x3f] %vm11514_vm2, %v11509_v17  ;;  %v11512_v26 = vadd.f32 %v15186_v23, %v11090_v37  ;;  %v11089_v50 = vadd.f32 %v11042_v38, %v18775_v52 }
 0x49a   : > { %v15133_v57 = vpop.f32.mrf.mxu1  ;;  %v15189_v21 = vpop.f32.mrf.mxu0 }
 0x49b   : > { %11545 = vst.msk [vmem:[%s18785_s27 + $0xf0] sm:$0x3f] %vm11514_vm2, %v11512_v26  ;;  %v11511_v18 = vadd.f32 %v11464_v61, %v11089_v50 }
 0x49c   : > { %v11052_v48 = vpop.f32.mrf.mxu1  ;;  %v11474_v11 = vpop.f32.mrf.mxu0 }
 0x49d   : > { %11544 = vst.msk [vmem:[%s18785_s27 + $0xe8] sm:$0x3f] %vm11514_vm2, %v11511_v18  ;;  %v11091_v45 = vadd.f32 %v11052_v48, %v18779_v24 }
 0x49f   : > { %v11513_v13 = vadd.f32 %v11474_v11, %v11091_v45 }
 0x4a1   : > { %11546 = vst.msk [vmem:[%s18785_s27 + $0xf8] sm:$0x3f] %vm11514_vm2, %v11513_v13 }
 0x4a2 PF: > { %s12_s11 = sadd.s32 1, %s15239_s11   ;;  %s18894_s9 = smov %s15235_s10 }
 0x4a3   : > { %p9_p5 = scmp.ge.s32.totalorder %s12_s11, 4   ;;  %s18895_s10 = smov %s18897_s12 }
 0x4a5   :  { %11 = sbr.rel (!%p9_p5) target bundleno = 2 (0x2), region = 84 }

</bundles_post_ra>
